<compile_context>
chip_gen: v5e
topology: v5e:2x2
jax: 0.10.0
libtpu: 0.0.40
codegen_flags: <defaults>
</compile_context>

<pallas_src>
import functools

import jax
import jax.numpy as jnp
from jax import lax
from jax.experimental import pallas as pl
from jax.experimental.pallas import tpu as pltpu

_CHUNK = 256  # lane width of the stage-A compute slabs (multiple of 128)


def _round_up(x, m):
    return ((x + m - 1) // m) * m


def _elu(x):
    # ELU with alpha=1 (nn.ELU default); exp(x)-1 on the clamped negative side.
    return jnp.where(x > 0, x, jnp.exp(jnp.minimum(x, 0.0)) - 1.0)


def eegnet_kernel(colA_ref, w12_ref, b12_ref, p1_ref, w3_ref, b3_ref, p2_ref,
                  o_ref, z2_ref, col2_ref, *, K2, F2p, L_Cp, CW):
    L_Ap = z2_ref.shape[1]
    w12 = w12_ref[...]                       # (F2p, KCp) bf16, loaded once
    b12 = b12_ref[...]                       # (F2p, 1)  f32

    # ---- fused conv1+bn1+conv2+bn2 -> ELU, chunked over 256-lane slabs ----
    for s in range(L_Ap // CW):
        lo = s * CW
        z = jnp.dot(w12, colA_ref[:, lo:lo + CW],
                    preferred_element_type=jnp.float32,
                    precision=lax.Precision.DEFAULT)        # bf16 MXU, f32 acc
        z2_ref[:, lo:lo + CW] = _elu(z + b12).astype(z2_ref.dtype)

    # ---- avg_pool1 (+ re-segmentation / zero padding for block3 'same') ----
    a1 = jnp.dot(z2_ref[...], p1_ref[...],
                 preferred_element_type=jnp.float32,
                 precision=lax.Precision.DEFAULT)           # (F2p, L_Bp) f32
    # TODO(synk): nn.Dropout / training-mode BatchNorm batch statistics are not
    # implemented; eval-mode semantics used (dropout = identity).

    # ---- stage-C im2col (K2 lane-shifted copies of a1, stored bf16) ----
    for k in range(K2):
        col2_ref[k * F2p:(k + 1) * F2p, :] = (
            a1[:, k:k + L_Cp].astype(col2_ref.dtype))

    # ---- fused block3 + bn3 -> ELU ----
    z3 = jnp.dot(w3_ref[...], col2_ref[...],
                 preferred_element_type=jnp.float32,
                 precision=lax.Precision.DEFAULT)           # (F2p, L_Cp) f32
    z3 = _elu(z3 + b3_ref[...])

    # ---- avg_pool2 -> lane-dense 128-wide output block ----
    o_ref[...] = jnp.dot(z3.astype(p2_ref.dtype), p2_ref[...],
                         preferred_element_type=jnp.float32,
                         precision=lax.Precision.DEFAULT)


def eegnet_prepare(params, *, C, T, K1, K2, p1, p2, Nb, mxu_dtype=jnp.bfloat16):
    """One-time prep (hoist out of the per-call path; cache per params/shape):
    fold eval-mode BN affines into the conv weights, pad, cast the MXU operands
    to bf16 and build the pooling / re-segmentation matrices."""
    w1, w2, w3, s1, b1, s2, b2, s3, b3 = params
    F2 = w2.shape[0]
    T1 = T // p1
    T2 = T1 // p2
    SegB = T1 + K2 - 1
    left3 = (K2 - 1) // 2

    F2p = _round_up(F2, 8)
    KC = K1 * C
    KCp = _round_up(KC, 128)

    L_Ap = _round_up(Nb * T, _CHUNK)
    L_C = Nb * SegB
    L_Cp = _round_up(L_C, 128)
    L_Bp = _round_up(L_Cp + K2 - 1, 128)
    Woutp = _round_up(Nb * T2, 128)

    # ---- fold eval-mode BN affines into the conv weights ----
    w1m = w1[:, 0, 0, :]                                    # (F1, K1)
    w2m = w2[:, :, :, 0]                                    # (F2, F1, C)
    w3m = w3[:, :, 0, :]                                    # (F2, F2, K2)

    weff = jnp.einsum('ofc,f,fk->okc', w2m, s1, w1m)        # (F2, K1, C)
    weff = s2[:, None, None] * weff
    beff = s2 * jnp.einsum('ofc,f->o', w2m, b1) + b2        # (F2,)

    w12 = jnp.zeros((F2p, KCp), jnp.float32).at[:F2, :KC].set(weff.reshape(F2, KC))
    b12 = jnp.zeros((F2p, 1), jnp.float32).at[:F2, 0].set(beff)

    w3eff = s3[:, None, None] * jnp.transpose(w3m, (0, 2, 1))   # (F2, K2, F2)
    w3k = jnp.zeros((F2p, K2, F2p), jnp.float32).at[:F2, :, :F2].set(w3eff)
    w3k = w3k.reshape(F2p, K2 * F2p)
    b3k = jnp.zeros((F2p, 1), jnp.float32).at[:F2, 0].set(b3)

    # ---- pool1: avg(p1) + re-segmentation with 'same' zero padding ----
    a = jnp.arange(L_Ap)
    n_a, l_a = a // T, a % T
    col_a = n_a * SegB + left3 + l_a // p1
    valid_a = (a < Nb * T) & (l_a < p1 * T1)
    P1 = jnp.where(valid_a[:, None] & (jnp.arange(L_Bp)[None, :] == col_a[:, None]),
                   1.0 / p1, 0.0)                           # (L_Ap, L_Bp)

    # ---- pool2 ----
    c = jnp.arange(L_Cp)
    n_c, j_c = c // SegB, c % SegB
    col_c = n_c * T2 + j_c // p2
    valid_c = (c < L_C) & (j_c < p2 * T2)
    P2 = jnp.where(valid_c[:, None] & (jnp.arange(Woutp)[None, :] == col_c[:, None]),
                   1.0 / p2, 0.0)                           # (L_Cp, Woutp)

    return (w12.astype(mxu_dtype), b12, P1.astype(mxu_dtype),
            w3k.astype(mxu_dtype), b3k, P2.astype(mxu_dtype))


def eegnet_forward(x, consts, *, F2, K1, K2, p1, p2, Nb):
    """x: (N, 1, C, T) float32 NCHW. Returns (N, F2, 1, (T//p1)//p2)."""
    N, one, C, T = x.shape
    assert one == 1
    w12, b12, P1, w3k, b3k, P2 = consts
    mxu_dtype = w12.dtype
    F2p, KCp = w12.shape
    L_Ap, L_Bp = P1.shape
    L_Cp, Woutp = P2.shape
    assert w3k.shape[1] == K2 * F2p and L_Ap % _CHUNK == 0

    T1 = T // p1
    T2 = T1 // p2
    left1 = (K1 - 1) // 2
    right1 = (K1 - 1) - left1
    KC = K1 * C

    Ngrid = -(-N // Nb)
    Npad = Ngrid * Nb

    # ---- stage-A im2col built in the wrapper (no in-kernel shifted copies) ----
    x3 = x[:, 0, :, :].astype(mxu_dtype)                          # (N, C, T)
    xp = jnp.pad(x3, ((0, Npad - N), (0, 0), (left1, right1)))    # (Npad, C, T+K1-1)
    colA = jnp.stack([xp[:, :, k:k + T] for k in range(K1)], axis=0)  # (K1,Npad,C,T)
    colA = colA.transpose(0, 2, 1, 3)                             # (K1, C, Npad, T)
    colA = colA.reshape(KC, Ngrid, Nb * T)                        # row = k*C + c
    colA = jnp.pad(colA, ((0, KCp - KC), (0, 0), (0, L_Ap - Nb * T)))
    colA = colA.reshape(KCp, Ngrid * L_Ap)

    kernel = functools.partial(eegnet_kernel, K2=K2, F2p=F2p, L_Cp=L_Cp, CW=_CHUNK)
    out = pl.pallas_call(
        kernel,
        out_shape=jax.ShapeDtypeStruct((F2p, Ngrid * Woutp), jnp.float32),
        grid=(Ngrid,),
        in_specs=[
            pl.BlockSpec((KCp, L_Ap), lambda g: (0, g)),        # im2col slab (per group)
            pl.BlockSpec((F2p, KCp), lambda g: (0, 0)),         # fused conv1..bn2 weight
            pl.BlockSpec((F2p, 1), lambda g: (0, 0)),           # fused bias
            pl.BlockSpec((L_Ap, L_Bp), lambda g: (0, 0)),       # pool1 + re-pad matrix
            pl.BlockSpec((F2p, K2 * F2p), lambda g: (0, 0)),    # fused conv3+bn3 weight
            pl.BlockSpec((F2p, 1), lambda g: (0, 0)),           # bn3 shift
            pl.BlockSpec((L_Cp, Woutp), lambda g: (0, 0)),      # pool2 matrix
        ],
        out_specs=pl.BlockSpec((F2p, Woutp), lambda g: (0, g)),
        scratch_shapes=[
            pltpu.VMEM((F2p, L_Ap), mxu_dtype),                 # staged ELU(z2), bf16
            pltpu.VMEM((K2 * F2p, L_Cp), mxu_dtype),            # im2col for block3
        ],
        compiler_params=pltpu.CompilerParams(
            dimension_semantics=("parallel",),
            vmem_limit_bytes=32 * 1024 * 1024),
    )(colA, w12, b12, P1, w3k, b3k, P2)

    # ---- unpack: (F2p, Ngrid*Woutp) -> (N, F2, 1, T2) NCHW ----
    out = out.reshape(F2p, Ngrid, Woutp)[:F2, :, :Nb * T2]
    out = out.reshape(F2, Ngrid, Nb, T2).transpose(1, 2, 0, 3).reshape(Npad, F2, T2)
    return out[:N, :, None, :]


# ---------------------------------------------------------------------------
# Deterministic parameter init (synthetic; no checkpoint) and pure-JAX reference
# ---------------------------------------------------------------------------
def init_params(key, *, F1, D, C, K1, K2):
    F2 = F1 * D
    ks = jax.random.split(key, 6)
    w1 = 0.2 * jax.random.normal(ks[0], (F1, 1, 1, K1), jnp.float32)
    w2 = 0.1 * jax.random.normal(ks[1], (F2, F1, C, 1), jnp.float32)
    w3 = 0.1 * jax.random.normal(ks[2], (F2, F2, 1, K2), jnp.float32)

    def bn(k, F):
        k1, k2, k3, k4 = jax.random.split(k, 4)
        gamma = 1.0 + 0.1 * jax.random.normal(k1, (F,), jnp.float32)
        beta = 0.1 * jax.random.normal(k2, (F,), jnp.float32)
        mean = 0.05 * jax.random.normal(k3, (F,), jnp.float32)
        var = 1.0 + 0.1 * jax.random.uniform(k4, (F,), jnp.float32)
        eps = 1e-5
        scale = gamma / jnp.sqrt(var + eps)
        shift = beta - mean * scale
        return scale, shift

    s1, b1 = bn(ks[3], F1)
    s2, b2 = bn(ks[4], F2)
    s3, b3 = bn(ks[5], F2)
    return (w1, w2, w3, s1, b1, s2, b2, s3, b3)


def eegnet_ref(x, params, *, K1, K2, p1, p2):
    w1, w2, w3, s1, b1, s2, b2, s3, b3 = params
    dn = ("NCHW", "OIHW", "NCHW")
    hp = lax.Precision.HIGHEST

    left1 = (K1 - 1) // 2
    y = lax.conv_general_dilated(x, w1, (1, 1),
                                 [(0, 0), (left1, K1 - 1 - left1)],
                                 dimension_numbers=dn, precision=hp)
    y = y * s1[None, :, None, None] + b1[None, :, None, None]
    y = lax.conv_general_dilated(y, w2, (1, 1), [(0, 0), (0, 0)],
                                 dimension_numbers=dn, precision=hp)
    y = y * s2[None, :, None, None] + b2[None, :, None, None]
    y = jnp.where(y > 0, y, jnp.expm1(jnp.minimum(y, 0.0)))
    N, F2, H, T = y.shape
    T1 = T // p1
    y = y[..., :T1 * p1].reshape(N, F2, H, T1, p1).mean(-1)

    left3 = (K2 - 1) // 2
    y = lax.conv_general_dilated(y, w3, (1, 1),
                                 [(0, 0), (left3, K2 - 1 - left3)],
                                 dimension_numbers=dn, precision=hp)
    y = y * s3[None, :, None, None] + b3[None, :, None, None]
    y = jnp.where(y > 0, y, jnp.expm1(jnp.minimum(y, 0.0)))
    Tb = y.shape[-1]
    T2 = Tb // p2
    y = y[..., :T2 * p2].reshape(N, F2, H, T2, p2).mean(-1)
    return y


if __name__ == "__main__":
    # Module-default hyperparameters; small batch / sequence for the test.
    F1, D, eeg_chans = 16, 2, 22
    K1, K2 = 32, 16          # temporal / separable kernel sizes
    p1, p2 = 8, 4            # pooling factors
    N, T = 16, 128
    Nb = 8                   # samples per grid step -> Ngrid=2 (both v7x TCs busy)
    F2 = F1 * D

    key = jax.random.PRNGKey(0)
    kx, kp = jax.random.split(key)
    x = jax.random.normal(kx, (N, 1, eeg_chans, T), jnp.float32)
    params = init_params(kp, F1=F1, D=D, C=eeg_chans, K1=K1, K2=K2)

    # One-time prep (BN folding, padding, bf16 cast, pool matrices) hoisted out
    # of the per-call path.
    consts = eegnet_prepare(params, C=eeg_chans, T=T, K1=K1, K2=K2,
                            p1=p1, p2=p2, Nb=Nb)
    fwd = jax.jit(functools.partial(eegnet_forward, F2=F2, K1=K1, K2=K2,
                                    p1=p1, p2=p2, Nb=Nb))

    out = jax.block_until_ready(fwd(x, consts))
    ref = jax.block_until_ready(eegnet_ref(x, params, K1=K1, K2=K2, p1=p1, p2=p2))

    assert out.shape == ref.shape, (out.shape, ref.shape)
    max_err = float(jnp.max(jnp.abs(out - ref)))
    rel_err = float(jnp.linalg.norm(out - ref) / (jnp.linalg.norm(ref) + 1e-12))
    # bf16 MXU operands with f32 accumulation vs the full-f32 reference.
    if not (max_err < 0.1 and rel_err < 0.04):
        raise SystemExit(
            f"mismatch vs reference: max_abs={max_err:.4g} rel_fro={rel_err:.4g}")
    print("KERNEL_OK")
</pallas_src>

<mosaic_0001>
module attributes {stable_mosaic.version = 11 : i64} {
  func.func @eegnet_kernel(%arg0: i32, %arg1: memref<768x1024xbf16, #tpu.memory_space<vmem>>, %arg2: memref<32x768xbf16, #tpu.memory_space<vmem>>, %arg3: memref<32x1xf32, #tpu.memory_space<vmem>>, %arg4: memref<1024x384xbf16, #tpu.memory_space<vmem>>, %arg5: memref<32x512xbf16, #tpu.memory_space<vmem>>, %arg6: memref<32x1xf32, #tpu.memory_space<vmem>>, %arg7: memref<256x128xbf16, #tpu.memory_space<vmem>>, %arg8: memref<32x128xf32, #tpu.memory_space<vmem>>, %arg9: memref<32x1024xbf16, #tpu.memory_space<vmem>>, %arg10: memref<512x256xbf16, #tpu.memory_space<vmem>>) attributes {dimension_semantics = [#tpu.dimension_semantics<parallel>], iteration_bounds = array<i64: 2>, scalar_prefetch = 0 : i64, scratch_operands = 2 : i64, tpu.core_type = #tpu.core_type<tc>, window_params = [{transform_indices = @transform_0, window_bounds = array<i64: 768, 1024>}, {pipeline_mode = #tpu.pipeline_mode<synchronous>, transform_indices = @transform_1, window_bounds = array<i64: 32, 768>}, {pipeline_mode = #tpu.pipeline_mode<synchronous>, transform_indices = @transform_2, window_bounds = array<i64: 32, 1>}, {pipeline_mode = #tpu.pipeline_mode<synchronous>, transform_indices = @transform_3, window_bounds = array<i64: 1024, 384>}, {pipeline_mode = #tpu.pipeline_mode<synchronous>, transform_indices = @transform_4, window_bounds = array<i64: 32, 512>}, {pipeline_mode = #tpu.pipeline_mode<synchronous>, transform_indices = @transform_5, window_bounds = array<i64: 32, 1>}, {pipeline_mode = #tpu.pipeline_mode<synchronous>, transform_indices = @transform_6, window_bounds = array<i64: 256, 128>}, {transform_indices = @transform_7, window_bounds = array<i64: 32, 128>}]} {
    %c0 = arith.constant 0 : index
    %c0_0 = arith.constant 0 : index
    %0 = vector.load %arg2[%c0, %c0_0] : memref<32x768xbf16, #tpu.memory_space<vmem>>, vector<32x768xbf16>
    %c0_1 = arith.constant 0 : index
    %c0_2 = arith.constant 0 : index
    %1 = vector.load %arg3[%c0_1, %c0_2] : memref<32x1xf32, #tpu.memory_space<vmem>>, vector<32x1xf32>
    %c0_3 = arith.constant 0 : index
    %c0_4 = arith.constant 0 : index
    %2 = vector.load %arg1[%c0_3, %c0_4] : memref<768x1024xbf16, #tpu.memory_space<vmem>>, vector<768x256xbf16>
    %cst = arith.constant dense<0.000000e+00> : vector<32x256xf32>
    %3 = tpu.matmul %0, %2, %cst {dimension_numbers = #tpu.dot_dimension_numbers<[1], [0], [0], [1], [0, 0, 1, 1], [], []>} : vector<32x768xbf16>, vector<768x256xbf16>, vector<32x256xf32> -> vector<32x256xf32>
    %4 = vector.broadcast %1 : vector<32x1xf32> to vector<32x256xf32>
    %5 = arith.addf %3, %4 : vector<32x256xf32>
    %cst_5 = arith.constant 0.000000e+00 : f32
    %6 = vector.broadcast %cst_5 : f32 to vector<32x256xf32>
    %7 = arith.cmpf ogt, %5, %6 : vector<32x256xf32>
    %cst_6 = arith.constant 0.000000e+00 : f32
    %8 = vector.broadcast %cst_6 : f32 to vector<32x256xf32>
    %9 = arith.minimumf %5, %8 : vector<32x256xf32>
    %10 = math.exp %9 : vector<32x256xf32>
    %cst_7 = arith.constant 1.000000e+00 : f32
    %11 = vector.broadcast %cst_7 : f32 to vector<32x256xf32>
    %12 = arith.subf %10, %11 : vector<32x256xf32>
    %13 = arith.select %7, %5, %12 : vector<32x256xi1>, vector<32x256xf32>
    %14 = arith.truncf %13 : vector<32x256xf32> to vector<32x256xbf16>
    %c0_8 = arith.constant 0 : index
    %c0_9 = arith.constant 0 : index
    %15 = vector.load %arg9[%c0_8, %c0_9] : memref<32x1024xbf16, #tpu.memory_space<vmem>>, vector<32x256xbf16>
    tpu.vector_store %arg9[%c0_8, %c0_9], %14 {strides = array<i32>} : memref<32x1024xbf16, #tpu.memory_space<vmem>>, vector<32x256xbf16>,
    %c0_10 = arith.constant 0 : index
    %c256 = arith.constant 256 : index
    %16 = vector.load %arg1[%c0_10, %c256] : memref<768x1024xbf16, #tpu.memory_space<vmem>>, vector<768x256xbf16>
    %cst_11 = arith.constant dense<0.000000e+00> : vector<32x256xf32>
    %17 = tpu.matmul %0, %16, %cst_11 {dimension_numbers = #tpu.dot_dimension_numbers<[1], [0], [0], [1], [0, 0, 1, 1], [], []>} : vector<32x768xbf16>, vector<768x256xbf16>, vector<32x256xf32> -> vector<32x256xf32>
    %18 = vector.broadcast %1 : vector<32x1xf32> to vector<32x256xf32>
    %19 = arith.addf %17, %18 : vector<32x256xf32>
    %cst_12 = arith.constant 0.000000e+00 : f32
    %20 = vector.broadcast %cst_12 : f32 to vector<32x256xf32>
    %21 = arith.cmpf ogt, %19, %20 : vector<32x256xf32>
    %cst_13 = arith.constant 0.000000e+00 : f32
    %22 = vector.broadcast %cst_13 : f32 to vector<32x256xf32>
    %23 = arith.minimumf %19, %22 : vector<32x256xf32>
    %24 = math.exp %23 : vector<32x256xf32>
    %cst_14 = arith.constant 1.000000e+00 : f32
    %25 = vector.broadcast %cst_14 : f32 to vector<32x256xf32>
    %26 = arith.subf %24, %25 : vector<32x256xf32>
    %27 = arith.select %21, %19, %26 : vector<32x256xi1>, vector<32x256xf32>
    %28 = arith.truncf %27 : vector<32x256xf32> to vector<32x256xbf16>
    %c0_15 = arith.constant 0 : index
    %c256_16 = arith.constant 256 : index
    %29 = vector.load %arg9[%c0_15, %c256_16] : memref<32x1024xbf16, #tpu.memory_space<vmem>>, vector<32x256xbf16>
    tpu.vector_store %arg9[%c0_15, %c256_16], %28 {strides = array<i32>} : memref<32x1024xbf16, #tpu.memory_space<vmem>>, vector<32x256xbf16>,
    %c0_17 = arith.constant 0 : index
    %c512 = arith.constant 512 : index
    %30 = vector.load %arg1[%c0_17, %c512] : memref<768x1024xbf16, #tpu.memory_space<vmem>>, vector<768x256xbf16>
    %cst_18 = arith.constant dense<0.000000e+00> : vector<32x256xf32>
    %31 = tpu.matmul %0, %30, %cst_18 {dimension_numbers = #tpu.dot_dimension_numbers<[1], [0], [0], [1], [0, 0, 1, 1], [], []>} : vector<32x768xbf16>, vector<768x256xbf16>, vector<32x256xf32> -> vector<32x256xf32>
    %32 = vector.broadcast %1 : vector<32x1xf32> to vector<32x256xf32>
    %33 = arith.addf %31, %32 : vector<32x256xf32>
    %cst_19 = arith.constant 0.000000e+00 : f32
    %34 = vector.broadcast %cst_19 : f32 to vector<32x256xf32>
    %35 = arith.cmpf ogt, %33, %34 : vector<32x256xf32>
    %cst_20 = arith.constant 0.000000e+00 : f32
    %36 = vector.broadcast %cst_20 : f32 to vector<32x256xf32>
    %37 = arith.minimumf %33, %36 : vector<32x256xf32>
    %38 = math.exp %37 : vector<32x256xf32>
    %cst_21 = arith.constant 1.000000e+00 : f32
    %39 = vector.broadcast %cst_21 : f32 to vector<32x256xf32>
    %40 = arith.subf %38, %39 : vector<32x256xf32>
    %41 = arith.select %35, %33, %40 : vector<32x256xi1>, vector<32x256xf32>
    %42 = arith.truncf %41 : vector<32x256xf32> to vector<32x256xbf16>
    %c0_22 = arith.constant 0 : index
    %c512_23 = arith.constant 512 : index
    %43 = vector.load %arg9[%c0_22, %c512_23] : memref<32x1024xbf16, #tpu.memory_space<vmem>>, vector<32x256xbf16>
    tpu.vector_store %arg9[%c0_22, %c512_23], %42 {strides = array<i32>} : memref<32x1024xbf16, #tpu.memory_space<vmem>>, vector<32x256xbf16>,
    %c0_24 = arith.constant 0 : index
    %c768 = arith.constant 768 : index
    %44 = vector.load %arg1[%c0_24, %c768] : memref<768x1024xbf16, #tpu.memory_space<vmem>>, vector<768x256xbf16>
    %cst_25 = arith.constant dense<0.000000e+00> : vector<32x256xf32>
    %45 = tpu.matmul %0, %44, %cst_25 {dimension_numbers = #tpu.dot_dimension_numbers<[1], [0], [0], [1], [0, 0, 1, 1], [], []>} : vector<32x768xbf16>, vector<768x256xbf16>, vector<32x256xf32> -> vector<32x256xf32>
    %46 = vector.broadcast %1 : vector<32x1xf32> to vector<32x256xf32>
    %47 = arith.addf %45, %46 : vector<32x256xf32>
    %cst_26 = arith.constant 0.000000e+00 : f32
    %48 = vector.broadcast %cst_26 : f32 to vector<32x256xf32>
    %49 = arith.cmpf ogt, %47, %48 : vector<32x256xf32>
    %cst_27 = arith.constant 0.000000e+00 : f32
    %50 = vector.broadcast %cst_27 : f32 to vector<32x256xf32>
    %51 = arith.minimumf %47, %50 : vector<32x256xf32>
    %52 = math.exp %51 : vector<32x256xf32>
    %cst_28 = arith.constant 1.000000e+00 : f32
    %53 = vector.broadcast %cst_28 : f32 to vector<32x256xf32>
    %54 = arith.subf %52, %53 : vector<32x256xf32>
    %55 = arith.select %49, %47, %54 : vector<32x256xi1>, vector<32x256xf32>
    %56 = arith.truncf %55 : vector<32x256xf32> to vector<32x256xbf16>
    %c0_29 = arith.constant 0 : index
    %c768_30 = arith.constant 768 : index
    %57 = vector.load %arg9[%c0_29, %c768_30] : memref<32x1024xbf16, #tpu.memory_space<vmem>>, vector<32x256xbf16>
    tpu.vector_store %arg9[%c0_29, %c768_30], %56 {strides = array<i32>} : memref<32x1024xbf16, #tpu.memory_space<vmem>>, vector<32x256xbf16>,
    %c0_31 = arith.constant 0 : index
    %c0_32 = arith.constant 0 : index
    %58 = vector.load %arg9[%c0_31, %c0_32] : memref<32x1024xbf16, #tpu.memory_space<vmem>>, vector<32x1024xbf16>
    %c0_33 = arith.constant 0 : index
    %c0_34 = arith.constant 0 : index
    %59 = vector.load %arg4[%c0_33, %c0_34] : memref<1024x384xbf16, #tpu.memory_space<vmem>>, vector<1024x384xbf16>
    %cst_35 = arith.constant dense<0.000000e+00> : vector<32x384xf32>
    %60 = tpu.matmul %58, %59, %cst_35 {dimension_numbers = #tpu.dot_dimension_numbers<[1], [0], [0], [1], [0, 0, 1, 1], [], []>} : vector<32x1024xbf16>, vector<1024x384xbf16>, vector<32x384xf32> -> vector<32x384xf32>
    %61 = vector.extract_strided_slice %60 {offsets = [0, 0], sizes = [32, 256], strides = [1, 1]} : vector<32x384xf32> to vector<32x256xf32>
    %62 = arith.truncf %61 : vector<32x256xf32> to vector<32x256xbf16>
    %c0_36 = arith.constant 0 : index
    %c0_37 = arith.constant 0 : index
    %63 = vector.load %arg10[%c0_36, %c0_37] : memref<512x256xbf16, #tpu.memory_space<vmem>>, vector<32x256xbf16>
    tpu.vector_store %arg10[%c0_36, %c0_37], %62 {strides = array<i32>} : memref<512x256xbf16, #tpu.memory_space<vmem>>, vector<32x256xbf16>,
    %64 = vector.extract_strided_slice %60 {offsets = [0, 1], sizes = [32, 256], strides = [1, 1]} : vector<32x384xf32> to vector<32x256xf32>
    %65 = arith.truncf %64 : vector<32x256xf32> to vector<32x256xbf16>
    %c32 = arith.constant 32 : index
    %c0_38 = arith.constant 0 : index
    %66 = vector.load %arg10[%c32, %c0_38] : memref<512x256xbf16, #tpu.memory_space<vmem>>, vector<32x256xbf16>
    tpu.vector_store %arg10[%c32, %c0_38], %65 {strides = array<i32>} : memref<512x256xbf16, #tpu.memory_space<vmem>>, vector<32x256xbf16>,
    %67 = vector.extract_strided_slice %60 {offsets = [0, 2], sizes = [32, 256], strides = [1, 1]} : vector<32x384xf32> to vector<32x256xf32>
    %68 = arith.truncf %67 : vector<32x256xf32> to vector<32x256xbf16>
    %c64 = arith.constant 64 : index
    %c0_39 = arith.constant 0 : index
    %69 = vector.load %arg10[%c64, %c0_39] : memref<512x256xbf16, #tpu.memory_space<vmem>>, vector<32x256xbf16>
    tpu.vector_store %arg10[%c64, %c0_39], %68 {strides = array<i32>} : memref<512x256xbf16, #tpu.memory_space<vmem>>, vector<32x256xbf16>,
    %70 = vector.extract_strided_slice %60 {offsets = [0, 3], sizes = [32, 256], strides = [1, 1]} : vector<32x384xf32> to vector<32x256xf32>
    %71 = arith.truncf %70 : vector<32x256xf32> to vector<32x256xbf16>
    %c96 = arith.constant 96 : index
    %c0_40 = arith.constant 0 : index
    %72 = vector.load %arg10[%c96, %c0_40] : memref<512x256xbf16, #tpu.memory_space<vmem>>, vector<32x256xbf16>
    tpu.vector_store %arg10[%c96, %c0_40], %71 {strides = array<i32>} : memref<512x256xbf16, #tpu.memory_space<vmem>>, vector<32x256xbf16>,
    %73 = vector.extract_strided_slice %60 {offsets = [0, 4], sizes = [32, 256], strides = [1, 1]} : vector<32x384xf32> to vector<32x256xf32>
    %74 = arith.truncf %73 : vector<32x256xf32> to vector<32x256xbf16>
    %c128 = arith.constant 128 : index
    %c0_41 = arith.constant 0 : index
    %75 = vector.load %arg10[%c128, %c0_41] : memref<512x256xbf16, #tpu.memory_space<vmem>>, vector<32x256xbf16>
    tpu.vector_store %arg10[%c128, %c0_41], %74 {strides = array<i32>} : memref<512x256xbf16, #tpu.memory_space<vmem>>, vector<32x256xbf16>,
    %76 = vector.extract_strided_slice %60 {offsets = [0, 5], sizes = [32, 256], strides = [1, 1]} : vector<32x384xf32> to vector<32x256xf32>
    %77 = arith.truncf %76 : vector<32x256xf32> to vector<32x256xbf16>
    %c160 = arith.constant 160 : index
    %c0_42 = arith.constant 0 : index
    %78 = vector.load %arg10[%c160, %c0_42] : memref<512x256xbf16, #tpu.memory_space<vmem>>, vector<32x256xbf16>
    tpu.vector_store %arg10[%c160, %c0_42], %77 {strides = array<i32>} : memref<512x256xbf16, #tpu.memory_space<vmem>>, vector<32x256xbf16>,
    %79 = vector.extract_strided_slice %60 {offsets = [0, 6], sizes = [32, 256], strides = [1, 1]} : vector<32x384xf32> to vector<32x256xf32>
    %80 = arith.truncf %79 : vector<32x256xf32> to vector<32x256xbf16>
    %c192 = arith.constant 192 : index
    %c0_43 = arith.constant 0 : index
    %81 = vector.load %arg10[%c192, %c0_43] : memref<512x256xbf16, #tpu.memory_space<vmem>>, vector<32x256xbf16>
    tpu.vector_store %arg10[%c192, %c0_43], %80 {strides = array<i32>} : memref<512x256xbf16, #tpu.memory_space<vmem>>, vector<32x256xbf16>,
    %82 = vector.extract_strided_slice %60 {offsets = [0, 7], sizes = [32, 256], strides = [1, 1]} : vector<32x384xf32> to vector<32x256xf32>
    %83 = arith.truncf %82 : vector<32x256xf32> to vector<32x256xbf16>
    %c224 = arith.constant 224 : index
    %c0_44 = arith.constant 0 : index
    %84 = vector.load %arg10[%c224, %c0_44] : memref<512x256xbf16, #tpu.memory_space<vmem>>, vector<32x256xbf16>
    tpu.vector_store %arg10[%c224, %c0_44], %83 {strides = array<i32>} : memref<512x256xbf16, #tpu.memory_space<vmem>>, vector<32x256xbf16>,
    %85 = vector.extract_strided_slice %60 {offsets = [0, 8], sizes = [32, 256], strides = [1, 1]} : vector<32x384xf32> to vector<32x256xf32>
    %86 = arith.truncf %85 : vector<32x256xf32> to vector<32x256xbf16>
    %c256_45 = arith.constant 256 : index
    %c0_46 = arith.constant 0 : index
    %87 = vector.load %arg10[%c256_45, %c0_46] : memref<512x256xbf16, #tpu.memory_space<vmem>>, vector<32x256xbf16>
    tpu.vector_store %arg10[%c256_45, %c0_46], %86 {strides = array<i32>} : memref<512x256xbf16, #tpu.memory_space<vmem>>, vector<32x256xbf16>,
    %88 = vector.extract_strided_slice %60 {offsets = [0, 9], sizes = [32, 256], strides = [1, 1]} : vector<32x384xf32> to vector<32x256xf32>
    %89 = arith.truncf %88 : vector<32x256xf32> to vector<32x256xbf16>
    %c288 = arith.constant 288 : index
    %c0_47 = arith.constant 0 : index
    %90 = vector.load %arg10[%c288, %c0_47] : memref<512x256xbf16, #tpu.memory_space<vmem>>, vector<32x256xbf16>
    tpu.vector_store %arg10[%c288, %c0_47], %89 {strides = array<i32>} : memref<512x256xbf16, #tpu.memory_space<vmem>>, vector<32x256xbf16>,
    %91 = vector.extract_strided_slice %60 {offsets = [0, 10], sizes = [32, 256], strides = [1, 1]} : vector<32x384xf32> to vector<32x256xf32>
    %92 = arith.truncf %91 : vector<32x256xf32> to vector<32x256xbf16>
    %c320 = arith.constant 320 : index
    %c0_48 = arith.constant 0 : index
    %93 = vector.load %arg10[%c320, %c0_48] : memref<512x256xbf16, #tpu.memory_space<vmem>>, vector<32x256xbf16>
    tpu.vector_store %arg10[%c320, %c0_48], %92 {strides = array<i32>} : memref<512x256xbf16, #tpu.memory_space<vmem>>, vector<32x256xbf16>,
    %94 = vector.extract_strided_slice %60 {offsets = [0, 11], sizes = [32, 256], strides = [1, 1]} : vector<32x384xf32> to vector<32x256xf32>
    %95 = arith.truncf %94 : vector<32x256xf32> to vector<32x256xbf16>
    %c352 = arith.constant 352 : index
    %c0_49 = arith.constant 0 : index
    %96 = vector.load %arg10[%c352, %c0_49] : memref<512x256xbf16, #tpu.memory_space<vmem>>, vector<32x256xbf16>
    tpu.vector_store %arg10[%c352, %c0_49], %95 {strides = array<i32>} : memref<512x256xbf16, #tpu.memory_space<vmem>>, vector<32x256xbf16>,
    %97 = vector.extract_strided_slice %60 {offsets = [0, 12], sizes = [32, 256], strides = [1, 1]} : vector<32x384xf32> to vector<32x256xf32>
    %98 = arith.truncf %97 : vector<32x256xf32> to vector<32x256xbf16>
    %c384 = arith.constant 384 : index
    %c0_50 = arith.constant 0 : index
    %99 = vector.load %arg10[%c384, %c0_50] : memref<512x256xbf16, #tpu.memory_space<vmem>>, vector<32x256xbf16>
    tpu.vector_store %arg10[%c384, %c0_50], %98 {strides = array<i32>} : memref<512x256xbf16, #tpu.memory_space<vmem>>, vector<32x256xbf16>,
    %100 = vector.extract_strided_slice %60 {offsets = [0, 13], sizes = [32, 256], strides = [1, 1]} : vector<32x384xf32> to vector<32x256xf32>
    %101 = arith.truncf %100 : vector<32x256xf32> to vector<32x256xbf16>
    %c416 = arith.constant 416 : index
    %c0_51 = arith.constant 0 : index
    %102 = vector.load %arg10[%c416, %c0_51] : memref<512x256xbf16, #tpu.memory_space<vmem>>, vector<32x256xbf16>
    tpu.vector_store %arg10[%c416, %c0_51], %101 {strides = array<i32>} : memref<512x256xbf16, #tpu.memory_space<vmem>>, vector<32x256xbf16>,
    %103 = vector.extract_strided_slice %60 {offsets = [0, 14], sizes = [32, 256], strides = [1, 1]} : vector<32x384xf32> to vector<32x256xf32>
    %104 = arith.truncf %103 : vector<32x256xf32> to vector<32x256xbf16>
    %c448 = arith.constant 448 : index
    %c0_52 = arith.constant 0 : index
    %105 = vector.load %arg10[%c448, %c0_52] : memref<512x256xbf16, #tpu.memory_space<vmem>>, vector<32x256xbf16>
    tpu.vector_store %arg10[%c448, %c0_52], %104 {strides = array<i32>} : memref<512x256xbf16, #tpu.memory_space<vmem>>, vector<32x256xbf16>,
    %106 = vector.extract_strided_slice %60 {offsets = [0, 15], sizes = [32, 256], strides = [1, 1]} : vector<32x384xf32> to vector<32x256xf32>
    %107 = arith.truncf %106 : vector<32x256xf32> to vector<32x256xbf16>
    %c480 = arith.constant 480 : index
    %c0_53 = arith.constant 0 : index
    %108 = vector.load %arg10[%c480, %c0_53] : memref<512x256xbf16, #tpu.memory_space<vmem>>, vector<32x256xbf16>
    tpu.vector_store %arg10[%c480, %c0_53], %107 {strides = array<i32>} : memref<512x256xbf16, #tpu.memory_space<vmem>>, vector<32x256xbf16>,
    %c0_54 = arith.constant 0 : index
    %c0_55 = arith.constant 0 : index
    %109 = vector.load %arg5[%c0_54, %c0_55] : memref<32x512xbf16, #tpu.memory_space<vmem>>, vector<32x512xbf16>
    %c0_56 = arith.constant 0 : index
    %c0_57 = arith.constant 0 : index
    %110 = vector.load %arg10[%c0_56, %c0_57] : memref<512x256xbf16, #tpu.memory_space<vmem>>, vector<512x256xbf16>
    %cst_58 = arith.constant dense<0.000000e+00> : vector<32x256xf32>
    %111 = tpu.matmul %109, %110, %cst_58 {dimension_numbers = #tpu.dot_dimension_numbers<[1], [0], [0], [1], [0, 0, 1, 1], [], []>} : vector<32x512xbf16>, vector<512x256xbf16>, vector<32x256xf32> -> vector<32x256xf32>
    %c0_59 = arith.constant 0 : index
    %c0_60 = arith.constant 0 : index
    %112 = vector.load %arg6[%c0_59, %c0_60] : memref<32x1xf32, #tpu.memory_space<vmem>>, vector<32x1xf32>
    %113 = vector.broadcast %112 : vector<32x1xf32> to vector<32x256xf32>
    %114 = arith.addf %111, %113 : vector<32x256xf32>
    %cst_61 = arith.constant 0.000000e+00 : f32
    %115 = vector.broadcast %cst_61 : f32 to vector<32x256xf32>
    %116 = arith.cmpf ogt, %114, %115 : vector<32x256xf32>
    %cst_62 = arith.constant 0.000000e+00 : f32
    %117 = vector.broadcast %cst_62 : f32 to vector<32x256xf32>
    %118 = arith.minimumf %114, %117 : vector<32x256xf32>
    %119 = math.exp %118 : vector<32x256xf32>
    %cst_63 = arith.constant 1.000000e+00 : f32
    %120 = vector.broadcast %cst_63 : f32 to vector<32x256xf32>
    %121 = arith.subf %119, %120 : vector<32x256xf32>
    %122 = arith.select %116, %114, %121 : vector<32x256xi1>, vector<32x256xf32>
    %123 = arith.truncf %122 : vector<32x256xf32> to vector<32x256xbf16>
    %c0_64 = arith.constant 0 : index
    %c0_65 = arith.constant 0 : index
    %124 = vector.load %arg7[%c0_64, %c0_65] : memref<256x128xbf16, #tpu.memory_space<vmem>>, vector<256x128xbf16>
    %cst_66 = arith.constant dense<0.000000e+00> : vector<32x128xf32>
    %125 = tpu.matmul %123, %124, %cst_66 {dimension_numbers = #tpu.dot_dimension_numbers<[1], [0], [0], [1], [0, 0, 1, 1], [], []>} : vector<32x256xbf16>, vector<256x128xbf16>, vector<32x128xf32> -> vector<32x128xf32>
    %c0_67 = arith.constant 0 : index
    %c0_68 = arith.constant 0 : index
    %126 = vector.load %arg8[%c0_67, %c0_68] : memref<32x128xf32, #tpu.memory_space<vmem>>, vector<32x128xf32>
    tpu.vector_store %arg8[%c0_67, %c0_68], %125 {strides = array<i32>} : memref<32x128xf32, #tpu.memory_space<vmem>>, vector<32x128xf32>,
    return
  }
  func.func @transform_0(%arg0: i32) -> (i32, i32) {
    %c0_i32 = arith.constant 0 : i32
    %c0_i32_0 = arith.constant 0 : i32
    return %c0_i32, %arg0 : i32, i32
  }
  func.func @transform_1(%arg0: i32) -> (i32, i32) {
    %c0_i32 = arith.constant 0 : i32
    %c0_i32_0 = arith.constant 0 : i32
    %c0_i32_1 = arith.constant 0 : i32
    return %c0_i32, %c0_i32_0 : i32, i32
  }
  func.func @transform_2(%arg0: i32) -> (i32, i32) {
    %c0_i32 = arith.constant 0 : i32
    %c0_i32_0 = arith.constant 0 : i32
    %c0_i32_1 = arith.constant 0 : i32
    return %c0_i32, %c0_i32_0 : i32, i32
  }
  func.func @transform_3(%arg0: i32) -> (i32, i32) {
    %c0_i32 = arith.constant 0 : i32
    %c0_i32_0 = arith.constant 0 : i32
    %c0_i32_1 = arith.constant 0 : i32
    return %c0_i32, %c0_i32_0 : i32, i32
  }
  func.func @transform_4(%arg0: i32) -> (i32, i32) {
    %c0_i32 = arith.constant 0 : i32
    %c0_i32_0 = arith.constant 0 : i32
    %c0_i32_1 = arith.constant 0 : i32
    return %c0_i32, %c0_i32_0 : i32, i32
  }
  func.func @transform_5(%arg0: i32) -> (i32, i32) {
    %c0_i32 = arith.constant 0 : i32
    %c0_i32_0 = arith.constant 0 : i32
    %c0_i32_1 = arith.constant 0 : i32
    return %c0_i32, %c0_i32_0 : i32, i32
  }
  func.func @transform_6(%arg0: i32) -> (i32, i32) {
    %c0_i32 = arith.constant 0 : i32
    %c0_i32_0 = arith.constant 0 : i32
    %c0_i32_1 = arith.constant 0 : i32
    return %c0_i32, %c0_i32_0 : i32, i32
  }
  func.func @transform_7(%arg0: i32) -> (i32, i32) {
    %c0_i32 = arith.constant 0 : i32
    %c0_i32_0 = arith.constant 0 : i32
    return %c0_i32, %arg0 : i32, i32
  }
}

</mosaic_0001>

<bundles_post_ra>
// kernel: eegnet_forward.1
= control target key start
LH: loop header
LB: loop body
LE: loop exit
PB: predicated region body
PF: predicated region fallthrough
CT: control target
= control target key end

     0   :  { %s11738_s24 = smov 0   ;;  %s11740_s25 = smov 0   ;;  %s16297_s0 = inlined_call_operand.vmem [shape: bf16[768,2048], index: 0, kind: input, shape index: {}]   ;;  %s16298_s1 = inlined_call_operand.vmem [shape: bf16[32,768], index: 1, kind: input, shape index: {}]   ;;  %s16299_s2 = inlined_call_operand.vmem [shape: f32[32,1], index: 2, kind: input, shape index: {}]   ;;  %s16300_s3 = inlined_call_operand.vmem [shape: bf16[1024,384], index: 3, kind: input, shape index: {}]   ;;  %s16301_s4 = inlined_call_operand.vmem [shape: bf16[32,512], index: 4, kind: input, shape index: {}]   ;;  %s16302_s5 = inlined_call_operand.vmem [shape: f32[32,1], index: 5, kind: input, shape index: {}]   ;;  %s16303_s6 = inlined_call_operand.vmem [shape: bf16[256,128], index: 6, kind: input, shape index: {}]   ;;  %s16304_s7 = inlined_call_operand.vmem [shape: f32[32,256], index: 7, kind: output, shape index: {}]  }
   0x1   :  { %s11742_s26 = smov 0  }
   0x2 LB: > { %s8004_s27 = sadd.s32 4294967295, %s11680_s26   ;;  %s11755_s28 = sadd.s32 1, %s11680_s26   ;;  %s11680_s26 = sphi %s11742_s26, %s16339_s26   ;;  %s11676_s25 = sphi %s11740_s25, %s16338_s25   ;;  %s11672_s24 = sphi %s11738_s24, %s16337_s24  }
   0x3   : > { %s21_s29 = ssub.s32 %s11680_s26, %s11755_s28  ;;  %s24_s30 = sadd.s32 1, %s11676_s25 }
   0x4   : > { %p22_p0 = scmp.eq.s32.totalorder %s21_s29, 0  ;;  %p31_p1 = scmp.ne.s32.totalorder %s11676_s25, %s11672_s24 }
   0x5   : > { %p32_p2 = scmp.eq.s32.totalorder %s11680_s26, 0  ;;  %p187_p3 = scmp.eq.s32.totalorder %s8004_s27, 1 }
   0x6   : > { %s11766_s8 = scalar_select %p22_p0, %s11676_s25, %s24_s30  }
   0x7   : > { %p33_p4 = por %p32_p2, %p31_p1  ;;  %p11768_p5 = por %p187_p3, %p31_p1 }
   0x8   : > { %p8007_p6 = scmp.ge.s32.totalorder %s11680_s26, 2 }
   0xa   : > { %227 = sbr.rel (%p8007_p6) target bundleno = 403 (0x193), region = 40 }
   0xf   : > { %230 = sbr.rel (!%p33_p4) target bundleno = 403 (0x193), region = 44  ;;  %s232_s10 = sand.u32 (%p33_p4), 1, %s11676_s25  }
  0x10   : > { %s10824_s11 = sshll.u32 (%p33_p4), %s11680_s26, 5  ;;  %s11533_s12 = smul.u32 (%p33_p4), 3072, %s232_s10 }
  0x11   : > { %s11778_s15 = scalar_lea.vmem (%p33_p4), %s16297_s0, %s10824_s11 }
  0x12   : > { %v250_v0 = vld [vmem:[%s11778_s15] sm:$0xff] (%p33_p4)  ;;  %v252_v1 = vld [vmem:[%s11778_s15 + $0x8] sm:$0xff] (%p33_p4)  ;;  %v254_v2 = vld [vmem:[%s11778_s15 + $0x10] sm:$0xff] (%p33_p4)  ;;  %s11783_s16 = scalar_lea.vmem (%p33_p4), [#allocation4], %s11533_s12 }
  0x13   : > { %251 = vst [vmem:[%s11783_s16] sm:$0xff] (%p33_p4), %v250_v0  ;;  %v256_v3 = vld [vmem:[%s11778_s15 + $0x18] sm:$0xff] (%p33_p4)  ;;  %v258_v4 = vld [vmem:[%s11778_s15 + $0x40] sm:$0xff] (%p33_p4)  ;;  %v260_v5 = vld [vmem:[%s11778_s15 + $0x48] sm:$0xff] (%p33_p4) }
  0x14   : > { %253 = vst [vmem:[%s11783_s16 + $0x8] sm:$0xff] %v252_v1  ;;  %v262_v6 = vld [vmem:[%s11778_s15 + $0x50] sm:$0xff]  ;;  %v264_v7 = vld [vmem:[%s11778_s15 + $0x58] sm:$0xff]  ;;  %v266_v8 = vld [vmem:[%s11778_s15 + $0x80] sm:$0xff] }
  0x15   : > { %255 = vst [vmem:[%s11783_s16 + $0x10] sm:$0xff] %v254_v2  ;;  %v268_v9 = vld [vmem:[%s11778_s15 + $0x88] sm:$0xff]  ;;  %v270_v10 = vld [vmem:[%s11778_s15 + $0x90] sm:$0xff]  ;;  %v272_v11 = vld [vmem:[%s11778_s15 + $0x98] sm:$0xff] }
  0x16   : > { %257 = vst [vmem:[%s11783_s16 + $0x18] sm:$0xff] %v256_v3  ;;  %v274_v12 = vld [vmem:[%s11778_s15 + $0xc0] sm:$0xff]  ;;  %v276_v13 = vld [vmem:[%s11778_s15 + $0xc8] sm:$0xff]  ;;  %v278_v14 = vld [vmem:[%s11778_s15 + $0xd0] sm:$0xff] }
  0x17   : > { %259 = vst [vmem:[%s11783_s16 + $0x20] sm:$0xff] %v258_v4  ;;  %v280_v15 = vld [vmem:[%s11778_s15 + $0xd8] sm:$0xff]  ;;  %v282_v16 = vld [vmem:[%s11778_s15 + $0x100] sm:$0xff]  ;;  %v284_v17 = vld [vmem:[%s11778_s15 + $0x108] sm:$0xff] }
  0x18   : > { %261 = vst [vmem:[%s11783_s16 + $0x28] sm:$0xff] %v260_v5  ;;  %v286_v18 = vld [vmem:[%s11778_s15 + $0x110] sm:$0xff]  ;;  %v288_v19 = vld [vmem:[%s11778_s15 + $0x118] sm:$0xff]  ;;  %v290_v20 = vld [vmem:[%s11778_s15 + $0x140] sm:$0xff] }
  0x19   : > { %263 = vst [vmem:[%s11783_s16 + $0x30] sm:$0xff] %v262_v6  ;;  %v292_v21 = vld [vmem:[%s11778_s15 + $0x148] sm:$0xff]  ;;  %v294_v22 = vld [vmem:[%s11778_s15 + $0x150] sm:$0xff]  ;;  %v296_v23 = vld [vmem:[%s11778_s15 + $0x158] sm:$0xff] }
  0x1a   : > { %265 = vst [vmem:[%s11783_s16 + $0x38] sm:$0xff] %v264_v7  ;;  %v298_v24 = vld [vmem:[%s11778_s15 + $0x180] sm:$0xff]  ;;  %v300_v25 = vld [vmem:[%s11778_s15 + $0x188] sm:$0xff]  ;;  %v302_v26 = vld [vmem:[%s11778_s15 + $0x190] sm:$0xff] }
  0x1b   : > { %267 = vst [vmem:[%s11783_s16 + $0x40] sm:$0xff] %v266_v8  ;;  %v304_v27 = vld [vmem:[%s11778_s15 + $0x198] sm:$0xff]  ;;  %v306_v28 = vld [vmem:[%s11778_s15 + $0x1c0] sm:$0xff]  ;;  %v308_v29 = vld [vmem:[%s11778_s15 + $0x1c8] sm:$0xff] }
  0x1c   : > { %269 = vst [vmem:[%s11783_s16 + $0x48] sm:$0xff] %v268_v9  ;;  %v310_v30 = vld [vmem:[%s11778_s15 + $0x1d0] sm:$0xff]  ;;  %v312_v31 = vld [vmem:[%s11778_s15 + $0x1d8] sm:$0xff]  ;;  %v314_v32 = vld [vmem:[%s11778_s15 + $0x200] sm:$0xff] }
  0x1d   : > { %271 = vst [vmem:[%s11783_s16 + $0x50] sm:$0xff] %v270_v10  ;;  %v316_v33 = vld [vmem:[%s11778_s15 + $0x208] sm:$0xff]  ;;  %v318_v34 = vld [vmem:[%s11778_s15 + $0x210] sm:$0xff]  ;;  %v320_v35 = vld [vmem:[%s11778_s15 + $0x218] sm:$0xff] }
  0x1e   : > { %273 = vst [vmem:[%s11783_s16 + $0x58] sm:$0xff] %v272_v11  ;;  %v322_v36 = vld [vmem:[%s11778_s15 + $0x240] sm:$0xff]  ;;  %v324_v37 = vld [vmem:[%s11778_s15 + $0x248] sm:$0xff]  ;;  %v326_v38 = vld [vmem:[%s11778_s15 + $0x250] sm:$0xff] }
  0x1f   : > { %275 = vst [vmem:[%s11783_s16 + $0x60] sm:$0xff] %v274_v12  ;;  %v328_v39 = vld [vmem:[%s11778_s15 + $0x258] sm:$0xff]  ;;  %v330_v40 = vld [vmem:[%s11778_s15 + $0x280] sm:$0xff]  ;;  %v332_v41 = vld [vmem:[%s11778_s15 + $0x288] sm:$0xff] }
  0x20   : > { %277 = vst [vmem:[%s11783_s16 + $0x68] sm:$0xff] %v276_v13  ;;  %v334_v42 = vld [vmem:[%s11778_s15 + $0x290] sm:$0xff]  ;;  %v336_v43 = vld [vmem:[%s11778_s15 + $0x298] sm:$0xff]  ;;  %v338_v44 = vld [vmem:[%s11778_s15 + $0x2c0] sm:$0xff] }
  0x21   : > { %279 = vst [vmem:[%s11783_s16 + $0x70] sm:$0xff] %v278_v14  ;;  %v340_v45 = vld [vmem:[%s11778_s15 + $0x2c8] sm:$0xff]  ;;  %v342_v46 = vld [vmem:[%s11778_s15 + $0x2d0] sm:$0xff]  ;;  %v344_v47 = vld [vmem:[%s11778_s15 + $0x2d8] sm:$0xff] }
  0x22   : > { %281 = vst [vmem:[%s11783_s16 + $0x78] sm:$0xff] %v280_v15  ;;  %v346_v48 = vld [vmem:[%s11778_s15 + $0x300] sm:$0xff]  ;;  %v348_v49 = vld [vmem:[%s11778_s15 + $0x308] sm:$0xff]  ;;  %v350_v50 = vld [vmem:[%s11778_s15 + $0x310] sm:$0xff] }
  0x23   : > { %283 = vst [vmem:[%s11783_s16 + $0x80] sm:$0xff] %v282_v16  ;;  %v352_v51 = vld [vmem:[%s11778_s15 + $0x318] sm:$0xff]  ;;  %v354_v52 = vld [vmem:[%s11778_s15 + $0x340] sm:$0xff]  ;;  %v356_v53 = vld [vmem:[%s11778_s15 + $0x348] sm:$0xff] }
  0x24   : > { %285 = vst [vmem:[%s11783_s16 + $0x88] sm:$0xff] %v284_v17  ;;  %v358_v54 = vld [vmem:[%s11778_s15 + $0x350] sm:$0xff]  ;;  %v360_v55 = vld [vmem:[%s11778_s15 + $0x358] sm:$0xff]  ;;  %v362_v56 = vld [vmem:[%s11778_s15 + $0x380] sm:$0xff] }
  0x25   : > { %287 = vst [vmem:[%s11783_s16 + $0x90] sm:$0xff] %v286_v18  ;;  %v364_v57 = vld [vmem:[%s11778_s15 + $0x388] sm:$0xff]  ;;  %v366_v58 = vld [vmem:[%s11778_s15 + $0x390] sm:$0xff]  ;;  %v368_v59 = vld [vmem:[%s11778_s15 + $0x398] sm:$0xff] }
  0x26   : > { %289 = vst [vmem:[%s11783_s16 + $0x98] sm:$0xff] %v288_v19  ;;  %v370_v60 = vld [vmem:[%s11778_s15 + $0x3c0] sm:$0xff]  ;;  %v372_v61 = vld [vmem:[%s11778_s15 + $0x3c8] sm:$0xff]  ;;  %v374_v62 = vld [vmem:[%s11778_s15 + $0x3d0] sm:$0xff] }
  0x27   : > { %291 = vst [vmem:[%s11783_s16 + $0xa0] sm:$0xff] %v290_v20  ;;  %v376_v63 = vld [vmem:[%s11778_s15 + $0x3d8] sm:$0xff]  ;;  %v378_v0 = vld [vmem:[%s11778_s15 + $0x400] sm:$0xff]  ;;  %v380_v1 = vld [vmem:[%s11778_s15 + $0x408] sm:$0xff] }
  0x28   : > { %293 = vst [vmem:[%s11783_s16 + $0xa8] sm:$0xff] %v292_v21  ;;  %v382_v2 = vld [vmem:[%s11778_s15 + $0x410] sm:$0xff]  ;;  %v384_v3 = vld [vmem:[%s11778_s15 + $0x418] sm:$0xff]  ;;  %v386_v4 = vld [vmem:[%s11778_s15 + $0x440] sm:$0xff] }
  0x29   : > { %295 = vst [vmem:[%s11783_s16 + $0xb0] sm:$0xff] %v294_v22  ;;  %v388_v5 = vld [vmem:[%s11778_s15 + $0x448] sm:$0xff]  ;;  %v390_v6 = vld [vmem:[%s11778_s15 + $0x450] sm:$0xff]  ;;  %v392_v7 = vld [vmem:[%s11778_s15 + $0x458] sm:$0xff] }
  0x2a   : > { %297 = vst [vmem:[%s11783_s16 + $0xb8] sm:$0xff] %v296_v23  ;;  %v394_v8 = vld [vmem:[%s11778_s15 + $0x480] sm:$0xff]  ;;  %v396_v9 = vld [vmem:[%s11778_s15 + $0x488] sm:$0xff]  ;;  %v398_v10 = vld [vmem:[%s11778_s15 + $0x490] sm:$0xff] }
  0x2b   : > { %299 = vst [vmem:[%s11783_s16 + $0xc0] sm:$0xff] %v298_v24  ;;  %v400_v11 = vld [vmem:[%s11778_s15 + $0x498] sm:$0xff]  ;;  %v402_v12 = vld [vmem:[%s11778_s15 + $0x4c0] sm:$0xff]  ;;  %v404_v13 = vld [vmem:[%s11778_s15 + $0x4c8] sm:$0xff] }
  0x2c   : > { %301 = vst [vmem:[%s11783_s16 + $0xc8] sm:$0xff] %v300_v25  ;;  %v406_v14 = vld [vmem:[%s11778_s15 + $0x4d0] sm:$0xff]  ;;  %v408_v15 = vld [vmem:[%s11778_s15 + $0x4d8] sm:$0xff]  ;;  %v410_v16 = vld [vmem:[%s11778_s15 + $0x500] sm:$0xff] }
  0x2d   : > { %303 = vst [vmem:[%s11783_s16 + $0xd0] sm:$0xff] %v302_v26  ;;  %v412_v17 = vld [vmem:[%s11778_s15 + $0x508] sm:$0xff]  ;;  %v414_v18 = vld [vmem:[%s11778_s15 + $0x510] sm:$0xff]  ;;  %v416_v19 = vld [vmem:[%s11778_s15 + $0x518] sm:$0xff] }
  0x2e   : > { %305 = vst [vmem:[%s11783_s16 + $0xd8] sm:$0xff] %v304_v27  ;;  %v418_v20 = vld [vmem:[%s11778_s15 + $0x540] sm:$0xff]  ;;  %v420_v21 = vld [vmem:[%s11778_s15 + $0x548] sm:$0xff]  ;;  %v422_v22 = vld [vmem:[%s11778_s15 + $0x550] sm:$0xff] }
  0x2f   : > { %307 = vst [vmem:[%s11783_s16 + $0xe0] sm:$0xff] %v306_v28  ;;  %v424_v23 = vld [vmem:[%s11778_s15 + $0x558] sm:$0xff]  ;;  %v426_v24 = vld [vmem:[%s11778_s15 + $0x580] sm:$0xff]  ;;  %v428_v25 = vld [vmem:[%s11778_s15 + $0x588] sm:$0xff] }
  0x30   : > { %309 = vst [vmem:[%s11783_s16 + $0xe8] sm:$0xff] %v308_v29  ;;  %v430_v26 = vld [vmem:[%s11778_s15 + $0x590] sm:$0xff]  ;;  %v432_v27 = vld [vmem:[%s11778_s15 + $0x598] sm:$0xff]  ;;  %v434_v28 = vld [vmem:[%s11778_s15 + $0x5c0] sm:$0xff] }
  0x31   : > { %311 = vst [vmem:[%s11783_s16 + $0xf0] sm:$0xff] %v310_v30  ;;  %v436_v29 = vld [vmem:[%s11778_s15 + $0x5c8] sm:$0xff]  ;;  %v438_v30 = vld [vmem:[%s11778_s15 + $0x5d0] sm:$0xff] }
  0x32   : > { %313 = vst [vmem:[%s11783_s16 + $0xf8] sm:$0xff] %v312_v31  ;;  %v440_v31 = vld [vmem:[%s11778_s15 + $0x5d8] sm:$0xff] }
  0x33   : > { %315 = vst [vmem:[%s11783_s16 + $0x100] sm:$0xff] %v314_v32  ;;  %v442_v32 = vld [vmem:[%s11778_s15 + $0x600] sm:$0xff] }
  0x34   : > { %317 = vst [vmem:[%s11783_s16 + $0x108] sm:$0xff] %v316_v33  ;;  %v444_v33 = vld [vmem:[%s11778_s15 + $0x608] sm:$0xff] }
  0x35   : > { %319 = vst [vmem:[%s11783_s16 + $0x110] sm:$0xff] %v318_v34  ;;  %v446_v34 = vld [vmem:[%s11778_s15 + $0x610] sm:$0xff] }
  0x36   : > { %321 = vst [vmem:[%s11783_s16 + $0x118] sm:$0xff] %v320_v35  ;;  %v448_v35 = vld [vmem:[%s11778_s15 + $0x618] sm:$0xff] }
  0x37   : > { %323 = vst [vmem:[%s11783_s16 + $0x120] sm:$0xff] %v322_v36  ;;  %v450_v36 = vld [vmem:[%s11778_s15 + $0x640] sm:$0xff] }
  0x38   : > { %325 = vst [vmem:[%s11783_s16 + $0x128] sm:$0xff] %v324_v37  ;;  %v452_v37 = vld [vmem:[%s11778_s15 + $0x648] sm:$0xff] }
  0x39   : > { %327 = vst [vmem:[%s11783_s16 + $0x130] sm:$0xff] %v326_v38  ;;  %v454_v38 = vld [vmem:[%s11778_s15 + $0x650] sm:$0xff] }
  0x3a   : > { %329 = vst [vmem:[%s11783_s16 + $0x138] sm:$0xff] %v328_v39  ;;  %v456_v39 = vld [vmem:[%s11778_s15 + $0x658] sm:$0xff] }
  0x3b   : > { %331 = vst [vmem:[%s11783_s16 + $0x140] sm:$0xff] %v330_v40  ;;  %v458_v40 = vld [vmem:[%s11778_s15 + $0x680] sm:$0xff] }
  0x3c   : > { %333 = vst [vmem:[%s11783_s16 + $0x148] sm:$0xff] %v332_v41  ;;  %v460_v41 = vld [vmem:[%s11778_s15 + $0x688] sm:$0xff] }
  0x3d   : > { %335 = vst [vmem:[%s11783_s16 + $0x150] sm:$0xff] %v334_v42  ;;  %v462_v42 = vld [vmem:[%s11778_s15 + $0x690] sm:$0xff] }
  0x3e   : > { %337 = vst [vmem:[%s11783_s16 + $0x158] sm:$0xff] %v336_v43  ;;  %v464_v43 = vld [vmem:[%s11778_s15 + $0x698] sm:$0xff] }
  0x3f   : > { %339 = vst [vmem:[%s11783_s16 + $0x160] sm:$0xff] %v338_v44  ;;  %v466_v44 = vld [vmem:[%s11778_s15 + $0x6c0] sm:$0xff] }
  0x40   : > { %341 = vst [vmem:[%s11783_s16 + $0x168] sm:$0xff] %v340_v45  ;;  %v468_v45 = vld [vmem:[%s11778_s15 + $0x6c8] sm:$0xff] }
  0x41   : > { %343 = vst [vmem:[%s11783_s16 + $0x170] sm:$0xff] %v342_v46  ;;  %v470_v46 = vld [vmem:[%s11778_s15 + $0x6d0] sm:$0xff] }
  0x42   : > { %345 = vst [vmem:[%s11783_s16 + $0x178] sm:$0xff] %v344_v47  ;;  %v472_v47 = vld [vmem:[%s11778_s15 + $0x6d8] sm:$0xff] }
  0x43   : > { %347 = vst [vmem:[%s11783_s16 + $0x180] sm:$0xff] %v346_v48  ;;  %v474_v48 = vld [vmem:[%s11778_s15 + $0x700] sm:$0xff] }
  0x44   : > { %349 = vst [vmem:[%s11783_s16 + $0x188] sm:$0xff] %v348_v49  ;;  %v476_v49 = vld [vmem:[%s11778_s15 + $0x708] sm:$0xff] }
  0x45   : > { %351 = vst [vmem:[%s11783_s16 + $0x190] sm:$0xff] %v350_v50  ;;  %v478_v50 = vld [vmem:[%s11778_s15 + $0x710] sm:$0xff] }
  0x46   : > { %353 = vst [vmem:[%s11783_s16 + $0x198] sm:$0xff] %v352_v51  ;;  %v480_v51 = vld [vmem:[%s11778_s15 + $0x718] sm:$0xff] }
  0x47   : > { %355 = vst [vmem:[%s11783_s16 + $0x1a0] sm:$0xff] %v354_v52  ;;  %v482_v52 = vld [vmem:[%s11778_s15 + $0x740] sm:$0xff] }
  0x48   : > { %357 = vst [vmem:[%s11783_s16 + $0x1a8] sm:$0xff] %v356_v53  ;;  %v484_v53 = vld [vmem:[%s11778_s15 + $0x748] sm:$0xff] }
  0x49   : > { %359 = vst [vmem:[%s11783_s16 + $0x1b0] sm:$0xff] %v358_v54  ;;  %v486_v54 = vld [vmem:[%s11778_s15 + $0x750] sm:$0xff] }
  0x4a   : > { %361 = vst [vmem:[%s11783_s16 + $0x1b8] sm:$0xff] %v360_v55  ;;  %v488_v55 = vld [vmem:[%s11778_s15 + $0x758] sm:$0xff] }
  0x4b   : > { %363 = vst [vmem:[%s11783_s16 + $0x1c0] sm:$0xff] %v362_v56  ;;  %v490_v56 = vld [vmem:[%s11778_s15 + $0x780] sm:$0xff] }
  0x4c   : > { %365 = vst [vmem:[%s11783_s16 + $0x1c8] sm:$0xff] %v364_v57  ;;  %v492_v57 = vld [vmem:[%s11778_s15 + $0x788] sm:$0xff] }
  0x4d   : > { %367 = vst [vmem:[%s11783_s16 + $0x1d0] sm:$0xff] %v366_v58  ;;  %v494_v58 = vld [vmem:[%s11778_s15 + $0x790] sm:$0xff] }
  0x4e   : > { %369 = vst [vmem:[%s11783_s16 + $0x1d8] sm:$0xff] %v368_v59  ;;  %v496_v59 = vld [vmem:[%s11778_s15 + $0x798] sm:$0xff] }
  0x4f   : > { %371 = vst [vmem:[%s11783_s16 + $0x1e0] sm:$0xff] %v370_v60  ;;  %v498_v60 = vld [vmem:[%s11778_s15 + $0x7c0] sm:$0xff] }
  0x50   : > { %373 = vst [vmem:[%s11783_s16 + $0x1e8] sm:$0xff] %v372_v61  ;;  %v500_v61 = vld [vmem:[%s11778_s15 + $0x7c8] sm:$0xff] }
  0x51   : > { %375 = vst [vmem:[%s11783_s16 + $0x1f0] sm:$0xff] %v374_v62  ;;  %v502_v62 = vld [vmem:[%s11778_s15 + $0x7d0] sm:$0xff] }
  0x52   : > { %377 = vst [vmem:[%s11783_s16 + $0x1f8] sm:$0xff] %v376_v63  ;;  %v504_v63 = vld [vmem:[%s11778_s15 + $0x7d8] sm:$0xff] }
  0x53   : > { %379 = vst [vmem:[%s11783_s16 + $0x200] sm:$0xff] %v378_v0  ;;  %v506_v0 = vld [vmem:[%s11778_s15 + $0x800] sm:$0xff] }
  0x54   : > { %381 = vst [vmem:[%s11783_s16 + $0x208] sm:$0xff] %v380_v1  ;;  %v508_v1 = vld [vmem:[%s11778_s15 + $0x808] sm:$0xff] }
  0x55   : > { %383 = vst [vmem:[%s11783_s16 + $0x210] sm:$0xff] %v382_v2  ;;  %v510_v2 = vld [vmem:[%s11778_s15 + $0x810] sm:$0xff] }
  0x56   : > { %385 = vst [vmem:[%s11783_s16 + $0x218] sm:$0xff] %v384_v3  ;;  %v512_v3 = vld [vmem:[%s11778_s15 + $0x818] sm:$0xff] }
  0x57   : > { %387 = vst [vmem:[%s11783_s16 + $0x220] sm:$0xff] %v386_v4  ;;  %v514_v4 = vld [vmem:[%s11778_s15 + $0x840] sm:$0xff] }
  0x58   : > { %389 = vst [vmem:[%s11783_s16 + $0x228] sm:$0xff] %v388_v5  ;;  %v516_v5 = vld [vmem:[%s11778_s15 + $0x848] sm:$0xff] }
  0x59   : > { %391 = vst [vmem:[%s11783_s16 + $0x230] sm:$0xff] %v390_v6  ;;  %v518_v6 = vld [vmem:[%s11778_s15 + $0x850] sm:$0xff] }
  0x5a   : > { %393 = vst [vmem:[%s11783_s16 + $0x238] sm:$0xff] %v392_v7  ;;  %v520_v7 = vld [vmem:[%s11778_s15 + $0x858] sm:$0xff] }
  0x5b   : > { %395 = vst [vmem:[%s11783_s16 + $0x240] sm:$0xff] %v394_v8  ;;  %v522_v8 = vld [vmem:[%s11778_s15 + $0x880] sm:$0xff] }
  0x5c   : > { %397 = vst [vmem:[%s11783_s16 + $0x248] sm:$0xff] %v396_v9  ;;  %v524_v9 = vld [vmem:[%s11778_s15 + $0x888] sm:$0xff] }
  0x5d   : > { %399 = vst [vmem:[%s11783_s16 + $0x250] sm:$0xff] %v398_v10  ;;  %v526_v10 = vld [vmem:[%s11778_s15 + $0x890] sm:$0xff] }
  0x5e   : > { %401 = vst [vmem:[%s11783_s16 + $0x258] sm:$0xff] %v400_v11  ;;  %v528_v11 = vld [vmem:[%s11778_s15 + $0x898] sm:$0xff] }
  0x5f   : > { %403 = vst [vmem:[%s11783_s16 + $0x260] sm:$0xff] %v402_v12  ;;  %v530_v12 = vld [vmem:[%s11778_s15 + $0x8c0] sm:$0xff] }
  0x60   : > { %405 = vst [vmem:[%s11783_s16 + $0x268] sm:$0xff] %v404_v13  ;;  %v532_v13 = vld [vmem:[%s11778_s15 + $0x8c8] sm:$0xff] }
  0x61   : > { %407 = vst [vmem:[%s11783_s16 + $0x270] sm:$0xff] %v406_v14  ;;  %v534_v14 = vld [vmem:[%s11778_s15 + $0x8d0] sm:$0xff] }
  0x62   : > { %409 = vst [vmem:[%s11783_s16 + $0x278] sm:$0xff] %v408_v15  ;;  %v536_v15 = vld [vmem:[%s11778_s15 + $0x8d8] sm:$0xff] }
  0x63   : > { %411 = vst [vmem:[%s11783_s16 + $0x280] sm:$0xff] %v410_v16  ;;  %v538_v16 = vld [vmem:[%s11778_s15 + $0x900] sm:$0xff] }
  0x64   : > { %413 = vst [vmem:[%s11783_s16 + $0x288] sm:$0xff] %v412_v17  ;;  %v540_v17 = vld [vmem:[%s11778_s15 + $0x908] sm:$0xff] }
  0x65   : > { %415 = vst [vmem:[%s11783_s16 + $0x290] sm:$0xff] %v414_v18  ;;  %v542_v18 = vld [vmem:[%s11778_s15 + $0x910] sm:$0xff] }
  0x66   : > { %417 = vst [vmem:[%s11783_s16 + $0x298] sm:$0xff] %v416_v19  ;;  %v544_v19 = vld [vmem:[%s11778_s15 + $0x918] sm:$0xff] }
  0x67   : > { %419 = vst [vmem:[%s11783_s16 + $0x2a0] sm:$0xff] %v418_v20  ;;  %v546_v20 = vld [vmem:[%s11778_s15 + $0x940] sm:$0xff] }
  0x68   : > { %421 = vst [vmem:[%s11783_s16 + $0x2a8] sm:$0xff] %v420_v21  ;;  %v548_v21 = vld [vmem:[%s11778_s15 + $0x948] sm:$0xff] }
  0x69   : > { %423 = vst [vmem:[%s11783_s16 + $0x2b0] sm:$0xff] %v422_v22  ;;  %v550_v22 = vld [vmem:[%s11778_s15 + $0x950] sm:$0xff] }
  0x6a   : > { %425 = vst [vmem:[%s11783_s16 + $0x2b8] sm:$0xff] %v424_v23  ;;  %v552_v23 = vld [vmem:[%s11778_s15 + $0x958] sm:$0xff] }
  0x6b   : > { %427 = vst [vmem:[%s11783_s16 + $0x2c0] sm:$0xff] %v426_v24  ;;  %v554_v24 = vld [vmem:[%s11778_s15 + $0x980] sm:$0xff] }
  0x6c   : > { %429 = vst [vmem:[%s11783_s16 + $0x2c8] sm:$0xff] %v428_v25  ;;  %v556_v25 = vld [vmem:[%s11778_s15 + $0x988] sm:$0xff] }
  0x6d   : > { %431 = vst [vmem:[%s11783_s16 + $0x2d0] sm:$0xff] %v430_v26  ;;  %v558_v26 = vld [vmem:[%s11778_s15 + $0x990] sm:$0xff] }
  0x6e   : > { %433 = vst [vmem:[%s11783_s16 + $0x2d8] sm:$0xff] %v432_v27  ;;  %v560_v27 = vld [vmem:[%s11778_s15 + $0x998] sm:$0xff] }
  0x6f   : > { %435 = vst [vmem:[%s11783_s16 + $0x2e0] sm:$0xff] %v434_v28  ;;  %v562_v28 = vld [vmem:[%s11778_s15 + $0x9c0] sm:$0xff] }
  0x70   : > { %437 = vst [vmem:[%s11783_s16 + $0x2e8] sm:$0xff] %v436_v29  ;;  %v564_v29 = vld [vmem:[%s11778_s15 + $0x9c8] sm:$0xff] }
  0x71   : > { %439 = vst [vmem:[%s11783_s16 + $0x2f0] sm:$0xff] %v438_v30  ;;  %v566_v30 = vld [vmem:[%s11778_s15 + $0x9d0] sm:$0xff] }
  0x72   : > { %441 = vst [vmem:[%s11783_s16 + $0x2f8] sm:$0xff] %v440_v31  ;;  %v568_v31 = vld [vmem:[%s11778_s15 + $0x9d8] sm:$0xff] }
  0x73   : > { %443 = vst [vmem:[%s11783_s16 + $0x300] sm:$0xff] %v442_v32  ;;  %v570_v32 = vld [vmem:[%s11778_s15 + $0xa00] sm:$0xff] }
  0x74   : > { %445 = vst [vmem:[%s11783_s16 + $0x308] sm:$0xff] %v444_v33  ;;  %v572_v33 = vld [vmem:[%s11778_s15 + $0xa08] sm:$0xff] }
  0x75   : > { %447 = vst [vmem:[%s11783_s16 + $0x310] sm:$0xff] %v446_v34  ;;  %v574_v34 = vld [vmem:[%s11778_s15 + $0xa10] sm:$0xff] }
  0x76   : > { %449 = vst [vmem:[%s11783_s16 + $0x318] sm:$0xff] %v448_v35  ;;  %v576_v35 = vld [vmem:[%s11778_s15 + $0xa18] sm:$0xff] }
  0x77   : > { %451 = vst [vmem:[%s11783_s16 + $0x320] sm:$0xff] %v450_v36  ;;  %v578_v36 = vld [vmem:[%s11778_s15 + $0xa40] sm:$0xff] }
  0x78   : > { %453 = vst [vmem:[%s11783_s16 + $0x328] sm:$0xff] %v452_v37  ;;  %v580_v37 = vld [vmem:[%s11778_s15 + $0xa48] sm:$0xff] }
  0x79   : > { %455 = vst [vmem:[%s11783_s16 + $0x330] sm:$0xff] %v454_v38  ;;  %v582_v38 = vld [vmem:[%s11778_s15 + $0xa50] sm:$0xff] }
  0x7a   : > { %457 = vst [vmem:[%s11783_s16 + $0x338] sm:$0xff] %v456_v39  ;;  %v584_v39 = vld [vmem:[%s11778_s15 + $0xa58] sm:$0xff] }
  0x7b   : > { %459 = vst [vmem:[%s11783_s16 + $0x340] sm:$0xff] %v458_v40  ;;  %v586_v40 = vld [vmem:[%s11778_s15 + $0xa80] sm:$0xff] }
  0x7c   : > { %461 = vst [vmem:[%s11783_s16 + $0x348] sm:$0xff] %v460_v41  ;;  %v588_v41 = vld [vmem:[%s11778_s15 + $0xa88] sm:$0xff] }
  0x7d   : > { %463 = vst [vmem:[%s11783_s16 + $0x350] sm:$0xff] %v462_v42  ;;  %v590_v42 = vld [vmem:[%s11778_s15 + $0xa90] sm:$0xff] }
  0x7e   : > { %465 = vst [vmem:[%s11783_s16 + $0x358] sm:$0xff] %v464_v43  ;;  %v592_v43 = vld [vmem:[%s11778_s15 + $0xa98] sm:$0xff] }
  0x7f   : > { %467 = vst [vmem:[%s11783_s16 + $0x360] sm:$0xff] %v466_v44  ;;  %v594_v44 = vld [vmem:[%s11778_s15 + $0xac0] sm:$0xff] }
  0x80   : > { %469 = vst [vmem:[%s11783_s16 + $0x368] sm:$0xff] %v468_v45  ;;  %v596_v45 = vld [vmem:[%s11778_s15 + $0xac8] sm:$0xff] }
  0x81   : > { %471 = vst [vmem:[%s11783_s16 + $0x370] sm:$0xff] %v470_v46  ;;  %v598_v46 = vld [vmem:[%s11778_s15 + $0xad0] sm:$0xff] }
  0x82   : > { %473 = vst [vmem:[%s11783_s16 + $0x378] sm:$0xff] %v472_v47  ;;  %v600_v47 = vld [vmem:[%s11778_s15 + $0xad8] sm:$0xff] }
  0x83   : > { %475 = vst [vmem:[%s11783_s16 + $0x380] sm:$0xff] %v474_v48  ;;  %v602_v48 = vld [vmem:[%s11778_s15 + $0xb00] sm:$0xff] }
  0x84   : > { %477 = vst [vmem:[%s11783_s16 + $0x388] sm:$0xff] %v476_v49  ;;  %v604_v49 = vld [vmem:[%s11778_s15 + $0xb08] sm:$0xff] }
  0x85   : > { %479 = vst [vmem:[%s11783_s16 + $0x390] sm:$0xff] %v478_v50  ;;  %v606_v50 = vld [vmem:[%s11778_s15 + $0xb10] sm:$0xff] }
  0x86   : > { %481 = vst [vmem:[%s11783_s16 + $0x398] sm:$0xff] %v480_v51  ;;  %v608_v51 = vld [vmem:[%s11778_s15 + $0xb18] sm:$0xff] }
  0x87   : > { %483 = vst [vmem:[%s11783_s16 + $0x3a0] sm:$0xff] %v482_v52  ;;  %v610_v52 = vld [vmem:[%s11778_s15 + $0xb40] sm:$0xff] }
  0x88   : > { %485 = vst [vmem:[%s11783_s16 + $0x3a8] sm:$0xff] %v484_v53  ;;  %v612_v53 = vld [vmem:[%s11778_s15 + $0xb48] sm:$0xff] }
  0x89   : > { %487 = vst [vmem:[%s11783_s16 + $0x3b0] sm:$0xff] %v486_v54  ;;  %v614_v54 = vld [vmem:[%s11778_s15 + $0xb50] sm:$0xff] }
  0x8a   : > { %489 = vst [vmem:[%s11783_s16 + $0x3b8] sm:$0xff] %v488_v55  ;;  %v616_v55 = vld [vmem:[%s11778_s15 + $0xb58] sm:$0xff] }
  0x8b   : > { %491 = vst [vmem:[%s11783_s16 + $0x3c0] sm:$0xff] %v490_v56  ;;  %v618_v56 = vld [vmem:[%s11778_s15 + $0xb80] sm:$0xff] }
  0x8c   : > { %493 = vst [vmem:[%s11783_s16 + $0x3c8] sm:$0xff] %v492_v57  ;;  %v620_v57 = vld [vmem:[%s11778_s15 + $0xb88] sm:$0xff] }
  0x8d   : > { %495 = vst [vmem:[%s11783_s16 + $0x3d0] sm:$0xff] %v494_v58  ;;  %v622_v58 = vld [vmem:[%s11778_s15 + $0xb90] sm:$0xff] }
  0x8e   : > { %497 = vst [vmem:[%s11783_s16 + $0x3d8] sm:$0xff] %v496_v59  ;;  %v624_v59 = vld [vmem:[%s11778_s15 + $0xb98] sm:$0xff] }
  0x8f   : > { %499 = vst [vmem:[%s11783_s16 + $0x3e0] sm:$0xff] %v498_v60  ;;  %v626_v60 = vld [vmem:[%s11778_s15 + $0xbc0] sm:$0xff] }
  0x90   : > { %501 = vst [vmem:[%s11783_s16 + $0x3e8] sm:$0xff] %v500_v61  ;;  %v628_v61 = vld [vmem:[%s11778_s15 + $0xbc8] sm:$0xff] }
  0x91   : > { %503 = vst [vmem:[%s11783_s16 + $0x3f0] sm:$0xff] %v502_v62  ;;  %v630_v62 = vld [vmem:[%s11778_s15 + $0xbd0] sm:$0xff] }
  0x92   : > { %505 = vst [vmem:[%s11783_s16 + $0x3f8] sm:$0xff] %v504_v63  ;;  %v632_v63 = vld [vmem:[%s11778_s15 + $0xbd8] sm:$0xff] }
  0x93   : > { %507 = vst [vmem:[%s11783_s16 + $0x400] sm:$0xff] %v506_v0  ;;  %v634_v0 = vld [vmem:[%s11778_s15 + $0xc00] sm:$0xff] }
  0x94   : > { %509 = vst [vmem:[%s11783_s16 + $0x408] sm:$0xff] %v508_v1  ;;  %v636_v1 = vld [vmem:[%s11778_s15 + $0xc08] sm:$0xff] }
  0x95   : > { %511 = vst [vmem:[%s11783_s16 + $0x410] sm:$0xff] %v510_v2  ;;  %v638_v2 = vld [vmem:[%s11778_s15 + $0xc10] sm:$0xff] }
  0x96   : > { %513 = vst [vmem:[%s11783_s16 + $0x418] sm:$0xff] %v512_v3  ;;  %v640_v3 = vld [vmem:[%s11778_s15 + $0xc18] sm:$0xff] }
  0x97   : > { %515 = vst [vmem:[%s11783_s16 + $0x420] sm:$0xff] %v514_v4  ;;  %v642_v4 = vld [vmem:[%s11778_s15 + $0xc40] sm:$0xff] }
  0x98   : > { %517 = vst [vmem:[%s11783_s16 + $0x428] sm:$0xff] %v516_v5  ;;  %v644_v5 = vld [vmem:[%s11778_s15 + $0xc48] sm:$0xff] }
  0x99   : > { %519 = vst [vmem:[%s11783_s16 + $0x430] sm:$0xff] %v518_v6  ;;  %v646_v6 = vld [vmem:[%s11778_s15 + $0xc50] sm:$0xff] }
  0x9a   : > { %521 = vst [vmem:[%s11783_s16 + $0x438] sm:$0xff] %v520_v7  ;;  %v648_v7 = vld [vmem:[%s11778_s15 + $0xc58] sm:$0xff] }
  0x9b   : > { %523 = vst [vmem:[%s11783_s16 + $0x440] sm:$0xff] %v522_v8  ;;  %v650_v8 = vld [vmem:[%s11778_s15 + $0xc80] sm:$0xff] }
  0x9c   : > { %525 = vst [vmem:[%s11783_s16 + $0x448] sm:$0xff] %v524_v9  ;;  %v652_v9 = vld [vmem:[%s11778_s15 + $0xc88] sm:$0xff] }
  0x9d   : > { %527 = vst [vmem:[%s11783_s16 + $0x450] sm:$0xff] %v526_v10  ;;  %v654_v10 = vld [vmem:[%s11778_s15 + $0xc90] sm:$0xff] }
  0x9e   : > { %529 = vst [vmem:[%s11783_s16 + $0x458] sm:$0xff] %v528_v11  ;;  %v656_v11 = vld [vmem:[%s11778_s15 + $0xc98] sm:$0xff] }
  0x9f   : > { %531 = vst [vmem:[%s11783_s16 + $0x460] sm:$0xff] %v530_v12  ;;  %v658_v12 = vld [vmem:[%s11778_s15 + $0xcc0] sm:$0xff] }
  0xa0   : > { %533 = vst [vmem:[%s11783_s16 + $0x468] sm:$0xff] %v532_v13  ;;  %v660_v13 = vld [vmem:[%s11778_s15 + $0xcc8] sm:$0xff] }
  0xa1   : > { %535 = vst [vmem:[%s11783_s16 + $0x470] sm:$0xff] %v534_v14  ;;  %v662_v14 = vld [vmem:[%s11778_s15 + $0xcd0] sm:$0xff] }
  0xa2   : > { %537 = vst [vmem:[%s11783_s16 + $0x478] sm:$0xff] %v536_v15  ;;  %v664_v15 = vld [vmem:[%s11778_s15 + $0xcd8] sm:$0xff] }
  0xa3   : > { %539 = vst [vmem:[%s11783_s16 + $0x480] sm:$0xff] %v538_v16  ;;  %v666_v16 = vld [vmem:[%s11778_s15 + $0xd00] sm:$0xff] }
  0xa4   : > { %541 = vst [vmem:[%s11783_s16 + $0x488] sm:$0xff] %v540_v17  ;;  %v668_v17 = vld [vmem:[%s11778_s15 + $0xd08] sm:$0xff] }
  0xa5   : > { %543 = vst [vmem:[%s11783_s16 + $0x490] sm:$0xff] %v542_v18  ;;  %v670_v18 = vld [vmem:[%s11778_s15 + $0xd10] sm:$0xff] }
  0xa6   : > { %545 = vst [vmem:[%s11783_s16 + $0x498] sm:$0xff] %v544_v19  ;;  %v672_v19 = vld [vmem:[%s11778_s15 + $0xd18] sm:$0xff] }
  0xa7   : > { %547 = vst [vmem:[%s11783_s16 + $0x4a0] sm:$0xff] %v546_v20  ;;  %v674_v20 = vld [vmem:[%s11778_s15 + $0xd40] sm:$0xff] }
  0xa8   : > { %549 = vst [vmem:[%s11783_s16 + $0x4a8] sm:$0xff] %v548_v21  ;;  %v676_v21 = vld [vmem:[%s11778_s15 + $0xd48] sm:$0xff] }
  0xa9   : > { %551 = vst [vmem:[%s11783_s16 + $0x4b0] sm:$0xff] %v550_v22  ;;  %v678_v22 = vld [vmem:[%s11778_s15 + $0xd50] sm:$0xff] }
  0xaa   : > { %553 = vst [vmem:[%s11783_s16 + $0x4b8] sm:$0xff] %v552_v23  ;;  %v680_v23 = vld [vmem:[%s11778_s15 + $0xd58] sm:$0xff] }
  0xab   : > { %555 = vst [vmem:[%s11783_s16 + $0x4c0] sm:$0xff] %v554_v24  ;;  %v682_v24 = vld [vmem:[%s11778_s15 + $0xd80] sm:$0xff] }
  0xac   : > { %557 = vst [vmem:[%s11783_s16 + $0x4c8] sm:$0xff] %v556_v25  ;;  %v684_v25 = vld [vmem:[%s11778_s15 + $0xd88] sm:$0xff] }
  0xad   : > { %559 = vst [vmem:[%s11783_s16 + $0x4d0] sm:$0xff] %v558_v26  ;;  %v686_v26 = vld [vmem:[%s11778_s15 + $0xd90] sm:$0xff] }
  0xae   : > { %561 = vst [vmem:[%s11783_s16 + $0x4d8] sm:$0xff] %v560_v27  ;;  %v688_v27 = vld [vmem:[%s11778_s15 + $0xd98] sm:$0xff] }
  0xaf   : > { %563 = vst [vmem:[%s11783_s16 + $0x4e0] sm:$0xff] %v562_v28  ;;  %v690_v28 = vld [vmem:[%s11778_s15 + $0xdc0] sm:$0xff] }
  0xb0   : > { %565 = vst [vmem:[%s11783_s16 + $0x4e8] sm:$0xff] %v564_v29  ;;  %v692_v29 = vld [vmem:[%s11778_s15 + $0xdc8] sm:$0xff] }
  0xb1   : > { %567 = vst [vmem:[%s11783_s16 + $0x4f0] sm:$0xff] %v566_v30  ;;  %v694_v30 = vld [vmem:[%s11778_s15 + $0xdd0] sm:$0xff] }
  0xb2   : > { %569 = vst [vmem:[%s11783_s16 + $0x4f8] sm:$0xff] %v568_v31  ;;  %v696_v31 = vld [vmem:[%s11778_s15 + $0xdd8] sm:$0xff] }
  0xb3   : > { %571 = vst [vmem:[%s11783_s16 + $0x500] sm:$0xff] %v570_v32  ;;  %v698_v32 = vld [vmem:[%s11778_s15 + $0xe00] sm:$0xff] }
  0xb4   : > { %573 = vst [vmem:[%s11783_s16 + $0x508] sm:$0xff] %v572_v33  ;;  %v700_v33 = vld [vmem:[%s11778_s15 + $0xe08] sm:$0xff] }
  0xb5   : > { %575 = vst [vmem:[%s11783_s16 + $0x510] sm:$0xff] %v574_v34  ;;  %v702_v34 = vld [vmem:[%s11778_s15 + $0xe10] sm:$0xff] }
  0xb6   : > { %577 = vst [vmem:[%s11783_s16 + $0x518] sm:$0xff] %v576_v35  ;;  %v704_v35 = vld [vmem:[%s11778_s15 + $0xe18] sm:$0xff] }
  0xb7   : > { %579 = vst [vmem:[%s11783_s16 + $0x520] sm:$0xff] %v578_v36  ;;  %v706_v36 = vld [vmem:[%s11778_s15 + $0xe40] sm:$0xff] }
  0xb8   : > { %581 = vst [vmem:[%s11783_s16 + $0x528] sm:$0xff] %v580_v37  ;;  %v708_v37 = vld [vmem:[%s11778_s15 + $0xe48] sm:$0xff] }
  0xb9   : > { %583 = vst [vmem:[%s11783_s16 + $0x530] sm:$0xff] %v582_v38  ;;  %v710_v38 = vld [vmem:[%s11778_s15 + $0xe50] sm:$0xff] }
  0xba   : > { %585 = vst [vmem:[%s11783_s16 + $0x538] sm:$0xff] %v584_v39  ;;  %v712_v39 = vld [vmem:[%s11778_s15 + $0xe58] sm:$0xff] }
  0xbb   : > { %587 = vst [vmem:[%s11783_s16 + $0x540] sm:$0xff] %v586_v40  ;;  %v714_v40 = vld [vmem:[%s11778_s15 + $0xe80] sm:$0xff] }
  0xbc   : > { %589 = vst [vmem:[%s11783_s16 + $0x548] sm:$0xff] %v588_v41  ;;  %v716_v41 = vld [vmem:[%s11778_s15 + $0xe88] sm:$0xff] }
  0xbd   : > { %591 = vst [vmem:[%s11783_s16 + $0x550] sm:$0xff] %v590_v42  ;;  %v718_v42 = vld [vmem:[%s11778_s15 + $0xe90] sm:$0xff] }
  0xbe   : > { %593 = vst [vmem:[%s11783_s16 + $0x558] sm:$0xff] %v592_v43  ;;  %v720_v43 = vld [vmem:[%s11778_s15 + $0xe98] sm:$0xff] }
  0xbf   : > { %595 = vst [vmem:[%s11783_s16 + $0x560] sm:$0xff] %v594_v44  ;;  %v722_v44 = vld [vmem:[%s11778_s15 + $0xec0] sm:$0xff] }
  0xc0   : > { %597 = vst [vmem:[%s11783_s16 + $0x568] sm:$0xff] %v596_v45  ;;  %v724_v45 = vld [vmem:[%s11778_s15 + $0xec8] sm:$0xff] }
  0xc1   : > { %599 = vst [vmem:[%s11783_s16 + $0x570] sm:$0xff] %v598_v46  ;;  %v726_v46 = vld [vmem:[%s11778_s15 + $0xed0] sm:$0xff] }
  0xc2   : > { %601 = vst [vmem:[%s11783_s16 + $0x578] sm:$0xff] %v600_v47  ;;  %v728_v47 = vld [vmem:[%s11778_s15 + $0xed8] sm:$0xff] }
  0xc3   : > { %603 = vst [vmem:[%s11783_s16 + $0x580] sm:$0xff] %v602_v48  ;;  %v730_v48 = vld [vmem:[%s11778_s15 + $0xf00] sm:$0xff] }
  0xc4   : > { %605 = vst [vmem:[%s11783_s16 + $0x588] sm:$0xff] %v604_v49  ;;  %v732_v49 = vld [vmem:[%s11778_s15 + $0xf08] sm:$0xff] }
  0xc5   : > { %607 = vst [vmem:[%s11783_s16 + $0x590] sm:$0xff] %v606_v50  ;;  %v734_v50 = vld [vmem:[%s11778_s15 + $0xf10] sm:$0xff] }
  0xc6   : > { %609 = vst [vmem:[%s11783_s16 + $0x598] sm:$0xff] %v608_v51  ;;  %v736_v51 = vld [vmem:[%s11778_s15 + $0xf18] sm:$0xff] }
  0xc7   : > { %611 = vst [vmem:[%s11783_s16 + $0x5a0] sm:$0xff] %v610_v52  ;;  %v738_v52 = vld [vmem:[%s11778_s15 + $0xf40] sm:$0xff] }
  0xc8   : > { %613 = vst [vmem:[%s11783_s16 + $0x5a8] sm:$0xff] %v612_v53  ;;  %v740_v53 = vld [vmem:[%s11778_s15 + $0xf48] sm:$0xff] }
  0xc9   : > { %615 = vst [vmem:[%s11783_s16 + $0x5b0] sm:$0xff] %v614_v54  ;;  %v742_v54 = vld [vmem:[%s11778_s15 + $0xf50] sm:$0xff] }
  0xca   : > { %617 = vst [vmem:[%s11783_s16 + $0x5b8] sm:$0xff] %v616_v55  ;;  %v744_v55 = vld [vmem:[%s11778_s15 + $0xf58] sm:$0xff] }
  0xcb   : > { %619 = vst [vmem:[%s11783_s16 + $0x5c0] sm:$0xff] %v618_v56  ;;  %v746_v56 = vld [vmem:[%s11778_s15 + $0xf80] sm:$0xff] }
  0xcc   : > { %621 = vst [vmem:[%s11783_s16 + $0x5c8] sm:$0xff] %v620_v57  ;;  %v748_v57 = vld [vmem:[%s11778_s15 + $0xf88] sm:$0xff] }
  0xcd   : > { %623 = vst [vmem:[%s11783_s16 + $0x5d0] sm:$0xff] %v622_v58  ;;  %v750_v58 = vld [vmem:[%s11778_s15 + $0xf90] sm:$0xff] }
  0xce   : > { %625 = vst [vmem:[%s11783_s16 + $0x5d8] sm:$0xff] %v624_v59  ;;  %v752_v59 = vld [vmem:[%s11778_s15 + $0xf98] sm:$0xff] }
  0xcf   : > { %627 = vst [vmem:[%s11783_s16 + $0x5e0] sm:$0xff] %v626_v60  ;;  %v754_v60 = vld [vmem:[%s11778_s15 + $0xfc0] sm:$0xff] }
  0xd0   : > { %629 = vst [vmem:[%s11783_s16 + $0x5e8] sm:$0xff] %v628_v61  ;;  %v756_v61 = vld [vmem:[%s11778_s15 + $0xfc8] sm:$0xff] }
  0xd1   : > { %631 = vst [vmem:[%s11783_s16 + $0x5f0] sm:$0xff] %v630_v62  ;;  %v758_v62 = vld [vmem:[%s11778_s15 + $0xfd0] sm:$0xff] }
  0xd2   : > { %633 = vst [vmem:[%s11783_s16 + $0x5f8] sm:$0xff] %v632_v63  ;;  %v760_v63 = vld [vmem:[%s11778_s15 + $0xfd8] sm:$0xff] }
  0xd3   : > { %635 = vst [vmem:[%s11783_s16 + $0x600] sm:$0xff] %v634_v0  ;;  %v762_v0 = vld [vmem:[%s11778_s15 + $0x1000] sm:$0xff] }
  0xd4   : > { %637 = vst [vmem:[%s11783_s16 + $0x608] sm:$0xff] %v636_v1  ;;  %v764_v1 = vld [vmem:[%s11778_s15 + $0x1008] sm:$0xff] }
  0xd5   : > { %639 = vst [vmem:[%s11783_s16 + $0x610] sm:$0xff] %v638_v2  ;;  %v766_v2 = vld [vmem:[%s11778_s15 + $0x1010] sm:$0xff] }
  0xd6   : > { %641 = vst [vmem:[%s11783_s16 + $0x618] sm:$0xff] %v640_v3  ;;  %v768_v3 = vld [vmem:[%s11778_s15 + $0x1018] sm:$0xff] }
  0xd7   : > { %643 = vst [vmem:[%s11783_s16 + $0x620] sm:$0xff] %v642_v4  ;;  %v770_v4 = vld [vmem:[%s11778_s15 + $0x1040] sm:$0xff] }
  0xd8   : > { %645 = vst [vmem:[%s11783_s16 + $0x628] sm:$0xff] %v644_v5  ;;  %v772_v5 = vld [vmem:[%s11778_s15 + $0x1048] sm:$0xff] }
  0xd9   : > { %647 = vst [vmem:[%s11783_s16 + $0x630] sm:$0xff] %v646_v6  ;;  %v774_v6 = vld [vmem:[%s11778_s15 + $0x1050] sm:$0xff] }
  0xda   : > { %649 = vst [vmem:[%s11783_s16 + $0x638] sm:$0xff] %v648_v7  ;;  %v776_v7 = vld [vmem:[%s11778_s15 + $0x1058] sm:$0xff] }
  0xdb   : > { %651 = vst [vmem:[%s11783_s16 + $0x640] sm:$0xff] %v650_v8  ;;  %v778_v8 = vld [vmem:[%s11778_s15 + $0x1080] sm:$0xff] }
  0xdc   : > { %653 = vst [vmem:[%s11783_s16 + $0x648] sm:$0xff] %v652_v9  ;;  %v780_v9 = vld [vmem:[%s11778_s15 + $0x1088] sm:$0xff] }
  0xdd   : > { %655 = vst [vmem:[%s11783_s16 + $0x650] sm:$0xff] %v654_v10  ;;  %v782_v10 = vld [vmem:[%s11778_s15 + $0x1090] sm:$0xff] }
  0xde   : > { %657 = vst [vmem:[%s11783_s16 + $0x658] sm:$0xff] %v656_v11  ;;  %v784_v11 = vld [vmem:[%s11778_s15 + $0x1098] sm:$0xff] }
  0xdf   : > { %659 = vst [vmem:[%s11783_s16 + $0x660] sm:$0xff] %v658_v12  ;;  %v786_v12 = vld [vmem:[%s11778_s15 + $0x10c0] sm:$0xff] }
  0xe0   : > { %661 = vst [vmem:[%s11783_s16 + $0x668] sm:$0xff] %v660_v13  ;;  %v788_v13 = vld [vmem:[%s11778_s15 + $0x10c8] sm:$0xff] }
  0xe1   : > { %663 = vst [vmem:[%s11783_s16 + $0x670] sm:$0xff] %v662_v14  ;;  %v790_v14 = vld [vmem:[%s11778_s15 + $0x10d0] sm:$0xff] }
  0xe2   : > { %665 = vst [vmem:[%s11783_s16 + $0x678] sm:$0xff] %v664_v15  ;;  %v792_v15 = vld [vmem:[%s11778_s15 + $0x10d8] sm:$0xff] }
  0xe3   : > { %667 = vst [vmem:[%s11783_s16 + $0x680] sm:$0xff] %v666_v16  ;;  %v794_v16 = vld [vmem:[%s11778_s15 + $0x1100] sm:$0xff] }
  0xe4   : > { %669 = vst [vmem:[%s11783_s16 + $0x688] sm:$0xff] %v668_v17  ;;  %v796_v17 = vld [vmem:[%s11778_s15 + $0x1108] sm:$0xff] }
  0xe5   : > { %671 = vst [vmem:[%s11783_s16 + $0x690] sm:$0xff] %v670_v18  ;;  %v798_v18 = vld [vmem:[%s11778_s15 + $0x1110] sm:$0xff] }
  0xe6   : > { %673 = vst [vmem:[%s11783_s16 + $0x698] sm:$0xff] %v672_v19  ;;  %v800_v19 = vld [vmem:[%s11778_s15 + $0x1118] sm:$0xff] }
  0xe7   : > { %675 = vst [vmem:[%s11783_s16 + $0x6a0] sm:$0xff] %v674_v20  ;;  %v802_v20 = vld [vmem:[%s11778_s15 + $0x1140] sm:$0xff] }
  0xe8   : > { %677 = vst [vmem:[%s11783_s16 + $0x6a8] sm:$0xff] %v676_v21  ;;  %v804_v21 = vld [vmem:[%s11778_s15 + $0x1148] sm:$0xff] }
  0xe9   : > { %679 = vst [vmem:[%s11783_s16 + $0x6b0] sm:$0xff] %v678_v22  ;;  %v806_v22 = vld [vmem:[%s11778_s15 + $0x1150] sm:$0xff] }
  0xea   : > { %681 = vst [vmem:[%s11783_s16 + $0x6b8] sm:$0xff] %v680_v23  ;;  %v808_v23 = vld [vmem:[%s11778_s15 + $0x1158] sm:$0xff] }
  0xeb   : > { %683 = vst [vmem:[%s11783_s16 + $0x6c0] sm:$0xff] %v682_v24  ;;  %v810_v24 = vld [vmem:[%s11778_s15 + $0x1180] sm:$0xff] }
  0xec   : > { %685 = vst [vmem:[%s11783_s16 + $0x6c8] sm:$0xff] %v684_v25  ;;  %v812_v25 = vld [vmem:[%s11778_s15 + $0x1188] sm:$0xff] }
  0xed   : > { %687 = vst [vmem:[%s11783_s16 + $0x6d0] sm:$0xff] %v686_v26  ;;  %v814_v26 = vld [vmem:[%s11778_s15 + $0x1190] sm:$0xff] }
  0xee   : > { %689 = vst [vmem:[%s11783_s16 + $0x6d8] sm:$0xff] %v688_v27  ;;  %v816_v27 = vld [vmem:[%s11778_s15 + $0x1198] sm:$0xff] }
  0xef   : > { %691 = vst [vmem:[%s11783_s16 + $0x6e0] sm:$0xff] %v690_v28  ;;  %v818_v28 = vld [vmem:[%s11778_s15 + $0x11c0] sm:$0xff] }
  0xf0   : > { %693 = vst [vmem:[%s11783_s16 + $0x6e8] sm:$0xff] %v692_v29  ;;  %v820_v29 = vld [vmem:[%s11778_s15 + $0x11c8] sm:$0xff] }
  0xf1   : > { %695 = vst [vmem:[%s11783_s16 + $0x6f0] sm:$0xff] %v694_v30  ;;  %v822_v30 = vld [vmem:[%s11778_s15 + $0x11d0] sm:$0xff] }
  0xf2   : > { %697 = vst [vmem:[%s11783_s16 + $0x6f8] sm:$0xff] %v696_v31  ;;  %v824_v31 = vld [vmem:[%s11778_s15 + $0x11d8] sm:$0xff] }
  0xf3   : > { %699 = vst [vmem:[%s11783_s16 + $0x700] sm:$0xff] %v698_v32  ;;  %v826_v32 = vld [vmem:[%s11778_s15 + $0x1200] sm:$0xff] }
  0xf4   : > { %701 = vst [vmem:[%s11783_s16 + $0x708] sm:$0xff] %v700_v33  ;;  %v828_v33 = vld [vmem:[%s11778_s15 + $0x1208] sm:$0xff] }
  0xf5   : > { %703 = vst [vmem:[%s11783_s16 + $0x710] sm:$0xff] %v702_v34  ;;  %v830_v34 = vld [vmem:[%s11778_s15 + $0x1210] sm:$0xff] }
  0xf6   : > { %705 = vst [vmem:[%s11783_s16 + $0x718] sm:$0xff] %v704_v35  ;;  %v832_v35 = vld [vmem:[%s11778_s15 + $0x1218] sm:$0xff] }
  0xf7   : > { %707 = vst [vmem:[%s11783_s16 + $0x720] sm:$0xff] %v706_v36  ;;  %v834_v36 = vld [vmem:[%s11778_s15 + $0x1240] sm:$0xff] }
  0xf8   : > { %709 = vst [vmem:[%s11783_s16 + $0x728] sm:$0xff] %v708_v37  ;;  %v836_v37 = vld [vmem:[%s11778_s15 + $0x1248] sm:$0xff] }
  0xf9   : > { %711 = vst [vmem:[%s11783_s16 + $0x730] sm:$0xff] %v710_v38  ;;  %v838_v38 = vld [vmem:[%s11778_s15 + $0x1250] sm:$0xff] }
  0xfa   : > { %713 = vst [vmem:[%s11783_s16 + $0x738] sm:$0xff] %v712_v39  ;;  %v840_v39 = vld [vmem:[%s11778_s15 + $0x1258] sm:$0xff] }
  0xfb   : > { %715 = vst [vmem:[%s11783_s16 + $0x740] sm:$0xff] %v714_v40  ;;  %v842_v40 = vld [vmem:[%s11778_s15 + $0x1280] sm:$0xff] }
  0xfc   : > { %717 = vst [vmem:[%s11783_s16 + $0x748] sm:$0xff] %v716_v41  ;;  %v844_v41 = vld [vmem:[%s11778_s15 + $0x1288] sm:$0xff] }
  0xfd   : > { %719 = vst [vmem:[%s11783_s16 + $0x750] sm:$0xff] %v718_v42  ;;  %v846_v42 = vld [vmem:[%s11778_s15 + $0x1290] sm:$0xff] }
  0xfe   : > { %721 = vst [vmem:[%s11783_s16 + $0x758] sm:$0xff] %v720_v43  ;;  %v848_v43 = vld [vmem:[%s11778_s15 + $0x1298] sm:$0xff] }
  0xff   : > { %723 = vst [vmem:[%s11783_s16 + $0x760] sm:$0xff] %v722_v44  ;;  %v850_v44 = vld [vmem:[%s11778_s15 + $0x12c0] sm:$0xff] }
 0x100   : > { %725 = vst [vmem:[%s11783_s16 + $0x768] sm:$0xff] %v724_v45  ;;  %v852_v45 = vld [vmem:[%s11778_s15 + $0x12c8] sm:$0xff] }
 0x101   : > { %727 = vst [vmem:[%s11783_s16 + $0x770] sm:$0xff] %v726_v46  ;;  %v854_v46 = vld [vmem:[%s11778_s15 + $0x12d0] sm:$0xff] }
 0x102   : > { %729 = vst [vmem:[%s11783_s16 + $0x778] sm:$0xff] %v728_v47  ;;  %v856_v47 = vld [vmem:[%s11778_s15 + $0x12d8] sm:$0xff] }
 0x103   : > { %731 = vst [vmem:[%s11783_s16 + $0x780] sm:$0xff] %v730_v48  ;;  %v858_v48 = vld [vmem:[%s11778_s15 + $0x1300] sm:$0xff] }
 0x104   : > { %733 = vst [vmem:[%s11783_s16 + $0x788] sm:$0xff] %v732_v49  ;;  %v860_v49 = vld [vmem:[%s11778_s15 + $0x1308] sm:$0xff] }
 0x105   : > { %735 = vst [vmem:[%s11783_s16 + $0x790] sm:$0xff] %v734_v50  ;;  %v862_v50 = vld [vmem:[%s11778_s15 + $0x1310] sm:$0xff] }
 0x106   : > { %737 = vst [vmem:[%s11783_s16 + $0x798] sm:$0xff] %v736_v51  ;;  %v864_v51 = vld [vmem:[%s11778_s15 + $0x1318] sm:$0xff] }
 0x107   : > { %739 = vst [vmem:[%s11783_s16 + $0x7a0] sm:$0xff] %v738_v52  ;;  %v866_v52 = vld [vmem:[%s11778_s15 + $0x1340] sm:$0xff] }
 0x108   : > { %741 = vst [vmem:[%s11783_s16 + $0x7a8] sm:$0xff] %v740_v53  ;;  %v868_v53 = vld [vmem:[%s11778_s15 + $0x1348] sm:$0xff] }
 0x109   : > { %743 = vst [vmem:[%s11783_s16 + $0x7b0] sm:$0xff] %v742_v54  ;;  %v870_v54 = vld [vmem:[%s11778_s15 + $0x1350] sm:$0xff] }
 0x10a   : > { %745 = vst [vmem:[%s11783_s16 + $0x7b8] sm:$0xff] %v744_v55  ;;  %v872_v55 = vld [vmem:[%s11778_s15 + $0x1358] sm:$0xff] }
 0x10b   : > { %747 = vst [vmem:[%s11783_s16 + $0x7c0] sm:$0xff] %v746_v56  ;;  %v874_v56 = vld [vmem:[%s11778_s15 + $0x1380] sm:$0xff] }
 0x10c   : > { %749 = vst [vmem:[%s11783_s16 + $0x7c8] sm:$0xff] %v748_v57  ;;  %v876_v57 = vld [vmem:[%s11778_s15 + $0x1388] sm:$0xff] }
 0x10d   : > { %751 = vst [vmem:[%s11783_s16 + $0x7d0] sm:$0xff] %v750_v58  ;;  %v878_v58 = vld [vmem:[%s11778_s15 + $0x1390] sm:$0xff] }
 0x10e   : > { %753 = vst [vmem:[%s11783_s16 + $0x7d8] sm:$0xff] %v752_v59  ;;  %v880_v59 = vld [vmem:[%s11778_s15 + $0x1398] sm:$0xff] }
 0x10f   : > { %755 = vst [vmem:[%s11783_s16 + $0x7e0] sm:$0xff] %v754_v60  ;;  %v882_v60 = vld [vmem:[%s11778_s15 + $0x13c0] sm:$0xff] }
 0x110   : > { %757 = vst [vmem:[%s11783_s16 + $0x7e8] sm:$0xff] %v756_v61  ;;  %v884_v61 = vld [vmem:[%s11778_s15 + $0x13c8] sm:$0xff] }
 0x111   : > { %759 = vst [vmem:[%s11783_s16 + $0x7f0] sm:$0xff] %v758_v62  ;;  %v886_v62 = vld [vmem:[%s11778_s15 + $0x13d0] sm:$0xff] }
 0x112   : > { %761 = vst [vmem:[%s11783_s16 + $0x7f8] sm:$0xff] %v760_v63  ;;  %v888_v63 = vld [vmem:[%s11778_s15 + $0x13d8] sm:$0xff] }
 0x113   : > { %763 = vst [vmem:[%s11783_s16 + $0x800] sm:$0xff] %v762_v0  ;;  %v890_v0 = vld [vmem:[%s11778_s15 + $0x1400] sm:$0xff] }
 0x114   : > { %765 = vst [vmem:[%s11783_s16 + $0x808] sm:$0xff] %v764_v1  ;;  %v892_v1 = vld [vmem:[%s11778_s15 + $0x1408] sm:$0xff] }
 0x115   : > { %767 = vst [vmem:[%s11783_s16 + $0x810] sm:$0xff] %v766_v2  ;;  %v894_v2 = vld [vmem:[%s11778_s15 + $0x1410] sm:$0xff] }
 0x116   : > { %769 = vst [vmem:[%s11783_s16 + $0x818] sm:$0xff] %v768_v3  ;;  %v896_v3 = vld [vmem:[%s11778_s15 + $0x1418] sm:$0xff] }
 0x117   : > { %771 = vst [vmem:[%s11783_s16 + $0x820] sm:$0xff] %v770_v4  ;;  %v898_v4 = vld [vmem:[%s11778_s15 + $0x1440] sm:$0xff] }
 0x118   : > { %773 = vst [vmem:[%s11783_s16 + $0x828] sm:$0xff] %v772_v5  ;;  %v900_v5 = vld [vmem:[%s11778_s15 + $0x1448] sm:$0xff] }
 0x119   : > { %775 = vst [vmem:[%s11783_s16 + $0x830] sm:$0xff] %v774_v6  ;;  %v902_v6 = vld [vmem:[%s11778_s15 + $0x1450] sm:$0xff] }
 0x11a   : > { %777 = vst [vmem:[%s11783_s16 + $0x838] sm:$0xff] %v776_v7  ;;  %v904_v7 = vld [vmem:[%s11778_s15 + $0x1458] sm:$0xff] }
 0x11b   : > { %779 = vst [vmem:[%s11783_s16 + $0x840] sm:$0xff] %v778_v8  ;;  %v906_v8 = vld [vmem:[%s11778_s15 + $0x1480] sm:$0xff] }
 0x11c   : > { %781 = vst [vmem:[%s11783_s16 + $0x848] sm:$0xff] %v780_v9  ;;  %v908_v9 = vld [vmem:[%s11778_s15 + $0x1488] sm:$0xff] }
 0x11d   : > { %783 = vst [vmem:[%s11783_s16 + $0x850] sm:$0xff] %v782_v10  ;;  %v910_v10 = vld [vmem:[%s11778_s15 + $0x1490] sm:$0xff] }
 0x11e   : > { %785 = vst [vmem:[%s11783_s16 + $0x858] sm:$0xff] %v784_v11  ;;  %v912_v11 = vld [vmem:[%s11778_s15 + $0x1498] sm:$0xff] }
 0x11f   : > { %787 = vst [vmem:[%s11783_s16 + $0x860] sm:$0xff] %v786_v12  ;;  %v914_v12 = vld [vmem:[%s11778_s15 + $0x14c0] sm:$0xff] }
 0x120   : > { %789 = vst [vmem:[%s11783_s16 + $0x868] sm:$0xff] %v788_v13  ;;  %v916_v13 = vld [vmem:[%s11778_s15 + $0x14c8] sm:$0xff] }
 0x121   : > { %791 = vst [vmem:[%s11783_s16 + $0x870] sm:$0xff] %v790_v14  ;;  %v918_v14 = vld [vmem:[%s11778_s15 + $0x14d0] sm:$0xff] }
 0x122   : > { %793 = vst [vmem:[%s11783_s16 + $0x878] sm:$0xff] %v792_v15  ;;  %v920_v15 = vld [vmem:[%s11778_s15 + $0x14d8] sm:$0xff] }
 0x123   : > { %795 = vst [vmem:[%s11783_s16 + $0x880] sm:$0xff] %v794_v16  ;;  %v922_v16 = vld [vmem:[%s11778_s15 + $0x1500] sm:$0xff] }
 0x124   : > { %797 = vst [vmem:[%s11783_s16 + $0x888] sm:$0xff] %v796_v17  ;;  %v924_v17 = vld [vmem:[%s11778_s15 + $0x1508] sm:$0xff] }
 0x125   : > { %799 = vst [vmem:[%s11783_s16 + $0x890] sm:$0xff] %v798_v18  ;;  %v926_v18 = vld [vmem:[%s11778_s15 + $0x1510] sm:$0xff] }
 0x126   : > { %801 = vst [vmem:[%s11783_s16 + $0x898] sm:$0xff] %v800_v19  ;;  %v928_v19 = vld [vmem:[%s11778_s15 + $0x1518] sm:$0xff] }
 0x127   : > { %803 = vst [vmem:[%s11783_s16 + $0x8a0] sm:$0xff] %v802_v20  ;;  %v930_v20 = vld [vmem:[%s11778_s15 + $0x1540] sm:$0xff] }
 0x128   : > { %805 = vst [vmem:[%s11783_s16 + $0x8a8] sm:$0xff] %v804_v21  ;;  %v932_v21 = vld [vmem:[%s11778_s15 + $0x1548] sm:$0xff] }
 0x129   : > { %807 = vst [vmem:[%s11783_s16 + $0x8b0] sm:$0xff] %v806_v22  ;;  %v934_v22 = vld [vmem:[%s11778_s15 + $0x1550] sm:$0xff] }
 0x12a   : > { %809 = vst [vmem:[%s11783_s16 + $0x8b8] sm:$0xff] %v808_v23  ;;  %v936_v23 = vld [vmem:[%s11778_s15 + $0x1558] sm:$0xff] }
 0x12b   : > { %811 = vst [vmem:[%s11783_s16 + $0x8c0] sm:$0xff] %v810_v24  ;;  %v938_v24 = vld [vmem:[%s11778_s15 + $0x1580] sm:$0xff] }
 0x12c   : > { %813 = vst [vmem:[%s11783_s16 + $0x8c8] sm:$0xff] %v812_v25  ;;  %v940_v25 = vld [vmem:[%s11778_s15 + $0x1588] sm:$0xff] }
 0x12d   : > { %815 = vst [vmem:[%s11783_s16 + $0x8d0] sm:$0xff] %v814_v26  ;;  %v942_v26 = vld [vmem:[%s11778_s15 + $0x1590] sm:$0xff] }
 0x12e   : > { %817 = vst [vmem:[%s11783_s16 + $0x8d8] sm:$0xff] %v816_v27  ;;  %v944_v27 = vld [vmem:[%s11778_s15 + $0x1598] sm:$0xff] }
 0x12f   : > { %819 = vst [vmem:[%s11783_s16 + $0x8e0] sm:$0xff] %v818_v28  ;;  %v946_v28 = vld [vmem:[%s11778_s15 + $0x15c0] sm:$0xff] }
 0x130   : > { %821 = vst [vmem:[%s11783_s16 + $0x8e8] sm:$0xff] %v820_v29  ;;  %v948_v29 = vld [vmem:[%s11778_s15 + $0x15c8] sm:$0xff] }
 0x131   : > { %823 = vst [vmem:[%s11783_s16 + $0x8f0] sm:$0xff] %v822_v30  ;;  %v950_v30 = vld [vmem:[%s11778_s15 + $0x15d0] sm:$0xff] }
 0x132   : > { %825 = vst [vmem:[%s11783_s16 + $0x8f8] sm:$0xff] %v824_v31  ;;  %v952_v31 = vld [vmem:[%s11778_s15 + $0x15d8] sm:$0xff] }
 0x133   : > { %827 = vst [vmem:[%s11783_s16 + $0x900] sm:$0xff] %v826_v32  ;;  %v954_v32 = vld [vmem:[%s11778_s15 + $0x1600] sm:$0xff] }
 0x134   : > { %829 = vst [vmem:[%s11783_s16 + $0x908] sm:$0xff] %v828_v33  ;;  %v956_v33 = vld [vmem:[%s11778_s15 + $0x1608] sm:$0xff] }
 0x135   : > { %831 = vst [vmem:[%s11783_s16 + $0x910] sm:$0xff] %v830_v34  ;;  %v958_v34 = vld [vmem:[%s11778_s15 + $0x1610] sm:$0xff] }
 0x136   : > { %833 = vst [vmem:[%s11783_s16 + $0x918] sm:$0xff] %v832_v35  ;;  %v960_v35 = vld [vmem:[%s11778_s15 + $0x1618] sm:$0xff] }
 0x137   : > { %835 = vst [vmem:[%s11783_s16 + $0x920] sm:$0xff] %v834_v36  ;;  %v962_v36 = vld [vmem:[%s11778_s15 + $0x1640] sm:$0xff] }
 0x138   : > { %837 = vst [vmem:[%s11783_s16 + $0x928] sm:$0xff] %v836_v37  ;;  %v964_v37 = vld [vmem:[%s11778_s15 + $0x1648] sm:$0xff] }
 0x139   : > { %839 = vst [vmem:[%s11783_s16 + $0x930] sm:$0xff] %v838_v38  ;;  %v966_v38 = vld [vmem:[%s11778_s15 + $0x1650] sm:$0xff] }
 0x13a   : > { %841 = vst [vmem:[%s11783_s16 + $0x938] sm:$0xff] %v840_v39  ;;  %v968_v39 = vld [vmem:[%s11778_s15 + $0x1658] sm:$0xff] }
 0x13b   : > { %843 = vst [vmem:[%s11783_s16 + $0x940] sm:$0xff] %v842_v40  ;;  %v970_v40 = vld [vmem:[%s11778_s15 + $0x1680] sm:$0xff] }
 0x13c   : > { %845 = vst [vmem:[%s11783_s16 + $0x948] sm:$0xff] %v844_v41  ;;  %v972_v41 = vld [vmem:[%s11778_s15 + $0x1688] sm:$0xff] }
 0x13d   : > { %847 = vst [vmem:[%s11783_s16 + $0x950] sm:$0xff] %v846_v42  ;;  %v974_v42 = vld [vmem:[%s11778_s15 + $0x1690] sm:$0xff] }
 0x13e   : > { %849 = vst [vmem:[%s11783_s16 + $0x958] sm:$0xff] %v848_v43  ;;  %v976_v43 = vld [vmem:[%s11778_s15 + $0x1698] sm:$0xff] }
 0x13f   : > { %851 = vst [vmem:[%s11783_s16 + $0x960] sm:$0xff] %v850_v44  ;;  %v978_v44 = vld [vmem:[%s11778_s15 + $0x16c0] sm:$0xff] }
 0x140   : > { %853 = vst [vmem:[%s11783_s16 + $0x968] sm:$0xff] %v852_v45  ;;  %v980_v45 = vld [vmem:[%s11778_s15 + $0x16c8] sm:$0xff] }
 0x141   : > { %855 = vst [vmem:[%s11783_s16 + $0x970] sm:$0xff] %v854_v46  ;;  %v982_v46 = vld [vmem:[%s11778_s15 + $0x16d0] sm:$0xff] }
 0x142   : > { %857 = vst [vmem:[%s11783_s16 + $0x978] sm:$0xff] %v856_v47  ;;  %v984_v47 = vld [vmem:[%s11778_s15 + $0x16d8] sm:$0xff] }
 0x143   : > { %859 = vst [vmem:[%s11783_s16 + $0x980] sm:$0xff] %v858_v48  ;;  %v986_v48 = vld [vmem:[%s11778_s15 + $0x1700] sm:$0xff] }
 0x144   : > { %861 = vst [vmem:[%s11783_s16 + $0x988] sm:$0xff] %v860_v49  ;;  %v988_v49 = vld [vmem:[%s11778_s15 + $0x1708] sm:$0xff] }
 0x145   : > { %863 = vst [vmem:[%s11783_s16 + $0x990] sm:$0xff] %v862_v50  ;;  %v990_v50 = vld [vmem:[%s11778_s15 + $0x1710] sm:$0xff] }
 0x146   : > { %865 = vst [vmem:[%s11783_s16 + $0x998] sm:$0xff] %v864_v51  ;;  %v992_v51 = vld [vmem:[%s11778_s15 + $0x1718] sm:$0xff] }
 0x147   : > { %867 = vst [vmem:[%s11783_s16 + $0x9a0] sm:$0xff] %v866_v52  ;;  %v994_v52 = vld [vmem:[%s11778_s15 + $0x1740] sm:$0xff] }
 0x148   : > { %869 = vst [vmem:[%s11783_s16 + $0x9a8] sm:$0xff] %v868_v53  ;;  %v996_v53 = vld [vmem:[%s11778_s15 + $0x1748] sm:$0xff] }
 0x149   : > { %871 = vst [vmem:[%s11783_s16 + $0x9b0] sm:$0xff] %v870_v54  ;;  %v998_v54 = vld [vmem:[%s11778_s15 + $0x1750] sm:$0xff] }
 0x14a   : > { %873 = vst [vmem:[%s11783_s16 + $0x9b8] sm:$0xff] %v872_v55  ;;  %v1000_v55 = vld [vmem:[%s11778_s15 + $0x1758] sm:$0xff] }
 0x14b   : > { %875 = vst [vmem:[%s11783_s16 + $0x9c0] sm:$0xff] %v874_v56  ;;  %v1002_v56 = vld [vmem:[%s11778_s15 + $0x1780] sm:$0xff] }
 0x14c   : > { %877 = vst [vmem:[%s11783_s16 + $0x9c8] sm:$0xff] %v876_v57  ;;  %v1004_v57 = vld [vmem:[%s11778_s15 + $0x1788] sm:$0xff] }
 0x14d   : > { %879 = vst [vmem:[%s11783_s16 + $0x9d0] sm:$0xff] %v878_v58  ;;  %v1006_v58 = vld [vmem:[%s11778_s15 + $0x1790] sm:$0xff] }
 0x14e   : > { %881 = vst [vmem:[%s11783_s16 + $0x9d8] sm:$0xff] %v880_v59  ;;  %v1008_v59 = vld [vmem:[%s11778_s15 + $0x1798] sm:$0xff] }
 0x14f   : > { %883 = vst [vmem:[%s11783_s16 + $0x9e0] sm:$0xff] %v882_v60  ;;  %v1010_v60 = vld [vmem:[%s11778_s15 + $0x17c0] sm:$0xff] }
 0x150   : > { %885 = vst [vmem:[%s11783_s16 + $0x9e8] sm:$0xff] %v884_v61  ;;  %v1012_v61 = vld [vmem:[%s11778_s15 + $0x17c8] sm:$0xff] }
 0x151   : > { %887 = vst [vmem:[%s11783_s16 + $0x9f0] sm:$0xff] %v886_v62  ;;  %v1014_v62 = vld [vmem:[%s11778_s15 + $0x17d0] sm:$0xff] }
 0x152   : > { %889 = vst [vmem:[%s11783_s16 + $0x9f8] sm:$0xff] %v888_v63  ;;  %v1016_v63 = vld [vmem:[%s11778_s15 + $0x17d8] sm:$0xff] }
 0x153   : > { %891 = vst [vmem:[%s11783_s16 + $0xa00] sm:$0xff] %v890_v0 }
 0x154   : > { %893 = vst [vmem:[%s11783_s16 + $0xa08] sm:$0xff] %v892_v1 }
 0x155   : > { %895 = vst [vmem:[%s11783_s16 + $0xa10] sm:$0xff] %v894_v2 }
 0x156   : > { %897 = vst [vmem:[%s11783_s16 + $0xa18] sm:$0xff] %v896_v3 }
 0x157   : > { %899 = vst [vmem:[%s11783_s16 + $0xa20] sm:$0xff] %v898_v4 }
 0x158   : > { %901 = vst [vmem:[%s11783_s16 + $0xa28] sm:$0xff] %v900_v5 }
 0x159   : > { %903 = vst [vmem:[%s11783_s16 + $0xa30] sm:$0xff] %v902_v6 }
 0x15a   : > { %905 = vst [vmem:[%s11783_s16 + $0xa38] sm:$0xff] %v904_v7 }
 0x15b   : > { %907 = vst [vmem:[%s11783_s16 + $0xa40] sm:$0xff] %v906_v8 }
 0x15c   : > { %909 = vst [vmem:[%s11783_s16 + $0xa48] sm:$0xff] %v908_v9 }
 0x15d   : > { %911 = vst [vmem:[%s11783_s16 + $0xa50] sm:$0xff] %v910_v10 }
 0x15e   : > { %913 = vst [vmem:[%s11783_s16 + $0xa58] sm:$0xff] %v912_v11 }
 0x15f   : > { %915 = vst [vmem:[%s11783_s16 + $0xa60] sm:$0xff] %v914_v12 }
 0x160   : > { %917 = vst [vmem:[%s11783_s16 + $0xa68] sm:$0xff] %v916_v13 }
 0x161   : > { %919 = vst [vmem:[%s11783_s16 + $0xa70] sm:$0xff] %v918_v14 }
 0x162   : > { %921 = vst [vmem:[%s11783_s16 + $0xa78] sm:$0xff] %v920_v15 }
 0x163   : > { %923 = vst [vmem:[%s11783_s16 + $0xa80] sm:$0xff] %v922_v16 }
 0x164   : > { %925 = vst [vmem:[%s11783_s16 + $0xa88] sm:$0xff] %v924_v17 }
 0x165   : > { %927 = vst [vmem:[%s11783_s16 + $0xa90] sm:$0xff] %v926_v18 }
 0x166   : > { %929 = vst [vmem:[%s11783_s16 + $0xa98] sm:$0xff] %v928_v19 }
 0x167   : > { %931 = vst [vmem:[%s11783_s16 + $0xaa0] sm:$0xff] %v930_v20 }
 0x168   : > { %933 = vst [vmem:[%s11783_s16 + $0xaa8] sm:$0xff] %v932_v21 }
 0x169   : > { %935 = vst [vmem:[%s11783_s16 + $0xab0] sm:$0xff] %v934_v22 }
 0x16a   : > { %937 = vst [vmem:[%s11783_s16 + $0xab8] sm:$0xff] %v936_v23 }
 0x16b   : > { %939 = vst [vmem:[%s11783_s16 + $0xac0] sm:$0xff] %v938_v24 }
 0x16c   : > { %941 = vst [vmem:[%s11783_s16 + $0xac8] sm:$0xff] %v940_v25 }
 0x16d   : > { %943 = vst [vmem:[%s11783_s16 + $0xad0] sm:$0xff] %v942_v26 }
 0x16e   : > { %945 = vst [vmem:[%s11783_s16 + $0xad8] sm:$0xff] %v944_v27 }
 0x16f   : > { %947 = vst [vmem:[%s11783_s16 + $0xae0] sm:$0xff] %v946_v28 }
 0x170   : > { %949 = vst [vmem:[%s11783_s16 + $0xae8] sm:$0xff] %v948_v29 }
 0x171   : > { %951 = vst [vmem:[%s11783_s16 + $0xaf0] sm:$0xff] %v950_v30 }
 0x172   : > { %953 = vst [vmem:[%s11783_s16 + $0xaf8] sm:$0xff] %v952_v31 }
 0x173   : > { %955 = vst [vmem:[%s11783_s16 + $0xb00] sm:$0xff] %v954_v32 }
 0x174   : > { %957 = vst [vmem:[%s11783_s16 + $0xb08] sm:$0xff] %v956_v33 }
 0x175   : > { %959 = vst [vmem:[%s11783_s16 + $0xb10] sm:$0xff] %v958_v34 }
 0x176   : > { %961 = vst [vmem:[%s11783_s16 + $0xb18] sm:$0xff] %v960_v35 }
 0x177   : > { %963 = vst [vmem:[%s11783_s16 + $0xb20] sm:$0xff] %v962_v36 }
 0x178   : > { %965 = vst [vmem:[%s11783_s16 + $0xb28] sm:$0xff] %v964_v37 }
 0x179   : > { %967 = vst [vmem:[%s11783_s16 + $0xb30] sm:$0xff] %v966_v38 }
 0x17a   : > { %969 = vst [vmem:[%s11783_s16 + $0xb38] sm:$0xff] %v968_v39 }
 0x17b   : > { %971 = vst [vmem:[%s11783_s16 + $0xb40] sm:$0xff] %v970_v40 }
 0x17c   : > { %973 = vst [vmem:[%s11783_s16 + $0xb48] sm:$0xff] %v972_v41 }
 0x17d   : > { %975 = vst [vmem:[%s11783_s16 + $0xb50] sm:$0xff] %v974_v42 }
 0x17e   : > { %977 = vst [vmem:[%s11783_s16 + $0xb58] sm:$0xff] %v976_v43 }
 0x17f   : > { %979 = vst [vmem:[%s11783_s16 + $0xb60] sm:$0xff] %v978_v44 }
 0x180   : > { %981 = vst [vmem:[%s11783_s16 + $0xb68] sm:$0xff] %v980_v45 }
 0x181   : > { %983 = vst [vmem:[%s11783_s16 + $0xb70] sm:$0xff] %v982_v46 }
 0x182   : > { %985 = vst [vmem:[%s11783_s16 + $0xb78] sm:$0xff] %v984_v47 }
 0x183   : > { %987 = vst [vmem:[%s11783_s16 + $0xb80] sm:$0xff] %v986_v48 }
 0x184   : > { %989 = vst [vmem:[%s11783_s16 + $0xb88] sm:$0xff] %v988_v49 }
 0x185   : > { %991 = vst [vmem:[%s11783_s16 + $0xb90] sm:$0xff] %v990_v50 }
 0x186   : > { %993 = vst [vmem:[%s11783_s16 + $0xb98] sm:$0xff] %v992_v51 }
 0x187   : > { %995 = vst [vmem:[%s11783_s16 + $0xba0] sm:$0xff] %v994_v52 }
 0x188   : > { %997 = vst [vmem:[%s11783_s16 + $0xba8] sm:$0xff] %v996_v53 }
 0x189   : > { %999 = vst [vmem:[%s11783_s16 + $0xbb0] sm:$0xff] %v998_v54 }
 0x18a   : > { %1001 = vst [vmem:[%s11783_s16 + $0xbb8] sm:$0xff] %v1000_v55 }
 0x18b   : > { %1003 = vst [vmem:[%s11783_s16 + $0xbc0] sm:$0xff] %v1002_v56 }
 0x18c   : > { %1005 = vst [vmem:[%s11783_s16 + $0xbc8] sm:$0xff] %v1004_v57 }
 0x18d   : > { %1007 = vst [vmem:[%s11783_s16 + $0xbd0] sm:$0xff] %v1006_v58 }
 0x18e   : > { %1009 = vst [vmem:[%s11783_s16 + $0xbd8] sm:$0xff] %v1008_v59 }
 0x18f   : > { %1011 = vst [vmem:[%s11783_s16 + $0xbe0] sm:$0xff] %v1010_v60 }
 0x190   : > { %1013 = vst [vmem:[%s11783_s16 + $0xbe8] sm:$0xff] %v1012_v61 }
 0x191   : > { %1015 = vst [vmem:[%s11783_s16 + $0xbf0] sm:$0xff] %v1014_v62 }
 0x192   : > { %1017 = vst [vmem:[%s11783_s16 + $0xbf8] sm:$0xff] %v1016_v63 }
 0x193 PF: > { %p8010_p7 = scmp.ge.s32.totalorder %s11680_s26, 1  ;;  %p1022_p8 = scmp.lt.s32.totalorder %s11680_s26, 3 }
 0x195   : > { %p1023_p9 = pnand %p8010_p7, %p1022_p8 }
 0x197   : > { %1026 = sbr.rel (%p1023_p9) target bundleno = 2107 (0x83b), region = 67 }
 0x19c   : > { %s1029_s17 = sand.u32 1, %s11672_s24   ;;  %s11683_s23 = smov 113  }
 0x19d   : > { %s11534_s18 = smul.u32 3072, %s1029_s17  ;;  %s11684_s29 = smov 125  }
 0x19e   : > { %s11685_s30 = smov 117   ;;  %s11687_s10 = smov 114  }
 0x19f   : > { %s12555_s19 = scalar_lea.vmem [#allocation4], %s11534_s18  ;;  %s11688_s11 = smov 121  }
 0x1a0   : > { %v8118_v0 = vld [vmem:[%s12555_s19 + $0x1c0] sm:$0xf]  ;;  %s11689_s12 = smov 122   ;;  %s11690_s13 = smov 119  }
 0x1a1   : > { %v10852_v1 = vld [vmem:[%s12555_s19 + $0x1dc] sm:$0xf0]  ;;  %s11691_s14 = smov 126   ;;  %s11692_s15 = smov 127  }
 0x1a2   : > { %v8182_v2 = vld [vmem:[%s12555_s19 + $0x3c0] sm:$0xf]  ;;  %v8119_v3 = vor.u32 %v10852_v1, %v8118_v0  ;;  %s11693_s16 = smov 123   ;;  %s11694_s18 = smov 115  }
 0x1a3   : > { %v10868_v4 = vld [vmem:[%s12555_s19 + $0x3dc] sm:$0xf0]  ;;  %s11695_s20 = smov 120   ;;  %s11696_s21 = smov 124  }
 0x1a4   : > { %v8246_v5 = vld [vmem:[%s12555_s19 + $0x5c0] sm:$0xf]  ;;  %v8183_v7 = vor.u32 %v10868_v4, %v8182_v2  ;;  %1732 = vmatpush.bf16.msra.mxu0 %v8119_v3  ;;  %s11697_s22 = smov 116   ;;  %s10821_s24 = sshll.u32 (%p11768_p5), %s8004_s27, 3 }
 0x1a5   : > { %v10884_v6 = vld [vmem:[%s12555_s19 + $0x5dc] sm:$0xf0] }
 0x1a6   : > { %v8247_v8 = vor.u32 %v10884_v6, %v8246_v5  ;;  %v8310_v9 = vld [vmem:[%s12555_s19 + $0x7c0] sm:$0xf]  ;;  %1751 = vmatpush.bf16.msra.mxu1 %v8183_v7 }
 0x1a7   : > { %v10900_v10 = vld [vmem:[%s12555_s19 + $0x7dc] sm:$0xf0] }
 0x1a8   : > { %v8110_v11 = vld [vmem:[%s12555_s19 + $0x180] sm:$0xf]  ;;  %v8311_v12 = vor.u32 %v10900_v10, %v8310_v9  ;;  %1770 = vmatpush.bf16.msra.mxu2 %v8247_v8 }
 0x1a9   : > { %v10850_v13 = vld [vmem:[%s12555_s19 + $0x19c] sm:$0xf0] }
 0x1aa   : > { %v8174_v14 = vld [vmem:[%s12555_s19 + $0x380] sm:$0xf]  ;;  %v8111_v16 = vor.u32 %v10850_v13, %v8110_v11  ;;  %1789 = vmatpush.bf16.msra.mxu3 %v8311_v12 }
 0x1ab   : > { %v10866_v15 = vld [vmem:[%s12555_s19 + $0x39c] sm:$0xf0] }
 0x1ac   : > { %v8175_v17 = vor.u32 %v10866_v15, %v8174_v14  ;;  %v8238_v18 = vld [vmem:[%s12555_s19 + $0x580] sm:$0xf]  ;;  %1733 = vmatpush.bf16.msra.mxu0 %v8111_v16 }
 0x1ad   : > { %v10882_v19 = vld [vmem:[%s12555_s19 + $0x59c] sm:$0xf0] }
 0x1ae   : > { %v8302_v20 = vld [vmem:[%s12555_s19 + $0x780] sm:$0xf]  ;;  %v8239_v21 = vor.u32 %v10882_v19, %v8238_v18  ;;  %1752 = vmatpush.bf16.msra.mxu1 %v8175_v17 }
 0x1af   : > { %v10898_v22 = vld [vmem:[%s12555_s19 + $0x79c] sm:$0xf0] }
 0x1b0   : > { %v8102_v23 = vld [vmem:[%s12555_s19 + $0x140] sm:$0xf]  ;;  %v8303_v25 = vor.u32 %v10898_v22, %v8302_v20  ;;  %1771 = vmatpush.bf16.msra.mxu2 %v8239_v21 }
 0x1b1   : > { %v10848_v24 = vld [vmem:[%s12555_s19 + $0x15c] sm:$0xf0] }
 0x1b2   : > { %v8166_v26 = vld [vmem:[%s12555_s19 + $0x340] sm:$0xf]  ;;  %v8103_v29 = vor.u32 %v10848_v24, %v8102_v23  ;;  %1790 = vmatpush.bf16.msra.mxu3 %v8303_v25 }
 0x1b3   : > { %v10864_v27 = vld [vmem:[%s12555_s19 + $0x35c] sm:$0xf0] }
 0x1b4   : > { %v8230_v28 = vld [vmem:[%s12555_s19 + $0x540] sm:$0xf]  ;;  %v8167_v33 = vor.u32 %v10864_v27, %v8166_v26  ;;  %1734 = vmatpush.bf16.msra.mxu0 %v8103_v29  ;;  %v10828_v29 = vld [vmem:[%s16298_s1 + $0x14] sm:$0xf0] }
 0x1b5   : > { %v10880_v30 = vld [vmem:[%s12555_s19 + $0x55c] sm:$0xf0] }
 0x1b6   : > { %v8294_v31 = vld [vmem:[%s12555_s19 + $0x740] sm:$0xf]  ;;  %v8231_v34 = vor.u32 %v10880_v30, %v8230_v28  ;;  %1753 = vmatpush.bf16.msra.mxu1 %v8167_v33  ;;  %v10825_v30 = vld [vmem:[%s16298_s1 + $0x4] sm:$0xf] }
 0x1b7   : > { %v10896_v32 = vld [vmem:[%s12555_s19 + $0x75c] sm:$0xf0] }
 0x1b8   : > { %v8094_v35 = vld [vmem:[%s12555_s19 + $0x100] sm:$0xf]  ;;  %v8295_v38 = vor.u32 %v10896_v32, %v8294_v31  ;;  %1772 = vmatpush.bf16.msra.mxu2 %v8231_v34  ;;  %v8016_v31 = vld [vmem:[%s16298_s1 + $0x18] sm:$0xf0] }
 0x1b9   : > { %v10846_v36 = vld [vmem:[%s12555_s19 + $0x11c] sm:$0xf0] }
 0x1ba   : > { %v8158_v37 = vld [vmem:[%s12555_s19 + $0x300] sm:$0xf]  ;;  %v8095_v44 = vor.u32 %v10846_v36, %v8094_v35  ;;  %1791 = vmatpush.bf16.msra.mxu3 %v8295_v38  ;;  %v8022_v35 = vld [vmem:[%s16298_s1 + $0x8] sm:$0xf] }
 0x1bb   : > { %v10862_v39 = vld [vmem:[%s12555_s19 + $0x31c] sm:$0xf0] }
 0x1bc   : > { %v8222_v40 = vld [vmem:[%s12555_s19 + $0x500] sm:$0xf]  ;;  %v8159_v45 = vor.u32 %v10862_v39, %v8158_v37  ;;  %1735 = vmatpush.bf16.msra.mxu0 %v8095_v44 }
 0x1bd   : > { %v10878_v41 = vld [vmem:[%s12555_s19 + $0x51c] sm:$0xf0] }
 0x1be   : > { %v8286_v42 = vld [vmem:[%s12555_s19 + $0x700] sm:$0xf]  ;;  %v8223_v46 = vor.u32 %v10878_v41, %v8222_v40  ;;  %1754 = vmatpush.bf16.msra.mxu1 %v8159_v45  ;;  %v10826_v41 = vld [vmem:[%s16298_s1 + $0xc] sm:$0xf]  ;;  %v10851_v45 = vld [vmem:[%s12555_s19 + $0x1c4] sm:$0xf] }
 0x1bf   : > { %v10894_v43 = vld [vmem:[%s12555_s19 + $0x71c] sm:$0xf0] }
 0x1c0   : > { %v8086_v47 = vld [vmem:[%s12555_s19 + $0xc0] sm:$0xf]  ;;  %v8287_v50 = vor.u32 %v10894_v43, %v8286_v42  ;;  %1773 = vmatpush.bf16.msra.mxu2 %v8223_v46  ;;  %v8024_v42 = vld [vmem:[%s16298_s1 + $0x20] sm:$0xf0] }
 0x1c1   : > { %v10844_v48 = vld [vmem:[%s12555_s19 + $0xdc] sm:$0xf0]  ;;  %v8120_v46 = vld [vmem:[%s12555_s19 + $0x1e0] sm:$0xf0] }
 0x1c2   : > { %v8150_v49 = vld [vmem:[%s12555_s19 + $0x2c0] sm:$0xf]  ;;  %v8087_v56 = vor.u32 %v10844_v48, %v8086_v47  ;;  %1792 = vmatpush.bf16.msra.mxu3 %v8287_v50  ;;  %v10867_v47 = vld [vmem:[%s12555_s19 + $0x3c4] sm:$0xf] }
 0x1c3   : > { %v10860_v51 = vld [vmem:[%s12555_s19 + $0x2dc] sm:$0xf0]  ;;  %v8184_v50 = vld [vmem:[%s12555_s19 + $0x3e0] sm:$0xf0] }
 0x1c4   : > { %v8214_v52 = vld [vmem:[%s12555_s19 + $0x4c0] sm:$0xf]  ;;  %v8151_v57 = vor.u32 %v10860_v51, %v8150_v49  ;;  %1736 = vmatpush.bf16.msra.mxu0 %v8087_v56 }
 0x1c5   : > { %v10876_v53 = vld [vmem:[%s12555_s19 + $0x4dc] sm:$0xf0] }
 0x1c6   : > { %v8278_v54 = vld [vmem:[%s12555_s19 + $0x6c0] sm:$0xf]  ;;  %v8215_v58 = vor.u32 %v10876_v53, %v8214_v52  ;;  %1755 = vmatpush.bf16.msra.mxu1 %v8151_v57  ;;  %v12657_v53 = vor.u32 %v10825_v30, %v8016_v31  ;;  %v12663_v57 = vor.u32 %v10826_v41, %v8024_v42  ;;  %v10831_v30 = vld [vmem:[%s16298_s1 + $0x34] sm:$0xf]  ;;  %v8040_v31 = vld [vmem:[%s16298_s1 + $0x48] sm:$0xf0] }
 0x1c7   : > { %v10892_v55 = vld [vmem:[%s12555_s19 + $0x6dc] sm:$0xf0]  ;;  %v10843_v41 = vld [vmem:[%s12555_s19 + $0xc4] sm:$0xf]  ;;  %v1073_v42 = vld [vmem:[%s16299_s2 + $0x8] sm:$0xff] }
 0x1c8   : > { %v8078_v59 = vld [vmem:[%s12555_s19 + $0x80] sm:$0xf]  ;;  %v8279_v62 = vor.u32 %v10892_v55, %v8278_v54  ;;  %1774 = vmatpush.bf16.msra.mxu2 %v8215_v58  ;;  %v8123_v58 = vor.u32 %v10851_v45, %v8120_v46  ;;  %v8088_v45 = vld [vmem:[%s12555_s19 + $0xe0] sm:$0xf0] }
 0x1c9   : > { %v10842_v60 = vld [vmem:[%s12555_s19 + $0x9c] sm:$0xf0]  ;;  %v10859_v46 = vld [vmem:[%s12555_s19 + $0x2c4] sm:$0xf] }
 0x1ca   : > { %v8142_v61 = vld [vmem:[%s12555_s19 + $0x280] sm:$0xf]  ;;  %v8079_v4 = vor.u32 %v10842_v60, %v8078_v59  ;;  %1793 = vmatpush.bf16.msra.mxu3 %v8279_v62  ;;  %v8187_v59 = vor.u32 %v10867_v47, %v8184_v50  ;;  %v8112_v62 = vld [vmem:[%s12555_s19 + $0x1a0] sm:$0xf0] }
 0x1cb   : > { %v10858_v63 = vld [vmem:[%s12555_s19 + $0x29c] sm:$0xf0]  ;;  %v8152_v47 = vld [vmem:[%s12555_s19 + $0x2e0] sm:$0xf0] }
 0x1cc   : > { %v8206_v0 = vld [vmem:[%s12555_s19 + $0x480] sm:$0xf]  ;;  %v8143_v5 = vor.u32 %v10858_v63, %v8142_v61  ;;  %1737 = vmatpush.bf16.msra.mxu0 %v8079_v4  ;;  %v10849_v61 = vld [vmem:[%s12555_s19 + $0x184] sm:$0xf] }
 0x1cd   : > { %v10874_v1 = vld [vmem:[%s12555_s19 + $0x49c] sm:$0xf0]  ;;  %v10865_v63 = vld [vmem:[%s12555_s19 + $0x384] sm:$0xf] }
 0x1ce   : > { %v8270_v2 = vld [vmem:[%s12555_s19 + $0x680] sm:$0xf]  ;;  %v8207_v6 = vor.u32 %v10874_v1, %v8206_v0  ;;  %1756 = vmatpush.bf16.msra.mxu1 %v8143_v5  ;;  %v8176_v1 = vld [vmem:[%s12555_s19 + $0x3a0] sm:$0xf0] }
 0x1cf   : > { %v10890_v3 = vld [vmem:[%s12555_s19 + $0x69c] sm:$0xf0] }
 0x1d0   : > { %v8070_v7 = vld [vmem:[%s12555_s19 + $0x40] sm:$0xf]  ;;  %v8271_v10 = vor.u32 %v10890_v3, %v8270_v2  ;;  %1775 = vmatpush.bf16.msra.mxu2 %v8207_v6  ;;  %v8115_v6 = vor.u32 %v10849_v61, %v8112_v62  ;;  %v8091_v62 = vor.u32 %v10843_v41, %v8088_v45  ;;  %v10931_v41 = vld [vmem:[%s12555_s19 + $0xbc4] sm:$0xf]  ;;  %v8032_v45 = vld [vmem:[%s16298_s1 + $0x28] sm:$0xf0] }
 0x1d1   : > { %v10840_v8 = vld [vmem:[%s12555_s19 + $0x5c] sm:$0xf0] }
 0x1d2   : > { %v8134_v9 = vld [vmem:[%s12555_s19 + $0x240] sm:$0xf]  ;;  %v8071_v17 = vor.u32 %v10840_v8, %v8070_v7  ;;  %1794 = vmatpush.bf16.msra.mxu3 %v8271_v10  ;;  %v8179_v8 = vor.u32 %v10865_v63, %v8176_v1  ;;  %v10847_v10 = vld [vmem:[%s12555_s19 + $0x144] sm:$0xf]  ;;  %v8155_v63 = vor.u32 %v10859_v46, %v8152_v47 }
 0x1d3   : > { %v10856_v11 = vld [vmem:[%s12555_s19 + $0x25c] sm:$0xf0]  ;;  %v10841_v1 = vld [vmem:[%s12555_s19 + $0x84] sm:$0xf] }
 0x1d4   : > { %v8198_v12 = vld [vmem:[%s12555_s19 + $0x440] sm:$0xf]  ;;  %v8135_v21 = vor.u32 %v10856_v11, %v8134_v9  ;;  %1738 = vmatpush.bf16.msra.mxu0 %v8071_v17  ;;  %v8104_v11 = vld [vmem:[%s12555_s19 + $0x160] sm:$0xf0] }
 0x1d5   : > { %v10872_v13 = vld [vmem:[%s12555_s19 + $0x45c] sm:$0xf0] }
 0x1d6   : > { %v8262_v14 = vld [vmem:[%s12555_s19 + $0x640] sm:$0xf]  ;;  %v8199_v22 = vor.u32 %v10872_v13, %v8198_v12  ;;  %1757 = vmatpush.bf16.msra.mxu1 %v8135_v21  ;;  %v10863_v12 = vld [vmem:[%s12555_s19 + $0x344] sm:$0xf] }
 0x1d7   : > { %v10888_v15 = vld [vmem:[%s12555_s19 + $0x65c] sm:$0xf0]  ;;  %v10845_v21 = vld [vmem:[%s12555_s19 + $0x104] sm:$0xf] }
 0x1d8   : > { %v8062_v16 = vld [vmem:[%s12555_s19] sm:$0xf]  ;;  %v8263_v26 = vor.u32 %v10888_v15, %v8262_v14  ;;  %1776 = vmatpush.bf16.msra.mxu2 %v8199_v22  ;;  %v8168_v14 = vld [vmem:[%s12555_s19 + $0x360] sm:$0xf0]  ;;  %v11682_v15 = vmov 0  }
 0x1d9   : > { %v10838_v18 = vld [vmem:[%s12555_s19 + $0x1c] sm:$0xf0]  ;;  %11575 = vset.pattern.permute.xlu0 %v11682_v15  ;;  %11576 = vset.pattern.permute.xlu1 %v11682_v15  ;;  %v8096_v22 = vld [vmem:[%s12555_s19 + $0x120] sm:$0xf0] }
 0x1da   : > { %v8126_v19 = vld [vmem:[%s12555_s19 + $0x200] sm:$0xf]  ;;  %v8063_v34 = vor.u32 %v10838_v18, %v8062_v16  ;;  %1795 = vmatpush.bf16.msra.mxu3 %v8263_v26  ;;  %11577 = vset.pattern.permute.xlu2 %v11682_v15  ;;  %v8160_v26 = vld [vmem:[%s12555_s19 + $0x320] sm:$0xf0] }
 0x1db   : > { %v10854_v20 = vld [vmem:[%s12555_s19 + $0x21c] sm:$0xf0]  ;;  %v10855_v15 = vld [vmem:[%s12555_s19 + $0x244] sm:$0xf] }
 0x1dc   : > { %v8190_v23 = vld [vmem:[%s12555_s19 + $0x400] sm:$0xf]  ;;  %v8127_v38 = vor.u32 %v10854_v20, %v8126_v19  ;;  %1739 = vmatpush.bf16.msra.mxu0 %v8063_v34  ;;  %v8107_v20 = vor.u32 %v10847_v10, %v8104_v11  ;;  %v10839_v11 = vld [vmem:[%s12555_s19 + $0x44] sm:$0xf] }
 0x1dd   : > { %v10870_v24 = vld [vmem:[%s12555_s19 + $0x41c] sm:$0xf0] }
 0x1de   : > { %v8254_v25 = vld [vmem:[%s12555_s19 + $0x600] sm:$0xf]  ;;  %v8191_v39 = vor.u32 %v10870_v24, %v8190_v23  ;;  %1758 = vmatpush.bf16.msra.mxu1 %v8127_v38  ;;  %v10861_v23 = vld [vmem:[%s12555_s19 + $0x304] sm:$0xf]  ;;  %v8171_v24 = vor.u32 %v10863_v12, %v8168_v14 }
 0x1df   : > { %v10886_v27 = vld [vmem:[%s12555_s19 + $0x61c] sm:$0xf0]  ;;  %v8072_v12 = vld [vmem:[%s12555_s19 + $0x60] sm:$0xf0] }
 0x1e0   : > { %v8014_v28 = vld [vmem:[%s16298_s1] sm:$0xf]  ;;  %v8255_v43 = vor.u32 %v10886_v27, %v8254_v25  ;;  %1777 = vmatpush.bf16.msra.mxu2 %v8191_v39  ;;  %v8038_v27 = vld [vmem:[%s16298_s1 + $0x30] sm:$0xf]  ;;  %v8099_v39 = vor.u32 %v10845_v21, %v8096_v22 }
 0x1e1   : > { %v8374_v32 = vld [vmem:[%s12555_s19 + $0x9c0] sm:$0xf]  ;;  %v12652_v48 = vor.u32 %v10828_v29, %v8014_v28  ;;  %1759 = vmatmul.bf16.vlgmr.msra.gmra.mxu1 %v12657_v53  ;;  %v10834_v28 = vld [vmem:[%s16298_s1 + $0x44] sm:$0xf0] }
 0x1e2   : > { %v10916_v33 = vld [vmem:[%s12555_s19 + $0x9dc] sm:$0xf0]  ;;  %1796 = vmatpush.bf16.msra.mxu3 %v8255_v43  ;;  %v8163_v43 = vor.u32 %v10861_v23, %v8160_v26  ;;  %v10883_v23 = vld [vmem:[%s12555_s19 + $0x5c4] sm:$0xf] }
 0x1e3   : > { %v8438_v36 = vld [vmem:[%s12555_s19 + $0xbc0] sm:$0xf]  ;;  %v8375_v44 = vor.u32 %v10916_v33, %v8374_v32  ;;  %1740 = vmatmul.bf16.vlgmr.msra.gmra.mxu0 %v12652_v48  ;;  %v8046_v32 = vld [vmem:[%s16298_s1 + $0x38] sm:$0xf]  ;;  %v10835_v33 = vld [vmem:[%s16298_s1 + $0x4c] sm:$0xf0] }
 0x1e4   : > { %v10932_v37 = vld [vmem:[%s12555_s19 + $0xbdc] sm:$0xf0]  ;;  %1846 = vmatpush.bf16.msrb.mxu2 %v8123_v58  ;;  %v12736_v58 = vor.u32 %v10835_v33, %v8046_v32  ;;  %v10837_v26 = vld [vmem:[%s12555_s19 + $0x4] sm:$0xf] }
 0x1e5   : > { %v10829_v40 = vld [vmem:[%s16298_s1 + $0x1c] sm:$0xf0]  ;;  %v8439_v49 = vor.u32 %v10932_v37, %v8438_v36  ;;  %1808 = vmatpush.bf16.msrb.mxu0 %v8375_v44  ;;  %1797 = vmatmul.bf16.vlgmr.msra.gmra.mxu3 %v12663_v57  ;;  %v10832_v36 = vld [vmem:[%s16298_s1 + $0x3c] sm:$0xf]  ;;  %v10853_v32 = vld [vmem:[%s12555_s19 + $0x204] sm:$0xf] }
 0x1e6   : > { %v8366_v51 = vld [vmem:[%s12555_s19 + $0x980] sm:$0xf]  ;;  %v12659_v54 = vor.u32 %v10829_v40, %v8022_v35  ;;  %1865 = vmatpush.bf16.msrb.mxu3 %v8187_v59  ;;  %v8048_v40 = vld [vmem:[%s16298_s1 + $0x50] sm:$0xf0]  ;;  %v8128_v33 = vld [vmem:[%s12555_s19 + $0x220] sm:$0xf0] }
 0x1e7   : > { %v10914_v52 = vld [vmem:[%s12555_s19 + $0x99c] sm:$0xf0]  ;;  %1827 = vmatpush.bf16.msrb.mxu1 %v8439_v49  ;;  %v12727_v49 = vor.u32 %v10834_v28, %v8038_v27  ;;  %v12740_v61 = vor.u32 %v10832_v36, %v8048_v40  ;;  %v10899_v27 = vld [vmem:[%s12555_s19 + $0x7c4] sm:$0xf]  ;;  %v8131_v46 = vor.u32 %v10853_v32, %v8128_v33 }
 0x1e8   : > { %v8430_v55 = vld [vmem:[%s12555_s19 + $0xb80] sm:$0xf]  ;;  %v8367_v60 = vor.u32 %v10914_v52, %v8366_v51  ;;  %1778 = vmatmul.bf16.vlgmr.msra.gmra.mxu2 %v12659_v54  ;;  %v8312_v28 = vld [vmem:[%s12555_s19 + $0x7e0] sm:$0xf0] }
 0x1e9   : > { %v10930_v56 = vld [vmem:[%s12555_s19 + $0xb9c] sm:$0xf0]  ;;  %1847 = vmatpush.bf16.msrb.mxu2 %v8115_v6  ;;  %v8315_v40 = vor.u32 %v10899_v27, %v8312_v28  ;;  %v8216_v32 = vld [vmem:[%s12555_s19 + $0x4e0] sm:$0xf0] }
 0x1ea   : > { %v8431_v0 = vor.u32 %v10930_v56, %v8430_v55  ;;  %v8358_v2 = vld [vmem:[%s12555_s19 + $0x940] sm:$0xf]  ;;  %1809 = vmatpush.bf16.msrb.mxu0 %v8367_v60  ;;  %1866 = vmatpush.bf16.msrb.mxu3 %v8179_v8  ;;  %v1074_v55 = vld [vmem:[%s16299_s2 + $0x10] sm:$0xff]  ;;  %v12734_v56 = vor.u32 %v10831_v30, %v8040_v31  ;;  %v8064_v31 = vld [vmem:[%s12555_s19 + $0x20] sm:$0xf0] }
 0x1eb   : > { %v10912_v3 = vld [vmem:[%s12555_s19 + $0x95c] sm:$0xf0]  ;;  %1184 = vperm.xlu1 %11576, %v1074_v55   ;;  %v10891_v33 = vld [vmem:[%s12555_s19 + $0x6c4] sm:$0xf] }
 0x1ec   : > { %v8422_v4 = vld [vmem:[%s12555_s19 + $0xb40] sm:$0xf]  ;;  %v8359_v9 = vor.u32 %v10912_v3, %v8358_v2  ;;  %1828 = vmatpush.bf16.msrb.mxu1 %v8431_v0  ;;  %v8080_v2 = vld [vmem:[%s12555_s19 + $0xa0] sm:$0xf0] }
 0x1ed   : > { %v10928_v5 = vld [vmem:[%s12555_s19 + $0xb5c] sm:$0xf0]  ;;  %1848 = vmatpush.bf16.msrb.mxu2 %v8107_v20  ;;  %v10857_v3 = vld [vmem:[%s12555_s19 + $0x284] sm:$0xf]  ;;  %v8083_v10 = vor.u32 %v10841_v1, %v8080_v2 }
 0x1ee   : > { %v1072_v7 = vld [vmem:[%s16299_s2] sm:$0xff]  ;;  %v8423_v13 = vor.u32 %v10928_v5, %v8422_v4  ;;  %1810 = vmatpush.bf16.msrb.mxu0 %v8359_v9  ;;  %1867 = vmatpush.bf16.msrb.mxu3 %v8171_v24 }
 0x1ef   : > { %v8350_v16 = vld [vmem:[%s12555_s19 + $0x900] sm:$0xf]  ;;  %1174 = vperm.xlu0 %11575, %v1072_v7   ;;  %v8144_v5 = vld [vmem:[%s12555_s19 + $0x2a0] sm:$0xf0] }
 0x1f0   : > { %v10910_v17 = vld [vmem:[%s12555_s19 + $0x91c] sm:$0xf0]  ;;  %1829 = vmatpush.bf16.msrb.mxu1 %v8423_v13  ;;  %v8147_v13 = vor.u32 %v10857_v3, %v8144_v5  ;;  %v8248_v24 = vld [vmem:[%s12555_s19 + $0x5e0] sm:$0xf0] }
 0x1f1   : > { %v8414_v18 = vld [vmem:[%s12555_s19 + $0xb00] sm:$0xf]  ;;  %v8351_v25 = vor.u32 %v10910_v17, %v8350_v16  ;;  %1849 = vmatpush.bf16.msrb.mxu2 %v8099_v39  ;;  %1764 = vmatmul.bf16.gmra.mxu1 %v12734_v56  ;;  %v8136_v16 = vld [vmem:[%s12555_s19 + $0x260] sm:$0xf0]  ;;  %v1075_v17 = vld [vmem:[%s16299_s2 + $0x18] sm:$0xff]  ;;  %v8251_v36 = vor.u32 %v10883_v23, %v8248_v24 }
 0x1f2   : > { %v10926_v19 = vld [vmem:[%s12555_s19 + $0xb1c] sm:$0xf0]  ;;  %1868 = vmatpush.bf16.msrb.mxu3 %v8163_v43  ;;  %v10830_v39 = vld [vmem:[%s16298_s1 + $0x24] sm:$0xf0]  ;;  %v8067_v43 = vor.u32 %v10837_v26, %v8064_v31  ;;  %v10929_v1 = vld [vmem:[%s12555_s19 + $0xb84] sm:$0xf] }
 0x1f3   : > { %v8415_v29 = vor.u32 %v10926_v19, %v8414_v18  ;;  %v8342_v34 = vld [vmem:[%s12555_s19 + $0x8c0] sm:$0xf]  ;;  %1811 = vmatpush.bf16.msrb.mxu0 %v8351_v25  ;;  %1189 = vperm.xlu1 %11576, %v1075_v17   ;;  %v8075_v25 = vor.u32 %v10839_v11, %v8072_v12  ;;  %v8432_v2 = vld [vmem:[%s12555_s19 + $0xba0] sm:$0xf0] }
 0x1f4   : > { %v10908_v35 = vld [vmem:[%s12555_s19 + $0x8dc] sm:$0xf0]  ;;  %1745 = vmatmul.bf16.gmra.mxu0 %v12727_v49  ;;  %v10911_v11 = vld [vmem:[%s12555_s19 + $0x944] sm:$0xf] }
 0x1f5   : > { %v8406_v37 = vld [vmem:[%s12555_s19 + $0xac0] sm:$0xf]  ;;  %v8343_v44 = vor.u32 %v10908_v35, %v8342_v34  ;;  %1830 = vmatpush.bf16.msrb.mxu1 %v8415_v29  ;;  %1802 = vmatmul.bf16.gmra.mxu3 %v12740_v61  ;;  %v8139_v29 = vor.u32 %v10855_v15, %v8136_v16  ;;  %v8030_v35 = vld [vmem:[%s16298_s1 + $0x10] sm:$0xf]  ;;  %v8360_v12 = vld [vmem:[%s12555_s19 + $0x960] sm:$0xf0] }
 0x1f6   : > { %v10924_v38 = vld [vmem:[%s12555_s19 + $0xadc] sm:$0xf0]  ;;  %1850 = vmatpush.bf16.msrb.mxu2 %v8091_v62  ;;  %1869 = vmatpush.bf16.msrb.mxu3 %v8155_v63  ;;  %v12792_v55 = vor.u32 %v10830_v39, %v8030_v35  ;;  %v10913_v62 = vld [vmem:[%s12555_s19 + $0x984] sm:$0xf]  ;;  %v8363_v17 = vor.u32 %v10911_v11, %v8360_v12 }
 0x1f7   : > { %v8407_v50 = vor.u32 %v10924_v38, %v8406_v37  ;;  %v8334_v51 = vld [vmem:[%s12555_s19 + $0x880] sm:$0xf]  ;;  %1179 = vperm.xlu0 %11575, %v1073_v42   ;;  %1812 = vmatpush.bf16.msrb.mxu0 %v8343_v44  ;;  %v10915_v37 = vld [vmem:[%s12555_s19 + $0x9c4] sm:$0xf]  ;;  %v10827_v44 = vld [vmem:[%s16298_s1 + $0x14] sm:$0xf] }
 0x1f8   : > { %v10906_v52 = vld [vmem:[%s12555_s19 + $0x89c] sm:$0xf0]  ;;  %1783 = vmatmul.bf16.gmra.mxu2 %v12736_v58  ;;  %v8376_v38 = vld [vmem:[%s12555_s19 + $0x9e0] sm:$0xf0] }
 0x1f9   : > { %v8398_v59 = vld [vmem:[%s12555_s19 + $0xa80] sm:$0xf]  ;;  %v8335_v0 = vor.u32 %v10906_v52, %v8334_v51  ;;  %1831 = vmatpush.bf16.msrb.mxu1 %v8407_v50  ;;  %v8440_v42 = vld [vmem:[%s12555_s19 + $0xbe0] sm:$0xf0]  ;;  %v8379_v47 = vor.u32 %v10915_v37, %v8376_v38  ;;  %v10836_v38 = vld [vmem:[%s16298_s1 + $0x54] sm:$0xf0] }
 0x1fa   : > { %v10922_v60 = vld [vmem:[%s12555_s19 + $0xa9c] sm:$0xf0]  ;;  %1851 = vmatpush.bf16.msrb.mxu2 %v8083_v10  ;;  %1870 = vmatpush.bf16.msrb.mxu3 %v8147_v13  ;;  %v10881_v50 = vld [vmem:[%s12555_s19 + $0x584] sm:$0xf] }
 0x1fb   : > { %v8399_v4 = vor.u32 %v10922_v60, %v8398_v59  ;;  %v8326_v6 = vld [vmem:[%s12555_s19 + $0x840] sm:$0xf]  ;;  %1813 = vmatpush.bf16.msrb.mxu0 %v8335_v0  ;;  %v8240_v51 = vld [vmem:[%s12555_s19 + $0x5a0] sm:$0xf0]  ;;  %v8443_v59 = vor.u32 %v10931_v41, %v8440_v42  ;;  %v12797_v0 = vor.u32 %v10827_v44, %v8032_v45  ;;  %v8056_v42 = vld [vmem:[%s16298_s1 + $0x58] sm:$0xf0] }
 0x1fc   : > { %v10904_v7 = vld [vmem:[%s12555_s19 + $0x85c] sm:$0xf0]  ;;  %v10897_v52 = vld [vmem:[%s12555_s19 + $0x784] sm:$0xf]  ;;  %v8243_v3 = vor.u32 %v10881_v50, %v8240_v51 }
 0x1fd   : > { %v8390_v8 = vld [vmem:[%s12555_s19 + $0xa40] sm:$0xf]  ;;  %v8327_v14 = vor.u32 %v10904_v7, %v8326_v6  ;;  %1832 = vmatpush.bf16.msrb.mxu1 %v8399_v4  ;;  %v8304_v60 = vld [vmem:[%s12555_s19 + $0x7a0] sm:$0xf0] }
 0x1fe   : > { %v10920_v9 = vld [vmem:[%s12555_s19 + $0xa5c] sm:$0xf0]  ;;  %1852 = vmatpush.bf16.msrb.mxu2 %v8075_v25  ;;  %1871 = vmatpush.bf16.msrb.mxu3 %v8139_v29  ;;  %v8368_v63 = vld [vmem:[%s12555_s19 + $0x9a0] sm:$0xf0]  ;;  %v8307_v4 = vor.u32 %v10897_v52, %v8304_v60 }
 0x1ff   : > { %v8391_v18 = vor.u32 %v10920_v9, %v8390_v8  ;;  %v8318_v19 = vld [vmem:[%s12555_s19 + $0x800] sm:$0xf]  ;;  %1814 = vmatpush.bf16.msrb.mxu0 %v8327_v14  ;;  %v8371_v5 = vor.u32 %v10913_v62, %v8368_v63  ;;  %v10879_v6 = vld [vmem:[%s12555_s19 + $0x544] sm:$0xf]  ;;  %v8435_v9 = vor.u32 %v10929_v1, %v8432_v2 }
 0x200   : > { %v10902_v20 = vld [vmem:[%s12555_s19 + $0x81c] sm:$0xf0]  ;;  %v8232_v7 = vld [vmem:[%s12555_s19 + $0x560] sm:$0xf0] }
 0x201   : > { %v8382_v21 = vld [vmem:[%s12555_s19 + $0xa00] sm:$0xf]  ;;  %v8319_v30 = vor.u32 %v10902_v20, %v8318_v19  ;;  %1833 = vmatpush.bf16.msrb.mxu1 %v8391_v18  ;;  %v10895_v8 = vld [vmem:[%s12555_s19 + $0x744] sm:$0xf]  ;;  %v8235_v15 = vor.u32 %v10879_v6, %v8232_v7 }
 0x202   : > { %v10918_v22 = vld [vmem:[%s12555_s19 + $0xa1c] sm:$0xf0]  ;;  %1853 = vmatpush.bf16.msrb.mxu2 %v8067_v43  ;;  %1872 = vmatpush.bf16.msrb.mxu3 %v8131_v46  ;;  %v8296_v10 = vld [vmem:[%s12555_s19 + $0x760] sm:$0xf0] }
 0x203   : > { %v8383_v34 = vor.u32 %v10918_v22, %v8382_v21  ;;  %1815 = vmatpush.bf16.msrb.mxu0 %v8319_v30  ;;  %v10927_v13 = vld [vmem:[%s12555_s19 + $0xb44] sm:$0xf]  ;;  %v8299_v16 = vor.u32 %v10895_v8, %v8296_v10  ;;  %v8054_v30 = vld [vmem:[%s16298_s1 + $0x40] sm:$0xf] }
 0x204   : > { %v8424_v14 = vld [vmem:[%s12555_s19 + $0xb60] sm:$0xf0]  ;;  %v12844_v51 = vor.u32 %v10836_v38, %v8054_v30 }
 0x205   : > { %1834 = vmatpush.bf16.msrb.mxu1 %v8383_v34  ;;  %1873 = vmatmul.bf16.vlgmr.msrb.gmra.mxu3 %v12657_v53  ;;  %v10877_v18 = vld [vmem:[%s12555_s19 + $0x504] sm:$0xf]  ;;  %v8427_v21 = vor.u32 %v10927_v13, %v8424_v14 }
 0x206   : > { %1922 = vmatpush.bf16.msra.mxu2 %v8379_v47  ;;  %1816 = vmatmul.bf16.vlgmr.msrb.gmra.mxu0 %v12792_v55  ;;  %v8224_v19 = vld [vmem:[%s12555_s19 + $0x520] sm:$0xf0] }
 0x207   : > { %1884 = vmatpush.bf16.msra.mxu0 %v8251_v36  ;;  %1941 = vmatpush.bf16.msra.mxu3 %v8443_v59  ;;  %v10893_v20 = vld [vmem:[%s12555_s19 + $0x704] sm:$0xf]  ;;  %v8227_v27 = vor.u32 %v10877_v18, %v8224_v19 }
 0x208   : > { %1835 = vmatmul.bf16.vlgmr.msrb.gmra.mxu1 %v12797_v0  ;;  %1854 = vmatmul.bf16.vlgmr.msrb.gmra.mxu2 %v12652_v48  ;;  %v8288_v22 = vld [vmem:[%s12555_s19 + $0x720] sm:$0xf0] }
 0x209   : > { %1903 = vmatpush.bf16.msra.mxu1 %v8315_v40  ;;  %v10909_v23 = vld [vmem:[%s12555_s19 + $0x904] sm:$0xf]  ;;  %v8291_v28 = vor.u32 %v10893_v20, %v8288_v22 }
 0x20a   : > { %1923 = vmatpush.bf16.msra.mxu2 %v8371_v5  ;;  %v8352_v24 = vld [vmem:[%s12555_s19 + $0x920] sm:$0xf0] }
 0x20b   : > { %1885 = vmatpush.bf16.msra.mxu0 %v8243_v3  ;;  %1942 = vmatpush.bf16.msra.mxu3 %v8435_v9  ;;  %v10925_v25 = vld [vmem:[%s12555_s19 + $0xb04] sm:$0xf]  ;;  %v8355_v29 = vor.u32 %v10909_v23, %v8352_v24 }
 0x20c   : > { %v8416_v26 = vld [vmem:[%s12555_s19 + $0xb20] sm:$0xf0] }
 0x20d   : > { %1904 = vmatpush.bf16.msra.mxu1 %v8307_v4  ;;  %v10875_v31 = vld [vmem:[%s12555_s19 + $0x4c4] sm:$0xf]  ;;  %v8419_v34 = vor.u32 %v10925_v25, %v8416_v26 }
 0x20e   : > { %1924 = vmatpush.bf16.msra.mxu2 %v8363_v17  ;;  %v8280_v35 = vld [vmem:[%s12555_s19 + $0x6e0] sm:$0xf0]  ;;  %v8219_v43 = vor.u32 %v10875_v31, %v8216_v32  ;;  %v10964_v31 = vld [vmem:[%s12555_s19 + $0x3e4] sm:$0xf0] }
 0x20f   : > { %1886 = vmatpush.bf16.msra.mxu0 %v8235_v15  ;;  %1943 = vmatpush.bf16.msra.mxu3 %v8427_v21  ;;  %v10907_v36 = vld [vmem:[%s12555_s19 + $0x8c4] sm:$0xf]  ;;  %v8283_v44 = vor.u32 %v10891_v33, %v8280_v35  ;;  %v8638_v32 = vld [vmem:[%s12555_s19 + $0x5c8] sm:$0xf] }
 0x210   : > { %v8344_v37 = vld [vmem:[%s12555_s19 + $0x8e0] sm:$0xf0]  ;;  %v10980_v33 = vld [vmem:[%s12555_s19 + $0x5e4] sm:$0xf0] }
 0x211   : > { %1905 = vmatpush.bf16.msra.mxu1 %v8299_v16  ;;  %v10923_v39 = vld [vmem:[%s12555_s19 + $0xac4] sm:$0xf]  ;;  %v8347_v45 = vor.u32 %v10907_v36, %v8344_v37  ;;  %v8702_v36 = vld [vmem:[%s12555_s19 + $0x7c8] sm:$0xf] }
 0x212   : > { %v8408_v40 = vld [vmem:[%s12555_s19 + $0xae0] sm:$0xf0]  ;;  %1925 = vmatpush.bf16.msra.mxu2 %v8355_v29  ;;  %v8574_v29 = vld [vmem:[%s12555_s19 + $0x3c8] sm:$0xf] }
 0x213   : > { %1887 = vmatpush.bf16.msra.mxu0 %v8227_v27  ;;  %v10833_v41 = vld [vmem:[%s16298_s1 + $0x44] sm:$0xf]  ;;  %1944 = vmatpush.bf16.msra.mxu3 %v8419_v34  ;;  %v8411_v52 = vor.u32 %v10923_v39, %v8408_v40  ;;  %v8510_v27 = vld [vmem:[%s12555_s19 + $0x1c8] sm:$0xf]  ;;  %v8575_v40 = vor.u32 %v10964_v31, %v8574_v29 }
 0x214   : > { %v10873_v46 = vld [vmem:[%s12555_s19 + $0x484] sm:$0xf]  ;;  %v12849_v63 = vor.u32 %v10833_v41, %v8056_v42  ;;  %v10996_v37 = vld [vmem:[%s12555_s19 + $0x7e4] sm:$0xf0]  ;;  %v8639_v41 = vor.u32 %v10980_v33, %v8638_v32 }
 0x215   : > { %1906 = vmatpush.bf16.msra.mxu1 %v8291_v28  ;;  %v8208_v47 = vld [vmem:[%s12555_s19 + $0x4a0] sm:$0xf0]  ;;  %1878 = vmatmul.bf16.gmra.mxu3 %v12734_v56  ;;  %v10948_v28 = vld [vmem:[%s12555_s19 + $0x1e4] sm:$0xf0]  ;;  %v8703_v42 = vor.u32 %v10996_v37, %v8702_v36 }
 0x216   : > { %v10889_v50 = vld [vmem:[%s12555_s19 + $0x684] sm:$0xf]  ;;  %16317 = vst [vmem:[#allocation6_spill] sm:$0xff] %v12849_v63  ;;  %v8211_v3 = vor.u32 %v10873_v46, %v8208_v47  ;;  %1926 = vmatpush.bf16.msra.mxu2 %v8347_v45  ;;  %1821 = vmatmul.bf16.gmra.mxu0 %v12844_v51  ;;  %v8511_v39 = vor.u32 %v10948_v28, %v8510_v27  ;;  %v8566_v45 = vld [vmem:[%s12555_s19 + $0x388] sm:$0xf] }
 0x217   : > { %v8272_v59 = vld [vmem:[%s12555_s19 + $0x6a0] sm:$0xf0]  ;;  %1888 = vmatpush.bf16.msra.mxu0 %v8219_v43  ;;  %1945 = vmatpush.bf16.msra.mxu3 %v8411_v52  ;;  %v8502_v43 = vld [vmem:[%s12555_s19 + $0x188] sm:$0xf] }
 0x218   : > { %v10905_v60 = vld [vmem:[%s12555_s19 + $0x884] sm:$0xf]  ;;  %v8275_v4 = vor.u32 %v10889_v50, %v8272_v59  ;;  %1840 = vmatmul.bf16.gmra.mxu1 %v12849_v63  ;;  %1859 = vmatmul.bf16.gmra.mxu2 %v12727_v49  ;;  %v10962_v46 = vld [vmem:[%s12555_s19 + $0x3a4] sm:$0xf0] }
 0x219   : > { %v8336_v62 = vld [vmem:[%s12555_s19 + $0x8a0] sm:$0xf0]  ;;  %1907 = vmatpush.bf16.msra.mxu1 %v8283_v44  ;;  %v10946_v44 = vld [vmem:[%s12555_s19 + $0x1a4] sm:$0xf0] }
 0x21a   : > { %v10921_v1 = vld [vmem:[%s12555_s19 + $0xa84] sm:$0xf]  ;;  %v8339_v5 = vor.u32 %v10905_v60, %v8336_v62  ;;  %v8630_v47 = vld [vmem:[%s12555_s19 + $0x588] sm:$0xf]  ;;  %v8503_v60 = vor.u32 %v10946_v44, %v8502_v43  ;;  %v8567_v62 = vor.u32 %v10962_v46, %v8566_v45 }
 0x21b   : > { %v8400_v2 = vld [vmem:[%s12555_s19 + $0xaa0] sm:$0xf0]  ;;  %1889 = vmatpush.bf16.msra.mxu0 %v8211_v3  ;;  %v10978_v50 = vld [vmem:[%s12555_s19 + $0x5a4] sm:$0xf0] }
 0x21c   : > { %v10871_v6 = vld [vmem:[%s12555_s19 + $0x444] sm:$0xf]  ;;  %v8403_v9 = vor.u32 %v10921_v1, %v8400_v2  ;;  %1927 = vmatpush.bf16.msra.mxu2 %v8339_v5  ;;  %v8694_v52 = vld [vmem:[%s12555_s19 + $0x788] sm:$0xf]  ;;  %v8631_v1 = vor.u32 %v10978_v50, %v8630_v47 }
 0x21d   : > { %v8200_v7 = vld [vmem:[%s12555_s19 + $0x460] sm:$0xf0]  ;;  %1908 = vmatpush.bf16.msra.mxu1 %v8275_v4  ;;  %v10994_v59 = vld [vmem:[%s12555_s19 + $0x7a4] sm:$0xf0] }
 0x21e   : > { %v10887_v8 = vld [vmem:[%s12555_s19 + $0x644] sm:$0xf]  ;;  %v8203_v15 = vor.u32 %v10871_v6, %v8200_v7  ;;  %1946 = vmatpush.bf16.msra.mxu3 %v8403_v9  ;;  %v8494_v2 = vld [vmem:[%s12555_s19 + $0x148] sm:$0xf]  ;;  %v8695_v5 = vor.u32 %v10994_v59, %v8694_v52 }
 0x21f   : > { %v8264_v10 = vld [vmem:[%s12555_s19 + $0x660] sm:$0xf0]  ;;  %v10944_v3 = vld [vmem:[%s12555_s19 + $0x164] sm:$0xf0] }
 0x220   : > { %v10903_v11 = vld [vmem:[%s12555_s19 + $0x844] sm:$0xf]  ;;  %v8267_v18 = vor.u32 %v10887_v8, %v8264_v10  ;;  %1890 = vmatpush.bf16.msra.mxu0 %v8203_v15  ;;  %v8558_v4 = vld [vmem:[%s12555_s19 + $0x348] sm:$0xf] }
 0x221   : > { %v8328_v12 = vld [vmem:[%s12555_s19 + $0x860] sm:$0xf0]  ;;  %v10960_v6 = vld [vmem:[%s12555_s19 + $0x364] sm:$0xf0] }
 0x222   : > { %v10919_v13 = vld [vmem:[%s12555_s19 + $0xa44] sm:$0xf]  ;;  %v8331_v19 = vor.u32 %v10903_v11, %v8328_v12  ;;  %1909 = vmatpush.bf16.msra.mxu1 %v8267_v18  ;;  %v8622_v7 = vld [vmem:[%s12555_s19 + $0x548] sm:$0xf]  ;;  %v8495_v11 = vor.u32 %v10944_v3, %v8494_v2  ;;  %v8559_v12 = vor.u32 %v10960_v6, %v8558_v4 }
 0x223   : > { %v8392_v14 = vld [vmem:[%s12555_s19 + $0xa60] sm:$0xf0]  ;;  %v10976_v8 = vld [vmem:[%s12555_s19 + $0x564] sm:$0xf0] }
 0x224   : > { %v10869_v16 = vld [vmem:[%s12555_s19 + $0x404] sm:$0xf]  ;;  %v8395_v23 = vor.u32 %v10919_v13, %v8392_v14  ;;  %1928 = vmatpush.bf16.msra.mxu2 %v8331_v19  ;;  %v8686_v9 = vld [vmem:[%s12555_s19 + $0x748] sm:$0xf]  ;;  %v8623_v13 = vor.u32 %v10976_v8, %v8622_v7 }
 0x225   : > { %v8192_v17 = vld [vmem:[%s12555_s19 + $0x420] sm:$0xf0]  ;;  %v10992_v10 = vld [vmem:[%s12555_s19 + $0x764] sm:$0xf0] }
 0x226   : > { %v10885_v20 = vld [vmem:[%s12555_s19 + $0x604] sm:$0xf]  ;;  %v8195_v30 = vor.u32 %v10869_v16, %v8192_v17  ;;  %1947 = vmatpush.bf16.msra.mxu3 %v8395_v23  ;;  %v8486_v14 = vld [vmem:[%s12555_s19 + $0x108] sm:$0xf]  ;;  %v8687_v17 = vor.u32 %v10992_v10, %v8686_v9 }
 0x227   : > { %v8256_v21 = vld [vmem:[%s12555_s19 + $0x620] sm:$0xf0]  ;;  %v10942_v15 = vld [vmem:[%s12555_s19 + $0x124] sm:$0xf0] }
 0x228   : > { %v10901_v22 = vld [vmem:[%s12555_s19 + $0x804] sm:$0xf]  ;;  %v8259_v34 = vor.u32 %v10885_v20, %v8256_v21  ;;  %1891 = vmatpush.bf16.msra.mxu0 %v8195_v30  ;;  %v8550_v16 = vld [vmem:[%s12555_s19 + $0x308] sm:$0xf]  ;;  %v8487_v23 = vor.u32 %v10942_v15, %v8486_v14 }
 0x229   : > { %v8320_v24 = vld [vmem:[%s12555_s19 + $0x820] sm:$0xf0]  ;;  %v10958_v18 = vld [vmem:[%s12555_s19 + $0x324] sm:$0xf0] }
 0x22a   : > { %v10917_v25 = vld [vmem:[%s12555_s19 + $0xa04] sm:$0xf]  ;;  %v8323_v35 = vor.u32 %v10901_v22, %v8320_v24  ;;  %1910 = vmatpush.bf16.msra.mxu1 %v8259_v34  ;;  %v8614_v19 = vld [vmem:[%s12555_s19 + $0x508] sm:$0xf]  ;;  %v8551_v24 = vor.u32 %v10958_v18, %v8550_v16 }
 0x22b   : > { %v8384_v26 = vld [vmem:[%s12555_s19 + $0xa20] sm:$0xf0]  ;;  %1892 = vmatmul.bf16.vlgmr.msra.gmra.mxu0 %v12659_v54  ;;  %v10974_v20 = vld [vmem:[%s12555_s19 + $0x524] sm:$0xf0] }
 0x22c   : > { %v8387_v38 = vor.u32 %v10917_v25, %v8384_v26  ;;  %1929 = vmatpush.bf16.msra.mxu2 %v8323_v35  ;;  %2592 = vmatpush.bf16.msrb.mxu0 %v8511_v39  ;;  %v8678_v21 = vld [vmem:[%s12555_s19 + $0x708] sm:$0xf]  ;;  %v8615_v25 = vor.u32 %v10974_v20, %v8614_v19 }
 0x22d   : > { %1911 = vmatmul.bf16.vlgmr.msra.gmra.mxu1 %v12663_v57  ;;  %v10990_v22 = vld [vmem:[%s12555_s19 + $0x724] sm:$0xf0] }
 0x22e   : > { %1948 = vmatpush.bf16.msra.mxu3 %v8387_v38  ;;  %2611 = vmatpush.bf16.msrb.mxu1 %v8575_v40  ;;  %v8478_v26 = vld [vmem:[%s12555_s19 + $0xc8] sm:$0xf]  ;;  %v8679_v29 = vor.u32 %v10990_v22, %v8678_v21 }
 0x22f   : > { %1930 = vmatmul.bf16.vlgmr.msra.gmra.mxu2 %v12792_v55  ;;  %v10940_v27 = vld [vmem:[%s12555_s19 + $0xe4] sm:$0xf0] }
 0x230   : > { %2630 = vmatpush.bf16.msrb.mxu2 %v8639_v41  ;;  %2593 = vmatpush.bf16.msrb.mxu0 %v8503_v60  ;;  %v8542_v28 = vld [vmem:[%s12555_s19 + $0x2c8] sm:$0xf]  ;;  %v8479_v35 = vor.u32 %v10940_v27, %v8478_v26 }
 0x231   : > { %1949 = vmatmul.bf16.vlgmr.msra.gmra.mxu3 %v12797_v0  ;;  %v10956_v30 = vld [vmem:[%s12555_s19 + $0x2e4] sm:$0xf0] }
 0x232   : > { %2649 = vmatpush.bf16.msrb.mxu3 %v8703_v42  ;;  %2612 = vmatpush.bf16.msrb.mxu1 %v8567_v62  ;;  %v8606_v31 = vld [vmem:[%s12555_s19 + $0x4c8] sm:$0xf]  ;;  %v8543_v36 = vor.u32 %v10956_v30, %v8542_v28  ;;  %v10963_v28 = vld [vmem:[%s12555_s19 + $0x3cc] sm:$0xf] }
 0x233   : > { %v10972_v32 = vld [vmem:[%s12555_s19 + $0x4e4] sm:$0xf0] }
 0x234   : > { %2631 = vmatpush.bf16.msrb.mxu2 %v8631_v1  ;;  %2594 = vmatpush.bf16.msrb.mxu0 %v8495_v11  ;;  %v8670_v33 = vld [vmem:[%s12555_s19 + $0x6c8] sm:$0xf]  ;;  %v8607_v37 = vor.u32 %v10972_v32, %v8606_v31 }
 0x235   : > { %v10988_v34 = vld [vmem:[%s12555_s19 + $0x6e4] sm:$0xf0] }
 0x236   : > { %2650 = vmatpush.bf16.msrb.mxu3 %v8695_v5  ;;  %2613 = vmatpush.bf16.msrb.mxu1 %v8559_v12  ;;  %v8470_v38 = vld [vmem:[%s12555_s19 + $0x88] sm:$0xf]  ;;  %v8671_v41 = vor.u32 %v10988_v34, %v8670_v33 }
 0x237   : > { %v10938_v39 = vld [vmem:[%s12555_s19 + $0xa4] sm:$0xf0] }
 0x238   : > { %2632 = vmatpush.bf16.msrb.mxu2 %v8623_v13  ;;  %2595 = vmatpush.bf16.msrb.mxu0 %v8487_v23  ;;  %v8534_v40 = vld [vmem:[%s12555_s19 + $0x288] sm:$0xf]  ;;  %v8471_v47 = vor.u32 %v10938_v39, %v8470_v38  ;;  %v10945_v39 = vld [vmem:[%s12555_s19 + $0x18c] sm:$0xf] }
 0x239   : > { %v10954_v42 = vld [vmem:[%s12555_s19 + $0x2a4] sm:$0xf0] }
 0x23a   : > { %2651 = vmatpush.bf16.msrb.mxu3 %v8687_v17  ;;  %2614 = vmatpush.bf16.msrb.mxu1 %v8551_v24  ;;  %v8598_v43 = vld [vmem:[%s12555_s19 + $0x488] sm:$0xf]  ;;  %v8535_v50 = vor.u32 %v10954_v42, %v8534_v40  ;;  %v10947_v24 = vld [vmem:[%s12555_s19 + $0x1cc] sm:$0xf] }
 0x23b   : > { %v10970_v44 = vld [vmem:[%s12555_s19 + $0x4a4] sm:$0xf0]  ;;  %1897 = vmatmul.bf16.gmra.mxu0 %v12736_v58  ;;  %v8504_v40 = vld [vmem:[%s12555_s19 + $0x1a8] sm:$0xf0] }
 0x23c   : > { %2633 = vmatpush.bf16.msrb.mxu2 %v8615_v25  ;;  %v8662_v45 = vld [vmem:[%s12555_s19 + $0x688] sm:$0xf]  ;;  %2596 = vmatpush.bf16.msrb.mxu0 %v8479_v35  ;;  %v8599_v52 = vor.u32 %v10970_v44, %v8598_v43  ;;  %v8512_v25 = vld [vmem:[%s12555_s19 + $0x1e8] sm:$0xf0] }
 0x23d   : > { %v10986_v46 = vld [vmem:[%s12555_s19 + $0x6a4] sm:$0xf0]  ;;  %1916 = vmatmul.bf16.gmra.mxu1 %v12740_v61  ;;  %v8515_v33 = vor.u32 %v10947_v24, %v8512_v25  ;;  %v8568_v42 = vld [vmem:[%s12555_s19 + $0x3a8] sm:$0xf0] }
 0x23e   : > { %2652 = vmatpush.bf16.msrb.mxu3 %v8679_v29  ;;  %2615 = vmatpush.bf16.msrb.mxu1 %v8543_v36  ;;  %v8462_v59 = vld [vmem:[%s12555_s19 + $0x48] sm:$0xf]  ;;  %v8663_v1 = vor.u32 %v10986_v46, %v8662_v45  ;;  %v8576_v29 = vld [vmem:[%s12555_s19 + $0x3e8] sm:$0xf0]  ;;  %v8507_v45 = vor.u32 %v10945_v39, %v8504_v40 }
 0x23f   : > { %v10936_v60 = vld [vmem:[%s12555_s19 + $0x64] sm:$0xf0]  ;;  %1935 = vmatmul.bf16.gmra.mxu2 %v12844_v51  ;;  %v8579_v34 = vor.u32 %v10963_v28, %v8576_v29  ;;  %v8480_v24 = vld [vmem:[%s12555_s19 + $0xe8] sm:$0xf0] }
 0x240   : > { %2634 = vmatpush.bf16.msrb.mxu2 %v8607_v37  ;;  %v8526_v62 = vld [vmem:[%s12555_s19 + $0x248] sm:$0xf]  ;;  %2597 = vmatpush.bf16.msrb.mxu0 %v8471_v47  ;;  %v8463_v7 = vor.u32 %v10936_v60, %v8462_v59  ;;  %v10943_v60 = vld [vmem:[%s12555_s19 + $0x14c] sm:$0xf] }
 0x241   : > { %v10952_v2 = vld [vmem:[%s12555_s19 + $0x264] sm:$0xf0]  ;;  %1954 = vmatmul.bf16.gmra.mxu3 %v12849_v63  ;;  %v10955_v25 = vld [vmem:[%s12555_s19 + $0x2cc] sm:$0xf] }
 0x242   : > { %2653 = vmatpush.bf16.msrb.mxu3 %v8671_v41  ;;  %v8590_v3 = vld [vmem:[%s12555_s19 + $0x448] sm:$0xf]  ;;  %2616 = vmatpush.bf16.msrb.mxu1 %v8535_v50  ;;  %v8527_v10 = vor.u32 %v10952_v2, %v8526_v62  ;;  %v10961_v41 = vld [vmem:[%s12555_s19 + $0x38c] sm:$0xf] }
 0x243   : > { %v10968_v4 = vld [vmem:[%s12555_s19 + $0x464] sm:$0xf0]  ;;  %v8496_v62 = vld [vmem:[%s12555_s19 + $0x168] sm:$0xf0] }
 0x244   : > { %v8654_v5 = vld [vmem:[%s12555_s19 + $0x648] sm:$0xf]  ;;  %2635 = vmatpush.bf16.msrb.mxu2 %v8599_v52  ;;  %v8591_v11 = vor.u32 %v10968_v4, %v8590_v3  ;;  %2598 = vmatpush.bf16.msrb.mxu0 %v8463_v7  ;;  %v8571_v52 = vor.u32 %v10961_v41, %v8568_v42  ;;  %v8560_v2 = vld [vmem:[%s12555_s19 + $0x368] sm:$0xf0] }
 0x245   : > { %v10984_v6 = vld [vmem:[%s12555_s19 + $0x664] sm:$0xf0] }
 0x246   : > { %v8454_v8 = vld [vmem:[%s12555_s19 + $0x8] sm:$0xf]  ;;  %2654 = vmatpush.bf16.msrb.mxu3 %v8663_v1  ;;  %v8655_v15 = vor.u32 %v10984_v6, %v8654_v5  ;;  %2617 = vmatpush.bf16.msrb.mxu1 %v8527_v10  ;;  %v10959_v1 = vld [vmem:[%s12555_s19 + $0x34c] sm:$0xf]  ;;  %v8499_v5 = vor.u32 %v10943_v60, %v8496_v62 }
 0x247   : > { %v10934_v9 = vld [vmem:[%s12555_s19 + $0x24] sm:$0xf0] }
 0x248   : > { %v8518_v12 = vld [vmem:[%s12555_s19 + $0x208] sm:$0xf]  ;;  %v8455_v22 = vor.u32 %v10934_v9, %v8454_v8  ;;  %2636 = vmatpush.bf16.msrb.mxu2 %v8591_v11  ;;  %v8563_v9 = vor.u32 %v10959_v1, %v8560_v2  ;;  %v10941_v11 = vld [vmem:[%s12555_s19 + $0x10c] sm:$0xf] }
 0x249   : > { %v10950_v13 = vld [vmem:[%s12555_s19 + $0x224] sm:$0xf0] }
 0x24a   : > { %v8582_v14 = vld [vmem:[%s12555_s19 + $0x408] sm:$0xf]  ;;  %v8519_v26 = vor.u32 %v10950_v13, %v8518_v12  ;;  %2655 = vmatpush.bf16.msrb.mxu3 %v8655_v15  ;;  %2599 = vmatpush.bf16.msrb.mxu0 %v8455_v22  ;;  %v8488_v12 = vld [vmem:[%s12555_s19 + $0x128] sm:$0xf0] }
 0x24b   : > { %v10966_v16 = vld [vmem:[%s12555_s19 + $0x424] sm:$0xf0]  ;;  %v10957_v13 = vld [vmem:[%s12555_s19 + $0x30c] sm:$0xf] }
 0x24c   : > { %v8646_v17 = vld [vmem:[%s12555_s19 + $0x608] sm:$0xf]  ;;  %v8583_v27 = vor.u32 %v10966_v16, %v8582_v14  ;;  %2618 = vmatpush.bf16.msrb.mxu1 %v8519_v26  ;;  %v8552_v14 = vld [vmem:[%s12555_s19 + $0x328] sm:$0xf0] }
 0x24d   : > { %v10982_v18 = vld [vmem:[%s12555_s19 + $0x624] sm:$0xf0]  ;;  %2600 = vmatmul.bf16.vlgmr.msrb.gmra.mxu0 %v12652_v48  ;;  %v8544_v26 = vld [vmem:[%s12555_s19 + $0x2e8] sm:$0xf0] }
 0x24e   : > { %v8766_v19 = vld [vmem:[%s12555_s19 + $0x9c8] sm:$0xf]  ;;  %v8647_v30 = vor.u32 %v10982_v18, %v8646_v17  ;;  %2637 = vmatpush.bf16.msrb.mxu2 %v8583_v27  ;;  %v8491_v17 = vor.u32 %v10941_v11, %v8488_v12  ;;  %v10979_v11 = vld [vmem:[%s12555_s19 + $0x5cc] sm:$0xf] }
 0x24f   : > { %v11012_v20 = vld [vmem:[%s12555_s19 + $0x9e4] sm:$0xf0]  ;;  %2619 = vmatmul.bf16.vlgmr.msrb.gmra.mxu1 %v12657_v53  ;;  %v8640_v12 = vld [vmem:[%s12555_s19 + $0x5e8] sm:$0xf0] }
 0x250   : > { %v8830_v21 = vld [vmem:[%s12555_s19 + $0xbc8] sm:$0xf]  ;;  %v8767_v31 = vor.u32 %v11012_v20, %v8766_v19  ;;  %2656 = vmatpush.bf16.msrb.mxu3 %v8647_v30 }
 0x251   : > { %v11028_v23 = vld [vmem:[%s12555_s19 + $0xbe4] sm:$0xf0]  ;;  %2638 = vmatmul.bf16.vlgmr.msrb.gmra.mxu2 %v12659_v54 }
 0x252   : > { %v8831_v32 = vor.u32 %v11028_v23, %v8830_v21  ;;  %v8758_v35 = vld [vmem:[%s12555_s19 + $0x988] sm:$0xf]  ;;  %2668 = vmatpush.bf16.msra.mxu0 %v8767_v31  ;;  %2706 = vmatpush.bf16.msra.mxu2 %v8515_v33  ;;  %v8555_v21 = vor.u32 %v10957_v13, %v8552_v14  ;;  %v10939_v23 = vld [vmem:[%s12555_s19 + $0xcc] sm:$0xf]  ;;  %v8547_v33 = vor.u32 %v10955_v25, %v8544_v26 }
 0x253   : > { %v11010_v36 = vld [vmem:[%s12555_s19 + $0x9a4] sm:$0xf0]  ;;  %2657 = vmatmul.bf16.vlgmr.msrb.gmra.mxu3 %v12663_v57  ;;  %v8483_v29 = vor.u32 %v10939_v23, %v8480_v24  ;;  %v10995_v13 = vld [vmem:[%s12555_s19 + $0x7cc] sm:$0xf]  ;;  %v8643_v23 = vor.u32 %v10979_v11, %v8640_v12 }
 0x254   : > { %v8822_v37 = vld [vmem:[%s12555_s19 + $0xb88] sm:$0xf]  ;;  %2687 = vmatpush.bf16.msra.mxu1 %v8831_v32  ;;  %2725 = vmatpush.bf16.msra.mxu3 %v8579_v34  ;;  %v8759_v43 = vor.u32 %v11010_v36, %v8758_v35  ;;  %v10937_v35 = vld [vmem:[%s12555_s19 + $0x8c] sm:$0xf] }
 0x255   : > { %v11026_v38 = vld [vmem:[%s12555_s19 + $0xba4] sm:$0xf0]  ;;  %v8472_v36 = vld [vmem:[%s12555_s19 + $0xa8] sm:$0xf0] }
 0x256   : > { %v8823_v44 = vor.u32 %v11026_v38, %v8822_v37  ;;  %v8750_v46 = vld [vmem:[%s12555_s19 + $0x948] sm:$0xf]  ;;  %2669 = vmatpush.bf16.msra.mxu0 %v8759_v43  ;;  %2707 = vmatpush.bf16.msra.mxu2 %v8507_v45  ;;  %v10953_v37 = vld [vmem:[%s12555_s19 + $0x28c] sm:$0xf]  ;;  %v8475_v41 = vor.u32 %v10937_v35, %v8472_v36 }
 0x257   : > { %v11008_v47 = vld [vmem:[%s12555_s19 + $0x964] sm:$0xf0]  ;;  %v8536_v38 = vld [vmem:[%s12555_s19 + $0x2a8] sm:$0xf0] }
 0x258   : > { %v8814_v50 = vld [vmem:[%s12555_s19 + $0xb48] sm:$0xf]  ;;  %v8751_v3 = vor.u32 %v11008_v47, %v8750_v46  ;;  %2688 = vmatpush.bf16.msra.mxu1 %v8823_v44  ;;  %2726 = vmatpush.bf16.msra.mxu3 %v8571_v52  ;;  %v8539_v45 = vor.u32 %v10953_v37, %v8536_v38  ;;  %v10935_v47 = vld [vmem:[%s12555_s19 + $0x4c] sm:$0xf] }
 0x259   : > { %v11024_v59 = vld [vmem:[%s12555_s19 + $0xb64] sm:$0xf0]  ;;  %v10951_v52 = vld [vmem:[%s12555_s19 + $0x24c] sm:$0xf] }
 0x25a   : > { %v8815_v4 = vor.u32 %v11024_v59, %v8814_v50  ;;  %v8742_v6 = vld [vmem:[%s12555_s19 + $0x908] sm:$0xf]  ;;  %2670 = vmatpush.bf16.msra.mxu0 %v8751_v3  ;;  %2708 = vmatpush.bf16.msra.mxu2 %v8499_v5  ;;  %v8464_v50 = vld [vmem:[%s12555_s19 + $0x68] sm:$0xf0] }
 0x25b   : > { %v11006_v7 = vld [vmem:[%s12555_s19 + $0x924] sm:$0xf0]  ;;  %v8528_v59 = vld [vmem:[%s12555_s19 + $0x268] sm:$0xf0]  ;;  %v8467_v3 = vor.u32 %v10935_v47, %v8464_v50 }
 0x25c   : > { %v8806_v8 = vld [vmem:[%s12555_s19 + $0xb08] sm:$0xf]  ;;  %v8743_v15 = vor.u32 %v11006_v7, %v8742_v6  ;;  %2689 = vmatpush.bf16.msra.mxu1 %v8815_v4  ;;  %2727 = vmatpush.bf16.msra.mxu3 %v8563_v9  ;;  %v10933_v6 = vld [vmem:[%s12555_s19 + $0xc] sm:$0xf]  ;;  %v8531_v7 = vor.u32 %v10951_v52, %v8528_v59 }
 0x25d   : > { %v11022_v10 = vld [vmem:[%s12555_s19 + $0xb24] sm:$0xf0]  ;;  %2605 = vmatmul.bf16.gmra.mxu0 %v12727_v49  ;;  %v10949_v9 = vld [vmem:[%s12555_s19 + $0x20c] sm:$0xf] }
 0x25e   : > { %v8807_v16 = vor.u32 %v11022_v10, %v8806_v8  ;;  %v8734_v18 = vld [vmem:[%s12555_s19 + $0x8c8] sm:$0xf]  ;;  %2671 = vmatpush.bf16.msra.mxu0 %v8743_v15  ;;  %2709 = vmatpush.bf16.msra.mxu2 %v8491_v17  ;;  %v8456_v8 = vld [vmem:[%s12555_s19 + $0x28] sm:$0xf0]  ;;  %v13035_v36 = vpop.f32.mrf.mxu1 }
 0x25f   : > { %v11004_v19 = vld [vmem:[%s12555_s19 + $0x8e4] sm:$0xf0]  ;;  %2624 = vmatmul.bf16.gmra.mxu1 %v12734_v56  ;;  %v8520_v10 = vld [vmem:[%s12555_s19 + $0x228] sm:$0xf0] }
 0x260   : > { %v8798_v20 = vld [vmem:[%s12555_s19 + $0xac8] sm:$0xf]  ;;  %v8735_v27 = vor.u32 %v11004_v19, %v8734_v18  ;;  %2690 = vmatpush.bf16.msra.mxu1 %v8807_v16  ;;  %2728 = vmatpush.bf16.msra.mxu3 %v8555_v21  ;;  %v8704_v15 = vld [vmem:[%s12555_s19 + $0x7e8] sm:$0xf0]  ;;  %v8459_v19 = vor.u32 %v10933_v6, %v8456_v8 }
 0x261   : > { %v11020_v22 = vld [vmem:[%s12555_s19 + $0xae4] sm:$0xf0]  ;;  %2643 = vmatmul.bf16.gmra.mxu2 %v12736_v58  ;;  %v11011_v16 = vld [vmem:[%s12555_s19 + $0x9cc] sm:$0xf]  ;;  %v8707_v24 = vor.u32 %v10995_v13, %v8704_v15 }
 0x262   : > { %v8799_v28 = vor.u32 %v11020_v22, %v8798_v20  ;;  %v8726_v30 = vld [vmem:[%s12555_s19 + $0x888] sm:$0xf]  ;;  %2672 = vmatpush.bf16.msra.mxu0 %v8735_v27  ;;  %2710 = vmatpush.bf16.msra.mxu2 %v8483_v29  ;;  %v8768_v17 = vld [vmem:[%s12555_s19 + $0x9e8] sm:$0xf0]  ;;  %v8523_v22 = vor.u32 %v10949_v9, %v8520_v10 }
 0x263   : > { %v11002_v31 = vld [vmem:[%s12555_s19 + $0x8a4] sm:$0xf0]  ;;  %2662 = vmatmul.bf16.gmra.mxu3 %v12740_v61  ;;  %v11027_v20 = vld [vmem:[%s12555_s19 + $0xbcc] sm:$0xf]  ;;  %v8771_v25 = vor.u32 %v11011_v16, %v8768_v17 }
 0x264   : > { %v8790_v32 = vld [vmem:[%s12555_s19 + $0xa88] sm:$0xf]  ;;  %v8727_v39 = vor.u32 %v11002_v31, %v8726_v30  ;;  %2691 = vmatpush.bf16.msra.mxu1 %v8799_v28  ;;  %2729 = vmatpush.bf16.msra.mxu3 %v8547_v33  ;;  %v8832_v21 = vld [vmem:[%s12555_s19 + $0xbe8] sm:$0xf0]  ;;  %v13031_v33 = vpop.f32.mrf.mxu0 }
 0x265   : > { %v11018_v34 = vld [vmem:[%s12555_s19 + $0xaa4] sm:$0xf0]  ;;  %v8835_v26 = vor.u32 %v11027_v20, %v8832_v21  ;;  %v10977_v27 = vld [vmem:[%s12555_s19 + $0x58c] sm:$0xf] }
 0x266   : > { %v8791_v40 = vor.u32 %v11018_v34, %v8790_v32  ;;  %v8718_v42 = vld [vmem:[%s12555_s19 + $0x848] sm:$0xf]  ;;  %2673 = vmatpush.bf16.msra.mxu0 %v8727_v39  ;;  %2711 = vmatpush.bf16.msra.mxu2 %v8475_v41  ;;  %v8632_v28 = vld [vmem:[%s12555_s19 + $0x5a8] sm:$0xf0]  ;;  %v13063_v12 = vpop.f32.mrf.mxu1 }
 0x267   : > { %v11000_v43 = vld [vmem:[%s12555_s19 + $0x864] sm:$0xf0]  ;;  %v10993_v29 = vld [vmem:[%s12555_s19 + $0x78c] sm:$0xf]  ;;  %v8635_v37 = vor.u32 %v10977_v27, %v8632_v28 }
 0x268   : > { %v8782_v44 = vld [vmem:[%s12555_s19 + $0xa48] sm:$0xf]  ;;  %v8719_v60 = vor.u32 %v11000_v43, %v8718_v42  ;;  %2692 = vmatpush.bf16.msra.mxu1 %v8791_v40  ;;  %2730 = vmatpush.bf16.msra.mxu3 %v8539_v45  ;;  %v8696_v30 = vld [vmem:[%s12555_s19 + $0x7a8] sm:$0xf0]  ;;  %v13057_v8 = vpop.f32.mrf.mxu3 }
 0x269   : > { %v11016_v46 = vld [vmem:[%s12555_s19 + $0xa64] sm:$0xf0]  ;;  %v11009_v31 = vld [vmem:[%s12555_s19 + $0x98c] sm:$0xf]  ;;  %v8699_v38 = vor.u32 %v10993_v29, %v8696_v30 }
 0x26a   : > { %v8710_v62 = vld [vmem:[%s12555_s19 + $0x808] sm:$0xf]  ;;  %v8783_v2 = vor.u32 %v11016_v46, %v8782_v44  ;;  %2674 = vmatpush.bf16.msra.mxu0 %v8719_v60  ;;  %2712 = vmatpush.bf16.msra.mxu2 %v8467_v3  ;;  %v8760_v32 = vld [vmem:[%s12555_s19 + $0x9a8] sm:$0xf0] }
 0x26b   : > { %v10998_v1 = vld [vmem:[%s12555_s19 + $0x824] sm:$0xf0]  ;;  %v11025_v34 = vld [vmem:[%s12555_s19 + $0xb8c] sm:$0xf]  ;;  %v8763_v39 = vor.u32 %v11009_v31, %v8760_v32  ;;  %v13052_v3 = vpop.f32.mrf.mxu2 }
 0x26c   : > { %v8774_v4 = vld [vmem:[%s12555_s19 + $0xa08] sm:$0xf]  ;;  %v8711_v14 = vor.u32 %v10998_v1, %v8710_v62  ;;  %2693 = vmatpush.bf16.msra.mxu1 %v8783_v2  ;;  %2731 = vmatpush.bf16.msra.mxu3 %v8531_v7  ;;  %v8824_v35 = vld [vmem:[%s12555_s19 + $0xba8] sm:$0xf0]  ;;  %v13059_v9 = vpop.f32.mrf.mxu0 }
 0x26d   : > { %v11014_v5 = vld [vmem:[%s12555_s19 + $0xa24] sm:$0xf0]  ;;  %v10975_v40 = vld [vmem:[%s12555_s19 + $0x54c] sm:$0xf]  ;;  %v8827_v43 = vor.u32 %v11025_v34, %v8824_v35 }
 0x26e   : > { %v8775_v18 = vor.u32 %v11014_v5, %v8774_v4  ;;  %2675 = vmatpush.bf16.msra.mxu0 %v8711_v14  ;;  %2713 = vmatpush.bf16.msra.mxu2 %v8459_v19  ;;  %v8624_v41 = vld [vmem:[%s12555_s19 + $0x568] sm:$0xf0] }
 0x26f   : > { %v10991_v42 = vld [vmem:[%s12555_s19 + $0x74c] sm:$0xf]  ;;  %v8627_v52 = vor.u32 %v10975_v40, %v8624_v41 }
 0x270   : > { %2694 = vmatpush.bf16.msra.mxu1 %v8775_v18  ;;  %2732 = vmatpush.bf16.msra.mxu3 %v8523_v22  ;;  %v8688_v44 = vld [vmem:[%s12555_s19 + $0x768] sm:$0xf0] }
 0x271   : > { %2676 = vmatmul.bf16.vlgmr.msra.gmra.mxu0 %v12792_v55  ;;  %v11007_v45 = vld [vmem:[%s12555_s19 + $0x94c] sm:$0xf]  ;;  %2714 = vmatmul.bf16.vlgmr.msra.gmra.mxu2 %v12652_v48  ;;  %v8691_v59 = vor.u32 %v10991_v42, %v8688_v44  ;;  %v13087_v42 = vpop.f32.mrf.mxu1 }
 0x272   : > { %2744 = vmatpush.bf16.msrb.mxu0 %v8643_v23  ;;  %2782 = vmatpush.bf16.msrb.mxu2 %v8771_v25  ;;  %v8752_v46 = vld [vmem:[%s12555_s19 + $0x968] sm:$0xf0] }
 0x273   : > { %2695 = vmatmul.bf16.vlgmr.msra.gmra.mxu1 %v12797_v0  ;;  %v11023_v47 = vld [vmem:[%s12555_s19 + $0xb4c] sm:$0xf]  ;;  %2733 = vmatmul.bf16.vlgmr.msra.gmra.mxu3 %v12657_v53  ;;  %v8755_v60 = vor.u32 %v11007_v45, %v8752_v46  ;;  %v13076_v31 = vpop.f32.mrf.mxu2 }
 0x274   : > { %2763 = vmatpush.bf16.msrb.mxu1 %v8707_v24  ;;  %2801 = vmatpush.bf16.msrb.mxu3 %v8835_v26  ;;  %v8816_v50 = vld [vmem:[%s12555_s19 + $0xb68] sm:$0xf0] }
 0x275   : > { %v10973_v62 = vld [vmem:[%s12555_s19 + $0x50c] sm:$0xf]  ;;  %v8819_v4 = vor.u32 %v11023_v47, %v8816_v50 }
 0x276   : > { %2745 = vmatpush.bf16.msrb.mxu0 %v8635_v37  ;;  %2783 = vmatpush.bf16.msrb.mxu2 %v8763_v39  ;;  %v8616_v1 = vld [vmem:[%s12555_s19 + $0x528] sm:$0xf0]  ;;  %v13083_v39 = vpop.f32.mrf.mxu0 }
 0x277   : > { %v10989_v2 = vld [vmem:[%s12555_s19 + $0x70c] sm:$0xf]  ;;  %v8619_v13 = vor.u32 %v10973_v62, %v8616_v1 }
 0x278   : > { %2764 = vmatpush.bf16.msrb.mxu1 %v8699_v38  ;;  %2802 = vmatpush.bf16.msrb.mxu3 %v8827_v43  ;;  %v8680_v5 = vld [vmem:[%s12555_s19 + $0x728] sm:$0xf0]  ;;  %v13081_v38 = vpop.f32.mrf.mxu3 }
 0x279   : > { %v11005_v6 = vld [vmem:[%s12555_s19 + $0x90c] sm:$0xf]  ;;  %v8683_v14 = vor.u32 %v10989_v2, %v8680_v5 }
 0x27a   : > { %v8744_v7 = vld [vmem:[%s12555_s19 + $0x928] sm:$0xf0]  ;;  %2746 = vmatpush.bf16.msrb.mxu0 %v8627_v52  ;;  %2784 = vmatpush.bf16.msrb.mxu2 %v8755_v60 }
 0x27b   : > { %v11021_v10 = vld [vmem:[%s12555_s19 + $0xb0c] sm:$0xf]  ;;  %v8747_v15 = vor.u32 %v11005_v6, %v8744_v7 }
 0x27c   : > { %v8808_v11 = vld [vmem:[%s12555_s19 + $0xb28] sm:$0xf0]  ;;  %2765 = vmatpush.bf16.msrb.mxu1 %v8691_v59  ;;  %2803 = vmatpush.bf16.msrb.mxu3 %v8819_v4 }
 0x27d   : > { %v10971_v16 = vld [vmem:[%s12555_s19 + $0x4cc] sm:$0xf]  ;;  %v8811_v19 = vor.u32 %v11021_v10, %v8808_v11 }
 0x27e   : > { %v8608_v17 = vld [vmem:[%s12555_s19 + $0x4e8] sm:$0xf0]  ;;  %2747 = vmatpush.bf16.msrb.mxu0 %v8619_v13  ;;  %2785 = vmatpush.bf16.msrb.mxu2 %v8747_v15  ;;  %v13106_v15 = vpop.f32.mrf.mxu2 }
 0x27f   : > { %v10987_v18 = vld [vmem:[%s12555_s19 + $0x6cc] sm:$0xf]  ;;  %v8611_v25 = vor.u32 %v10971_v16, %v8608_v17 }
 0x280   : > { %v8672_v20 = vld [vmem:[%s12555_s19 + $0x6e8] sm:$0xf0]  ;;  %2766 = vmatpush.bf16.msrb.mxu1 %v8683_v14  ;;  %2804 = vmatpush.bf16.msrb.mxu3 %v8811_v19 }
 0x281   : > { %v11003_v21 = vld [vmem:[%s12555_s19 + $0x8cc] sm:$0xf]  ;;  %v8675_v26 = vor.u32 %v10987_v18, %v8672_v20  ;;  %2681 = vmatmul.bf16.gmra.mxu0 %v12844_v51  ;;  %2719 = vmatmul.bf16.gmra.mxu2 %v12727_v49  ;;  %v13111_v20 = vpop.f32.mrf.mxu3 }
 0x282   : > { %v8736_v22 = vld [vmem:[%s12555_s19 + $0x8e8] sm:$0xf0]  ;;  %2748 = vmatpush.bf16.msrb.mxu0 %v8611_v25  ;;  %v13118_v25 = vpop.f32.mrf.mxu1 }
 0x283   : > { %v11019_v23 = vld [vmem:[%s12555_s19 + $0xacc] sm:$0xf]  ;;  %v8739_v27 = vor.u32 %v11003_v21, %v8736_v22  ;;  %2700 = vmatmul.bf16.gmra.mxu1 %v12849_v63  ;;  %2738 = vmatmul.bf16.gmra.mxu3 %v12734_v56  ;;  %v13113_v21 = vpop.f32.mrf.mxu0  ;;  %v8902_v22 = vld [vmem:[%s12555_s19 + $0x1d0] sm:$0xf] }
 0x284   : > { %v8800_v24 = vld [vmem:[%s12555_s19 + $0xae8] sm:$0xf0]  ;;  %2767 = vmatpush.bf16.msrb.mxu1 %v8675_v26 }
 0x285   : > { %v10969_v28 = vld [vmem:[%s12555_s19 + $0x48c] sm:$0xf]  ;;  %v8803_v32 = vor.u32 %v11019_v23, %v8800_v24  ;;  %2786 = vmatpush.bf16.msrb.mxu2 %v8739_v27  ;;  %v11044_v23 = vld [vmem:[%s12555_s19 + $0x1ec] sm:$0xf0] }
 0x286   : > { %v8600_v29 = vld [vmem:[%s12555_s19 + $0x4a8] sm:$0xf0]  ;;  %v8966_v24 = vld [vmem:[%s12555_s19 + $0x3d0] sm:$0xf] }
 0x287   : > { %v10985_v30 = vld [vmem:[%s12555_s19 + $0x68c] sm:$0xf]  ;;  %v8603_v43 = vor.u32 %v10969_v28, %v8600_v29  ;;  %2805 = vmatpush.bf16.msrb.mxu3 %v8803_v32  ;;  %v11060_v27 = vld [vmem:[%s12555_s19 + $0x3ec] sm:$0xf0] }
 0x288   : > { %v8664_v34 = vld [vmem:[%s12555_s19 + $0x6a8] sm:$0xf0]  ;;  %v9030_v28 = vld [vmem:[%s12555_s19 + $0x5d0] sm:$0xf] }
 0x289   : > { %v11001_v35 = vld [vmem:[%s12555_s19 + $0x88c] sm:$0xf]  ;;  %v8667_v44 = vor.u32 %v10985_v30, %v8664_v34  ;;  %2749 = vmatpush.bf16.msrb.mxu0 %v8603_v43  ;;  %v11076_v29 = vld [vmem:[%s12555_s19 + $0x5ec] sm:$0xf0] }
 0x28a   : > { %v8728_v37 = vld [vmem:[%s12555_s19 + $0x8a8] sm:$0xf0]  ;;  %v9094_v34 = vld [vmem:[%s12555_s19 + $0x7d0] sm:$0xf]  ;;  %v9031_v43 = vor.u32 %v11076_v29, %v9030_v28 }
 0x28b   : > { %v11017_v40 = vld [vmem:[%s12555_s19 + $0xa8c] sm:$0xf]  ;;  %v8731_v45 = vor.u32 %v11001_v35, %v8728_v37  ;;  %2768 = vmatpush.bf16.msrb.mxu1 %v8667_v44  ;;  %v11092_v35 = vld [vmem:[%s12555_s19 + $0x7ec] sm:$0xf0] }
 0x28c   : > { %v8792_v41 = vld [vmem:[%s12555_s19 + $0xaa8] sm:$0xf0]  ;;  %v9095_v44 = vor.u32 %v11092_v35, %v9094_v34  ;;  %v8878_v29 = vld [vmem:[%s12555_s19 + $0x110] sm:$0xf] }
 0x28d   : > { %v10967_v46 = vld [vmem:[%s12555_s19 + $0x44c] sm:$0xf]  ;;  %v8795_v52 = vor.u32 %v11017_v40, %v8792_v41  ;;  %2787 = vmatpush.bf16.msrb.mxu2 %v8731_v45  ;;  %v8903_v40 = vor.u32 %v11044_v23, %v8902_v22  ;;  %v8967_v41 = vor.u32 %v11060_v27, %v8966_v24  ;;  %v8894_v45 = vld [vmem:[%s12555_s19 + $0x190] sm:$0xf]  ;;  %v13148_v22 = vpop.permute.xlu0 %1174 }
 0x28e   : > { %v8592_v47 = vld [vmem:[%s12555_s19 + $0x468] sm:$0xf0]  ;;  %v9078_v23 = vld [vmem:[%s12555_s19 + $0x750] sm:$0xf]  ;;  %v1742_v34 = vadd.f32 %v13031_v33, %v13148_v22 }
 0x28f   : > { %v10983_v50 = vld [vmem:[%s12555_s19 + $0x64c] sm:$0xf]  ;;  %v8595_v4 = vor.u32 %v10967_v46, %v8592_v47  ;;  %2806 = vmatpush.bf16.msrb.mxu3 %v8795_v52  ;;  %v11042_v46 = vld [vmem:[%s12555_s19 + $0x1ac] sm:$0xf0] }
 0x290   : > { %v8656_v59 = vld [vmem:[%s12555_s19 + $0x668] sm:$0xf0]  ;;  %v8958_v47 = vld [vmem:[%s12555_s19 + $0x390] sm:$0xf] }
 0x291   : > { %v10999_v60 = vld [vmem:[%s12555_s19 + $0x84c] sm:$0xf]  ;;  %v8659_v7 = vor.u32 %v10983_v50, %v8656_v59  ;;  %2750 = vmatpush.bf16.msrb.mxu0 %v8595_v4  ;;  %v13128_v50 = vpop.f32.mrf.mxu2  ;;  %v11058_v52 = vld [vmem:[%s12555_s19 + $0x3ac] sm:$0xf0] }
 0x292   : > { %v8720_v62 = vld [vmem:[%s12555_s19 + $0x868] sm:$0xf0]  ;;  %v9022_v59 = vld [vmem:[%s12555_s19 + $0x590] sm:$0xf] }
 0x293   : > { %v11015_v1 = vld [vmem:[%s12555_s19 + $0xa4c] sm:$0xf]  ;;  %v8723_v10 = vor.u32 %v10999_v60, %v8720_v62  ;;  %2769 = vmatpush.bf16.msrb.mxu1 %v8659_v7  ;;  %v11074_v60 = vld [vmem:[%s12555_s19 + $0x5ac] sm:$0xf0]  ;;  %v13133_v62 = vpop.f32.mrf.mxu3  ;;  %v8959_v7 = vor.u32 %v11058_v52, %v8958_v47 }
 0x294   : > { %v8784_v2 = vld [vmem:[%s12555_s19 + $0xa68] sm:$0xf0]  ;;  %v11090_v4 = vld [vmem:[%s12555_s19 + $0x7ac] sm:$0xf0] }
 0x295   : > { %v10965_v5 = vld [vmem:[%s12555_s19 + $0x40c] sm:$0xf]  ;;  %v8787_v16 = vor.u32 %v11015_v1, %v8784_v2  ;;  %2788 = vmatpush.bf16.msrb.mxu2 %v8723_v10  ;;  %v13135_v1 = vpop.f32.mrf.mxu0  ;;  %v9086_v2 = vld [vmem:[%s12555_s19 + $0x790] sm:$0xf]  ;;  %v9023_v10 = vor.u32 %v11074_v60, %v9022_v59 }
 0x296   : > { %v8584_v6 = vld [vmem:[%s12555_s19 + $0x428] sm:$0xf0]  ;;  %v11088_v24 = vld [vmem:[%s12555_s19 + $0x76c] sm:$0xf0] }
 0x297   : > { %v10981_v11 = vld [vmem:[%s12555_s19 + $0x60c] sm:$0xf]  ;;  %v8587_v26 = vor.u32 %v10965_v5, %v8584_v6  ;;  %2807 = vmatpush.bf16.msrb.mxu3 %v8787_v16  ;;  %v13139_v5 = vpop.f32.mrf.mxu1  ;;  %v8895_v6 = vor.u32 %v11042_v46, %v8894_v45  ;;  %v9087_v16 = vor.u32 %v11090_v4, %v9086_v2  ;;  %v9070_v46 = vld [vmem:[%s12555_s19 + $0x710] sm:$0xf] }
 0x298   : > { %v8648_v13 = vld [vmem:[%s12555_s19 + $0x628] sm:$0xf0]  ;;  %v11086_v47 = vld [vmem:[%s12555_s19 + $0x72c] sm:$0xf0] }
 0x299   : > { %v10997_v14 = vld [vmem:[%s12555_s19 + $0x80c] sm:$0xf]  ;;  %v8651_v30 = vor.u32 %v10981_v11, %v8648_v13  ;;  %2751 = vmatpush.bf16.msrb.mxu0 %v8587_v26  ;;  %v8886_v11 = vld [vmem:[%s12555_s19 + $0x150] sm:$0xf]  ;;  %v13160_v35 = vpop.f32.mrf.mxu2 }
 0x29a   : > { %v8712_v17 = vld [vmem:[%s12555_s19 + $0x828] sm:$0xf0]  ;;  %v11040_v13 = vld [vmem:[%s12555_s19 + $0x16c] sm:$0xf0] }
 0x29b   : > { %v11013_v18 = vld [vmem:[%s12555_s19 + $0xa0c] sm:$0xf]  ;;  %v8715_v32 = vor.u32 %v10997_v14, %v8712_v17  ;;  %2770 = vmatpush.bf16.msrb.mxu1 %v8651_v30  ;;  %v8950_v14 = vld [vmem:[%s12555_s19 + $0x350] sm:$0xf]  ;;  %v8887_v26 = vor.u32 %v11040_v13, %v8886_v11 }
 0x29c   : > { %v8776_v19 = vld [vmem:[%s12555_s19 + $0xa28] sm:$0xf0]  ;;  %2752 = vmatmul.bf16.vlgmr.msrb.gmra.mxu0 %v12659_v54  ;;  %v11056_v17 = vld [vmem:[%s12555_s19 + $0x36c] sm:$0xf0] }
 0x29d   : > { %v8779_v37 = vor.u32 %v11013_v18, %v8776_v19  ;;  %2789 = vmatpush.bf16.msrb.mxu2 %v8715_v32  ;;  %3452 = vmatpush.bf16.msra.mxu0 %v8903_v40  ;;  %v9014_v18 = vld [vmem:[%s12555_s19 + $0x550] sm:$0xf]  ;;  %v8951_v27 = vor.u32 %v11056_v17, %v8950_v14  ;;  %v13167_v45 = vpop.f32.mrf.mxu0 }
 0x29e   : > { %v11072_v19 = vld [vmem:[%s12555_s19 + $0x56c] sm:$0xf0]  ;;  %2771 = vmatmul.bf16.vlgmr.msrb.gmra.mxu1 %v12663_v57 }
 0x29f   : > { %2808 = vmatpush.bf16.msrb.mxu3 %v8779_v37  ;;  %3471 = vmatpush.bf16.msra.mxu1 %v8967_v41  ;;  %v9015_v28 = vor.u32 %v11072_v19, %v9014_v18  ;;  %v11038_v30 = vld [vmem:[%s12555_s19 + $0x12c] sm:$0xf0]  ;;  %v9079_v37 = vor.u32 %v11088_v24, %v9078_v23  ;;  %v13171_v33 = vpop.f32.mrf.mxu1  ;;  %v13182_v19 = vpop.permute.xlu0 %1179 }
 0x2a0   : > { %2790 = vmatmul.bf16.vlgmr.msrb.gmra.mxu2 %v12792_v55  ;;  %v8942_v32 = vld [vmem:[%s12555_s19 + $0x310] sm:$0xf]  ;;  %v8879_v52 = vor.u32 %v11038_v30, %v8878_v29 }
 0x2a1   : > { %3490 = vmatpush.bf16.msra.mxu2 %v9031_v43  ;;  %3453 = vmatpush.bf16.msra.mxu0 %v8895_v6  ;;  %v11054_v40 = vld [vmem:[%s12555_s19 + $0x32c] sm:$0xf0]  ;;  %v13188_v29 = vpop.f32.mrf.mxu2 }
 0x2a2   : > { %2809 = vmatmul.bf16.vlgmr.msrb.gmra.mxu3 %v12797_v0  ;;  %v9006_v41 = vld [vmem:[%s12555_s19 + $0x510] sm:$0xf]  ;;  %v8943_v59 = vor.u32 %v11054_v40, %v8942_v32 }
 0x2a3   : > { %3509 = vmatpush.bf16.msra.mxu3 %v9095_v44  ;;  %3472 = vmatpush.bf16.msra.mxu1 %v8959_v7  ;;  %v11070_v43 = vld [vmem:[%s12555_s19 + $0x52c] sm:$0xf0]  ;;  %v13165_v44 = vpop.f32.mrf.mxu3  ;;  %v1761_v7 = vadd.f32 %v13035_v36, %v1742_v34 }
 0x2a4   : > { %v9007_v60 = vor.u32 %v11070_v43, %v9006_v41  ;;  %v8870_v2 = vld [vmem:[%s12555_s19 + $0xd0] sm:$0xf] }
 0x2a5   : > { %3491 = vmatpush.bf16.msra.mxu2 %v9023_v10  ;;  %3454 = vmatpush.bf16.msra.mxu0 %v8887_v26  ;;  %v11036_v4 = vld [vmem:[%s12555_s19 + $0xec] sm:$0xf0]  ;;  %v9071_v10 = vor.u32 %v11086_v47, %v9070_v46  ;;  %v13195_v41 = vpop.f32.mrf.mxu0 }
 0x2a6   : > { %v8934_v6 = vld [vmem:[%s12555_s19 + $0x2d0] sm:$0xf]  ;;  %v8871_v18 = vor.u32 %v11036_v4, %v8870_v2 }
 0x2a7   : > { %3510 = vmatpush.bf16.msra.mxu3 %v9087_v16  ;;  %3473 = vmatpush.bf16.msra.mxu1 %v8951_v27  ;;  %v11052_v11 = vld [vmem:[%s12555_s19 + $0x2ec] sm:$0xf0]  ;;  %v13201_v47 = vpop.f32.mrf.mxu1 }
 0x2a8   : > { %v8998_v13 = vld [vmem:[%s12555_s19 + $0x4d0] sm:$0xf]  ;;  %v8935_v36 = vor.u32 %v11052_v11, %v8934_v6 }
 0x2a9   : > { %3492 = vmatpush.bf16.msra.mxu2 %v9015_v28  ;;  %v11068_v14 = vld [vmem:[%s12555_s19 + $0x4ec] sm:$0xf0]  ;;  %3455 = vmatpush.bf16.msra.mxu0 %v8879_v52  ;;  %v1780_v28 = vadd.f32 %v13052_v3, %v1761_v7  ;;  %v1744_v3 = vadd.f32 %v13059_v9, %v13182_v19 }
 0x2aa   : > { %v9062_v16 = vld [vmem:[%s12555_s19 + $0x6d0] sm:$0xf]  ;;  %v8999_v23 = vor.u32 %v11068_v14, %v8998_v13  ;;  %v13211_v14 = vpop.permute.xlu1 %1184 }
 0x2ab   : > { %3511 = vmatpush.bf16.msra.mxu3 %v9079_v37  ;;  %v11084_v17 = vld [vmem:[%s12555_s19 + $0x6ec] sm:$0xf0]  ;;  %3474 = vmatpush.bf16.msra.mxu1 %v8943_v59  ;;  %v13193_v40 = vpop.f32.mrf.mxu3  ;;  %v1799_v7 = vadd.f32 %v13057_v8, %v1780_v28 }
 0x2ac   : > { %v8862_v24 = vld [vmem:[%s12555_s19 + $0x90] sm:$0xf]  ;;  %v9063_v30 = vor.u32 %v11084_v17, %v9062_v16  ;;  %2757 = vmatmul.bf16.gmra.mxu0 %v12736_v58  ;;  %v1763_v17 = vadd.f32 %v13063_v12, %v1744_v3 }
 0x2ad   : > { %3493 = vmatpush.bf16.msra.mxu2 %v9007_v60  ;;  %v11034_v26 = vld [vmem:[%s12555_s19 + $0xac] sm:$0xf0]  ;;  %3456 = vmatpush.bf16.msra.mxu0 %v8871_v18  ;;  %v1818_v18 = vadd.f32 %v13135_v1, %v1799_v7 }
 0x2ae   : > { %v8926_v27 = vld [vmem:[%s12555_s19 + $0x290] sm:$0xf]  ;;  %v8863_v52 = vor.u32 %v11034_v26, %v8862_v24  ;;  %2776 = vmatmul.bf16.gmra.mxu1 %v12740_v61  ;;  %v1782_v1 = vadd.f32 %v13076_v31, %v1763_v17 }
 0x2af   : > { %3512 = vmatpush.bf16.msra.mxu3 %v9071_v10  ;;  %v11050_v32 = vld [vmem:[%s12555_s19 + $0x2ac] sm:$0xf0]  ;;  %3475 = vmatpush.bf16.msra.mxu1 %v8935_v36 }
 0x2b0   : > { %v8990_v34 = vld [vmem:[%s12555_s19 + $0x490] sm:$0xf]  ;;  %v8927_v59 = vor.u32 %v11050_v32, %v8926_v27  ;;  %2795 = vmatmul.bf16.gmra.mxu2 %v12844_v51  ;;  %v1747_v32 = vadd.f32 %v13083_v39, %v13211_v14  ;;  %v13241_v39 = vadd.f32 %v13139_v5, %v1818_v18  ;;  %v1801_v17 = vadd.f32 %v13081_v38, %v1782_v1 }
 0x2b1   : > { %v11066_v37 = vld [vmem:[%s12555_s19 + $0x4ac] sm:$0xf0]  ;;  %3494 = vmatpush.bf16.msra.mxu2 %v8999_v23  ;;  %3457 = vmatpush.bf16.msra.mxu0 %v8863_v52 }
 0x2b2   : > { %v9054_v43 = vld [vmem:[%s12555_s19 + $0x690] sm:$0xf]  ;;  %v8991_v60 = vor.u32 %v11066_v37, %v8990_v34  ;;  %2814 = vmatmul.bf16.gmra.mxu3 %v12849_v63  ;;  %v13228_v34 = vpop.f32.mrf.mxu2  ;;  %v1766_v5 = vadd.f32 %v13087_v42, %v1747_v32  ;;  %vm1960_vm0 = vcmp.gt.f32.partialorder %v13241_v39, 0.0 }
 0x2b3   : > { %v11082_v46 = vld [vmem:[%s12555_s19 + $0x6ac] sm:$0xf0]  ;;  %3513 = vmatpush.bf16.msra.mxu3 %v9063_v30  ;;  %3476 = vmatpush.bf16.msra.mxu1 %v8927_v59  ;;  %v13233_v52 = vpop.f32.mrf.mxu3  ;;  %v13235_v59 = vpop.f32.mrf.mxu0 }
 0x2b4   : > { %v8854_v2 = vld [vmem:[%s12555_s19 + $0x50] sm:$0xf]  ;;  %v9055_v9 = vor.u32 %v11082_v46, %v9054_v43  ;;  %v1785_v1 = vadd.f32 %v13106_v15, %v1766_v5 }
 0x2b5   : > { %v11032_v4 = vld [vmem:[%s12555_s19 + $0x6c] sm:$0xf0]  ;;  %3495 = vmatpush.bf16.msra.mxu2 %v8991_v60 }
 0x2b6   : > { %v8918_v6 = vld [vmem:[%s12555_s19 + $0x250] sm:$0xf]  ;;  %v8855_v36 = vor.u32 %v11032_v4, %v8854_v2  ;;  %v13243_v4 = vpop.f32.mrf.mxu1  ;;  %v1804_v5 = vadd.f32 %v13111_v20, %v1785_v1 }
 0x2b7   : > { %v11048_v10 = vld [vmem:[%s12555_s19 + $0x26c] sm:$0xf0]  ;;  %3514 = vmatpush.bf16.msra.mxu3 %v9055_v9  ;;  %v11043_v9 = vld [vmem:[%s12555_s19 + $0x1d4] sm:$0xf] }
 0x2b8   : > { %v8982_v11 = vld [vmem:[%s12555_s19 + $0x450] sm:$0xf]  ;;  %v8919_v26 = vor.u32 %v11048_v10, %v8918_v6  ;;  %3458 = vmatpush.bf16.msra.mxu0 %v8855_v36  ;;  %v8904_v10 = vld [vmem:[%s12555_s19 + $0x1f0] sm:$0xf0] }
 0x2b9   : > { %v11064_v13 = vld [vmem:[%s12555_s19 + $0x46c] sm:$0xf0] }
 0x2ba   : > { %v9046_v16 = vld [vmem:[%s12555_s19 + $0x650] sm:$0xf]  ;;  %v8983_v27 = vor.u32 %v11064_v13, %v8982_v11  ;;  %3477 = vmatpush.bf16.msra.mxu1 %v8919_v26  ;;  %v8907_v26 = vor.u32 %v11043_v9, %v8904_v10  ;;  %v13262_v32 = vpop.f32.mrf.mxu2 }
 0x2bb   : > { %v11080_v8 = vld [vmem:[%s12555_s19 + $0x66c] sm:$0xf0] }
 0x2bc   : > { %v8846_v23 = vld [vmem:[%s12555_s19 + $0x10] sm:$0xf]  ;;  %v9047_v37 = vor.u32 %v11080_v8, %v9046_v16  ;;  %3496 = vmatpush.bf16.msra.mxu2 %v8983_v27  ;;  %v11059_v16 = vld [vmem:[%s12555_s19 + $0x3d4] sm:$0xf]  ;;  %v1968_v27 = vmin.f32 %v13241_v39, 0.0 }
 0x2bd   : > { %v11030_v24 = vld [vmem:[%s12555_s19 + $0x2c] sm:$0xf0]  ;;  %v8968_v8 = vld [vmem:[%s12555_s19 + $0x3f0] sm:$0xf0] }
 0x2be   : > { %v8910_v28 = vld [vmem:[%s12555_s19 + $0x210] sm:$0xf]  ;;  %v8847_v6 = vor.u32 %v11030_v24, %v8846_v23  ;;  %3515 = vmatpush.bf16.msra.mxu3 %v9047_v37  ;;  %v1856_v23 = vadd.f32 %v13160_v35, %v13148_v22  ;;  %v8971_v38 = vor.u32 %v11059_v16, %v8968_v8 }
 0x2bf   : > { %v11046_v12 = vld [vmem:[%s12555_s19 + $0x22c] sm:$0xf0] }
 0x2c0   : > { %v8974_v30 = vld [vmem:[%s12555_s19 + $0x410] sm:$0xf]  ;;  %v8911_v11 = vor.u32 %v11046_v12, %v8910_v28  ;;  %v1820_v28 = vadd.f32 %v13167_v45, %v1801_v17  ;;  %3459 = vmatpush.bf16.msra.mxu0 %v8847_v6  ;;  %v13256_v12 = vpop.permute.xlu1 %1189  ;;  %v8896_v45 = vld [vmem:[%s12555_s19 + $0x1b0] sm:$0xf0]  ;;  %v1976_v6 = vmul.f32 1.442695, %v1968_v27 }
 0x2c1   : > { %v11062_v43 = vld [vmem:[%s12555_s19 + $0x42c] sm:$0xf0]  ;;  %v1749_v15 = vadd.f32 %v13113_v21, %v13256_v12 }
 0x2c2   : > { %v9038_v46 = vld [vmem:[%s12555_s19 + $0x610] sm:$0xf]  ;;  %v8975_v13 = vor.u32 %v11062_v43, %v8974_v30  ;;  %3478 = vmatpush.bf16.msra.mxu1 %v8911_v11  ;;  %v11041_v43 = vld [vmem:[%s12555_s19 + $0x194] sm:$0xf]  ;;  %11578 = vpow2.f32 %v1976_v6 }
 0x2c3   : > { %v11078_v3 = vld [vmem:[%s12555_s19 + $0x62c] sm:$0xf0]  ;;  %3460 = vmatmul.bf16.vlgmr.msra.gmra.mxu0 %v12652_v48  ;;  %v1768_v20 = vadd.f32 %v13118_v25, %v1749_v15 }
 0x2c4   : > { %v9158_v31 = vld [vmem:[%s12555_s19 + $0x9d0] sm:$0xf]  ;;  %v9039_v18 = vor.u32 %v11078_v3, %v9038_v46  ;;  %3497 = vmatpush.bf16.msra.mxu2 %v8975_v13  ;;  %v1875_v46 = vadd.f32 %v13165_v44, %v1856_v23  ;;  %v13268_v3 = vpop.f32.mrf.mxu3  ;;  %v1912_v44 = vpop.f32.mrf.mxu1  ;;  %v8899_v13 = vor.u32 %v11041_v43, %v8896_v45  ;;  %v1858_v23 = vadd.f32 %v13188_v29, %v13182_v19  ;;  %v11037_v45 = vld [vmem:[%s12555_s19 + $0x114] sm:$0xf] }
 0x2c5   : > { %v11108_v60 = vld [vmem:[%s12555_s19 + $0x9ec] sm:$0xf0]  ;;  %3479 = vmatmul.bf16.vlgmr.msra.gmra.mxu1 %v12657_v53  ;;  %v1931_v43 = vpop.f32.mrf.mxu2 }
 0x2c6   : > { %v9222_v2 = vld [vmem:[%s12555_s19 + $0xbd0] sm:$0xf]  ;;  %v9159_v36 = vor.u32 %v11108_v60, %v9158_v31  ;;  %3516 = vmatpush.bf16.msra.mxu3 %v9039_v18  ;;  %v1893_v31 = vpop.f32.mrf.mxu0  ;;  %v11057_v60 = vld [vmem:[%s12555_s19 + $0x394] sm:$0xf] }
 0x2c7   : > { %v11124_v7 = vld [vmem:[%s12555_s19 + $0xbec] sm:$0xf0]  ;;  %v1894_v10 = vadd.f32 %v1893_v31, %v1875_v46  ;;  %3498 = vmatmul.bf16.vlgmr.msra.gmra.mxu2 %v12659_v54  ;;  %v8880_v46 = vld [vmem:[%s12555_s19 + $0x130] sm:$0xf0]  ;;  %v1787_v31 = vadd.f32 %v13128_v50, %v1768_v20 }
 0x2c8   : > { %v9223_v24 = vor.u32 %v11124_v7, %v9222_v2  ;;  %v9150_v42 = vld [vmem:[%s12555_s19 + $0x990] sm:$0xf]  ;;  %3528 = vmatpush.bf16.msrb.mxu0 %v9159_v36  ;;  %3566 = vmatpush.bf16.msrb.mxu2 %v8907_v26  ;;  %v8960_v2 = vld [vmem:[%s12555_s19 + $0x3b0] sm:$0xf0]  ;;  %v13275_v7 = vadd.f32 %v13171_v33, %v1820_v28  ;;  %v1823_v28 = vadd.f32 %v13195_v41, %v1804_v5 }
 0x2c9   : > { %v11106_v30 = vld [vmem:[%s12555_s19 + $0x9ac] sm:$0xf0]  ;;  %v8963_v21 = vor.u32 %v11057_v60, %v8960_v2  ;;  %v11039_v33 = vld [vmem:[%s12555_s19 + $0x154] sm:$0xf]  ;;  %3517 = vmatmul.bf16.vlgmr.msra.gmra.mxu3 %v12663_v57  ;;  %v1877_v60 = vadd.f32 %v13193_v40, %v1858_v23 }
 0x2ca   : > { %v9214_v35 = vld [vmem:[%s12555_s19 + $0xb90] sm:$0xf]  ;;  %3547 = vmatpush.bf16.msrb.mxu1 %v9223_v24  ;;  %3585 = vmatpush.bf16.msrb.mxu3 %v8971_v38  ;;  %v9151_v9 = vor.u32 %v11106_v30, %v9150_v42  ;;  %v8888_v36 = vld [vmem:[%s12555_s19 + $0x170] sm:$0xf0]  ;;  %v1970_v27 = vmin.f32 %v13275_v7, 0.0  ;;  %v1913_v42 = vadd.f32 %v1912_v44, %v1894_v10  ;;  %v13306_v6 = vadd.f32 %v13201_v47, %v1823_v28  ;;  %v11579_v28 = vpop.eup %11578 }
 0x2cb   : > { %v11122_v37 = vld [vmem:[%s12555_s19 + $0xbac] sm:$0xf0]  ;;  %v11055_v24 = vld [vmem:[%s12555_s19 + $0x354] sm:$0xf]  ;;  %vm1962_vm2 = vcmp.gt.f32.partialorder %v13275_v7, 0.0 }
 0x2cc   : > { %v9215_v11 = vor.u32 %v11122_v37, %v9214_v35  ;;  %v9142_v16 = vld [vmem:[%s12555_s19 + $0x950] sm:$0xf]  ;;  %v8952_v26 = vld [vmem:[%s12555_s19 + $0x370] sm:$0xf0]  ;;  %3529 = vmatpush.bf16.msrb.mxu0 %v9151_v9  ;;  %3567 = vmatpush.bf16.msrb.mxu2 %v8899_v13  ;;  %v8891_v35 = vor.u32 %v11039_v33, %v8888_v36  ;;  %v1932_v2 = vadd.f32 %v1931_v43, %v1913_v42  ;;  %v1950_v15 = vpop.f32.mrf.mxu3  ;;  %v1914_v13 = vpop.f32.mrf.mxu1  ;;  %vm1964_vm4 = vcmp.gt.f32.partialorder %v13306_v6, 0.0 }
 0x2cd   : > { %v11104_v8 = vld [vmem:[%s12555_s19 + $0x96c] sm:$0xf0]  ;;  %v8955_v41 = vor.u32 %v11055_v24, %v8952_v26  ;;  %v11053_v9 = vld [vmem:[%s12555_s19 + $0x314] sm:$0xf]  ;;  %v1861_v24 = vadd.f32 %v13228_v34, %v13211_v14 }
 0x2ce   : > { %v9206_v17 = vld [vmem:[%s12555_s19 + $0xb50] sm:$0xf]  ;;  %v9143_v29 = vor.u32 %v11104_v8, %v9142_v16  ;;  %3548 = vmatpush.bf16.msrb.mxu1 %v9215_v11  ;;  %3586 = vmatpush.bf16.msrb.mxu3 %v8963_v21  ;;  %v1895_v44 = vpop.f32.mrf.mxu0  ;;  %v8944_v10 = vld [vmem:[%s12555_s19 + $0x330] sm:$0xf0]  ;;  %v1980_v11 = vmul.f32 1.442695, %v1970_v27  ;;  %v13308_v40 = vadd.f32 %v1950_v15, %v1932_v2 }
 0x2cf   : > { %v11120_v18 = vld [vmem:[%s12555_s19 + $0xb6c] sm:$0xf0]  ;;  %v1896_v8 = vadd.f32 %v1895_v44, %v1877_v60  ;;  %v8947_v47 = vor.u32 %v11053_v9, %v8944_v10  ;;  %v11035_v36 = vld [vmem:[%s12555_s19 + $0xd4] sm:$0xf]  ;;  %v8444_v2 = vadd.f32 -1.0, %v11579_v28  ;;  %v1880_v15 = vadd.f32 %v13233_v52, %v1861_v24 }
 0x2d0   : > { %v9134_v38 = vld [vmem:[%s12555_s19 + $0x910] sm:$0xf]  ;;  %v9207_v30 = vor.u32 %v11120_v18, %v9206_v17  ;;  %3530 = vmatpush.bf16.msrb.mxu0 %v9143_v29  ;;  %3568 = vmatpush.bf16.msrb.mxu2 %v8891_v35  ;;  %v8883_v17 = vor.u32 %v11037_v45, %v8880_v46  ;;  %v8872_v23 = vld [vmem:[%s12555_s19 + $0xf0] sm:$0xf0]  ;;  %v1969_v26 = vmin.f32 %v13308_v40, 0.0  ;;  %v1806_v29 = vadd.f32 %v13133_v62, %v1787_v31  ;;  %v1933_v45 = vpop.f32.mrf.mxu2 }
 0x2d1   : > { %v11102_v1 = vld [vmem:[%s12555_s19 + $0x92c] sm:$0xf0]  ;;  %v11051_v20 = vld [vmem:[%s12555_s19 + $0x2d4] sm:$0xf]  ;;  %v1863_v28 = vadd.f32 %v13262_v32, %v13256_v12  ;;  %vm1961_vm1 = vcmp.gt.f32.partialorder %v13308_v40, 0.0 }
 0x2d2   : > { %v9198_v25 = vld [vmem:[%s12555_s19 + $0xb10] sm:$0xf]  ;;  %v9135_v50 = vor.u32 %v11102_v1, %v9134_v38  ;;  %3549 = vmatpush.bf16.msrb.mxu1 %v9207_v30  ;;  %3587 = vmatpush.bf16.msrb.mxu3 %v8955_v41  ;;  %v8936_v27 = vld [vmem:[%s12555_s19 + $0x2f0] sm:$0xf0]  ;;  %v1972_v38 = vmin.f32 %v13306_v6, 0.0  ;;  %v1825_v62 = vadd.f32 %v13235_v59, %v1806_v29 }
 0x2d3   : > { %v11118_v37 = vld [vmem:[%s12555_s19 + $0xb2c] sm:$0xf0]  ;;  %v1978_v1 = vmul.f32 1.442695, %v1969_v26  ;;  %v8939_v46 = vor.u32 %v11051_v20, %v8936_v27  ;;  %v11033_v31 = vld [vmem:[%s12555_s19 + $0x94] sm:$0xf]  ;;  %3465 = vmatmul.bf16.gmra.mxu0 %v12727_v49 }
 0x2d4   : > { %v9199_v16 = vor.u32 %v11118_v37, %v9198_v25  ;;  %v9126_v5 = vld [vmem:[%s12555_s19 + $0x8d0] sm:$0xf]  ;;  %3531 = vmatpush.bf16.msrb.mxu0 %v9135_v50  ;;  %v1915_v25 = vadd.f32 %v1914_v13, %v1896_v8  ;;  %3569 = vmatpush.bf16.msrb.mxu2 %v8883_v17  ;;  %v8875_v37 = vor.u32 %v11035_v36, %v8872_v23  ;;  %v8864_v60 = vld [vmem:[%s12555_s19 + $0xb0] sm:$0xf0]  ;;  %v1952_v9 = vpop.f32.mrf.mxu3  ;;  %v13333_v59 = vmul.f32 1.442695, %v1972_v38 }
 0x2d5   : > { %v11100_v21 = vld [vmem:[%s12555_s19 + $0x8ec] sm:$0xf0]  ;;  %11580 = vpow2.f32 %v1978_v1  ;;  %v11049_v13 = vld [vmem:[%s12555_s19 + $0x294] sm:$0xf]  ;;  %v13343_v24 = vadd.f32 %v13243_v4, %v1825_v62  ;;  %3484 = vmatmul.bf16.gmra.mxu1 %v12734_v56 }
 0x2d6   : > { %v9190_v18 = vld [vmem:[%s12555_s19 + $0xad0] sm:$0xf]  ;;  %v9127_v42 = vor.u32 %v11100_v21, %v9126_v5  ;;  %3550 = vmatpush.bf16.msrb.mxu1 %v9199_v16  ;;  %3588 = vmatpush.bf16.msrb.mxu3 %v8947_v47  ;;  %v1934_v44 = vadd.f32 %v1933_v45, %v1915_v25  ;;  %v1898_v10 = vpop.f32.mrf.mxu0  ;;  %v8928_v50 = vld [vmem:[%s12555_s19 + $0x2b0] sm:$0xf0]  ;;  %v1917_v16 = vpop.f32.mrf.mxu1  ;;  %11582 = vpow2.f32 %v1980_v11  ;;  %v8867_v47 = vor.u32 %v11033_v31, %v8864_v60 }
 0x2d7   : > { %v11116_v33 = vld [vmem:[%s12555_s19 + $0xaec] sm:$0xf0]  ;;  %v11031_v23 = vld [vmem:[%s12555_s19 + $0x54] sm:$0xf]  ;;  %v8931_v11 = vor.u32 %v11049_v13, %v8928_v50  ;;  %3503 = vmatmul.bf16.gmra.mxu2 %v12736_v58  ;;  %v2000_v45 = vsel %vm1960_vm0, %v13241_v39, %v8444_v2  ;;  %v1882_v13 = vadd.f32 %v13268_v3, %v1863_v28  ;;  %vm1966_vm6 = vcmp.gt.f32.partialorder %v13343_v24, 0.0 }
 0x2d8   : > { %v9118_v30 = vld [vmem:[%s12555_s19 + $0x890] sm:$0xf]  ;;  %v9191_v34 = vor.u32 %v11116_v33, %v9190_v18  ;;  %3532 = vmatpush.bf16.msrb.mxu0 %v9127_v42  ;;  %v13337_v52 = vadd.f32 %v1952_v9, %v1934_v44  ;;  %v1899_v18 = vadd.f32 %v1898_v10, %v1880_v15  ;;  %3570 = vmatpush.bf16.msrb.mxu2 %v8875_v37  ;;  %v8856_v26 = vld [vmem:[%s12555_s19 + $0x70] sm:$0xf0]  ;;  %v1936_v60 = vpop.f32.mrf.mxu2 }
 0x2d9   : > { %v11098_v35 = vld [vmem:[%s12555_s19 + $0x8ac] sm:$0xf0]  ;;  %v11047_v20 = vld [vmem:[%s12555_s19 + $0x254] sm:$0xf]  ;;  %3522 = vmatmul.bf16.gmra.mxu3 %v12740_v61 }
 0x2da   : > { %v9182_v43 = vld [vmem:[%s12555_s19 + $0xa90] sm:$0xf]  ;;  %v9119_v8 = vor.u32 %v11098_v35, %v9118_v30  ;;  %3551 = vmatpush.bf16.msrb.mxu1 %v9191_v34  ;;  %3589 = vmatpush.bf16.msrb.mxu3 %v8939_v46  ;;  %v8920_v27 = vld [vmem:[%s12555_s19 + $0x270] sm:$0xf0]  ;;  %v1971_v29 = vmin.f32 %v13337_v52, 0.0  ;;  %v1918_v34 = vadd.f32 %v1917_v16, %v1899_v18  ;;  %v1974_v46 = vmin.f32 %v13343_v24, 0.0 }
 0x2db   : > { %v11114_v41 = vld [vmem:[%s12555_s19 + $0xaac] sm:$0xf0]  ;;  %v11029_v1 = vld [vmem:[%s12555_s19 + $0x14] sm:$0xf]  ;;  %v11581_v25 = vpop.eup %11580  ;;  %v8923_v15 = vor.u32 %v11047_v20, %v8920_v27  ;;  %vm1963_vm3 = vcmp.gt.f32.partialorder %v13337_v52, 0.0 }
 0x2dc   : > { %v9183_v17 = vor.u32 %v11114_v41, %v9182_v43  ;;  %v9110_v5 = vld [vmem:[%s12555_s19 + $0x850] sm:$0xf]  ;;  %3533 = vmatpush.bf16.msrb.mxu0 %v9119_v8  ;;  %v1982_v32 = vmul.f32 1.442695, %v1971_v29  ;;  %3571 = vmatpush.bf16.msrb.mxu2 %v8867_v47  ;;  %v8859_v43 = vor.u32 %v11031_v23, %v8856_v26  ;;  %v8848_v41 = vld [vmem:[%s12555_s19 + $0x30] sm:$0xf0]  ;;  %v11583_v10 = vpop.eup %11582  ;;  %v1937_v50 = vadd.f32 %v1936_v60, %v1918_v34  ;;  %v1955_v39 = vpop.f32.mrf.mxu3 }
 0x2dd   : > { %v11096_v21 = vld [vmem:[%s12555_s19 + $0x86c] sm:$0xf0]  ;;  %v11045_v62 = vld [vmem:[%s12555_s19 + $0x214] sm:$0xf]  ;;  %v8445_v31 = vadd.f32 -1.0, %v11581_v25  ;;  %v8851_v47 = vor.u32 %v11029_v1, %v8848_v41  ;;  %v8446_v28 = vadd.f32 -1.0, %v11583_v10 }
 0x2de   : > { %v9174_v33 = vld [vmem:[%s12555_s19 + $0xa50] sm:$0xf]  ;;  %v9111_v42 = vor.u32 %v11096_v21, %v9110_v5  ;;  %3552 = vmatpush.bf16.msrb.mxu1 %v9183_v17  ;;  %3590 = vmatpush.bf16.msrb.mxu3 %v8931_v11  ;;  %v8912_v44 = vld [vmem:[%s12555_s19 + $0x230] sm:$0xf0]  ;;  %11584 = vpow2.f32 %v1982_v32  ;;  %v1900_v2 = vpop.f32.mrf.mxu0  ;;  %v1919_v5 = vpop.f32.mrf.mxu1  ;;  %v13377_v11 = vadd.f32 %v1955_v39, %v1937_v50 }
 0x2df   : > { %v11112_v36 = vld [vmem:[%s12555_s19 + $0xa6c] sm:$0xf0]  ;;  %v11075_v9 = vld [vmem:[%s12555_s19 + $0x5d4] sm:$0xf]  ;;  %v2001_v17 = vsel %vm1961_vm1, %v13308_v40, %v8445_v31  ;;  %v1901_v26 = vadd.f32 %v1900_v2, %v1882_v13  ;;  %v8915_v40 = vor.u32 %v11045_v62, %v8912_v44  ;;  %11586 = vpow2.f32 %v13333_v59 }
 0x2e0   : > { %v9102_v4 = vld [vmem:[%s12555_s19 + $0x810] sm:$0xf]  ;;  %v9175_v37 = vor.u32 %v11112_v36, %v9174_v33  ;;  %v9032_v16 = vld [vmem:[%s12555_s19 + $0x5f0] sm:$0xf0]  ;;  %3534 = vmatpush.bf16.msrb.mxu0 %v9111_v42  ;;  %v2008_v23 = vpack.c.bf16 %v2001_v17, %v2000_v45  ;;  %3572 = vmatpush.bf16.msrb.mxu2 %v8859_v43  ;;  %v1938_v62 = vpop.f32.mrf.mxu2  ;;  %v2002_v10 = vsel %vm1962_vm2, %v13275_v7, %v8446_v28  ;;  %vm1965_vm5 = vcmp.gt.f32.partialorder %v13377_v11, 0.0 }
 0x2e1   : > { %v11094_v38 = vld [vmem:[%s12555_s19 + $0x82c] sm:$0xf0]  ;;  %v11091_v8 = vld [vmem:[%s12555_s19 + $0x7d4] sm:$0xf]  ;;  %v9035_v29 = vor.u32 %v11075_v9, %v9032_v16 }
 0x2e2   : > { %v9166_v30 = vld [vmem:[%s12555_s19 + $0xa10] sm:$0xf]  ;;  %v9103_v21 = vor.u32 %v11094_v38, %v9102_v4  ;;  %v9096_v33 = vld [vmem:[%s12555_s19 + $0x7f0] sm:$0xf0]  ;;  %3553 = vmatpush.bf16.msrb.mxu1 %v9175_v37  ;;  %3591 = vmatpush.bf16.msrb.mxu3 %v8923_v15  ;;  %2012 = vst [vmem:[#allocation2] sm:$0xff] %v2008_v23  ;;  %v1973_v4 = vmin.f32 %v13377_v11, 0.0  ;;  %v1920_v37 = vadd.f32 %v1919_v5, %v1901_v26 }
 0x2e3   : > { %v11110_v35 = vld [vmem:[%s12555_s19 + $0xa2c] sm:$0xf0]  ;;  %v11107_v3 = vld [vmem:[%s12555_s19 + $0x9d4] sm:$0xf]  ;;  %v9099_v38 = vor.u32 %v11091_v8, %v9096_v33 }
 0x2e4   : > { %v9167_v18 = vor.u32 %v11110_v35, %v9166_v30  ;;  %v9160_v36 = vld [vmem:[%s12555_s19 + $0x9f0] sm:$0xf0]  ;;  %v1988_v30 = vmul.f32 1.442695, %v1974_v46  ;;  %3535 = vmatpush.bf16.msrb.mxu0 %v9103_v21  ;;  %v11585_v32 = vpop.eup %11584  ;;  %v1986_v34 = vmul.f32 1.442695, %v1973_v4  ;;  %3573 = vmatpush.bf16.msrb.mxu2 %v8851_v47  ;;  %v1939_v31 = vadd.f32 %v1938_v62, %v1920_v37  ;;  %v1957_v60 = vpop.f32.mrf.mxu3 }
 0x2e5   : > { %v11123_v20 = vld [vmem:[%s12555_s19 + $0xbd4] sm:$0xf]  ;;  %v9163_v42 = vor.u32 %v11107_v3, %v9160_v36  ;;  %v8447_v41 = vadd.f32 -1.0, %v11585_v32  ;;  %v11587_v2 = vpop.eup %11586 }
 0x2e6   : > { %v9224_v27 = vld [vmem:[%s12555_s19 + $0xbf0] sm:$0xf0]  ;;  %3554 = vmatpush.bf16.msrb.mxu1 %v9167_v18  ;;  %3592 = vmatpush.bf16.msrb.mxu3 %v8915_v40  ;;  %11588 = vpow2.f32 %v1986_v34  ;;  %v13391_v15 = vpop.f32.mrf.mxu0  ;;  %v13397_v50 = vpop.f32.mrf.mxu1  ;;  %v13399_v8 = vadd.f32 %v1957_v60, %v1939_v31 }
 0x2e7   : > { %v9227_v35 = vor.u32 %v11123_v20, %v9224_v27  ;;  %v11073_v1 = vld [vmem:[%s12555_s19 + $0x594] sm:$0xf]  ;;  %v2003_v13 = vsel %vm1963_vm3, %v13337_v52, %v8447_v41  ;;  %3536 = vmatmul.bf16.vlgmr.msrb.gmra.mxu0 %v12792_v55  ;;  %11590 = vpow2.f32 %v1988_v30  ;;  %3574 = vmatmul.bf16.vlgmr.msrb.gmra.mxu2 %v12652_v48  ;;  %v8448_v20 = vadd.f32 -1.0, %v11587_v2 }
 0x2e8   : > { %v9024_v25 = vld [vmem:[%s12555_s19 + $0x5b0] sm:$0xf0]  ;;  %3604 = vmatpush.bf16.msra.mxu0 %v9035_v29  ;;  %3642 = vmatpush.bf16.msra.mxu2 %v9163_v42  ;;  %v2009_v16 = vpack.c.bf16 %v2003_v13, %v2002_v10  ;;  %v1975_v36 = vmin.f32 %v13399_v8, 0.0  ;;  %vm1967_vm7 = vcmp.gt.f32.partialorder %v13399_v8, 0.0 }
 0x2e9   : > { %v11089_v43 = vld [vmem:[%s12555_s19 + $0x794] sm:$0xf]  ;;  %v9027_v39 = vor.u32 %v11073_v1, %v9024_v25  ;;  %3555 = vmatmul.bf16.vlgmr.msrb.gmra.mxu1 %v12797_v0  ;;  %3593 = vmatmul.bf16.vlgmr.msrb.gmra.mxu3 %v12657_v53  ;;  %v13418_v25 = vpop.f32.mrf.mxu2 }
 0x2ea   : > { %v9088_v59 = vld [vmem:[%s12555_s19 + $0x7b0] sm:$0xf0]  ;;  %3623 = vmatpush.bf16.msra.mxu1 %v9099_v38  ;;  %3661 = vmatpush.bf16.msra.mxu3 %v9227_v35  ;;  %2013 = vst [vmem:[#allocation2 + $0x20] sm:$0xff] %v2009_v16  ;;  %v1990_v4 = vmul.f32 1.442695, %v1975_v36 }
 0x2eb   : > { %v11105_v45 = vld [vmem:[%s12555_s19 + $0x994] sm:$0xf]  ;;  %v9091_v17 = vor.u32 %v11089_v43, %v9088_v59 }
 0x2ec   : > { %v9152_v46 = vld [vmem:[%s12555_s19 + $0x9b0] sm:$0xf0]  ;;  %3605 = vmatpush.bf16.msra.mxu0 %v9027_v39  ;;  %v11589_v29 = vpop.eup %11588  ;;  %11592 = vpow2.f32 %v1990_v4  ;;  %v13424_v43 = vpop.f32.mrf.mxu3 }
 0x2ed   : > { %v11121_v44 = vld [vmem:[%s12555_s19 + $0xb94] sm:$0xf]  ;;  %v9155_v5 = vor.u32 %v11105_v45, %v9152_v46  ;;  %v8449_v1 = vadd.f32 -1.0, %v11589_v29  ;;  %v2004_v45 = vsel %vm1964_vm4, %v13306_v6, %v8448_v20 }
 0x2ee   : > { %v9216_v9 = vld [vmem:[%s12555_s19 + $0xbb0] sm:$0xf0]  ;;  %3624 = vmatpush.bf16.msra.mxu1 %v9091_v17  ;;  %v13426_v59 = vpop.f32.mrf.mxu0  ;;  %v13432_v31 = vpop.f32.mrf.mxu1 }
 0x2ef   : > { %v11071_v21 = vld [vmem:[%s12555_s19 + $0x554] sm:$0xf]  ;;  %v9219_v7 = vor.u32 %v11121_v44, %v9216_v9  ;;  %3643 = vmatpush.bf16.msra.mxu2 %v9155_v5  ;;  %v2005_v46 = vsel %vm1965_vm5, %v13377_v11, %v8449_v1  ;;  %v11591_v44 = vpop.eup %11590 }
 0x2f0   : > { %v9016_v18 = vld [vmem:[%s12555_s19 + $0x570] sm:$0xf0]  ;;  %v2010_v9 = vpack.c.bf16 %v2005_v46, %v2004_v45 }
 0x2f1   : > { %v11087_v47 = vld [vmem:[%s12555_s19 + $0x754] sm:$0xf]  ;;  %v9019_v27 = vor.u32 %v11071_v21, %v9016_v18  ;;  %3662 = vmatpush.bf16.msra.mxu3 %v9219_v7 }
 0x2f2   : > { %v9080_v52 = vld [vmem:[%s12555_s19 + $0x770] sm:$0xf0]  ;;  %2014 = vst [vmem:[#allocation2 + $0x40] sm:$0xff] %v2010_v9 }
 0x2f3   : > { %v11103_v33 = vld [vmem:[%s12555_s19 + $0x954] sm:$0xf]  ;;  %v9083_v38 = vor.u32 %v11087_v47, %v9080_v52  ;;  %3606 = vmatpush.bf16.msra.mxu0 %v9019_v27  ;;  %v8450_v47 = vadd.f32 -1.0, %v11591_v44 }
 0x2f4   : > { %v9144_v3 = vld [vmem:[%s12555_s19 + $0x970] sm:$0xf0] }
 0x2f5   : > { %v11119_v23 = vld [vmem:[%s12555_s19 + $0xb54] sm:$0xf]  ;;  %v9147_v42 = vor.u32 %v11103_v33, %v9144_v3  ;;  %3625 = vmatpush.bf16.msra.mxu1 %v9083_v38  ;;  %v11593_v33 = vpop.eup %11592  ;;  %v13452_v38 = vpop.f32.mrf.mxu3  ;;  %v2006_v1 = vsel %vm1966_vm6, %v13343_v24, %v8450_v47 }
 0x2f6   : > { %v9208_v26 = vld [vmem:[%s12555_s19 + $0xb70] sm:$0xf0]  ;;  %v8451_v27 = vadd.f32 -1.0, %v11593_v33 }
 0x2f7   : > { %v11069_v28 = vld [vmem:[%s12555_s19 + $0x514] sm:$0xf]  ;;  %v9211_v32 = vor.u32 %v11119_v23, %v9208_v26  ;;  %3644 = vmatpush.bf16.msra.mxu2 %v9147_v42  ;;  %v13454_v42 = vpop.f32.mrf.mxu0  ;;  %3541 = vmatmul.bf16.gmra.mxu0 %v12844_v51 }
 0x2f8   : > { %v9008_v40 = vld [vmem:[%s12555_s19 + $0x530] sm:$0xf0]  ;;  %3579 = vmatmul.bf16.gmra.mxu2 %v12727_v49 }
 0x2f9   : > { %v11085_v30 = vld [vmem:[%s12555_s19 + $0x714] sm:$0xf]  ;;  %v9011_v60 = vor.u32 %v11069_v28, %v9008_v40  ;;  %3663 = vmatpush.bf16.msra.mxu3 %v9211_v32  ;;  %v13446_v28 = vpop.f32.mrf.mxu2  ;;  %v2007_v32 = vsel %vm1967_vm7, %v13399_v8, %v8451_v27  ;;  %3560 = vmatmul.bf16.gmra.mxu1 %v12849_v63  ;;  %v9358_v27 = vld [vmem:[%s12555_s19 + $0x3d8] sm:$0xf] }
 0x2fa   : > { %v9072_v35 = vld [vmem:[%s12555_s19 + $0x730] sm:$0xf0]  ;;  %3598 = vmatmul.bf16.gmra.mxu3 %v12734_v56 }
 0x2fb   : > { %v11101_v34 = vld [vmem:[%s12555_s19 + $0x914] sm:$0xf]  ;;  %v9075_v10 = vor.u32 %v11085_v30, %v9072_v35  ;;  %3607 = vmatpush.bf16.msra.mxu0 %v9011_v60 }
 0x2fc   : > { %v9136_v37 = vld [vmem:[%s12555_s19 + $0x930] sm:$0xf0] }
 0x2fd   : > { %v11117_v41 = vld [vmem:[%s12555_s19 + $0xb14] sm:$0xf]  ;;  %v9139_v13 = vor.u32 %v11101_v34, %v9136_v37  ;;  %3626 = vmatpush.bf16.msra.mxu1 %v9075_v10  ;;  %v13460_v34 = vpop.f32.mrf.mxu1 }
 0x2fe   : > { %v9200_v62 = vld [vmem:[%s12555_s19 + $0xb30] sm:$0xf0] }
 0x2ff   : > { %v11067_v39 = vld [vmem:[%s12555_s19 + $0x4d4] sm:$0xf]  ;;  %v9203_v11 = vor.u32 %v11117_v41, %v9200_v62  ;;  %3645 = vmatpush.bf16.msra.mxu2 %v9139_v13  ;;  %v2011_v41 = vpack.c.bf16 %v2007_v32, %v2006_v1 }
 0x300   : > { %v9000_v6 = vld [vmem:[%s12555_s19 + $0x4f0] sm:$0xf0] }
 0x301   : > { %v11083_v2 = vld [vmem:[%s12555_s19 + $0x6d4] sm:$0xf]  ;;  %v9003_v7 = vor.u32 %v11067_v39, %v9000_v6  ;;  %3664 = vmatpush.bf16.msra.mxu3 %v9203_v11  ;;  %2015 = vst [vmem:[#allocation2 + $0x60] sm:$0xff] %v2011_v41  ;;  %v13479_v47 = vpop.f32.mrf.mxu2  ;;  %v11188_v41 = vld [vmem:[%s12555_s19 + $0x7f4] sm:$0xf0] }
 0x302   : > { %v9064_v16 = vld [vmem:[%s12555_s19 + $0x6f0] sm:$0xf0] }
 0x303   : > { %v11099_v17 = vld [vmem:[%s12555_s19 + $0x8d4] sm:$0xf]  ;;  %v9067_v3 = vor.u32 %v11083_v2, %v9064_v16  ;;  %3608 = vmatpush.bf16.msra.mxu0 %v9003_v7 }
 0x304   : > { %v9128_v5 = vld [vmem:[%s12555_s19 + $0x8f0] sm:$0xf0] }
 0x305   : > { %v11115_v21 = vld [vmem:[%s12555_s19 + $0xad4] sm:$0xf]  ;;  %v9131_v36 = vor.u32 %v11099_v17, %v9128_v5  ;;  %3627 = vmatpush.bf16.msra.mxu1 %v9067_v3 }
 0x306   : > { %v9192_v18 = vld [vmem:[%s12555_s19 + $0xaf0] sm:$0xf0] }
 0x307   : > { %v11065_v52 = vld [vmem:[%s12555_s19 + $0x494] sm:$0xf]  ;;  %v9195_v40 = vor.u32 %v11115_v21, %v9192_v18  ;;  %3646 = vmatpush.bf16.msra.mxu2 %v9131_v36  ;;  %v13484_v36 = vpop.f32.mrf.mxu3 }
 0x308   : > { %v8992_v23 = vld [vmem:[%s12555_s19 + $0x4b0] sm:$0xf0] }
 0x309   : > { %v11081_v26 = vld [vmem:[%s12555_s19 + $0x694] sm:$0xf]  ;;  %v8995_v37 = vor.u32 %v11065_v52, %v8992_v23  ;;  %3665 = vmatpush.bf16.msra.mxu3 %v9195_v40  ;;  %v13486_v23 = vpop.f32.mrf.mxu0  ;;  %v13491_v40 = vpop.f32.mrf.mxu1 }
 0x30a   : > { %v9056_v20 = vld [vmem:[%s12555_s19 + $0x6b0] sm:$0xf0] }
 0x30b   : > { %v11097_v29 = vld [vmem:[%s12555_s19 + $0x894] sm:$0xf]  ;;  %v9059_v62 = vor.u32 %v11081_v26, %v9056_v20  ;;  %3609 = vmatpush.bf16.msra.mxu0 %v8995_v37  ;;  %v9294_v26 = vld [vmem:[%s12555_s19 + $0x1d8] sm:$0xf] }
 0x30c   : > { %v9120_v4 = vld [vmem:[%s12555_s19 + $0x8b0] sm:$0xf0]  ;;  %v11140_v20 = vld [vmem:[%s12555_s19 + $0x1f4] sm:$0xf0] }
 0x30d   : > { %v11113_v30 = vld [vmem:[%s12555_s19 + $0xa94] sm:$0xf]  ;;  %v9123_v45 = vor.u32 %v11097_v29, %v9120_v4  ;;  %3628 = vmatpush.bf16.msra.mxu1 %v9059_v62  ;;  %v11156_v4 = vld [vmem:[%s12555_s19 + $0x3f4] sm:$0xf0] }
 0x30e   : > { %v9184_v35 = vld [vmem:[%s12555_s19 + $0xab0] sm:$0xf0]  ;;  %v9486_v37 = vld [vmem:[%s12555_s19 + $0x7d8] sm:$0xf] }
 0x30f   : > { %v11063_v46 = vld [vmem:[%s12555_s19 + $0x454] sm:$0xf]  ;;  %v9187_v8 = vor.u32 %v11113_v30, %v9184_v35  ;;  %3647 = vmatpush.bf16.msra.mxu2 %v9123_v45  ;;  %v9422_v30 = vld [vmem:[%s12555_s19 + $0x5d8] sm:$0xf]  ;;  %v9295_v45 = vor.u32 %v11140_v20, %v9294_v26 }
 0x310   : > { %v8984_v60 = vld [vmem:[%s12555_s19 + $0x470] sm:$0xf0]  ;;  %v11172_v35 = vld [vmem:[%s12555_s19 + $0x5f4] sm:$0xf0] }
 0x311   : > { %v11079_v24 = vld [vmem:[%s12555_s19 + $0x654] sm:$0xf]  ;;  %v8987_v6 = vor.u32 %v11063_v46, %v8984_v60  ;;  %3666 = vmatpush.bf16.msra.mxu3 %v9187_v8  ;;  %v9359_v46 = vor.u32 %v11156_v4, %v9358_v27  ;;  %v9423_v60 = vor.u32 %v11172_v35, %v9422_v30  ;;  %v9286_v8 = vld [vmem:[%s12555_s19 + $0x198] sm:$0xf] }
 0x312   : > { %v9048_v44 = vld [vmem:[%s12555_s19 + $0x670] sm:$0xf0]  ;;  %v11152_v20 = vld [vmem:[%s12555_s19 + $0x374] sm:$0xf0] }
 0x313   : > { %v11095_v9 = vld [vmem:[%s12555_s19 + $0x854] sm:$0xf]  ;;  %v9051_v16 = vor.u32 %v11079_v24, %v9048_v44  ;;  %3610 = vmatpush.bf16.msra.mxu0 %v8987_v6  ;;  %v9487_v24 = vor.u32 %v11188_v41, %v9486_v37  ;;  %v11138_v44 = vld [vmem:[%s12555_s19 + $0x1b4] sm:$0xf0] }
 0x314   : > { %v9112_v10 = vld [vmem:[%s12555_s19 + $0x870] sm:$0xf0]  ;;  %v11170_v6 = vld [vmem:[%s12555_s19 + $0x5b4] sm:$0xf0] }
 0x315   : > { %v11111_v13 = vld [vmem:[%s12555_s19 + $0xa54] sm:$0xf]  ;;  %v9115_v17 = vor.u32 %v11095_v9, %v9112_v10  ;;  %3629 = vmatpush.bf16.msra.mxu1 %v9051_v16  ;;  %v9350_v9 = vld [vmem:[%s12555_s19 + $0x398] sm:$0xf]  ;;  %v13501_v10 = vpop.f32.mrf.mxu2 }
 0x316   : > { %v9176_v39 = vld [vmem:[%s12555_s19 + $0xa70] sm:$0xf0]  ;;  %v9478_v16 = vld [vmem:[%s12555_s19 + $0x798] sm:$0xf] }
 0x317   : > { %v11061_v2 = vld [vmem:[%s12555_s19 + $0x414] sm:$0xf]  ;;  %v9179_v7 = vor.u32 %v11111_v13, %v9176_v39  ;;  %3648 = vmatpush.bf16.msra.mxu2 %v9115_v17  ;;  %v11154_v13 = vld [vmem:[%s12555_s19 + $0x3b4] sm:$0xf0] }
 0x318   : > { %v8976_v11 = vld [vmem:[%s12555_s19 + $0x430] sm:$0xf0]  ;;  %v9414_v39 = vld [vmem:[%s12555_s19 + $0x598] sm:$0xf] }
 0x319   : > { %v11077_v5 = vld [vmem:[%s12555_s19 + $0x614] sm:$0xf]  ;;  %v8979_v29 = vor.u32 %v11061_v2, %v8976_v11  ;;  %3667 = vmatpush.bf16.msra.mxu3 %v9179_v7  ;;  %v13506_v2 = vpop.f32.mrf.mxu3  ;;  %v13508_v11 = vpop.f32.mrf.mxu0  ;;  %v11186_v17 = vld [vmem:[%s12555_s19 + $0x7b4] sm:$0xf0]  ;;  %v9415_v7 = vor.u32 %v11170_v6, %v9414_v39 }
 0x31a   : > { %v9040_v21 = vld [vmem:[%s12555_s19 + $0x630] sm:$0xf0]  ;;  %v9479_v26 = vor.u32 %v11186_v17, %v9478_v16  ;;  %v9406_v27 = vld [vmem:[%s12555_s19 + $0x558] sm:$0xf] }
 0x31b   : > { %v11093_v18 = vld [vmem:[%s12555_s19 + $0x814] sm:$0xf]  ;;  %v9043_v1 = vor.u32 %v11077_v5, %v9040_v21  ;;  %3611 = vmatpush.bf16.msra.mxu0 %v8979_v29  ;;  %v13512_v5 = vpop.f32.mrf.mxu1  ;;  %v9287_v21 = vor.u32 %v11138_v44, %v9286_v8  ;;  %v11168_v29 = vld [vmem:[%s12555_s19 + $0x574] sm:$0xf0] }
 0x31c   : > { %v9104_v52 = vld [vmem:[%s12555_s19 + $0x830] sm:$0xf0]  ;;  %v9470_v4 = vld [vmem:[%s12555_s19 + $0x758] sm:$0xf] }
 0x31d   : > { %v11109_v33 = vld [vmem:[%s12555_s19 + $0xa14] sm:$0xf]  ;;  %v9107_v32 = vor.u32 %v11093_v18, %v9104_v52  ;;  %3630 = vmatpush.bf16.msra.mxu1 %v9043_v1  ;;  %v9351_v18 = vor.u32 %v11154_v13, %v9350_v9  ;;  %v9278_v52 = vld [vmem:[%s12555_s19 + $0x158] sm:$0xf] }
 0x31e   : > { %v9168_v3 = vld [vmem:[%s12555_s19 + $0xa30] sm:$0xf0]  ;;  %3612 = vmatmul.bf16.vlgmr.msra.gmra.mxu0 %v12659_v54  ;;  %v11184_v30 = vld [vmem:[%s12555_s19 + $0x774] sm:$0xf0] }
 0x31f   : > { %v9171_v62 = vor.u32 %v11109_v33, %v9168_v3  ;;  %3649 = vmatpush.bf16.msra.mxu2 %v9107_v32  ;;  %4312 = vmatpush.bf16.msrb.mxu0 %v9295_v45  ;;  %v11136_v33 = vld [vmem:[%s12555_s19 + $0x174] sm:$0xf0]  ;;  %v9407_v32 = vor.u32 %v11168_v29, %v9406_v27  ;;  %v2602_v45 = vadd.f32 %v13391_v15, %v13148_v22 }
 0x320   : > { %v9342_v3 = vld [vmem:[%s12555_s19 + $0x358] sm:$0xf]  ;;  %3631 = vmatmul.bf16.vlgmr.msra.gmra.mxu1 %v12663_v57  ;;  %v9279_v35 = vor.u32 %v11136_v33, %v9278_v52 }
 0x321   : > { %3668 = vmatpush.bf16.msra.mxu3 %v9171_v62  ;;  %4331 = vmatpush.bf16.msrb.mxu1 %v9359_v46  ;;  %v9343_v1 = vor.u32 %v11152_v20, %v9342_v3  ;;  %v9270_v37 = vld [vmem:[%s12555_s19 + $0x118] sm:$0xf]  ;;  %v13531_v46 = vpop.f32.mrf.mxu2  ;;  %v13536_v9 = vpop.f32.mrf.mxu3  ;;  %v2621_v33 = vadd.f32 %v13397_v50, %v2602_v45 }
 0x322   : > { %3650 = vmatmul.bf16.vlgmr.msra.gmra.mxu2 %v12792_v55  ;;  %v11134_v41 = vld [vmem:[%s12555_s19 + $0x134] sm:$0xf0]  ;;  %v13538_v13 = vpop.f32.mrf.mxu0 }
 0x323   : > { %4350 = vmatpush.bf16.msrb.mxu2 %v9423_v60  ;;  %4313 = vmatpush.bf16.msrb.mxu0 %v9287_v21  ;;  %v9334_v62 = vld [vmem:[%s12555_s19 + $0x318] sm:$0xf]  ;;  %v9471_v60 = vor.u32 %v11184_v30, %v9470_v4  ;;  %v13542_v15 = vpop.f32.mrf.mxu1  ;;  %v9271_v16 = vor.u32 %v11134_v41, %v9270_v37  ;;  %v2640_v41 = vadd.f32 %v13418_v25, %v2621_v33 }
 0x324   : > { %3669 = vmatmul.bf16.vlgmr.msra.gmra.mxu3 %v12797_v0  ;;  %v9398_v8 = vld [vmem:[%s12555_s19 + $0x518] sm:$0xf]  ;;  %v2604_v25 = vadd.f32 %v13426_v59, %v13182_v19 }
 0x325   : > { %4369 = vmatpush.bf16.msrb.mxu3 %v9487_v24  ;;  %4332 = vmatpush.bf16.msrb.mxu1 %v9351_v18  ;;  %v11150_v24 = vld [vmem:[%s12555_s19 + $0x334] sm:$0xf0] }
 0x326   : > { %v11166_v44 = vld [vmem:[%s12555_s19 + $0x534] sm:$0xf0]  ;;  %v9335_v17 = vor.u32 %v11150_v24, %v9334_v62 }
 0x327   : > { %4351 = vmatpush.bf16.msrb.mxu2 %v9415_v7  ;;  %v9462_v39 = vld [vmem:[%s12555_s19 + $0x718] sm:$0xf]  ;;  %4314 = vmatpush.bf16.msrb.mxu0 %v9279_v35  ;;  %v9399_v21 = vor.u32 %v11166_v44, %v9398_v8 }
 0x328   : > { %v11182_v6 = vld [vmem:[%s12555_s19 + $0x734] sm:$0xf0] }
 0x329   : > { %4370 = vmatpush.bf16.msrb.mxu3 %v9479_v26  ;;  %4333 = vmatpush.bf16.msrb.mxu1 %v9343_v1  ;;  %v9262_v18 = vld [vmem:[%s12555_s19 + $0xd8] sm:$0xf]  ;;  %v9463_v3 = vor.u32 %v11182_v6, %v9462_v39  ;;  %v13557_v62 = vpop.f32.mrf.mxu2  ;;  %v13562_v44 = vpop.f32.mrf.mxu3 }
 0x32a   : > { %v11132_v7 = vld [vmem:[%s12555_s19 + $0xf4] sm:$0xf0]  ;;  %v13564_v39 = vpop.f32.mrf.mxu0 }
 0x32b   : > { %4352 = vmatpush.bf16.msrb.mxu2 %v9407_v32  ;;  %v9326_v52 = vld [vmem:[%s12555_s19 + $0x2d8] sm:$0xf]  ;;  %4315 = vmatpush.bf16.msrb.mxu0 %v9271_v16  ;;  %v9263_v30 = vor.u32 %v11132_v7, %v9262_v18 }
 0x32c   : > { %v11148_v26 = vld [vmem:[%s12555_s19 + $0x2f4] sm:$0xf0] }
 0x32d   : > { %4371 = vmatpush.bf16.msrb.mxu3 %v9471_v60  ;;  %v9390_v20 = vld [vmem:[%s12555_s19 + $0x4d8] sm:$0xf]  ;;  %4334 = vmatpush.bf16.msrb.mxu1 %v9335_v17  ;;  %v9327_v35 = vor.u32 %v11148_v26, %v9326_v52  ;;  %v13570_v17 = vpop.f32.mrf.mxu1  ;;  %v2659_v26 = vadd.f32 %v13424_v43, %v2640_v41  ;;  %v2623_v43 = vadd.f32 %v13432_v31, %v2604_v25 }
 0x32e   : > { %v11164_v27 = vld [vmem:[%s12555_s19 + $0x4f4] sm:$0xf0]  ;;  %3617 = vmatmul.bf16.gmra.mxu0 %v12736_v58 }
 0x32f   : > { %v9454_v29 = vld [vmem:[%s12555_s19 + $0x6d8] sm:$0xf]  ;;  %4353 = vmatpush.bf16.msrb.mxu2 %v9399_v21  ;;  %v9391_v1 = vor.u32 %v11164_v27, %v9390_v20  ;;  %4316 = vmatpush.bf16.msrb.mxu0 %v9263_v30 }
 0x330   : > { %v11180_v4 = vld [vmem:[%s12555_s19 + $0x6f4] sm:$0xf0]  ;;  %3636 = vmatmul.bf16.gmra.mxu1 %v12740_v61 }
 0x331   : > { %v9254_v50 = vld [vmem:[%s12555_s19 + $0x98] sm:$0xf]  ;;  %4372 = vmatpush.bf16.msrb.mxu3 %v9463_v3  ;;  %v9455_v45 = vor.u32 %v11180_v4, %v9454_v29  ;;  %4335 = vmatpush.bf16.msrb.mxu1 %v9327_v35  ;;  %v2678_v35 = vadd.f32 %v13508_v11, %v2659_v26  ;;  %v2642_v11 = vadd.f32 %v13446_v28, %v2623_v43  ;;  %v9360_v43 = vld [vmem:[%s12555_s19 + $0x3f8] sm:$0xf0] }
 0x332   : > { %v11130_v32 = vld [vmem:[%s12555_s19 + $0xb4] sm:$0xf0]  ;;  %3655 = vmatmul.bf16.gmra.mxu2 %v12844_v51 }
 0x333   : > { %v9318_v37 = vld [vmem:[%s12555_s19 + $0x298] sm:$0xf]  ;;  %v9255_v21 = vor.u32 %v11130_v32, %v9254_v50  ;;  %4354 = vmatpush.bf16.msrb.mxu2 %v9391_v1 }
 0x334   : > { %v11146_v60 = vld [vmem:[%s12555_s19 + $0x2b4] sm:$0xf0]  ;;  %3674 = vmatmul.bf16.gmra.mxu3 %v12849_v63  ;;  %v2661_v63 = vadd.f32 %v13452_v38, %v2642_v11 }
 0x335   : > { %v9382_v24 = vld [vmem:[%s12555_s19 + $0x498] sm:$0xf]  ;;  %v9319_v18 = vor.u32 %v11146_v60, %v9318_v37  ;;  %4373 = vmatpush.bf16.msrb.mxu3 %v9455_v45  ;;  %4317 = vmatpush.bf16.msrb.mxu0 %v9255_v21 }
 0x336   : > { %v11162_v8 = vld [vmem:[%s12555_s19 + $0x4b4] sm:$0xf0] }
 0x337   : > { %v9446_v6 = vld [vmem:[%s12555_s19 + $0x698] sm:$0xf]  ;;  %v9383_v7 = vor.u32 %v11162_v8, %v9382_v24  ;;  %4336 = vmatpush.bf16.msrb.mxu1 %v9319_v18  ;;  %v2607_v24 = vadd.f32 %v13454_v42, %v13211_v14  ;;  %v13595_v8 = vpop.f32.mrf.mxu2  ;;  %v13600_v18 = vpop.f32.mrf.mxu3  ;;  %v13608_v42 = vadd.f32 %v13512_v5, %v2678_v35 }
 0x338   : > { %v11178_v16 = vld [vmem:[%s12555_s19 + $0x6b4] sm:$0xf0] }
 0x339   : > { %v9246_v52 = vld [vmem:[%s12555_s19 + $0x58] sm:$0xf]  ;;  %v9447_v59 = vor.u32 %v11178_v16, %v9446_v6  ;;  %4355 = vmatpush.bf16.msrb.mxu2 %v9383_v7  ;;  %v13602_v7 = vpop.f32.mrf.mxu0  ;;  %v2626_v5 = vadd.f32 %v13460_v34, %v2607_v24  ;;  %vm2820_vm8 = vcmp.gt.f32.partialorder %v13608_v42, 0.0 }
 0x33a   : > { %v11128_v33 = vld [vmem:[%s12555_s19 + $0x74] sm:$0xf0] }
 0x33b   : > { %v9310_v3 = vld [vmem:[%s12555_s19 + $0x258] sm:$0xf]  ;;  %v9247_v1 = vor.u32 %v11128_v33, %v9246_v52  ;;  %4374 = vmatpush.bf16.msrb.mxu3 %v9447_v59 }
 0x33c   : > { %v11144_v20 = vld [vmem:[%s12555_s19 + $0x274] sm:$0xf0] }
 0x33d   : > { %v9374_v27 = vld [vmem:[%s12555_s19 + $0x458] sm:$0xf]  ;;  %v9311_v37 = vor.u32 %v11144_v20, %v9310_v3  ;;  %v13610_v3 = vpop.f32.mrf.mxu1  ;;  %4318 = vmatpush.bf16.msrb.mxu0 %v9247_v1  ;;  %v11139_v20 = vld [vmem:[%s12555_s19 + $0x1dc] sm:$0xf] }
 0x33e   : > { %v11160_v29 = vld [vmem:[%s12555_s19 + $0x474] sm:$0xf0] }
 0x33f   : > { %v9438_v4 = vld [vmem:[%s12555_s19 + $0x658] sm:$0xf]  ;;  %v9375_v41 = vor.u32 %v11160_v29, %v9374_v27  ;;  %v9296_v27 = vld [vmem:[%s12555_s19 + $0x1f8] sm:$0xf0]  ;;  %4337 = vmatpush.bf16.msrb.mxu1 %v9311_v37  ;;  %v13627_v11 = vpop.f32.mrf.mxu2 }
 0x340   : > { %v11176_v30 = vld [vmem:[%s12555_s19 + $0x674] sm:$0xf0]  ;;  %v9299_v37 = vor.u32 %v11139_v20, %v9296_v27 }
 0x341   : > { %v9238_v50 = vld [vmem:[%s12555_s19 + $0x18] sm:$0xf]  ;;  %v9439_v6 = vor.u32 %v11176_v30, %v9438_v4  ;;  %4356 = vmatpush.bf16.msrb.mxu2 %v9375_v41  ;;  %v11155_v30 = vld [vmem:[%s12555_s19 + $0x3dc] sm:$0xf]  ;;  %v2828_v41 = vmin.f32 %v13608_v42, 0.0 }
 0x342   : > { %v11126_v32 = vld [vmem:[%s12555_s19 + $0x34] sm:$0xf0]  ;;  %v9363_v38 = vor.u32 %v11155_v30, %v9360_v43 }
 0x343   : > { %v9302_v45 = vld [vmem:[%s12555_s19 + $0x218] sm:$0xf]  ;;  %v9239_v26 = vor.u32 %v11126_v32, %v9238_v50  ;;  %4375 = vmatpush.bf16.msrb.mxu3 %v9439_v6  ;;  %v2716_v50 = vadd.f32 %v13531_v46, %v13148_v22  ;;  %v2645_v46 = vadd.f32 %v13479_v47, %v2626_v5  ;;  %v11137_v6 = vld [vmem:[%s12555_s19 + $0x19c] sm:$0xf]  ;;  %v2609_v47 = vadd.f32 %v13486_v23, %v13256_v12 }
 0x344   : > { %v11142_v31 = vld [vmem:[%s12555_s19 + $0x234] sm:$0xf0] }
 0x345   : > { %v9366_v60 = vld [vmem:[%s12555_s19 + $0x418] sm:$0xf]  ;;  %v9303_v29 = vor.u32 %v11142_v31, %v9302_v45  ;;  %v2680_v45 = vadd.f32 %v13538_v13, %v2661_v63  ;;  %4319 = vmatpush.bf16.msrb.mxu0 %v9239_v26  ;;  %v2735_v63 = vadd.f32 %v13536_v9, %v2716_v50  ;;  %v13633_v13 = vpop.f32.mrf.mxu3  ;;  %v2772_v9 = vpop.f32.mrf.mxu1  ;;  %v2664_v43 = vadd.f32 %v13484_v36, %v2645_v46  ;;  %v11151_v50 = vld [vmem:[%s12555_s19 + $0x35c] sm:$0xf] }
 0x346   : > { %v11158_v16 = vld [vmem:[%s12555_s19 + $0x434] sm:$0xf0]  ;;  %v2628_v36 = vadd.f32 %v13491_v40, %v2609_v47 }
 0x347   : > { %v9430_v25 = vld [vmem:[%s12555_s19 + $0x618] sm:$0xf]  ;;  %v9367_v4 = vor.u32 %v11158_v16, %v9366_v60  ;;  %4338 = vmatpush.bf16.msrb.mxu1 %v9303_v29  ;;  %v9288_v16 = vld [vmem:[%s12555_s19 + $0x1b8] sm:$0xf0] }
 0x348   : > { %v11174_v21 = vld [vmem:[%s12555_s19 + $0x634] sm:$0xf0]  ;;  %v9291_v27 = vor.u32 %v11137_v6, %v9288_v16  ;;  %4320 = vmatmul.bf16.vlgmr.msrb.gmra.mxu0 %v12652_v48  ;;  %v11133_v6 = vld [vmem:[%s12555_s19 + $0x11c] sm:$0xf] }
 0x349   : > { %v9550_v28 = vld [vmem:[%s12555_s19 + $0x9d8] sm:$0xf]  ;;  %v9431_v35 = vor.u32 %v11174_v21, %v9430_v25  ;;  %4357 = vmatpush.bf16.msrb.mxu2 %v9367_v4  ;;  %v2753_v25 = vpop.f32.mrf.mxu0  ;;  %v11153_v21 = vld [vmem:[%s12555_s19 + $0x39c] sm:$0xf] }
 0x34a   : > { %v11204_v52 = vld [vmem:[%s12555_s19 + $0x9f4] sm:$0xf0]  ;;  %4339 = vmatmul.bf16.vlgmr.msrb.gmra.mxu1 %v12657_v53  ;;  %v9272_v16 = vld [vmem:[%s12555_s19 + $0x138] sm:$0xf0] }
 0x34b   : > { %v9614_v33 = vld [vmem:[%s12555_s19 + $0xbd8] sm:$0xf]  ;;  %v9551_v1 = vor.u32 %v11204_v52, %v9550_v28  ;;  %4376 = vmatpush.bf16.msrb.mxu3 %v9431_v35  ;;  %v9352_v28 = vld [vmem:[%s12555_s19 + $0x3b8] sm:$0xf0]  ;;  %v2836_v52 = vmul.f32 1.442695, %v2828_v41  ;;  %v2683_v41 = vadd.f32 %v13564_v39, %v2664_v43 }
 0x34c   : > { %v11220_v59 = vld [vmem:[%s12555_s19 + $0xbf4] sm:$0xf0]  ;;  %v9355_v23 = vor.u32 %v11153_v21, %v9352_v28  ;;  %v9280_v35 = vld [vmem:[%s12555_s19 + $0x178] sm:$0xf0]  ;;  %4358 = vmatmul.bf16.vlgmr.msrb.gmra.mxu2 %v12659_v54 }
 0x34d   : > { %v9615_v32 = vor.u32 %v11220_v59, %v9614_v33  ;;  %v9542_v34 = vld [vmem:[%s12555_s19 + $0x998] sm:$0xf]  ;;  %4388 = vmatpush.bf16.msra.mxu0 %v9551_v1  ;;  %4426 = vmatpush.bf16.msra.mxu2 %v9299_v37  ;;  %v13640_v33 = vadd.f32 %v13542_v15, %v2680_v45  ;;  %v2754_v59 = vadd.f32 %v2753_v25, %v2735_v63  ;;  %v11135_v15 = vld [vmem:[%s12555_s19 + $0x15c] sm:$0xf]  ;;  %11594 = vpow2.f32 %v2836_v52  ;;  %v2810_v28 = vpop.f32.mrf.mxu3 }
 0x34e   : > { %v11202_v31 = vld [vmem:[%s12555_s19 + $0x9b4] sm:$0xf0]  ;;  %v2718_v1 = vadd.f32 %v13557_v62, %v13182_v19  ;;  %4377 = vmatmul.bf16.vlgmr.msrb.gmra.mxu3 %v12663_v57  ;;  %v2647_v63 = vadd.f32 %v13501_v10, %v2628_v36  ;;  %v13671_v52 = vadd.f32 %v13570_v17, %v2683_v41  ;;  %v9328_v36 = vld [vmem:[%s12555_s19 + $0x2f8] sm:$0xf0] }
 0x34f   : > { %v9606_v60 = vld [vmem:[%s12555_s19 + $0xb98] sm:$0xf]  ;;  %4407 = vmatpush.bf16.msra.mxu1 %v9615_v32  ;;  %4445 = vmatpush.bf16.msra.mxu3 %v9363_v38  ;;  %v9543_v26 = vor.u32 %v11202_v31, %v9542_v34  ;;  %v9344_v32 = vld [vmem:[%s12555_s19 + $0x378] sm:$0xf0]  ;;  %v2830_v37 = vmin.f32 %v13640_v33, 0.0  ;;  %v2773_v38 = vadd.f32 %v2772_v9, %v2754_v59  ;;  %v9283_v31 = vor.u32 %v11135_v15, %v9280_v35 }
 0x350   : > { %v11218_v24 = vld [vmem:[%s12555_s19 + $0xbb4] sm:$0xf0]  ;;  %v9347_v39 = vor.u32 %v11151_v50, %v9344_v32  ;;  %v2737_v25 = vadd.f32 %v13562_v44, %v2718_v1  ;;  %v11149_v9 = vld [vmem:[%s12555_s19 + $0x31c] sm:$0xf]  ;;  %v2721_v1 = vadd.f32 %v13595_v8, %v13211_v14  ;;  %v2666_v41 = vadd.f32 %v13506_v2, %v2647_v63 }
 0x351   : > { %v9607_v20 = vor.u32 %v11218_v24, %v9606_v60  ;;  %v9534_v29 = vld [vmem:[%s12555_s19 + $0x958] sm:$0xf]  ;;  %4389 = vmatpush.bf16.msra.mxu0 %v9543_v26  ;;  %4427 = vmatpush.bf16.msra.mxu2 %v9291_v27  ;;  %v2791_v24 = vpop.f32.mrf.mxu2  ;;  %v2755_v47 = vpop.f32.mrf.mxu0  ;;  %v9336_v26 = vld [vmem:[%s12555_s19 + $0x338] sm:$0xf0]  ;;  %v2840_v59 = vmul.f32 1.442695, %v2830_v37 }
 0x352   : > { %v11200_v4 = vld [vmem:[%s12555_s19 + $0x974] sm:$0xf0]  ;;  %v2792_v21 = vadd.f32 %v2791_v24, %v2773_v38  ;;  %v9339_v17 = vor.u32 %v11149_v9, %v9336_v26  ;;  %v11131_v15 = vld [vmem:[%s12555_s19 + $0xdc] sm:$0xf]  ;;  %v2685_v2 = vadd.f32 %v13602_v7, %v2666_v41  ;;  %vm2822_vm10 = vcmp.gt.f32.partialorder %v13640_v33, 0.0 }
 0x353   : > { %v9598_v30 = vld [vmem:[%s12555_s19 + $0xb58] sm:$0xf]  ;;  %v9535_v62 = vor.u32 %v11200_v4, %v9534_v29  ;;  %4408 = vmatpush.bf16.msra.mxu1 %v9607_v20  ;;  %4446 = vmatpush.bf16.msra.mxu3 %v9355_v23  ;;  %v2774_v20 = vpop.f32.mrf.mxu1  ;;  %v2756_v29 = vadd.f32 %v2755_v47, %v2737_v25  ;;  %v9275_v4 = vor.u32 %v11133_v6, %v9272_v16  ;;  %v9264_v35 = vld [vmem:[%s12555_s19 + $0xf8] sm:$0xf0]  ;;  %v11595_v37 = vpop.eup %11594  ;;  %vm2824_vm12 = vcmp.gt.f32.partialorder %v13671_v52, 0.0 }
 0x354   : > { %v11216_v5 = vld [vmem:[%s12555_s19 + $0xb74] sm:$0xf0]  ;;  %v13673_v44 = vadd.f32 %v2810_v28, %v2792_v21  ;;  %v11147_v32 = vld [vmem:[%s12555_s19 + $0x2dc] sm:$0xf]  ;;  %v8836_v25 = vadd.f32 -1.0, %v11595_v37  ;;  %v2740_v21 = vadd.f32 %v13600_v18, %v2721_v1 }
 0x355   : > { %v9526_v45 = vld [vmem:[%s12555_s19 + $0x918] sm:$0xf]  ;;  %v9599_v34 = vor.u32 %v11216_v5, %v9598_v30  ;;  %4390 = vmatpush.bf16.msra.mxu0 %v9535_v62  ;;  %4428 = vmatpush.bf16.msra.mxu2 %v9283_v31  ;;  %v2832_v62 = vmin.f32 %v13671_v52, 0.0  ;;  %v9331_v6 = vor.u32 %v11147_v32, %v9328_v36  ;;  %v11129_v16 = vld [vmem:[%s12555_s19 + $0x9c] sm:$0xf]  ;;  %v2812_v47 = vpop.f32.mrf.mxu3  ;;  %v2723_v36 = vadd.f32 %v13627_v11, %v13256_v12 }
 0x356   : > { %v11198_v60 = vld [vmem:[%s12555_s19 + $0x934] sm:$0xf0]  ;;  %v2829_v50 = vmin.f32 %v13673_v44, 0.0  ;;  %v9256_v63 = vld [vmem:[%s12555_s19 + $0xb8] sm:$0xf0]  ;;  %vm2821_vm9 = vcmp.gt.f32.partialorder %v13673_v44, 0.0 }
 0x357   : > { %v9590_v40 = vld [vmem:[%s12555_s19 + $0xb18] sm:$0xf]  ;;  %v9527_v10 = vor.u32 %v11198_v60, %v9526_v45  ;;  %4409 = vmatpush.bf16.msra.mxu1 %v9599_v34  ;;  %4447 = vmatpush.bf16.msra.mxu3 %v9347_v39  ;;  %v2775_v60 = vadd.f32 %v2774_v20, %v2756_v29  ;;  %v11145_v26 = vld [vmem:[%s12555_s19 + $0x29c] sm:$0xf]  ;;  %v13698_v7 = vmul.f32 1.442695, %v2832_v62 }
 0x358   : > { %v11214_v46 = vld [vmem:[%s12555_s19 + $0xb34] sm:$0xf0]  ;;  %v2838_v31 = vmul.f32 1.442695, %v2829_v50  ;;  %v9320_v20 = vld [vmem:[%s12555_s19 + $0x2b8] sm:$0xf0]  ;;  %4325 = vmatmul.bf16.gmra.mxu0 %v12727_v49 }
 0x359   : > { %v9591_v27 = vor.u32 %v11214_v46, %v9590_v40  ;;  %v9518_v30 = vld [vmem:[%s12555_s19 + $0x8d8] sm:$0xf]  ;;  %4391 = vmatpush.bf16.msra.mxu0 %v9527_v10  ;;  %4429 = vmatpush.bf16.msra.mxu2 %v9275_v4  ;;  %v9267_v40 = vor.u32 %v11131_v15, %v9264_v35  ;;  %v2793_v39 = vpop.f32.mrf.mxu2  ;;  %v2758_v9 = vpop.f32.mrf.mxu0  ;;  %v11127_v15 = vld [vmem:[%s12555_s19 + $0x5c] sm:$0xf]  ;;  %v13708_v35 = vadd.f32 %v13610_v3, %v2685_v2 }
 0x35a   : > { %v11196_v43 = vld [vmem:[%s12555_s19 + $0x8f4] sm:$0xf0]  ;;  %11596 = vpow2.f32 %v2838_v31  ;;  %v2794_v28 = vadd.f32 %v2793_v39, %v2775_v60  ;;  %v9248_v1 = vld [vmem:[%s12555_s19 + $0x78] sm:$0xf0]  ;;  %4344 = vmatmul.bf16.gmra.mxu1 %v12734_v56  ;;  %v2860_v2 = vsel %vm2820_vm8, %v13608_v42, %v8836_v25 }
 0x35b   : > { %v9582_v23 = vld [vmem:[%s12555_s19 + $0xad8] sm:$0xf]  ;;  %v9519_v45 = vor.u32 %v11196_v43, %v9518_v30  ;;  %4410 = vmatpush.bf16.msra.mxu1 %v9591_v27  ;;  %4448 = vmatpush.bf16.msra.mxu3 %v9339_v17  ;;  %v2777_v10 = vpop.f32.mrf.mxu1  ;;  %11598 = vpow2.f32 %v2840_v59  ;;  %v2759_v43 = vadd.f32 %v2758_v9, %v2740_v21  ;;  %v9323_v59 = vor.u32 %v11145_v26, %v9320_v20  ;;  %v11143_v50 = vld [vmem:[%s12555_s19 + $0x25c] sm:$0xf] }
 0x35c   : > { %v11212_v5 = vld [vmem:[%s12555_s19 + $0xaf4] sm:$0xf0]  ;;  %v13702_v18 = vadd.f32 %v2812_v47, %v2794_v28  ;;  %v9312_v32 = vld [vmem:[%s12555_s19 + $0x278] sm:$0xf0]  ;;  %4363 = vmatmul.bf16.gmra.mxu2 %v12736_v58  ;;  %v2834_v39 = vmin.f32 %v13708_v35, 0.0  ;;  %v2742_v9 = vadd.f32 %v13633_v13, %v2723_v36  ;;  %vm2826_vm14 = vcmp.gt.f32.partialorder %v13708_v35, 0.0 }
 0x35d   : > { %v9510_v38 = vld [vmem:[%s12555_s19 + $0x898] sm:$0xf]  ;;  %v9583_v8 = vor.u32 %v11212_v5, %v9582_v23  ;;  %4392 = vmatpush.bf16.msra.mxu0 %v9519_v45  ;;  %4430 = vmatpush.bf16.msra.mxu2 %v9267_v40  ;;  %v9259_v23 = vor.u32 %v11129_v16, %v9256_v63  ;;  %v2778_v60 = vadd.f32 %v2777_v10, %v2759_v43  ;;  %v9304_v21 = vld [vmem:[%s12555_s19 + $0x238] sm:$0xf0]  ;;  %v2815_v42 = vpop.f32.mrf.mxu3 }
 0x35e   : > { %v11194_v34 = vld [vmem:[%s12555_s19 + $0x8b4] sm:$0xf0]  ;;  %v2831_v37 = vmin.f32 %v13702_v18, 0.0  ;;  %4382 = vmatmul.bf16.gmra.mxu3 %v12740_v61  ;;  %v9251_v40 = vor.u32 %v11127_v15, %v9248_v1  ;;  %v9315_v63 = vor.u32 %v11143_v50, %v9312_v32  ;;  %v11171_v28 = vld [vmem:[%s12555_s19 + $0x5dc] sm:$0xf]  ;;  %vm2823_vm11 = vcmp.gt.f32.partialorder %v13702_v18, 0.0 }
 0x35f   : > { %v9574_v46 = vld [vmem:[%s12555_s19 + $0xa98] sm:$0xf]  ;;  %v9511_v27 = vor.u32 %v11194_v34, %v9510_v38  ;;  %4411 = vmatpush.bf16.msra.mxu1 %v9583_v8  ;;  %4449 = vmatpush.bf16.msra.mxu3 %v9331_v6  ;;  %v11125_v34 = vld [vmem:[%s12555_s19 + $0x1c] sm:$0xf] }
 0x360   : > { %v11210_v24 = vld [vmem:[%s12555_s19 + $0xab4] sm:$0xf0]  ;;  %v11597_v31 = vpop.eup %11596  ;;  %v2842_v11 = vmul.f32 1.442695, %v2831_v37  ;;  %v9424_v20 = vld [vmem:[%s12555_s19 + $0x5f8] sm:$0xf0] }
 0x361   : > { %v9575_v29 = vor.u32 %v11210_v24, %v9574_v46  ;;  %v9502_v4 = vld [vmem:[%s12555_s19 + $0x858] sm:$0xf]  ;;  %4393 = vmatpush.bf16.msra.mxu0 %v9511_v27  ;;  %4431 = vmatpush.bf16.msra.mxu2 %v9259_v23  ;;  %v9240_v46 = vld [vmem:[%s12555_s19 + $0x38] sm:$0xf0]  ;;  %v8837_v6 = vadd.f32 -1.0, %v11597_v31  ;;  %v2796_v16 = vpop.f32.mrf.mxu2  ;;  %v11599_v47 = vpop.eup %11598  ;;  %v9427_v36 = vor.u32 %v11171_v28, %v9424_v20 }
 0x362   : > { %v11192_v30 = vld [vmem:[%s12555_s19 + $0x874] sm:$0xf0]  ;;  %v11141_v24 = vld [vmem:[%s12555_s19 + $0x21c] sm:$0xf]  ;;  %11600 = vpow2.f32 %v2842_v11  ;;  %v2797_v26 = vadd.f32 %v2796_v16, %v2778_v60  ;;  %v2760_v25 = vpop.f32.mrf.mxu0  ;;  %v9243_v43 = vor.u32 %v11125_v34, %v9240_v46  ;;  %v8838_v32 = vadd.f32 -1.0, %v11599_v47 }
 0x363   : > { %v9566_v17 = vld [vmem:[%s12555_s19 + $0xa58] sm:$0xf]  ;;  %v9503_v62 = vor.u32 %v11192_v30, %v9502_v4  ;;  %4412 = vmatpush.bf16.msra.mxu1 %v9575_v29  ;;  %4450 = vmatpush.bf16.msra.mxu3 %v9323_v59  ;;  %v11187_v10 = vld [vmem:[%s12555_s19 + $0x7dc] sm:$0xf]  ;;  %v2861_v27 = vsel %vm2821_vm9, %v13673_v44, %v8837_v6  ;;  %v2779_v29 = vpop.f32.mrf.mxu1  ;;  %v2761_v59 = vadd.f32 %v2760_v25, %v2742_v9  ;;  %11602 = vpow2.f32 %v13698_v7 }
 0x364   : > { %v11208_v5 = vld [vmem:[%s12555_s19 + $0xa74] sm:$0xf0]  ;;  %v9488_v23 = vld [vmem:[%s12555_s19 + $0x7f8] sm:$0xf0]  ;;  %v13742_v15 = vadd.f32 %v2815_v42, %v2797_v26  ;;  %v9307_v44 = vor.u32 %v11141_v24, %v9304_v21  ;;  %v2862_v28 = vsel %vm2822_vm10, %v13640_v33, %v8838_v32 }
 0x365   : > { %v9494_v3 = vld [vmem:[%s12555_s19 + $0x818] sm:$0xf]  ;;  %v9567_v8 = vor.u32 %v11208_v5, %v9566_v17  ;;  %4394 = vmatpush.bf16.msra.mxu0 %v9503_v62  ;;  %v11203_v13 = vld [vmem:[%s12555_s19 + $0x9dc] sm:$0xf]  ;;  %v2868_v5 = vpack.c.bf16 %v2861_v27, %v2860_v2  ;;  %4432 = vmatpush.bf16.msra.mxu2 %v9251_v40  ;;  %v2848_v62 = vmul.f32 1.442695, %v2834_v39  ;;  %v2780_v60 = vadd.f32 %v2779_v29, %v2761_v59  ;;  %v2817_v6 = vpop.f32.mrf.mxu3 }
 0x366   : > { %v11190_v41 = vld [vmem:[%s12555_s19 + $0x834] sm:$0xf0]  ;;  %v9552_v17 = vld [vmem:[%s12555_s19 + $0x9f8] sm:$0xf0]  ;;  %v2833_v37 = vmin.f32 %v13742_v15, 0.0  ;;  %vm2825_vm13 = vcmp.gt.f32.partialorder %v13742_v15, 0.0 }
 0x367   : > { %v9558_v45 = vld [vmem:[%s12555_s19 + $0xa18] sm:$0xf]  ;;  %v9495_v4 = vor.u32 %v11190_v41, %v9494_v3  ;;  %4413 = vmatpush.bf16.msra.mxu1 %v9567_v8  ;;  %v11219_v1 = vld [vmem:[%s12555_s19 + $0xbdc] sm:$0xf]  ;;  %4451 = vmatpush.bf16.msra.mxu3 %v9315_v63  ;;  %2872 = vst [vmem:[#allocation2 + $0x8] sm:$0xff] %v2868_v5  ;;  %v9491_v3 = vor.u32 %v11187_v10, %v9488_v23 }
 0x368   : > { %v11206_v38 = vld [vmem:[%s12555_s19 + $0xa34] sm:$0xf0]  ;;  %v9616_v50 = vld [vmem:[%s12555_s19 + $0xbf8] sm:$0xf0]  ;;  %v9555_v41 = vor.u32 %v11203_v13, %v9552_v17  ;;  %v11601_v31 = vpop.eup %11600  ;;  %v2846_v11 = vmul.f32 1.442695, %v2833_v37 }
 0x369   : > { %v9559_v30 = vor.u32 %v11206_v38, %v9558_v45  ;;  %4395 = vmatpush.bf16.msra.mxu0 %v9495_v4  ;;  %v9619_v45 = vor.u32 %v11219_v1, %v9616_v50  ;;  %v11169_v38 = vld [vmem:[%s12555_s19 + $0x59c] sm:$0xf]  ;;  %4433 = vmatpush.bf16.msra.mxu2 %v9243_v43  ;;  %v8839_v40 = vadd.f32 -1.0, %v11601_v31  ;;  %v2798_v46 = vpop.f32.mrf.mxu2  ;;  %v11603_v42 = vpop.eup %11602 }
 0x36a   : > { %v9416_v34 = vld [vmem:[%s12555_s19 + $0x5b8] sm:$0xf0]  ;;  %11604 = vpow2.f32 %v2846_v11  ;;  %v2799_v39 = vadd.f32 %v2798_v46, %v2780_v60  ;;  %v13756_v16 = vpop.f32.mrf.mxu0  ;;  %v8840_v59 = vadd.f32 -1.0, %v11603_v42 }
 0x36b   : > { %4414 = vmatpush.bf16.msra.mxu1 %v9559_v30  ;;  %v11185_v8 = vld [vmem:[%s12555_s19 + $0x79c] sm:$0xf]  ;;  %4452 = vmatpush.bf16.msra.mxu3 %v9307_v44  ;;  %v2863_v47 = vsel %vm2823_vm11, %v13702_v18, %v8839_v40  ;;  %v13762_v9 = vpop.f32.mrf.mxu1  ;;  %v9419_v26 = vor.u32 %v11169_v38, %v9416_v34  ;;  %11606 = vpow2.f32 %v2848_v62 }
 0x36c   : > { %v9480_v7 = vld [vmem:[%s12555_s19 + $0x7b8] sm:$0xf0]  ;;  %v2869_v25 = vpack.c.bf16 %v2863_v47, %v2862_v28  ;;  %v13764_v20 = vadd.f32 %v2817_v6, %v2799_v39  ;;  %4396 = vmatmul.bf16.vlgmr.msra.gmra.mxu0 %v12792_v55  ;;  %4434 = vmatmul.bf16.vlgmr.msra.gmra.mxu2 %v12652_v48 }
 0x36d   : > { %4464 = vmatpush.bf16.msrb.mxu0 %v9427_v36  ;;  %v11201_v24 = vld [vmem:[%s12555_s19 + $0x99c] sm:$0xf]  ;;  %4502 = vmatpush.bf16.msrb.mxu2 %v9555_v41  ;;  %v9483_v10 = vor.u32 %v11185_v8, %v9480_v7  ;;  %v13789_v31 = vpop.f32.mrf.mxu3  ;;  %v2864_v7 = vsel %vm2824_vm12, %v13671_v52, %v8840_v59 }
 0x36e   : > { %v9544_v2 = vld [vmem:[%s12555_s19 + $0x9b8] sm:$0xf0]  ;;  %2873 = vst [vmem:[#allocation2 + $0x28] sm:$0xff] %v2869_v25  ;;  %v2835_v13 = vmin.f32 %v13764_v20, 0.0  ;;  %4415 = vmatmul.bf16.vlgmr.msra.gmra.mxu1 %v12797_v0  ;;  %4453 = vmatmul.bf16.vlgmr.msra.gmra.mxu3 %v12657_v53  ;;  %vm2827_vm15 = vcmp.gt.f32.partialorder %v13764_v20, 0.0 }
 0x36f   : > { %4483 = vmatpush.bf16.msrb.mxu1 %v9491_v3  ;;  %v11217_v63 = vld [vmem:[%s12555_s19 + $0xb9c] sm:$0xf]  ;;  %4521 = vmatpush.bf16.msrb.mxu3 %v9619_v45  ;;  %v9547_v27 = vor.u32 %v11201_v24, %v9544_v2 }
 0x370   : > { %v9608_v21 = vld [vmem:[%s12555_s19 + $0xbb8] sm:$0xf0]  ;;  %v11605_v44 = vpop.eup %11604  ;;  %v2850_v36 = vmul.f32 1.442695, %v2835_v13 }
 0x371   : > { %v11167_v29 = vld [vmem:[%s12555_s19 + $0x55c] sm:$0xf]  ;;  %v9611_v33 = vor.u32 %v11217_v63, %v9608_v21  ;;  %4465 = vmatpush.bf16.msrb.mxu0 %v9419_v26  ;;  %4503 = vmatpush.bf16.msrb.mxu2 %v9547_v27  ;;  %v8841_v62 = vadd.f32 -1.0, %v11605_v44  ;;  %v13783_v45 = vpop.f32.mrf.mxu2  ;;  %v11607_v2 = vpop.eup %11606 }
 0x372   : > { %v9408_v4 = vld [vmem:[%s12555_s19 + $0x578] sm:$0xf0]  ;;  %11608 = vpow2.f32 %v2850_v36  ;;  %v13791_v11 = vpop.f32.mrf.mxu0  ;;  %v8842_v27 = vadd.f32 -1.0, %v11607_v2  ;;  %v16318_v2 = vld [vmem:[#allocation6_spill] sm:$0xff] }
 0x373   : > { %v11183_v30 = vld [vmem:[%s12555_s19 + $0x75c] sm:$0xf]  ;;  %v9411_v1 = vor.u32 %v11167_v29, %v9408_v4  ;;  %4484 = vmatpush.bf16.msrb.mxu1 %v9483_v10  ;;  %4522 = vmatpush.bf16.msrb.mxu3 %v9611_v33  ;;  %v2865_v40 = vsel %vm2825_vm13, %v13742_v15, %v8841_v62  ;;  %v13797_v46 = vpop.f32.mrf.mxu1 }
 0x374   : > { %v9472_v18 = vld [vmem:[%s12555_s19 + $0x778] sm:$0xf0]  ;;  %v2870_v39 = vpack.c.bf16 %v2865_v40, %v2864_v7 }
 0x375   : > { %v11199_v43 = vld [vmem:[%s12555_s19 + $0x95c] sm:$0xf]  ;;  %v9475_v37 = vor.u32 %v11183_v30, %v9472_v18  ;;  %4466 = vmatpush.bf16.msrb.mxu0 %v9411_v1 }
 0x376   : > { %v9536_v23 = vld [vmem:[%s12555_s19 + $0x978] sm:$0xf0]  ;;  %2874 = vst [vmem:[#allocation2 + $0x48] sm:$0xff] %v2870_v39 }
 0x377   : > { %v11215_v17 = vld [vmem:[%s12555_s19 + $0xb5c] sm:$0xf]  ;;  %v9539_v48 = vor.u32 %v11199_v43, %v9536_v23  ;;  %4485 = vmatpush.bf16.msrb.mxu1 %v9475_v37 }
 0x378   : > { %v9600_v5 = vld [vmem:[%s12555_s19 + $0xb78] sm:$0xf0]  ;;  %v11609_v30 = vpop.eup %11608 }
 0x379   : > { %v11165_v50 = vld [vmem:[%s12555_s19 + $0x51c] sm:$0xf]  ;;  %v9603_v53 = vor.u32 %v11215_v17, %v9600_v5  ;;  %4504 = vmatpush.bf16.msrb.mxu2 %v9539_v48  ;;  %v8843_v17 = vadd.f32 -1.0, %v11609_v30  ;;  %v13811_v5 = vpop.f32.mrf.mxu2  ;;  %v2866_v48 = vsel %vm2826_vm14, %v13708_v35, %v8842_v27  ;;  %v9778_v30 = vld [vmem:[%s16300_s3 + $0xa8] sm:$0xf] }
 0x37a   : > { %v9400_v32 = vld [vmem:[%s12555_s19 + $0x538] sm:$0xf0]  ;;  %v13819_v44 = vpop.f32.mrf.mxu0 }
 0x37b   : > { %v11181_v3 = vld [vmem:[%s12555_s19 + $0x71c] sm:$0xf]  ;;  %v9403_v24 = vor.u32 %v11165_v50, %v9400_v32  ;;  %4523 = vmatpush.bf16.msrb.mxu3 %v9603_v53  ;;  %v13817_v32 = vpop.f32.mrf.mxu3 }
 0x37c   : > { %v9464_v41 = vld [vmem:[%s12555_s19 + $0x738] sm:$0xf0]  ;;  %4401 = vmatmul.bf16.gmra.mxu0 %v12844_v51  ;;  %4439 = vmatmul.bf16.gmra.mxu2 %v12727_v49 }
 0x37d   : > { %v11197_v38 = vld [vmem:[%s12555_s19 + $0x91c] sm:$0xf]  ;;  %v9467_v6 = vor.u32 %v11181_v3, %v9464_v41  ;;  %4467 = vmatpush.bf16.msrb.mxu0 %v9403_v24  ;;  %v2867_v3 = vsel %vm2827_vm15, %v13764_v20, %v8843_v17  ;;  %v13825_v41 = vpop.f32.mrf.mxu1  ;;  %v9970_v17 = vld [vmem:[%s16300_s3 + $0x228] sm:$0xf] }
 0x37e   : > { %v9528_v34 = vld [vmem:[%s12555_s19 + $0x938] sm:$0xf0]  ;;  %v2871_v53 = vpack.c.bf16 %v2867_v3, %v2866_v48  ;;  %4420 = vmatmul.bf16.gmra.mxu1 %v16318_v2  ;;  %4458 = vmatmul.bf16.gmra.mxu3 %v12734_v56 }
 0x37f   : > { %v11213_v60 = vld [vmem:[%s12555_s19 + $0xb1c] sm:$0xf]  ;;  %v9531_v63 = vor.u32 %v11197_v38, %v9528_v34  ;;  %4486 = vmatpush.bf16.msrb.mxu1 %v9467_v6 }
 0x380   : > { %v9592_v8 = vld [vmem:[%s12555_s19 + $0xb38] sm:$0xf0]  ;;  %2875 = vst [vmem:[#allocation2 + $0x68] sm:$0xff] %v2871_v53 }
 0x381   : > { %v11163_v21 = vld [vmem:[%s12555_s19 + $0x4dc] sm:$0xf]  ;;  %v9595_v15 = vor.u32 %v11213_v60, %v9592_v8  ;;  %4505 = vmatpush.bf16.msrb.mxu2 %v9531_v63 }
 0x382   : > { %v9392_v52 = vld [vmem:[%s12555_s19 + $0x4f8] sm:$0xf0] }
 0x383   : > { %v11179_v28 = vld [vmem:[%s12555_s19 + $0x6dc] sm:$0xf]  ;;  %v9395_v29 = vor.u32 %v11163_v21, %v9392_v52  ;;  %4524 = vmatpush.bf16.msrb.mxu3 %v9595_v15 }
 0x384   : > { %v9456_v47 = vld [vmem:[%s12555_s19 + $0x6f8] sm:$0xf0] }
 0x385   : > { %v11195_v26 = vld [vmem:[%s12555_s19 + $0x8dc] sm:$0xf]  ;;  %v9459_v33 = vor.u32 %v11179_v28, %v9456_v47  ;;  %4468 = vmatpush.bf16.msrb.mxu0 %v9395_v29  ;;  %v13849_v29 = vpop.f32.mrf.mxu3 }
 0x386   : > { %v9520_v42 = vld [vmem:[%s12555_s19 + $0x8f8] sm:$0xf0] }
 0x387   : > { %v11211_v25 = vld [vmem:[%s12555_s19 + $0xadc] sm:$0xf]  ;;  %v9523_v18 = vor.u32 %v11195_v26, %v9520_v42  ;;  %4487 = vmatpush.bf16.msrb.mxu1 %v9459_v33  ;;  %v11259_v33 = vld [vmem:[%s16300_s3 + $0xb0] sm:$0xf0] }
 0x388   : > { %v9584_v10 = vld [vmem:[%s12555_s19 + $0xaf8] sm:$0xf0]  ;;  %v9779_v3 = vor.u32 %v11259_v33, %v9778_v30  ;;  %v11325_v30 = vld [vmem:[%s16300_s3 + $0x2c0] sm:$0xf0] }
 0x389   : > { %v11161_v4 = vld [vmem:[%s12555_s19 + $0x49c] sm:$0xf]  ;;  %v9587_v59 = vor.u32 %v11211_v25, %v9584_v10  ;;  %4506 = vmatpush.bf16.msrb.mxu2 %v9523_v18  ;;  %v13844_v25 = vpop.f32.mrf.mxu2  ;;  %v9874_v18 = vld [vmem:[%s16300_s3 + $0x168] sm:$0xf] }
 0x38a   : > { %v9384_v43 = vld [vmem:[%s12555_s19 + $0x4b8] sm:$0xf0] }
 0x38b   : > { %v11177_v23 = vld [vmem:[%s12555_s19 + $0x69c] sm:$0xf]  ;;  %v9387_v62 = vor.u32 %v11161_v4, %v9384_v43  ;;  %4525 = vmatpush.bf16.msrb.mxu3 %v9587_v59  ;;  %v13851_v4 = vpop.f32.mrf.mxu0  ;;  %v13862_v43 = vpop.f32.mrf.mxu1  ;;  %v11307_v59 = vld [vmem:[%s16300_s3 + $0x230] sm:$0xf0] }
 0x38c   : > { %v9448_v13 = vld [vmem:[%s12555_s19 + $0x6b8] sm:$0xf0]  ;;  %v9971_v53 = vor.u32 %v11307_v59, %v9970_v17  ;;  %v11274_v59 = vld [vmem:[%s16300_s3 + $0x128] sm:$0xf0] }
 0x38d   : > { %v11193_v1 = vld [vmem:[%s12555_s19 + $0x89c] sm:$0xf]  ;;  %v9451_v38 = vor.u32 %v11177_v23, %v9448_v13  ;;  %4469 = vmatpush.bf16.msrb.mxu0 %v9387_v62  ;;  %v11283_v13 = vld [vmem:[%s16300_s3 + $0x170] sm:$0xf0] }
 0x38e   : > { %v9512_v50 = vld [vmem:[%s12555_s19 + $0x8b8] sm:$0xf0]  ;;  %v9875_v62 = vor.u32 %v11283_v13, %v9874_v18  ;;  %v9838_v13 = vld [vmem:[%s16300_s3 + $0x120] sm:$0xf] }
 0x38f   : > { %v11209_v36 = vld [vmem:[%s12555_s19 + $0xa9c] sm:$0xf]  ;;  %v9515_v34 = vor.u32 %v11193_v1, %v9512_v50  ;;  %4488 = vmatpush.bf16.msrb.mxu1 %v9451_v38 }
 0x390   : > { %v9576_v37 = vld [vmem:[%s12555_s19 + $0xab8] sm:$0xf0] }
 0x391   : > { %v11159_v60 = vld [vmem:[%s12555_s19 + $0x45c] sm:$0xf]  ;;  %v9579_v20 = vor.u32 %v11209_v36, %v9576_v37  ;;  %4507 = vmatpush.bf16.msrb.mxu2 %v9515_v34  ;;  %v10066_v36 = vld [vmem:[%s16300_s3 + $0x2e8] sm:$0xf]  ;;  %v11331_v37 = vld [vmem:[%s16300_s3 + $0x2f0] sm:$0xf0] }
 0x392   : > { %v9376_v8 = vld [vmem:[%s12555_s19 + $0x478] sm:$0xf0]  ;;  %v10067_v38 = vor.u32 %v11331_v37, %v10066_v36  ;;  %v9766_v34 = vld [vmem:[%s16300_s3 + $0x90] sm:$0xf] }
 0x393   : > { %v11175_v35 = vld [vmem:[%s12555_s19 + $0x65c] sm:$0xf]  ;;  %v9379_v63 = vor.u32 %v11159_v60, %v9376_v8  ;;  %4526 = vmatpush.bf16.msrb.mxu3 %v9579_v20  ;;  %v9862_v8 = vld [vmem:[%s16300_s3 + $0x150] sm:$0xf] }
 0x394   : > { %v9440_v7 = vld [vmem:[%s12555_s19 + $0x678] sm:$0xf0] }
 0x395   : > { %v11191_v40 = vld [vmem:[%s12555_s19 + $0x85c] sm:$0xf]  ;;  %v9443_v28 = vor.u32 %v11175_v35, %v9440_v7  ;;  %4470 = vmatpush.bf16.msrb.mxu0 %v9379_v63  ;;  %v13888_v35 = vpop.f32.mrf.mxu2  ;;  %v9958_v7 = vld [vmem:[%s16300_s3 + $0x210] sm:$0xf] }
 0x396   : > { %v9504_v24 = vld [vmem:[%s12555_s19 + $0x878] sm:$0xf0] }
 0x397   : > { %v11207_v39 = vld [vmem:[%s12555_s19 + $0xa5c] sm:$0xf]  ;;  %v9507_v15 = vor.u32 %v11191_v40, %v9504_v24  ;;  %4489 = vmatpush.bf16.msrb.mxu1 %v9443_v28  ;;  %v13899_v24 = vpop.f32.mrf.mxu3 }
 0x398   : > { %v9568_v6 = vld [vmem:[%s12555_s19 + $0xa78] sm:$0xf0] }
 0x399   : > { %v11157_v21 = vld [vmem:[%s12555_s19 + $0x41c] sm:$0xf]  ;;  %v9571_v49 = vor.u32 %v11207_v39, %v9568_v6  ;;  %4508 = vmatpush.bf16.msrb.mxu2 %v9507_v15  ;;  %v13901_v39 = vpop.f32.mrf.mxu0  ;;  %v10054_v6 = vld [vmem:[%s16300_s3 + $0x2d0] sm:$0xf] }
 0x39a   : > { %v9368_v52 = vld [vmem:[%s12555_s19 + $0x438] sm:$0xf0] }
 0x39b   : > { %v11173_v47 = vld [vmem:[%s12555_s19 + $0x61c] sm:$0xf]  ;;  %v9371_v23 = vor.u32 %v11157_v21, %v9368_v52  ;;  %4527 = vmatpush.bf16.msrb.mxu3 %v9571_v49  ;;  %v13909_v21 = vpop.f32.mrf.mxu1 }
 0x39c   : > { %v9432_v26 = vld [vmem:[%s12555_s19 + $0x638] sm:$0xf0] }
 0x39d   : > { %v11189_v42 = vld [vmem:[%s12555_s19 + $0x81c] sm:$0xf]  ;;  %v9435_v1 = vor.u32 %v11173_v47, %v9432_v26  ;;  %4471 = vmatpush.bf16.msrb.mxu0 %v9371_v23  ;;  %v9754_v47 = vld [vmem:[%s16300_s3 + $0x78] sm:$0xf]  ;;  %v11253_v26 = vld [vmem:[%s16300_s3 + $0x80] sm:$0xf0]  ;;  %v13948_v17 = vpop.f32.mrf.mxu2 }
 0x39e   : > { %v9496_v10 = vld [vmem:[%s12555_s19 + $0x838] sm:$0xf0]  ;;  %v9755_v33 = vor.u32 %v11253_v26, %v9754_v47 }
 0x39f   : > { %v11205_v27 = vld [vmem:[%s12555_s19 + $0xa1c] sm:$0xf]  ;;  %v9499_v50 = vor.u32 %v11189_v42, %v9496_v10  ;;  %4490 = vmatpush.bf16.msrb.mxu1 %v9435_v1  ;;  %v9850_v42 = vld [vmem:[%s16300_s3 + $0x138] sm:$0xf]  ;;  %v11277_v10 = vld [vmem:[%s16300_s3 + $0x140] sm:$0xf0]  ;;  %v13959_v36 = vpop.f32.mrf.mxu3 }
 0x3a0   : > { %v9560_v56 = vld [vmem:[%s12555_s19 + $0xa38] sm:$0xf0]  ;;  %4472 = vmatmul.bf16.vlgmr.msrb.gmra.mxu0 %v12659_v54  ;;  %v10042_v54 = vld [vmem:[%s16300_s3 + $0x2b8] sm:$0xf]  ;;  %v9851_v18 = vor.u32 %v11277_v10, %v9850_v42  ;;  %v9934_v1 = vld [vmem:[%s16300_s3 + $0x1e0] sm:$0xf] }
 0x3a1   : > { %v9563_v48 = vor.u32 %v11205_v27, %v9560_v56  ;;  %4509 = vmatpush.bf16.msrb.mxu2 %v9499_v50  ;;  %v11256_v60 = vld [vmem:[%s16300_s3 + $0x98] sm:$0xf0]  ;;  %5972 = vmatpush.bf16.msra.mxu0 %v9779_v3  ;;  %v9946_v27 = vld [vmem:[%s16300_s3 + $0x1f8] sm:$0xf]  ;;  %v11301_v56 = vld [vmem:[%s16300_s3 + $0x200] sm:$0xf0]  ;;  %v13961_v37 = vpop.f32.mrf.mxu0 }
 0x3a2   : > { %v11280_v20 = vld [vmem:[%s16300_s3 + $0x158] sm:$0xf0]  ;;  %v9767_v52 = vor.u32 %v11256_v60, %v9766_v34  ;;  %4491 = vmatmul.bf16.vlgmr.msrb.gmra.mxu1 %v12663_v57  ;;  %v9947_v23 = vor.u32 %v11301_v56, %v9946_v27  ;;  %v9742_v57 = vld [vmem:[%s16300_s3 + $0x60] sm:$0xf]  ;;  %v11298_v50 = vld [vmem:[%s16300_s3 + $0x1e8] sm:$0xf0] }
 0x3a3   : > { %4528 = vmatpush.bf16.msrb.mxu3 %v9563_v48  ;;  %v11304_v40 = vld [vmem:[%s16300_s3 + $0x218] sm:$0xf0]  ;;  %5991 = vmatpush.bf16.msra.mxu1 %v9875_v62  ;;  %v9863_v28 = vor.u32 %v11280_v20, %v9862_v8  ;;  %v10030_v48 = vld [vmem:[%s16300_s3 + $0x2a0] sm:$0xf]  ;;  %v11322_v3 = vld [vmem:[%s16300_s3 + $0x2a8] sm:$0xf0]  ;;  %v13969_v62 = vpop.f32.mrf.mxu1  ;;  %v9935_v34 = vor.u32 %v11298_v50, %v9934_v1 }
 0x3a4   : > { %v11328_v63 = vld [vmem:[%s16300_s3 + $0x2d8] sm:$0xf0]  ;;  %v9959_v15 = vor.u32 %v11304_v40, %v9958_v7  ;;  %4510 = vmatmul.bf16.vlgmr.msrb.gmra.mxu2 %v12792_v55  ;;  %v11250_v55 = vld [vmem:[%s16300_s3 + $0x68] sm:$0xf0]  ;;  %v9730_v60 = vld [vmem:[%s16300_s3 + $0x48] sm:$0xf]  ;;  %v10031_v7 = vor.u32 %v11322_v3, %v10030_v48 }
 0x3a5   : > { %6010 = vmatpush.bf16.msra.mxu2 %v9971_v53  ;;  %v10055_v49 = vor.u32 %v11328_v63, %v10054_v6  ;;  %5973 = vmatpush.bf16.msra.mxu0 %v9767_v52  ;;  %v9743_v53 = vor.u32 %v11250_v55, %v9742_v57  ;;  %v11247_v8 = vld [vmem:[%s16300_s3 + $0x50] sm:$0xf0]  ;;  %v9826_v20 = vld [vmem:[%s16300_s3 + $0x108] sm:$0xf]  ;;  %v3462_v52 = vadd.f32 %v13756_v16, %v13148_v22  ;;  %v11244_v16 = vld [vmem:[%s16300_s3 + $0x38] sm:$0xf0]  ;;  %v14006_v27 = vpop.f32.mrf.mxu2 }
 0x3a6   : > { %4529 = vmatmul.bf16.vlgmr.msrb.gmra.mxu3 %v12797_v0  ;;  %v10043_v0 = vor.u32 %v11325_v30, %v10042_v54  ;;  %v11271_v40 = vld [vmem:[%s16300_s3 + $0x110] sm:$0xf0]  ;;  %v9922_v6 = vld [vmem:[%s16300_s3 + $0x1c8] sm:$0xf]  ;;  %v9731_v47 = vor.u32 %v11247_v8, %v9730_v60  ;;  %v9814_v10 = vld [vmem:[%s16300_s3 + $0xf0] sm:$0xf] }
 0x3a7   : > { %6029 = vmatpush.bf16.msra.mxu3 %v10067_v38  ;;  %5992 = vmatpush.bf16.msra.mxu1 %v9863_v28  ;;  %v9839_v38 = vor.u32 %v11274_v59, %v9838_v13  ;;  %v11295_v63 = vld [vmem:[%s16300_s3 + $0x1d0] sm:$0xf0]  ;;  %v10018_v28 = vld [vmem:[%s16300_s3 + $0x288] sm:$0xf]  ;;  %v9827_v26 = vor.u32 %v11271_v40, %v9826_v20  ;;  %v11268_v54 = vld [vmem:[%s16300_s3 + $0xf8] sm:$0xf0] }
 0x3a8   : > { %v9923_v42 = vor.u32 %v11295_v63, %v9922_v6  ;;  %v9910_v30 = vld [vmem:[%s16300_s3 + $0x1b0] sm:$0xf]  ;;  %v11316_v13 = vld [vmem:[%s16300_s3 + $0x278] sm:$0xf0]  ;;  %v9815_v1 = vor.u32 %v11268_v54, %v9814_v10  ;;  %v9706_v50 = vld [vmem:[%s16300_s3 + $0x18] sm:$0xf] }
 0x3a9   : > { %6011 = vmatpush.bf16.msra.mxu2 %v9959_v15  ;;  %5974 = vmatpush.bf16.msra.mxu0 %v9755_v33  ;;  %v11319_v15 = vld [vmem:[%s16300_s3 + $0x290] sm:$0xf0]  ;;  %v11292_v33 = vld [vmem:[%s16300_s3 + $0x1b8] sm:$0xf0]  ;;  %v14020_v57 = vpop.f32.mrf.mxu0  ;;  %v10006_v55 = vld [vmem:[%s16300_s3 + $0x270] sm:$0xf] }
 0x3aa   : > { %v10019_v56 = vor.u32 %v11319_v15, %v10018_v28  ;;  %v11241_v48 = vld [vmem:[%s16300_s3 + $0x20] sm:$0xf0]  ;;  %v9802_v3 = vld [vmem:[%s16300_s3 + $0xd8] sm:$0xf]  ;;  %v11238_v40 = vld [vmem:[%s16300_s3 + $0x8] sm:$0xf0] }
 0x3ab   : > { %6030 = vmatpush.bf16.msra.mxu3 %v10055_v49  ;;  %5993 = vmatpush.bf16.msra.mxu1 %v9851_v18  ;;  %v9718_v49 = vld [vmem:[%s16300_s3 + $0x30] sm:$0xf]  ;;  %v3481_v18 = vadd.f32 %v13762_v9, %v3462_v52  ;;  %v9911_v9 = vor.u32 %v11292_v33, %v9910_v30  ;;  %v11289_v60 = vld [vmem:[%s16300_s3 + $0x1a0] sm:$0xf0]  ;;  %v9790_v6 = vld [vmem:[%s16300_s3 + $0xc0] sm:$0xf] }
 0x3ac   : > { %v9719_v59 = vor.u32 %v11244_v16, %v9718_v49  ;;  %v11313_v20 = vld [vmem:[%s16300_s3 + $0x260] sm:$0xf0]  ;;  %v9886_v28 = vld [vmem:[%s16300_s3 + $0x180] sm:$0xf]  ;;  %v11286_v15 = vld [vmem:[%s16300_s3 + $0x188] sm:$0xf0] }
 0x3ad   : > { %6012 = vmatpush.bf16.msra.mxu2 %v9947_v23  ;;  %5975 = vmatpush.bf16.msra.mxu0 %v9743_v53  ;;  %v14018_v23 = vpop.f32.mrf.mxu3  ;;  %v10007_v53 = vor.u32 %v11316_v13, %v10006_v55  ;;  %v3500_v8 = vadd.f32 %v13783_v45, %v3481_v18  ;;  %v9694_v45 = vld [vmem:[%s16300_s3] sm:$0xf]  ;;  %v14071_v63 = vpop.f32.mrf.mxu2  ;;  %v11310_v10 = vld [vmem:[%s16300_s3 + $0x248] sm:$0xf0]  ;;  %v11355_v54 = vld [vmem:[%s16300_s3 + $0x3b0] sm:$0xf0]  ;;  %v9887_v13 = vor.u32 %v11286_v15, %v9886_v28 }
 0x3ae   : > { %v10258_v30 = vld [vmem:[%s16300_s3 + $0x468] sm:$0xf]  ;;  %v11379_v33 = vld [vmem:[%s16300_s3 + $0x470] sm:$0xf0]  ;;  %v11222_v28 = vld [vmem:[#allocation2 + $0xc] sm:$0xf] }
 0x3af   : > { %6031 = vmatpush.bf16.msra.mxu3 %v10043_v0  ;;  %5994 = vmatpush.bf16.msra.mxu1 %v9839_v38  ;;  %v14028_v0 = vpop.f32.mrf.mxu1  ;;  %v11265_v38 = vld [vmem:[%s16300_s3 + $0xe0] sm:$0xf0]  ;;  %s11686_s19 = smov 118  }
 0x3b0   : > { %4477 = vmatmul.bf16.gmra.mxu0 %v12736_v58  ;;  %v9994_v58 = vld [vmem:[%s16300_s3 + $0x258] sm:$0xf] }
 0x3b1   : > { %6013 = vmatpush.bf16.msra.mxu2 %v9935_v34  ;;  %5976 = vmatpush.bf16.msra.mxu0 %v9731_v47  ;;  %v9898_v34 = vld [vmem:[%s16300_s3 + $0x198] sm:$0xf]  ;;  %v9995_v52 = vor.u32 %v11313_v20, %v9994_v58  ;;  %v9982_v47 = vld [vmem:[%s16300_s3 + $0x240] sm:$0xf]  ;;  %v14087_v16 = vpop.f32.mrf.mxu0  ;;  %v11376_v58 = vld [vmem:[%s16300_s3 + $0x458] sm:$0xf0] }
 0x3b2   : > { %4496 = vmatmul.bf16.gmra.mxu1 %v12740_v61  ;;  %v9803_v61 = vor.u32 %v11265_v38, %v9802_v3  ;;  %v10259_v3 = vor.u32 %v11379_v33, %v10258_v30  ;;  %v9632_v38 = vld [vmem:[#allocation2 + $0x20] sm:$0xf0] }
 0x3b3   : > { %6032 = vmatpush.bf16.msra.mxu3 %v10031_v7  ;;  %5995 = vmatpush.bf16.msra.mxu1 %v9827_v26  ;;  %v9707_v7 = vor.u32 %v11241_v48, %v9706_v50  ;;  %v3519_v26 = vadd.f32 %v13789_v31, %v3500_v8  ;;  %v3576_v48 = vadd.f32 %v13948_v17, %v13148_v22  ;;  %v11373_v30 = vld [vmem:[%s16300_s3 + $0x440] sm:$0xf0] }
 0x3b4   : > { %4515 = vmatmul.bf16.gmra.mxu2 %v12844_v51  ;;  %v9899_v51 = vor.u32 %v11289_v60, %v9898_v34  ;;  %v10150_v60 = vld [vmem:[%s16300_s3 + $0x390] sm:$0xf] }
 0x3b5   : > { %6014 = vmatpush.bf16.msra.mxu2 %v9923_v42  ;;  %5977 = vmatpush.bf16.msra.mxu0 %v9719_v59  ;;  %v3464_v42 = vadd.f32 %v13791_v11, %v13182_v19  ;;  %v14085_v49 = vpop.f32.mrf.mxu3  ;;  %v9695_v11 = vor.u32 %v11238_v40, %v9694_v45  ;;  %v3538_v18 = vadd.f32 %v13901_v39, %v3519_v26  ;;  %v14123_v8 = vpop.f32.mrf.mxu2 }
 0x3b6   : > { %4534 = vmatmul.bf16.gmra.mxu3 %v16318_v2  ;;  %v11262_v2 = vld [vmem:[%s16300_s3 + $0xc8] sm:$0xf0]  ;;  %v3467_v59 = vadd.f32 %v13819_v44, %v13211_v14  ;;  %v11226_v44 = vld [vmem:[#allocation2 + $0x24] sm:$0xf0]  ;;  %v3595_v20 = vadd.f32 %v13959_v36, %v3576_v48 }
 0x3b7   : > { %6033 = vmatpush.bf16.msra.mxu3 %v10019_v56  ;;  %5996 = vmatpush.bf16.msra.mxu1 %v9815_v1  ;;  %v10162_v56 = vld [vmem:[%s16300_s3 + $0x3a8] sm:$0xf]  ;;  %v14098_v31 = vpop.f32.mrf.mxu1  ;;  %v9791_v55 = vor.u32 %v11262_v2, %v9790_v6  ;;  %v9983_v1 = vor.u32 %v11310_v10, %v9982_v47  ;;  %v3483_v50 = vadd.f32 %v13797_v46, %v3464_v42  ;;  %v11352_v46 = vld [vmem:[%s16300_s3 + $0x398] sm:$0xf0]  ;;  %v10138_v10 = vld [vmem:[%s16300_s3 + $0x378] sm:$0xf] }
 0x3b8   : > { %v14114_v34 = vadd.f32 %v13909_v21, %v3538_v18  ;;  %v3486_v17 = vadd.f32 %v13825_v41, %v3467_v59  ;;  %v10246_v21 = vld [vmem:[%s16300_s3 + $0x450] sm:$0xf]  ;;  %v9638_v41 = vld [vmem:[#allocation2 + $0x8] sm:$0xf]  ;;  %v10151_v15 = vor.u32 %v11352_v46, %v10150_v60  ;;  %v3578_v18 = vadd.f32 %v14006_v27, %v13182_v19  ;;  %v11346_v27 = vld [vmem:[%s16300_s3 + $0x368] sm:$0xf0] }
 0x3b9   : > { %6015 = vmatpush.bf16.msra.mxu2 %v9911_v9  ;;  %5978 = vmatpush.bf16.msra.mxu0 %v9707_v7  ;;  %v10163_v9 = vor.u32 %v11355_v54, %v10162_v56  ;;  %v3502_v39 = vadd.f32 %v13811_v5, %v3483_v50  ;;  %v9630_v5 = vld [vmem:[#allocation2] sm:$0xf]  ;;  %v3613_v45 = vpop.f32.mrf.mxu0  ;;  %v10247_v42 = vor.u32 %v11376_v58, %v10246_v21  ;;  %v11349_v56 = vld [vmem:[%s16300_s3 + $0x380] sm:$0xf0]  ;;  %v11370_v48 = vld [vmem:[%s16300_s3 + $0x428] sm:$0xf0] }
 0x3ba   : > { %v3688_v36 = vmin.f32 %v14114_v34, 0.0  ;;  %v3614_v26 = vadd.f32 %v3613_v45, %v3595_v20  ;;  %v3505_v54 = vadd.f32 %v13844_v25, %v3486_v17  ;;  %v3469_v25 = vadd.f32 %v13851_v4, %v13256_v12  ;;  %v10222_v4 = vld [vmem:[%s16300_s3 + $0x420] sm:$0xf]  ;;  %v11367_v20 = vld [vmem:[%s16300_s3 + $0x410] sm:$0xf0] }
 0x3bb   : > { %6034 = vmatpush.bf16.msra.mxu3 %v10007_v53  ;;  %5997 = vmatpush.bf16.msra.mxu1 %v9803_v61  ;;  %v11225_v53 = vld [vmem:[#allocation2 + $0x1c] sm:$0xf0]  ;;  %v11221_v61 = vld [vmem:[#allocation2 + $0x4] sm:$0xf]  ;;  %v3521_v47 = vadd.f32 %v13817_v32, %v3502_v39  ;;  %v10234_v32 = vld [vmem:[%s16300_s3 + $0x438] sm:$0xf]  ;;  %v10223_v58 = vor.u32 %v11370_v48, %v10222_v4 }
 0x3bc   : > { %v14134_v6 = vor.u32 %v11225_v53, %v9630_v5  ;;  %v14136_v2 = vor.u32 %v11221_v61, %v9632_v38  ;;  %v3597_v53 = vadd.f32 %v14018_v23, %v3578_v18  ;;  %v3488_v60 = vadd.f32 %v13862_v43, %v3469_v25  ;;  %v11343_v23 = vld [vmem:[%s16300_s3 + $0x350] sm:$0xf0]  ;;  %v9670_v4 = vld [vmem:[#allocation2 + $0x48] sm:$0xf] }
 0x3bd   : > { %6016 = vmatpush.bf16.msra.mxu2 %v9899_v51  ;;  %5979 = vmatpush.bf16.msra.mxu0 %v9695_v11  ;;  %v14132_v7 = vpop.f32.mrf.mxu3  ;;  %v9640_v51 = vld [vmem:[#allocation2 + $0x28] sm:$0xf0]  ;;  %v3540_v33 = vadd.f32 %v13961_v37, %v3521_v47  ;;  %v10126_v37 = vld [vmem:[%s16300_s3 + $0x360] sm:$0xf]  ;;  %v3651_v50 = vpop.f32.mrf.mxu2  ;;  %v3581_v61 = vadd.f32 %v14071_v63, %v13211_v14  ;;  %v11340_v63 = vld [vmem:[%s16300_s3 + $0x338] sm:$0xf0] }
 0x3be   : > { %v14150_v11 = vor.u32 %v11222_v28, %v9640_v51  ;;  %v10127_v17 = vor.u32 %v11346_v27, %v10126_v37  ;;  %v3507_v43 = vadd.f32 %v13888_v35, %v3488_v60  ;;  %v11233_v51 = vld [vmem:[#allocation2 + $0x5c] sm:$0xf0]  ;;  %v9664_v28 = vld [vmem:[#allocation2 + $0x60] sm:$0xf0]  ;;  %v10090_v60 = vld [vmem:[%s16300_s3 + $0x318] sm:$0xf] }
 0x3bf   : > { %6035 = vmatpush.bf16.msra.mxu3 %v9995_v52  ;;  %5998 = vmatpush.bf16.msra.mxu1 %v9791_v55  ;;  %v3632_v40 = vpop.f32.mrf.mxu1  ;;  %v14138_v52 = vor.u32 %v11226_v44, %v9638_v41  ;;  %v10139_v55 = vor.u32 %v11349_v56, %v10138_v10  ;;  %v9662_v35 = vld [vmem:[#allocation2 + $0x40] sm:$0xf]  ;;  %v3600_v25 = vadd.f32 %v14085_v49, %v3581_v61  ;;  %vm3680_vm0 = vcmp.gt.f32.partialorder %v14114_v34, 0.0 }
 0x3c0   : > { %5980 = vmatmul.bf16.vlgmr.msra.gmra.mxu0 %v14134_v6  ;;  %v3633_v59 = vadd.f32 %v3632_v40, %v3614_v26  ;;  %v3526_v10 = vadd.f32 %v13899_v24, %v3507_v43  ;;  %v14214_v56 = vor.u32 %v11233_v51, %v9662_v35  ;;  %v11358_v35 = vld [vmem:[%s16300_s3 + $0x3c8] sm:$0xf0] }
 0x3c1   : > { %6017 = vmatpush.bf16.msra.mxu2 %v9887_v13  ;;  %6048 = vmatpush.bf16.msrb.mxu0 %v10163_v9  ;;  %v3696_v13 = vmul.f32 1.442695, %v3688_v36  ;;  %v3524_v9 = vadd.f32 %v13849_v29, %v3505_v54  ;;  %v3615_v44 = vpop.f32.mrf.mxu0  ;;  %v11234_v54 = vld [vmem:[#allocation2 + $0x64] sm:$0xf0] }
 0x3c2   : > { %5999 = vmatmul.bf16.vlgmr.msra.gmra.mxu1 %v14136_v2  ;;  %v3652_v38 = vadd.f32 %v3651_v50, %v3633_v59  ;;  %v3616_v21 = vadd.f32 %v3615_v44, %v3597_v53  ;;  %v11229_v59 = vld [vmem:[#allocation2 + $0x44] sm:$0xf]  ;;  %v3545_v27 = vadd.f32 %v14087_v16, %v3526_v10  ;;  %v14229_v49 = vor.u32 %v11234_v54, %v9670_v4  ;;  %v9876_v54 = vld [vmem:[%s16300_s3 + $0x174] sm:$0xf0]  ;;  %v9864_v4 = vld [vmem:[%s16300_s3 + $0x15c] sm:$0xf0] }
 0x3c3   : > { %6036 = vmatpush.bf16.msra.mxu3 %v9983_v1  ;;  %6067 = vmatpush.bf16.msrb.mxu1 %v10259_v3  ;;  %v10235_v1 = vor.u32 %v11373_v30, %v10234_v32  ;;  %v14180_v3 = vadd.f32 %v13969_v62, %v3540_v33  ;;  %v3543_v29 = vadd.f32 %v14020_v57, %v3524_v9  ;;  %11610 = vpow2.f32 %v3696_v13  ;;  %v10114_v62 = vld [vmem:[%s16300_s3 + $0x348] sm:$0xf]  ;;  %v10198_v32 = vld [vmem:[%s16300_s3 + $0x3f0] sm:$0xf]  ;;  %v11364_v30 = vld [vmem:[%s16300_s3 + $0x3f8] sm:$0xf0] }
 0x3c4   : > { %6018 = vmatmul.bf16.vlgmr.msra.gmra.mxu2 %v14138_v52  ;;  %v10210_v57 = vld [vmem:[%s16300_s3 + $0x408] sm:$0xf]  ;;  %v14225_v50 = vor.u32 %v11229_v59, %v9664_v28  ;;  %v10199_v44 = vor.u32 %v11364_v30, %v10198_v32  ;;  %v11337_v16 = vld [vmem:[%s16300_s3 + $0x320] sm:$0xf0]  ;;  %v14253_v43 = vadd.f32 %v14098_v31, %v3545_v27  ;;  %v10174_v31 = vld [vmem:[%s16300_s3 + $0x3c0] sm:$0xf] }
 0x3c5   : > { %6049 = vmatpush.bf16.msrb.mxu0 %v10151_v15  ;;  %v3670_v39 = vpop.f32.mrf.mxu3  ;;  %v3690_v45 = vmin.f32 %v14180_v3, 0.0  ;;  %v14205_v40 = vadd.f32 %v14028_v0, %v3543_v29  ;;  %v10115_v15 = vor.u32 %v11343_v23, %v10114_v62  ;;  %v10211_v26 = vor.u32 %v11367_v20, %v10210_v57  ;;  %v3653_v0 = vpop.f32.mrf.mxu2  ;;  %v10078_v20 = vld [vmem:[%s16300_s3 + $0x300] sm:$0xf] }
 0x3c6   : > { %6037 = vmatmul.bf16.vlgmr.msra.gmra.mxu3 %v14150_v11  ;;  %v14185_v5 = vadd.f32 %v3670_v39, %v3652_v38  ;;  %v11230_v39 = vld [vmem:[#allocation2 + $0x4c] sm:$0xf]  ;;  %v10091_v57 = vor.u32 %v11337_v16, %v10090_v60  ;;  %v3694_v32 = vmin.f32 %v14253_v43, 0.0  ;;  %vm3682_vm2 = vcmp.gt.f32.partialorder %v14180_v3, 0.0 }
 0x3c7   : > { %6068 = vmatpush.bf16.msrb.mxu1 %v10247_v42  ;;  %v3634_v46 = vpop.f32.mrf.mxu1  ;;  %v10102_v42 = vld [vmem:[%s16300_s3 + $0x330] sm:$0xf]  ;;  %v3700_v18 = vmul.f32 1.442695, %v3690_v45  ;;  %v3692_v37 = vmin.f32 %v14205_v40, 0.0  ;;  %vm3684_vm4 = vcmp.gt.f32.partialorder %v14205_v40, 0.0 }
 0x3c8   : > { %v3689_v41 = vmin.f32 %v14185_v5, 0.0  ;;  %v3635_v36 = vadd.f32 %v3634_v46, %v3616_v21  ;;  %v10103_v48 = vor.u32 %v11340_v63, %v10102_v42  ;;  %v11361_v21 = vld [vmem:[%s16300_s3 + $0x3e0] sm:$0xf0]  ;;  %vm3681_vm1 = vcmp.gt.f32.partialorder %v14185_v5, 0.0 }
 0x3c9   : > { %6050 = vmatpush.bf16.msrb.mxu0 %v10139_v55  ;;  %v11611_v33 = vpop.eup %11610  ;;  %v3618_v24 = vpop.f32.mrf.mxu0  ;;  %v3704_v23 = vmul.f32 1.442695, %v3692_v37  ;;  %v11255_v37 = vld [vmem:[%s16300_s3 + $0x94] sm:$0xf]  ;;  %vm3686_vm6 = vcmp.gt.f32.partialorder %v14253_v43, 0.0 }
 0x3ca   : > { %v3698_v47 = vmul.f32 1.442695, %v3689_v41  ;;  %v3654_v55 = vadd.f32 %v3653_v0, %v3635_v36  ;;  %v3619_v38 = vadd.f32 %v3618_v24, %v3600_v25  ;;  %v9228_v29 = vadd.f32 -1.0, %v11611_v33  ;;  %v11258_v36 = vld [vmem:[%s16300_s3 + $0xac] sm:$0xf] }
 0x3cb   : > { %6069 = vmatpush.bf16.msrb.mxu1 %v10235_v1  ;;  %v9672_v1 = vld [vmem:[#allocation2 + $0x68] sm:$0xf0] }
 0x3cc   : > { %11612 = vpow2.f32 %v3698_v47  ;;  %v14238_v46 = vor.u32 %v11230_v39, %v9672_v1  ;;  %v3720_v28 = vsel %vm3680_vm0, %v14114_v34, %v9228_v29  ;;  %v11282_v34 = vld [vmem:[%s16300_s3 + $0x16c] sm:$0xf]  ;;  %v3708_v39 = vmul.f32 1.442695, %v3694_v32 }
 0x3cd   : > { %6051 = vmatpush.bf16.msrb.mxu0 %v10127_v17  ;;  %v3672_v13 = vpop.f32.mrf.mxu3  ;;  %v10186_v17 = vld [vmem:[%s16300_s3 + $0x3d8] sm:$0xf]  ;;  %11614 = vpow2.f32 %v3700_v18  ;;  %v3656_v47 = vpop.f32.mrf.mxu2  ;;  %v10175_v18 = vor.u32 %v11358_v35, %v10174_v31  ;;  %v9879_v1 = vor.u32 %v11282_v34, %v9876_v54  ;;  %vm6472_vm0 = vcmask 1043456  }
 0x3ce   : > { %v14227_v53 = vadd.f32 %v3672_v13, %v3654_v55  ;;  %v10187_v51 = vor.u32 %v11361_v21, %v10186_v17 }
 0x3cf   : > { %6070 = vmatpush.bf16.msrb.mxu1 %v10223_v58  ;;  %v3637_v9 = vpop.f32.mrf.mxu1  ;;  %v3583_v58 = vadd.f32 %v14123_v8, %v13256_v12  ;;  %v11334_v8 = vld [vmem:[%s16300_s3 + $0x308] sm:$0xf0] }
 0x3d0   : > { %5985 = vmatmul.bf16.gmra.mxu0 %v14214_v56  ;;  %v3691_v62 = vmin.f32 %v14227_v53, 0.0  ;;  %v3638_v41 = vadd.f32 %v3637_v9, %v3619_v38  ;;  %v11279_v9 = vld [vmem:[%s16300_s3 + $0x154] sm:$0xf]  ;;  %vm3683_vm3 = vcmp.gt.f32.partialorder %v14227_v53, 0.0 }
 0x3d1   : > { %6052 = vmatpush.bf16.msrb.mxu0 %v10115_v15  ;;  %v3602_v42 = vadd.f32 %v14132_v7, %v3583_v58  ;;  %v3620_v0 = vpop.f32.mrf.mxu0  ;;  %v10079_v7 = vor.u32 %v11334_v8, %v10078_v20  ;;  %v9867_v21 = vor.u32 %v11279_v9, %v9864_v4  ;;  %v11252_v58 = vld [vmem:[%s16300_s3 + $0x7c] sm:$0xf] }
 0x3d2   : > { %6004 = vmatmul.bf16.gmra.mxu1 %v14225_v50  ;;  %v11613_v45 = vpop.eup %11612  ;;  %v3702_v61 = vmul.f32 1.442695, %v3691_v62  ;;  %v3657_v63 = vadd.f32 %v3656_v47, %v3638_v41  ;;  %v9756_v62 = vld [vmem:[%s16300_s3 + $0x84] sm:$0xf0]  ;;  %v11276_v8 = vld [vmem:[%s16300_s3 + $0x13c] sm:$0xf] }
 0x3d3   : > { %6071 = vmatpush.bf16.msrb.mxu1 %v10211_v26  ;;  %v9229_v15 = vadd.f32 -1.0, %v11613_v45  ;;  %v9780_v26 = vld [vmem:[%s16300_s3 + $0xb4] sm:$0xf0]  ;;  %v11615_v25 = vpop.eup %11614  ;;  %v3621_v24 = vadd.f32 %v3620_v0, %v3602_v42  ;;  %v9852_v45 = vld [vmem:[%s16300_s3 + $0x144] sm:$0xf0] }
 0x3d4   : > { %6023 = vmatmul.bf16.gmra.mxu2 %v14229_v49  ;;  %11616 = vpow2.f32 %v3702_v61  ;;  %v9783_v59 = vor.u32 %v11258_v36, %v9780_v26  ;;  %v9855_v47 = vor.u32 %v11276_v8, %v9852_v45  ;;  %v11249_v36 = vld [vmem:[%s16300_s3 + $0x64] sm:$0xf]  ;;  %v9840_v42 = vld [vmem:[%s16300_s3 + $0x12c] sm:$0xf0]  ;;  %v11240_v45 = vld [vmem:[%s16300_s3 + $0x1c] sm:$0xf] }
 0x3d5   : > { %6053 = vmatpush.bf16.msrb.mxu0 %v10103_v48  ;;  %v3675_v10 = vpop.f32.mrf.mxu3  ;;  %v3721_v30 = vsel %vm3681_vm1, %v14185_v5, %v9229_v15  ;;  %v9768_v5 = vld [vmem:[%s16300_s3 + $0x9c] sm:$0xf0]  ;;  %11618 = vpow2.f32 %v3704_v23  ;;  %v9230_v48 = vadd.f32 -1.0, %v11615_v25  ;;  %v3658_v17 = vpop.f32.mrf.mxu2  ;;  %v9759_v15 = vor.u32 %v11252_v58, %v9756_v62  ;;  %v11273_v26 = vld [vmem:[%s16300_s3 + $0x124] sm:$0xf] }
 0x3d6   : > { %6042 = vmatmul.bf16.gmra.mxu3 %v14238_v46  ;;  %v3728_v55 = vpack.c.bf16 %v3721_v30, %v3720_v28  ;;  %v14287_v13 = vadd.f32 %v3675_v10, %v3657_v63  ;;  %v9771_v16 = vor.u32 %v11255_v37, %v9768_v5  ;;  %v9843_v30 = vor.u32 %v11273_v26, %v9840_v42  ;;  %v9732_v25 = vld [vmem:[%s16300_s3 + $0x54] sm:$0xf0] }
 0x3d7   : > { %6072 = vmatpush.bf16.msrb.mxu1 %v10199_v44  ;;  %v3639_v33 = vpop.f32.mrf.mxu1  ;;  %v3722_v61 = vsel %vm3682_vm2, %v14180_v3, %v9230_v48  ;;  %v9744_v3 = vld [vmem:[%s16300_s3 + $0x6c] sm:$0xf0]  ;;  %v11243_v48 = vld [vmem:[%s16300_s3 + $0x34] sm:$0xf]  ;;  %vm7048_vm1 = vcmask 924672   ;;  %vm6843_vm2 = vcmask 965632  }
 0x3d8   : > { %3732 = vst [vmem:[#allocation2 + $0x10] sm:$0xff] %v3728_v55  ;;  %v3693_v27 = vmin.f32 %v14287_v13, 0.0  ;;  %v3640_v60 = vadd.f32 %v3639_v33, %v3621_v24  ;;  %v9747_v34 = vor.u32 %v11249_v36, %v9744_v3  ;;  %vm3685_vm5 = vcmp.gt.f32.partialorder %v14287_v13, 0.0  ;;  %v11246_v33 = vld [vmem:[%s16300_s3 + $0x4c] sm:$0xf] }
 0x3d9   : > { %6054 = vmatpush.bf16.msrb.mxu0 %v10091_v57  ;;  %v14310_v20 = vpop.f32.mrf.mxu0  ;;  %v11270_v55 = vld [vmem:[%s16300_s3 + $0x10c] sm:$0xf]  ;;  %v9828_v24 = vld [vmem:[%s16300_s3 + $0x114] sm:$0xf0] }
 0x3da   : > { %v11617_v38 = vpop.eup %11616  ;;  %v3706_v44 = vmul.f32 1.442695, %v3693_v27  ;;  %v3659_v23 = vadd.f32 %v3658_v17, %v3640_v60  ;;  %v9831_v60 = vor.u32 %v11270_v55, %v9828_v24  ;;  %v9816_v17 = vld [vmem:[%s16300_s3 + $0xfc] sm:$0xf0] }
 0x3db   : > { %6073 = vmatpush.bf16.msrb.mxu1 %v10187_v51  ;;  %v9231_v29 = vadd.f32 -1.0, %v11617_v38  ;;  %v11619_v31 = vpop.eup %11618 }
 0x3dc   : > { %11620 = vpow2.f32 %v3706_v44  ;;  %v9232_v63 = vadd.f32 -1.0, %v11619_v31  ;;  %v9735_v44 = vor.u32 %v11246_v33, %v9732_v25  ;;  %v9708_v31 = vld [vmem:[%s16300_s3 + $0x24] sm:$0xf0] }
 0x3dd   : > { %6055 = vmatpush.bf16.msrb.mxu0 %v10079_v7  ;;  %v3677_v57 = vpop.f32.mrf.mxu3  ;;  %v3723_v41 = vsel %vm3683_vm3, %v14227_v53, %v9231_v29  ;;  %11622 = vpow2.f32 %v3708_v39  ;;  %v14339_v32 = vpop.f32.mrf.mxu2  ;;  %v11267_v29 = vld [vmem:[%s16300_s3 + $0xf4] sm:$0xf]  ;;  %v9711_v26 = vor.u32 %v11240_v45, %v9708_v31  ;;  %v10236_v45 = vld [vmem:[%s16300_s3 + $0x444] sm:$0xf0]  ;;  %vm6556_vm3 = vcmask 1022976  }
 0x3de   : > { %v3729_v35 = vpack.c.bf16 %v3723_v41, %v3722_v61  ;;  %v14322_v28 = vadd.f32 %v3677_v57, %v3659_v23  ;;  %v9819_v8 = vor.u32 %v11267_v29, %v9816_v17 }
 0x3df   : > { %6074 = vmatpush.bf16.msrb.mxu1 %v10175_v18  ;;  %v14320_v51 = vpop.f32.mrf.mxu1  ;;  %v9646_v9 = vld [vmem:[#allocation2 + $0x10] sm:$0xf]  ;;  %v11223_v4 = vld [vmem:[#allocation2 + $0x14] sm:$0xf] }
 0x3e0   : > { %3733 = vst [vmem:[#allocation2 + $0x30] sm:$0xff] %v3729_v35  ;;  %v3695_v53 = vmin.f32 %v14322_v28, 0.0  ;;  %vm3687_vm7 = vcmp.gt.f32.partialorder %v14322_v28, 0.0  ;;  %v11264_v35 = vld [vmem:[%s16300_s3 + $0xdc] sm:$0xf] }
 0x3e1   : > { %6124 = vmatpush.bf16.msra.mxu0 %v9783_v59  ;;  %v14346_v18 = vpop.f32.mrf.mxu0  ;;  %v3724_v59 = vsel %vm3684_vm4, %v14205_v40, %v9232_v63  ;;  %v9720_v40 = vld [vmem:[%s16300_s3 + $0x3c] sm:$0xf0]  ;;  %v11237_v63 = vld [vmem:[%s16300_s3 + $0x4] sm:$0xf]  ;;  %vm6679_vm4 = vcmask 998400  }
 0x3e2   : > { %v11621_v10 = vpop.eup %11620  ;;  %v3710_v0 = vmul.f32 1.442695, %v3695_v53  ;;  %v9723_v57 = vor.u32 %v11243_v48, %v9720_v40  ;;  %v11375_v48 = vld [vmem:[%s16300_s3 + $0x454] sm:$0xf] }
 0x3e3   : > { %6143 = vmatpush.bf16.msra.mxu1 %v9879_v1  ;;  %v9233_v54 = vadd.f32 -1.0, %v11621_v10  ;;  %v11623_v5 = vpop.eup %11622  ;;  %v9696_v10 = vld [vmem:[%s16300_s3 + $0xc] sm:$0xf0] }
 0x3e4   : > { %11624 = vpow2.f32 %v3710_v0  ;;  %v11354_v0 = vld [vmem:[%s16300_s3 + $0x3ac] sm:$0xf]  ;;  %v9699_v25 = vor.u32 %v11237_v63, %v9696_v10  ;;  %v11369_v63 = vld [vmem:[%s16300_s3 + $0x424] sm:$0xf]  ;;  %v10224_v10 = vld [vmem:[%s16300_s3 + $0x42c] sm:$0xf0] }
 0x3e5   : > { %6125 = vmatpush.bf16.msra.mxu0 %v9771_v16  ;;  %v14344_v7 = vpop.f32.mrf.mxu3  ;;  %v3725_v1 = vsel %vm3685_vm5, %v14287_v13, %v9233_v54  ;;  %v14381_v23 = vpop.f32.mrf.mxu2  ;;  %v11378_v54 = vld [vmem:[%s16300_s3 + $0x46c] sm:$0xf]  ;;  %vm7007_vm5 = vcmask 932864  }
 0x3e6   : > { %v3730_v27 = vpack.c.bf16 %v3725_v1, %v3724_v59 }
 0x3e7   : > { %6144 = vmatpush.bf16.msra.mxu1 %v9867_v21  ;;  %v14359_v37 = vpop.f32.mrf.mxu1  ;;  %v11227_v38 = vld [vmem:[#allocation2 + $0x2c] sm:$0xf0]  ;;  %v9648_v39 = vld [vmem:[#allocation2 + $0x30] sm:$0xf0]  ;;  %v9234_v21 = vadd.f32 -1.0, %v11623_v5 }
 0x3e8   : > { %3734 = vst [vmem:[#allocation2 + $0x50] sm:$0xff] %v3730_v27  ;;  %v14367_v13 = vor.u32 %v11227_v38, %v9646_v9  ;;  %v14369_v16 = vor.u32 %v11223_v4, %v9648_v39  ;;  %v11351_v27 = vld [vmem:[%s16300_s3 + $0x394] sm:$0xf]  ;;  %v10152_v9 = vld [vmem:[%s16300_s3 + $0x39c] sm:$0xf0] }
 0x3e9   : > { %6126 = vmatpush.bf16.msra.mxu0 %v9759_v15  ;;  %v14388_v41 = vpop.f32.mrf.mxu0  ;;  %v9804_v15 = vld [vmem:[%s16300_s3 + $0xe4] sm:$0xf0]  ;;  %v10248_v38 = vld [vmem:[%s16300_s3 + $0x45c] sm:$0xf0]  ;;  %v10155_v29 = vor.u32 %v11351_v27, %v10152_v9  ;;  %v11339_v9 = vld [vmem:[%s16300_s3 + $0x334] sm:$0xf] }
 0x3ea   : > { %v11625_v58 = vpop.eup %11624  ;;  %6056 = vmatmul.bf16.vlgmr.msrb.gmra.mxu0 %v14367_v13  ;;  %6075 = vmatmul.bf16.vlgmr.msrb.gmra.mxu1 %v14369_v16  ;;  %v9807_v42 = vor.u32 %v11264_v35, %v9804_v15 }
 0x3eb   : > { %6145 = vmatpush.bf16.msra.mxu1 %v9855_v47  ;;  %v9235_v62 = vadd.f32 -1.0, %v11625_v58  ;;  %v3726_v47 = vsel %vm3686_vm6, %v14253_v43, %v9234_v21  ;;  %v11261_v43 = vld [vmem:[%s16300_s3 + $0xc4] sm:$0xf]  ;;  %v10251_v58 = vor.u32 %v11375_v48, %v10248_v38  ;;  %v10104_v38 = vld [vmem:[%s16300_s3 + $0x33c] sm:$0xf0]  ;;  %vm6884_vm6 = vcmask 957440  }
 0x3ed   : > { %6127 = vmatpush.bf16.msra.mxu0 %v9747_v34  ;;  %v14386_v61 = vpop.f32.mrf.mxu3  ;;  %v3727_v36 = vsel %vm3687_vm7, %v14322_v28, %v9235_v62  ;;  %v9792_v28 = vld [vmem:[%s16300_s3 + $0xcc] sm:$0xf0]  ;;  %v10164_v34 = vld [vmem:[%s16300_s3 + $0x3b4] sm:$0xf0]  ;;  %v14429_v33 = vpop.f32.mrf.mxu2  ;;  %v11348_v62 = vld [vmem:[%s16300_s3 + $0x37c] sm:$0xf] }
 0x3ee   : > { %v3731_v53 = vpack.c.bf16 %v3727_v36, %v3726_v47  ;;  %v9795_v55 = vor.u32 %v11261_v43, %v9792_v28  ;;  %v10167_v1 = vor.u32 %v11354_v0, %v10164_v34  ;;  %v10227_v28 = vor.u32 %v11369_v63, %v10224_v10  ;;  %v11342_v0 = vld [vmem:[%s16300_s3 + $0x34c] sm:$0xf]  ;;  %v10116_v34 = vld [vmem:[%s16300_s3 + $0x354] sm:$0xf0]  ;;  %v11333_v10 = vld [vmem:[%s16300_s3 + $0x304] sm:$0xf] }
 0x3ef   : > { %6146 = vmatpush.bf16.msra.mxu1 %v9843_v30  ;;  %v14403_v3 = vpop.f32.mrf.mxu1  ;;  %v10260_v30 = vld [vmem:[%s16300_s3 + $0x474] sm:$0xf0]  ;;  %v9678_v39 = vld [vmem:[#allocation2 + $0x50] sm:$0xf]  ;;  %vm6474_vm7 = vcmask 1039360  }
 0x3f0   : > { %3735 = vst [vmem:[#allocation2 + $0x70] sm:$0xff] %v3731_v53  ;;  %v10263_v5 = vor.u32 %v11378_v54, %v10260_v30  ;;  %v11345_v53 = vld [vmem:[%s16300_s3 + $0x364] sm:$0xf]  ;;  %v11366_v54 = vld [vmem:[%s16300_s3 + $0x40c] sm:$0xf] }
 0x3f1   : > { %6128 = vmatpush.bf16.msra.mxu0 %v9735_v44  ;;  %v14433_v59 = vpop.f32.mrf.mxu0  ;;  %v10212_v30 = vld [vmem:[%s16300_s3 + $0x414] sm:$0xf0] }
 0x3f2   : > { %v10215_v27 = vor.u32 %v11366_v54, %v10212_v30  ;;  %v10354_v30 = vld [vmem:[%s16300_s3 + $0x528] sm:$0xf] }
 0x3f3   : > { %6147 = vmatpush.bf16.msra.mxu1 %v9831_v60  ;;  %v11231_v60 = vld [vmem:[#allocation2 + $0x54] sm:$0xf] }
 0x3f5   : > { %6129 = vmatpush.bf16.msra.mxu0 %v9723_v57  ;;  %v14431_v24 = vpop.f32.mrf.mxu3  ;;  %v10140_v57 = vld [vmem:[%s16300_s3 + $0x384] sm:$0xf0]  ;;  %v14467_v31 = vpop.f32.mrf.mxu2 }
 0x3f6   : > { %v10143_v47 = vor.u32 %v11348_v62, %v10140_v57  ;;  %v4324_v62 = vadd.f32 %v14346_v18, %v13182_v19  ;;  %v10092_v57 = vld [vmem:[%s16300_s3 + $0x324] sm:$0xf0]  ;;  %v4327_v18 = vadd.f32 %v14388_v41, %v13211_v14  ;;  %v10080_v41 = vld [vmem:[%s16300_s3 + $0x30c] sm:$0xf0] }
 0x3f7   : > { %6148 = vmatpush.bf16.msra.mxu1 %v9819_v8  ;;  %v14441_v4 = vpop.f32.mrf.mxu1  ;;  %v11235_v44 = vld [vmem:[#allocation2 + $0x6c] sm:$0xf0]  ;;  %v9680_v40 = vld [vmem:[#allocation2 + $0x70] sm:$0xf0]  ;;  %v11372_v8 = vld [vmem:[%s16300_s3 + $0x43c] sm:$0xf] }
 0x3f8   : > { %v14449_v17 = vor.u32 %v11235_v44, %v9678_v39  ;;  %v14451_v21 = vor.u32 %v11231_v60, %v9680_v40  ;;  %v10239_v36 = vor.u32 %v11372_v8, %v10236_v45  ;;  %v11363_v39 = vld [vmem:[%s16300_s3 + $0x3f4] sm:$0xf]  ;;  %v10200_v44 = vld [vmem:[%s16300_s3 + $0x3fc] sm:$0xf0]  ;;  %v4322_v60 = vadd.f32 %v14310_v20, %v13148_v22  ;;  %v11360_v8 = vld [vmem:[%s16300_s3 + $0x3dc] sm:$0xf] }
 0x3f9   : > { %6130 = vmatpush.bf16.msra.mxu0 %v9711_v26  ;;  %v14471_v15 = vpop.f32.mrf.mxu0  ;;  %v10107_v40 = vor.u32 %v11339_v9, %v10104_v38  ;;  %v10188_v20 = vld [vmem:[%s16300_s3 + $0x3e4] sm:$0xf0]  ;;  %v10083_v9 = vor.u32 %v11333_v10, %v10080_v41  ;;  %v10438_v10 = vld [vmem:[%s16300_s3 + $0x5d0] sm:$0xf] }
 0x3fa   : > { %6061 = vmatmul.bf16.gmra.mxu0 %v14449_v17  ;;  %6080 = vmatmul.bf16.gmra.mxu1 %v14451_v21  ;;  %v4341_v45 = vadd.f32 %v14320_v51, %v4322_v60  ;;  %v10191_v63 = vor.u32 %v11360_v8, %v10188_v20  ;;  %v10342_v20 = vld [vmem:[%s16300_s3 + $0x510] sm:$0xf] }
 0x3fb   : > { %6149 = vmatpush.bf16.msra.mxu1 %v9807_v42  ;;  %v10128_v42 = vld [vmem:[%s16300_s3 + $0x36c] sm:$0xf0] }
 0x3fc   : > { %v10131_v43 = vor.u32 %v11345_v53, %v10128_v42 }
 0x3fd   : > { %6131 = vmatpush.bf16.msra.mxu0 %v9699_v25  ;;  %v14469_v35 = vpop.f32.mrf.mxu3  ;;  %v14499_v25 = vpop.f32.mrf.mxu2 }
 0x3ff   : > { %6150 = vmatpush.bf16.msra.mxu1 %v9795_v55  ;;  %v14476_v26 = vpop.f32.mrf.mxu1 }
 0x401   : > { %6200 = vmatpush.bf16.msrb.mxu0 %v10167_v1  ;;  %v14503_v1 = vpop.f32.mrf.mxu0 }
 0x403   : > { %6219 = vmatpush.bf16.msrb.mxu1 %v10263_v5  ;;  %v10119_v5 = vor.u32 %v11342_v0, %v10116_v34  ;;  %v10176_v0 = vld [vmem:[%s16300_s3 + $0x3cc] sm:$0xf0]  ;;  %v4360_v34 = vadd.f32 %v14339_v32, %v4341_v45  ;;  %v11400_v45 = vld [vmem:[%s16300_s3 + $0x518] sm:$0xf0] }
 0x405   : > { %6201 = vmatpush.bf16.msrb.mxu0 %v10155_v29  ;;  %v14501_v55 = vpop.f32.mrf.mxu3  ;;  %v10203_v29 = vor.u32 %v11363_v39, %v10200_v44  ;;  %v11260_v39 = vld [vmem:[%s16300_s3 + $0xb8] sm:$0xf0] }
 0x407   : > { %6220 = vmatpush.bf16.msrb.mxu1 %v10251_v58  ;;  %v14508_v48 = vpop.f32.mrf.mxu1  ;;  %v11336_v58 = vld [vmem:[%s16300_s3 + $0x31c] sm:$0xf] }
 0x408   : > { %v10095_v42 = vor.u32 %v11336_v58, %v10092_v57  ;;  %v4329_v57 = vadd.f32 %v14433_v59, %v13256_v12  ;;  %v10343_v59 = vor.u32 %v11400_v45, %v10342_v20 }
 0x409   : > { %6202 = vmatpush.bf16.msrb.mxu0 %v10143_v47  ;;  %v14540_v47 = vpop.f32.mrf.mxu2  ;;  %v14544_v53 = vpop.f32.mrf.mxu0 }
 0x40a   : > { %6132 = vmatmul.bf16.vlgmr.msra.gmra.mxu0 %v14134_v6  ;;  %6151 = vmatmul.bf16.vlgmr.msra.gmra.mxu1 %v14136_v2 }
 0x40b   : > { %6221 = vmatpush.bf16.msrb.mxu1 %v10239_v36 }
 0x40d   : > { %6203 = vmatpush.bf16.msrb.mxu0 %v10131_v43  ;;  %v14542_v36 = vpop.f32.mrf.mxu3  ;;  %v4343_v43 = vadd.f32 %v14359_v37, %v4324_v62  ;;  %v4346_v37 = vadd.f32 %v14403_v3, %v4327_v18  ;;  %v9786_v3 = vld [vmem:[%s16300_s3 + $0xb0] sm:$0xf]  ;;  %v4379_v62 = vadd.f32 %v14344_v7, %v4360_v34 }
 0x40e   : > { %v9787_v60 = vor.u32 %v11260_v39, %v9786_v3  ;;  %v9762_v3 = vld [vmem:[%s16300_s3 + $0x80] sm:$0xf]  ;;  %v11254_v39 = vld [vmem:[%s16300_s3 + $0x88] sm:$0xf0] }
 0x40f   : > { %6222 = vmatpush.bf16.msrb.mxu1 %v10227_v28  ;;  %v14550_v51 = vpop.f32.mrf.mxu1  ;;  %v11357_v28 = vld [vmem:[%s16300_s3 + $0x3c4] sm:$0xf]  ;;  %v4362_v54 = vadd.f32 %v14381_v23, %v4343_v43  ;;  %v11427_v23 = vld [vmem:[%s16300_s3 + $0x5f0] sm:$0xf0]  ;;  %v11424_v43 = vld [vmem:[%s16300_s3 + $0x5d8] sm:$0xf0]  ;;  %v4398_v34 = vadd.f32 %v14471_v15, %v4379_v62 }
 0x410   : > { %v10179_v32 = vor.u32 %v11357_v28, %v10176_v0  ;;  %v11257_v28 = vld [vmem:[%s16300_s3 + $0xa0] sm:$0xf0]  ;;  %v9870_v0 = vld [vmem:[%s16300_s3 + $0x158] sm:$0xf]  ;;  %v10318_v62 = vld [vmem:[%s16300_s3 + $0x4e0] sm:$0xf] }
 0x411   : > { %6204 = vmatpush.bf16.msrb.mxu0 %v10119_v5  ;;  %v11403_v5 = vld [vmem:[%s16300_s3 + $0x530] sm:$0xf0]  ;;  %v14591_v8 = vpop.f32.mrf.mxu2  ;;  %v4381_v18 = vadd.f32 %v14386_v61, %v4362_v54  ;;  %v14603_v7 = vpop.f32.mrf.mxu0  ;;  %v10439_v61 = vor.u32 %v11424_v43, %v10438_v10  ;;  %v11397_v15 = vld [vmem:[%s16300_s3 + $0x500] sm:$0xf0] }
 0x412   : > { %v10355_v38 = vor.u32 %v11403_v5, %v10354_v30  ;;  %v11281_v30 = vld [vmem:[%s16300_s3 + $0x160] sm:$0xf0]  ;;  %v4348_v5 = vadd.f32 %v14441_v4, %v4329_v57 }
 0x413   : > { %6223 = vmatpush.bf16.msrb.mxu1 %v10215_v27  ;;  %v10450_v27 = vld [vmem:[%s16300_s3 + $0x5e8] sm:$0xf]  ;;  %v4400_v54 = vadd.f32 %v14503_v1, %v4381_v18  ;;  %v10426_v1 = vld [vmem:[%s16300_s3 + $0x5b8] sm:$0xf] }
 0x414   : > { %v10451_v44 = vor.u32 %v11427_v23, %v10450_v27  ;;  %6086 = vmatpush.bf16.msrb.mxu2 %v10355_v38  ;;  %v9871_v27 = vor.u32 %v11281_v30, %v9870_v0  ;;  %v4436_v38 = vadd.f32 %v14499_v25, %v13148_v22  ;;  %v11421_v23 = vld [vmem:[%s16300_s3 + $0x5c0] sm:$0xf0]  ;;  %v9858_v22 = vld [vmem:[%s16300_s3 + $0x140] sm:$0xf]  ;;  %v11278_v25 = vld [vmem:[%s16300_s3 + $0x148] sm:$0xf0] }
 0x415   : > { %6205 = vmatpush.bf16.msrb.mxu0 %v10107_v40  ;;  %v9882_v40 = vld [vmem:[%s16300_s3 + $0x170] sm:$0xf] }
 0x416   : > { %6105 = vmatpush.bf16.msrb.mxu3 %v10451_v44  ;;  %v4367_v44 = vadd.f32 %v14467_v31, %v4348_v5  ;;  %v9859_v31 = vor.u32 %v11278_v25, %v9858_v22  ;;  %v10306_v5 = vld [vmem:[%s16300_s3 + $0x4c8] sm:$0xf]  ;;  %v10294_v25 = vld [vmem:[%s16300_s3 + $0x4b0] sm:$0xf] }
 0x417   : > { %6224 = vmatpush.bf16.msrb.mxu1 %v10203_v29  ;;  %v11284_v29 = vld [vmem:[%s16300_s3 + $0x178] sm:$0xf0]  ;;  %v14611_v41 = vpop.f32.mrf.mxu1 }
 0x418   : > { %v9883_v58 = vor.u32 %v11284_v29, %v9882_v40  ;;  %6087 = vmatpush.bf16.msrb.mxu2 %v10343_v59  ;;  %v14657_v40 = vadd.f32 %v14476_v26, %v4398_v34  ;;  %v14660_v29 = vadd.f32 %v14508_v48, %v4400_v54  ;;  %v11394_v26 = vld [vmem:[%s16300_s3 + $0x4e8] sm:$0xf0]  ;;  %v4455_v48 = vadd.f32 %v14501_v55, %v4436_v38  ;;  %v11275_v54 = vld [vmem:[%s16300_s3 + $0x130] sm:$0xf0]  ;;  %v11248_v38 = vld [vmem:[%s16300_s3 + $0x58] sm:$0xf0] }
 0x419   : > { %6206 = vmatpush.bf16.msrb.mxu0 %v10095_v42  ;;  %v4365_v42 = vadd.f32 %v14429_v33, %v4346_v37  ;;  %v9774_v33 = vld [vmem:[%s16300_s3 + $0x98] sm:$0xf]  ;;  %v10319_v18 = vor.u32 %v11394_v26, %v10318_v62  ;;  %v11418_v59 = vld [vmem:[%s16300_s3 + $0x5a8] sm:$0xf0]  ;;  %v4386_v10 = vadd.f32 %v14469_v35, %v4367_v44  ;;  %v10390_v62 = vld [vmem:[%s16300_s3 + $0x570] sm:$0xf] }
 0x41a   : > { %v9775_v37 = vor.u32 %v11257_v28, %v9774_v33  ;;  %6106 = vmatpush.bf16.msrb.mxu3 %v10439_v61  ;;  %6137 = vmatmul.bf16.gmra.mxu0 %v14214_v56  ;;  %v11251_v61 = vld [vmem:[%s16300_s3 + $0x70] sm:$0xf0]  ;;  %v9846_v33 = vld [vmem:[%s16300_s3 + $0x128] sm:$0xf]  ;;  %v4548_v28 = vmin.f32 %v14657_v40, 0.0  ;;  %v4550_v35 = vmin.f32 %v14660_v29, 0.0 }
 0x41b   : > { %6225 = vmatpush.bf16.msrb.mxu1 %v10191_v63  ;;  %v14601_v63 = vpop.f32.mrf.mxu3  ;;  %v9847_v30 = vor.u32 %v11275_v54, %v9846_v33  ;;  %v10378_v54 = vld [vmem:[%s16300_s3 + $0x558] sm:$0xf]  ;;  %vm4540_vm8 = vcmp.gt.f32.partialorder %v14657_v40, 0.0  ;;  %vm4542_vm10 = vcmp.gt.f32.partialorder %v14660_v29, 0.0 }
 0x41c   : > { %6156 = vmatmul.bf16.gmra.mxu1 %v14225_v50 }
 0x41d   : > { %6207 = vmatpush.bf16.msrb.mxu0 %v10083_v9  ;;  %v10330_v9 = vld [vmem:[%s16300_s3 + $0x4f8] sm:$0xf]  ;;  %v4473_v45 = vpop.f32.mrf.mxu0 }
 0x41e   : > { %v10331_v4 = vor.u32 %v11397_v15, %v10330_v9  ;;  %v4474_v0 = vadd.f32 %v4473_v45, %v4455_v48  ;;  %v10402_v9 = vld [vmem:[%s16300_s3 + $0x588] sm:$0xf] }
 0x41f   : > { %6226 = vmatpush.bf16.msrb.mxu1 %v10179_v32  ;;  %v4384_v32 = vadd.f32 %v14431_v24, %v4365_v42  ;;  %v10427_v24 = vor.u32 %v11421_v23, %v10426_v1  ;;  %v10414_v42 = vld [vmem:[%s16300_s3 + $0x5a0] sm:$0xf]  ;;  %v4492_v43 = vpop.f32.mrf.mxu1  ;;  %v11415_v1 = vld [vmem:[%s16300_s3 + $0x590] sm:$0xf0]  ;;  %v11272_v23 = vld [vmem:[%s16300_s3 + $0x118] sm:$0xf0] }
 0x420   : > { %6088 = vmatpush.bf16.msrb.mxu2 %v10331_v4  ;;  %v10415_v55 = vor.u32 %v11418_v59, %v10414_v42  ;;  %v10403_v4 = vor.u32 %v11415_v1, %v10402_v9  ;;  %v4493_v44 = vadd.f32 %v4492_v43, %v4474_v0  ;;  %v11412_v42 = vld [vmem:[%s16300_s3 + $0x578] sm:$0xf0]  ;;  %v9726_v59 = vld [vmem:[%s16300_s3 + $0x38] sm:$0xf]  ;;  %v11409_v9 = vld [vmem:[%s16300_s3 + $0x560] sm:$0xf0] }
 0x421   : > { %6276 = vmatpush.bf16.msra.mxu0 %v9787_v60  ;;  %v9763_v60 = vor.u32 %v11254_v39, %v9762_v3  ;;  %6107 = vmatpush.bf16.msrb.mxu3 %v10427_v24  ;;  %v4403_v57 = vadd.f32 %v14544_v53, %v4384_v32  ;;  %v9750_v53 = vld [vmem:[%s16300_s3 + $0x68] sm:$0xf]  ;;  %v9738_v32 = vld [vmem:[%s16300_s3 + $0x50] sm:$0xf]  ;;  %v4556_v3 = vmul.f32 1.442695, %v4548_v28  ;;  %v10391_v43 = vor.u32 %v11412_v42, %v10390_v62 }
 0x422   : > { %v9751_v34 = vor.u32 %v11251_v61, %v9750_v53  ;;  %v14727_v39 = vmul.f32 1.442695, %v4550_v35  ;;  %v11269_v53 = vld [vmem:[%s16300_s3 + $0x100] sm:$0xf0]  ;;  %v10282_v0 = vld [vmem:[%s16300_s3 + $0x498] sm:$0xf] }
 0x423   : > { %6295 = vmatpush.bf16.msra.mxu1 %v9883_v58  ;;  %v14664_v58 = vpop.f32.mrf.mxu2  ;;  %v14674_v20 = vpop.f32.mrf.mxu3  ;;  %v14709_v15 = vadd.f32 %v14550_v51, %v4403_v57  ;;  %v9739_v51 = vor.u32 %v11248_v38, %v9738_v32  ;;  %11626 = vpow2.f32 %v4556_v3  ;;  %v11266_v1 = vld [vmem:[%s16300_s3 + $0xe8] sm:$0xf0] }
 0x424   : > { %6089 = vmatpush.bf16.msrb.mxu2 %v10319_v18  ;;  %v11382_v3 = vld [vmem:[%s16300_s3 + $0x488] sm:$0xf0] }
 0x425   : > { %6277 = vmatpush.bf16.msra.mxu0 %v9775_v37  ;;  %v4438_v37 = vadd.f32 %v14540_v47, %v13182_v19  ;;  %6108 = vmatpush.bf16.msrb.mxu3 %v10415_v55  ;;  %v4405_v19 = vadd.f32 %v14603_v7, %v4386_v10  ;;  %v9834_v7 = vld [vmem:[%s16300_s3 + $0x110] sm:$0xf]  ;;  %v4552_v26 = vmin.f32 %v14709_v15, 0.0  ;;  %v4475_v45 = vpop.f32.mrf.mxu0  ;;  %v9822_v55 = vld [vmem:[%s16300_s3 + $0xf8] sm:$0xf]  ;;  %vm4544_vm12 = vcmp.gt.f32.partialorder %v14709_v15, 0.0 }
 0x426   : > { %v9835_v24 = vor.u32 %v11272_v23, %v9834_v7  ;;  %v9823_v35 = vor.u32 %v11269_v53, %v9822_v55  ;;  %v10270_v23 = vld [vmem:[%s16300_s3 + $0x480] sm:$0xf]  ;;  %v11406_v62 = vld [vmem:[%s16300_s3 + $0x548] sm:$0xf0] }
 0x427   : > { %6296 = vmatpush.bf16.msra.mxu1 %v9871_v27  ;;  %v11391_v27 = vld [vmem:[%s16300_s3 + $0x4d0] sm:$0xf0]  ;;  %v14741_v48 = vadd.f32 %v14611_v41, %v4405_v19  ;;  %v4494_v10 = vpop.f32.mrf.mxu1  ;;  %v11245_v41 = vld [vmem:[%s16300_s3 + $0x40] sm:$0xf0]  ;;  %v9714_v19 = vld [vmem:[%s16300_s3 + $0x20] sm:$0xf] }
 0x428   : > { %v10307_v47 = vor.u32 %v11391_v27, %v10306_v5  ;;  %v9727_v28 = vor.u32 %v11245_v41, %v9726_v59 }
 0x429   : > { %6278 = vmatpush.bf16.msra.mxu0 %v9763_v60  ;;  %v4457_v60 = vadd.f32 %v14542_v36, %v4438_v37  ;;  %6109 = vmatpush.bf16.msrb.mxu3 %v10403_v4  ;;  %v4441_v37 = vadd.f32 %v14591_v8, %v13211_v14  ;;  %v11242_v14 = vld [vmem:[%s16300_s3 + $0x28] sm:$0xf0]  ;;  %v9810_v8 = vld [vmem:[%s16300_s3 + $0xe0] sm:$0xf]  ;;  %vm4546_vm14 = vcmp.gt.f32.partialorder %v14741_v48, 0.0 }
 0x42a   : > { %6090 = vmatpush.bf16.msrb.mxu2 %v10307_v47  ;;  %v10379_v47 = vor.u32 %v11409_v9, %v10378_v54  ;;  %6208 = vmatmul.bf16.vlgmr.msrb.gmra.mxu0 %v14367_v13  ;;  %v9715_v4 = vor.u32 %v11242_v14, %v9714_v19 }
 0x42b   : > { %6297 = vmatpush.bf16.msra.mxu1 %v9859_v31  ;;  %v4511_v22 = vpop.f32.mrf.mxu2  ;;  %v11388_v31 = vld [vmem:[%s16300_s3 + $0x4b8] sm:$0xf0]  ;;  %v4530_v57 = vpop.f32.mrf.mxu3  ;;  %v4476_v33 = vadd.f32 %v4475_v45, %v4457_v60 }
 0x42c   : > { %v4512_v36 = vadd.f32 %v4511_v22, %v4493_v44  ;;  %v10295_v18 = vor.u32 %v11388_v31, %v10294_v25  ;;  %6227 = vmatmul.bf16.vlgmr.msrb.gmra.mxu1 %v14369_v16  ;;  %v10366_v44 = vld [vmem:[%s16300_s3 + $0x540] sm:$0xf]  ;;  %v10271_v31 = vor.u32 %v11382_v3, %v10270_v23  ;;  %v11627_v45 = vpop.eup %11626 }
 0x42d   : > { %6279 = vmatpush.bf16.msra.mxu0 %v9751_v34  ;;  %6110 = vmatpush.bf16.msrb.mxu3 %v10391_v43  ;;  %v11385_v34 = vld [vmem:[%s16300_s3 + $0x4a0] sm:$0xf0]  ;;  %v4495_v38 = vadd.f32 %v4494_v10, %v4476_v33  ;;  %v4478_v25 = vpop.f32.mrf.mxu0  ;;  %v10367_v42 = vor.u32 %v11406_v62, %v10366_v44  ;;  %v9798_v10 = vld [vmem:[%s16300_s3 + $0xc8] sm:$0xf]  ;;  %v11263_v43 = vld [vmem:[%s16300_s3 + $0xd0] sm:$0xf0] }
 0x42e   : > { %v14758_v61 = vadd.f32 %v4530_v57, %v4512_v36  ;;  %6091 = vmatpush.bf16.msrb.mxu2 %v10295_v18  ;;  %v10283_v27 = vor.u32 %v11385_v34, %v10282_v0  ;;  %v9702_v36 = vld [vmem:[%s16300_s3 + $0x8] sm:$0xf]  ;;  %v11239_v57 = vld [vmem:[%s16300_s3 + $0x10] sm:$0xf0]  ;;  %v4564_v18 = vmul.f32 1.442695, %v4552_v26  ;;  %v9799_v33 = vor.u32 %v11263_v43, %v9798_v10 }
 0x42f   : > { %6298 = vmatpush.bf16.msra.mxu1 %v9847_v30  ;;  %v4554_v30 = vmin.f32 %v14741_v48, 0.0  ;;  %v9703_v59 = vor.u32 %v11239_v57, %v9702_v36  ;;  %v11306_v26 = vld [vmem:[%s16300_s3 + $0x22c] sm:$0xf]  ;;  %v9620_v0 = vadd.f32 -1.0, %v11627_v45  ;;  %v4443_v34 = vadd.f32 %v14664_v58, %v13256_v12  ;;  %v10266_v12 = vld [vmem:[%s16300_s3 + $0x470] sm:$0xf] }
 0x430   : > { %v4549_v5 = vmin.f32 %v14758_v61, 0.0  ;;  %v11380_v58 = vld [vmem:[%s16300_s3 + $0x478] sm:$0xf0]  ;;  %vm4541_vm9 = vcmp.gt.f32.partialorder %v14758_v61, 0.0  ;;  %v10056_v23 = vld [vmem:[%s16300_s3 + $0x2dc] sm:$0xf0] }
 0x431   : > { %6280 = vmatpush.bf16.msra.mxu0 %v9739_v51  ;;  %v9811_v51 = vor.u32 %v11266_v1, %v9810_v8  ;;  %6111 = vmatpush.bf16.msrb.mxu3 %v10379_v47  ;;  %v4568_v41 = vmul.f32 1.442695, %v4554_v30  ;;  %v10170_v30 = vld [vmem:[%s16300_s3 + $0x3b0] sm:$0xf]  ;;  %v10267_v8 = vor.u32 %v11380_v58, %v10266_v12  ;;  %v11303_v1 = vld [vmem:[%s16300_s3 + $0x214] sm:$0xf]  ;;  %v4462_v3 = vadd.f32 %v14674_v20, %v4443_v34 }
 0x432   : > { %v4558_v32 = vmul.f32 1.442695, %v4549_v5  ;;  %6092 = vmatpush.bf16.msrb.mxu2 %v10283_v27  ;;  %v11356_v27 = vld [vmem:[%s16300_s3 + $0x3b8] sm:$0xf0]  ;;  %v10254_v62 = vld [vmem:[%s16300_s3 + $0x458] sm:$0xf]  ;;  %v4580_v36 = vsel %vm4540_vm8, %v14657_v40, %v9620_v0 }
 0x433   : > { %6299 = vmatpush.bf16.msra.mxu1 %v9835_v24  ;;  %v4513_v7 = vpop.f32.mrf.mxu2  ;;  %v4460_v24 = vadd.f32 %v14601_v63, %v4441_v37  ;;  %v4532_v22 = vpop.f32.mrf.mxu3  ;;  %v10068_v37 = vld [vmem:[%s16300_s3 + $0x2f4] sm:$0xf0]  ;;  %v10171_v14 = vor.u32 %v11356_v27, %v10170_v30  ;;  %v11300_v40 = vld [vmem:[%s16300_s3 + $0x1fc] sm:$0xf]  ;;  %v11297_v30 = vld [vmem:[%s16300_s3 + $0x1e4] sm:$0xf] }
 0x434   : > { %11628 = vpow2.f32 %v4558_v32  ;;  %v4514_v60 = vadd.f32 %v4513_v7, %v4495_v38  ;;  %v4497_v63 = vpop.f32.mrf.mxu1  ;;  %v9960_v32 = vld [vmem:[%s16300_s3 + $0x21c] sm:$0xf0]  ;;  %v11327_v7 = vld [vmem:[%s16300_s3 + $0x2d4] sm:$0xf]  ;;  %vm6802_vm8 = vcmask 973824  }
 0x435   : > { %6281 = vmatpush.bf16.msra.mxu0 %v9727_v28  ;;  %v4479_v53 = vadd.f32 %v4478_v25, %v4460_v24  ;;  %11630 = vpow2.f32 %v14727_v39  ;;  %6112 = vmatpush.bf16.msrb.mxu3 %v10367_v42  ;;  %v9972_v28 = vld [vmem:[%s16300_s3 + $0x234] sm:$0xf0]  ;;  %v11377_v42 = vld [vmem:[%s16300_s3 + $0x460] sm:$0xf0] }
 0x436   : > { %v14816_v55 = vadd.f32 %v4532_v22, %v4514_v60  ;;  %6093 = vmatpush.bf16.msrb.mxu2 %v10271_v31  ;;  %v9975_v54 = vor.u32 %v11306_v26, %v9972_v28  ;;  %v4480_v60 = vpop.f32.mrf.mxu0  ;;  %v10059_v22 = vor.u32 %v11327_v7, %v10056_v23  ;;  %v10158_v25 = vld [vmem:[%s16300_s3 + $0x398] sm:$0xf]  ;;  %v11353_v31 = vld [vmem:[%s16300_s3 + $0x3a0] sm:$0xf0]  ;;  %v10044_v26 = vld [vmem:[%s16300_s3 + $0x2c4] sm:$0xf0] }
 0x437   : > { %6300 = vmatpush.bf16.msra.mxu1 %v9823_v35  ;;  %v11330_v35 = vld [vmem:[%s16300_s3 + $0x2ec] sm:$0xf]  ;;  %v4498_v47 = vadd.f32 %v4497_v63, %v4479_v53  ;;  %v10159_v63 = vor.u32 %v11353_v31, %v10158_v25  ;;  %v4481_v43 = vadd.f32 %v4480_v60, %v4462_v3  ;;  %v10255_v53 = vor.u32 %v11377_v42, %v10254_v62  ;;  %v10146_v28 = vld [vmem:[%s16300_s3 + $0x380] sm:$0xf]  ;;  %v11371_v60 = vld [vmem:[%s16300_s3 + $0x430] sm:$0xf0] }
 0x438   : > { %v4551_v39 = vmin.f32 %v14816_v55, 0.0  ;;  %v10071_v5 = vor.u32 %v11330_v35, %v10068_v37  ;;  %v11350_v35 = vld [vmem:[%s16300_s3 + $0x388] sm:$0xf0]  ;;  %vm4543_vm11 = vcmp.gt.f32.partialorder %v14816_v55, 0.0  ;;  %v9924_v42 = vld [vmem:[%s16300_s3 + $0x1d4] sm:$0xf0] }
 0x439   : > { %6282 = vmatpush.bf16.msra.mxu0 %v9715_v4  ;;  %v11374_v37 = vld [vmem:[%s16300_s3 + $0x448] sm:$0xf0] }
 0x43a   : > { %v11629_v9 = vpop.eup %11628  ;;  %v4562_v19 = vmul.f32 1.442695, %v4551_v39  ;;  %6162 = vmatpush.bf16.msra.mxu2 %v9975_v54  ;;  %6181 = vmatpush.bf16.msra.mxu3 %v10071_v5  ;;  %v10147_v39 = vor.u32 %v11350_v35, %v10146_v28  ;;  %v10242_v54 = vld [vmem:[%s16300_s3 + $0x440] sm:$0xf]  ;;  %v9936_v5 = vld [vmem:[%s16300_s3 + $0x1ec] sm:$0xf0] }
 0x43b   : > { %6301 = vmatpush.bf16.msra.mxu1 %v9811_v51  ;;  %v9621_v38 = vadd.f32 -1.0, %v11629_v9  ;;  %v4516_v4 = vpop.f32.mrf.mxu2  ;;  %v9963_v51 = vor.u32 %v11303_v1, %v9960_v32  ;;  %v4535_v24 = vpop.f32.mrf.mxu3  ;;  %6213 = vmatmul.bf16.gmra.mxu0 %v14449_v17  ;;  %v10243_v9 = vor.u32 %v11374_v37, %v10242_v54  ;;  %v9939_v32 = vor.u32 %v11297_v30, %v9936_v5  ;;  %v11368_v28 = vld [vmem:[%s16300_s3 + $0x418] sm:$0xf0]  ;;  %v9912_v54 = vld [vmem:[%s16300_s3 + $0x1bc] sm:$0xf0] }
 0x43c   : > { %11632 = vpow2.f32 %v4562_v19  ;;  %v4517_v44 = vadd.f32 %v4516_v4, %v4498_v47  ;;  %v11631_v20 = vpop.eup %11630  ;;  %v4499_v45 = vpop.f32.mrf.mxu1  ;;  %6232 = vmatmul.bf16.gmra.mxu1 %v14451_v21  ;;  %v11321_v19 = vld [vmem:[%s16300_s3 + $0x2a4] sm:$0xf]  ;;  %v10032_v47 = vld [vmem:[%s16300_s3 + $0x2ac] sm:$0xf0]  ;;  %v10134_v4 = vld [vmem:[%s16300_s3 + $0x368] sm:$0xf] }
 0x43d   : > { %6283 = vmatpush.bf16.msra.mxu0 %v9703_v59  ;;  %11634 = vpow2.f32 %v4564_v18  ;;  %v4581_v57 = vsel %vm4541_vm9, %v14758_v61, %v9621_v38  ;;  %v9948_v61 = vld [vmem:[%s16300_s3 + $0x204] sm:$0xf0]  ;;  %v11324_v18 = vld [vmem:[%s16300_s3 + $0x2bc] sm:$0xf]  ;;  %v9622_v0 = vadd.f32 -1.0, %v11631_v20  ;;  %v4500_v58 = vadd.f32 %v4499_v45, %v4481_v43 }
 0x43e   : > { %v4588_v59 = vpack.c.bf16 %v4581_v57, %v4580_v36  ;;  %v14878_v10 = vadd.f32 %v4535_v24, %v4517_v44  ;;  %6163 = vmatpush.bf16.msra.mxu2 %v9963_v51  ;;  %11636 = vpow2.f32 %v4568_v41  ;;  %6182 = vmatpush.bf16.msra.mxu3 %v10059_v22  ;;  %v10047_v41 = vor.u32 %v11324_v18, %v10044_v26  ;;  %v11347_v51 = vld [vmem:[%s16300_s3 + $0x370] sm:$0xf0]  ;;  %v5981_v3 = vpop.f32.mrf.mxu0  ;;  %v10230_v24 = vld [vmem:[%s16300_s3 + $0x428] sm:$0xf]  ;;  %v10122_v18 = vld [vmem:[%s16300_s3 + $0x350] sm:$0xf] }
 0x43f   : > { %6302 = vmatpush.bf16.msra.mxu1 %v9799_v33  ;;  %v9951_v33 = vor.u32 %v11300_v40, %v9948_v61  ;;  %v10035_v38 = vor.u32 %v11321_v19, %v10032_v47  ;;  %v10135_v44 = vor.u32 %v11347_v51, %v10134_v4  ;;  %v4582_v25 = vsel %vm4542_vm10, %v14660_v29, %v9622_v0  ;;  %v11318_v29 = vld [vmem:[%s16300_s3 + $0x28c] sm:$0xf]  ;;  %v10218_v26 = vld [vmem:[%s16300_s3 + $0x410] sm:$0xf] }
 0x440   : > { %4592 = vst [vmem:[#allocation2 + $0x18] sm:$0xff] %v4588_v59  ;;  %v4553_v34 = vmin.f32 %v14878_v10, 0.0  ;;  %v10231_v20 = vor.u32 %v11371_v60, %v10230_v24  ;;  %v10020_v59 = vld [vmem:[%s16300_s3 + $0x294] sm:$0xf0]  ;;  %vm4545_vm13 = vcmp.gt.f32.partialorder %v14878_v10, 0.0  ;;  %vm6720_vm9 = vcmask 990208  }
 0x441   : > { %6352 = vmatpush.bf16.msrb.mxu0 %v10171_v14  ;;  %v10023_v61 = vor.u32 %v11318_v29, %v10020_v59  ;;  %v11362_v59 = vld [vmem:[%s16300_s3 + $0x3e8] sm:$0xf0]  ;;  %vm6761_vm10 = vcmask 982016  }
 0x442   : > { %v11633_v27 = vpop.eup %11632  ;;  %v4566_v12 = vmul.f32 1.442695, %v4553_v34  ;;  %6164 = vmatpush.bf16.msra.mxu2 %v9951_v33  ;;  %6183 = vmatpush.bf16.msra.mxu3 %v10047_v41  ;;  %v11344_v33 = vld [vmem:[%s16300_s3 + $0x358] sm:$0xf0]  ;;  %v10219_v41 = vor.u32 %v11368_v28, %v10218_v26  ;;  %v11309_v26 = vld [vmem:[%s16300_s3 + $0x244] sm:$0xf] }
 0x443   : > { %6371 = vmatpush.bf16.msrb.mxu1 %v10267_v8  ;;  %v11635_v14 = vpop.eup %11634  ;;  %v9623_v8 = vadd.f32 -1.0, %v11633_v27  ;;  %v4518_v1 = vpop.f32.mrf.mxu2  ;;  %v10123_v34 = vor.u32 %v11344_v33, %v10122_v18  ;;  %v11315_v27 = vld [vmem:[%s16300_s3 + $0x274] sm:$0xf]  ;;  %v11285_v18 = vld [vmem:[%s16300_s3 + $0x184] sm:$0xf] }
 0x444   : > { %11638 = vpow2.f32 %v4566_v12  ;;  %v4519_v7 = vadd.f32 %v4518_v1, %v4500_v58  ;;  %v4537_v23 = vpop.f32.mrf.mxu3  ;;  %v11637_v22 = vpop.eup %11636  ;;  %v9624_v43 = vadd.f32 -1.0, %v11635_v14  ;;  %v10008_v12 = vld [vmem:[%s16300_s3 + $0x27c] sm:$0xf0]  ;;  %v10110_v14 = vld [vmem:[%s16300_s3 + $0x338] sm:$0xf] }
 0x445   : > { %6353 = vmatpush.bf16.msrb.mxu0 %v10159_v63  ;;  %v4583_v31 = vsel %vm4543_vm11, %v14816_v55, %v9623_v8  ;;  %v6000_v62 = vpop.f32.mrf.mxu1  ;;  %v11294_v63 = vld [vmem:[%s16300_s3 + $0x1cc] sm:$0xf]  ;;  %v10011_v47 = vor.u32 %v11315_v27, %v10008_v12  ;;  %v11341_v8 = vld [vmem:[%s16300_s3 + $0x340] sm:$0xf0]  ;;  %v10206_v1 = vld [vmem:[%s16300_s3 + $0x3f8] sm:$0xf] }
 0x446   : > { %v4589_v36 = vpack.c.bf16 %v4583_v31, %v4582_v25  ;;  %v14937_v57 = vadd.f32 %v4537_v23, %v4519_v7  ;;  %v6001_v45 = vadd.f32 %v6000_v62, %v5981_v3  ;;  %6165 = vmatpush.bf16.msra.mxu2 %v9939_v32  ;;  %6184 = vmatpush.bf16.msra.mxu3 %v10035_v38  ;;  %v14980_v19 = vpop.f32.mrf.mxu0  ;;  %v11365_v3 = vld [vmem:[%s16300_s3 + $0x400] sm:$0xf0]  ;;  %v9996_v25 = vld [vmem:[%s16300_s3 + $0x264] sm:$0xf0]  ;;  %v10098_v31 = vld [vmem:[%s16300_s3 + $0x320] sm:$0xf] }
 0x447   : > { %6372 = vmatpush.bf16.msrb.mxu1 %v10255_v53  ;;  %v9927_v55 = vor.u32 %v11294_v63, %v9924_v42  ;;  %v14952_v53 = vadd.f32 -1.0, %v11637_v22  ;;  %v4584_v32 = vsel %vm4544_vm12, %v14709_v15, %v9624_v43  ;;  %v9654_v51 = vld [vmem:[#allocation2 + $0x18] sm:$0xf]  ;;  %v11224_v7 = vld [vmem:[#allocation2 + $0x1c] sm:$0xf]  ;;  %v10111_v23 = vor.u32 %v11341_v8, %v10110_v14 }
 0x448   : > { %4593 = vst [vmem:[#allocation2 + $0x38] sm:$0xff] %v4589_v36  ;;  %v4555_v40 = vmin.f32 %v14937_v57, 0.0  ;;  %v9900_v15 = vld [vmem:[%s16300_s3 + $0x1a4] sm:$0xf0]  ;;  %v11312_v22 = vld [vmem:[%s16300_s3 + $0x25c] sm:$0xf] }
 0x449   : > { %6354 = vmatpush.bf16.msrb.mxu0 %v10147_v39  ;;  %v11291_v39 = vld [vmem:[%s16300_s3 + $0x1b4] sm:$0xf]  ;;  %v9999_v29 = vor.u32 %v11312_v22, %v9996_v25  ;;  %v9888_v33 = vld [vmem:[%s16300_s3 + $0x18c] sm:$0xf0]  ;;  %vm4547_vm15 = vcmp.gt.f32.partialorder %v14937_v57, 0.0  ;;  %vm6638_vm11 = vcmask 1006592  }
 0x44a   : > { %v11639_v35 = vpop.eup %11638  ;;  %v4570_v0 = vmul.f32 1.442695, %v4555_v40  ;;  %6166 = vmatpush.bf16.msra.mxu2 %v9927_v55  ;;  %6185 = vmatpush.bf16.msra.mxu3 %v10023_v61  ;;  %v9915_v5 = vor.u32 %v11291_v39, %v9912_v54  ;;  %v10194_v55 = vld [vmem:[%s16300_s3 + $0x3e0] sm:$0xf]  ;;  %v10332_v25 = vld [vmem:[%s16300_s3 + $0x504] sm:$0xf0] }
 0x44b   : > { %6373 = vmatpush.bf16.msrb.mxu1 %v10243_v9  ;;  %v9625_v37 = vadd.f32 -1.0, %v11639_v35  ;;  %v6019_v30 = vpop.f32.mrf.mxu2  ;;  %v10195_v40 = vor.u32 %v11362_v59, %v10194_v55  ;;  %6284 = vmatmul.bf16.vlgmr.msra.gmra.mxu0 %v14134_v6  ;;  %vm6515_vm12 = vcmask 1031168  }
 0x44c   : > { %11640 = vpow2.f32 %v4570_v0  ;;  %v6020_v58 = vadd.f32 %v6019_v30, %v6001_v45  ;;  %v6038_v9 = vpop.f32.mrf.mxu3  ;;  %v11338_v45 = vld [vmem:[%s16300_s3 + $0x328] sm:$0xf0]  ;;  %6303 = vmatmul.bf16.vlgmr.msra.gmra.mxu1 %v14136_v2  ;;  %v9984_v0 = vld [vmem:[%s16300_s3 + $0x24c] sm:$0xf0]  ;;  %v9891_v2 = vor.u32 %v11285_v18, %v9888_v33  ;;  %v10182_v30 = vld [vmem:[%s16300_s3 + $0x3c8] sm:$0xf] }
 0x44d   : > { %6355 = vmatpush.bf16.msrb.mxu0 %v10135_v44  ;;  %v4585_v38 = vsel %vm4545_vm13, %v14878_v10, %v9625_v37  ;;  %v14997_v4 = vpop.f32.mrf.mxu1  ;;  %v11288_v44 = vld [vmem:[%s16300_s3 + $0x19c] sm:$0xf]  ;;  %v10207_v10 = vor.u32 %v11365_v3, %v10206_v1  ;;  %v10099_v43 = vor.u32 %v11338_v45, %v10098_v31  ;;  %v9987_v54 = vor.u32 %v11309_v26, %v9984_v0  ;;  %v11335_v37 = vld [vmem:[%s16300_s3 + $0x310] sm:$0xf0]  ;;  %v10452_v1 = vld [vmem:[%s16300_s3 + $0x5f4] sm:$0xf0] }
 0x44e   : > { %v4590_v24 = vpack.c.bf16 %v4585_v38, %v4584_v32  ;;  %v15008_v60 = vadd.f32 %v6038_v9, %v6020_v58  ;;  %6167 = vmatpush.bf16.msra.mxu2 %v9915_v5  ;;  %6186 = vmatpush.bf16.msra.mxu3 %v10011_v47  ;;  %v9903_v36 = vor.u32 %v11288_v44, %v9900_v15  ;;  %v5986_v6 = vpop.f32.mrf.mxu0  ;;  %v11359_v5 = vld [vmem:[%s16300_s3 + $0x3d0] sm:$0xf0]  ;;  %v11402_v58 = vld [vmem:[%s16300_s3 + $0x52c] sm:$0xf]  ;;  %v10356_v9 = vld [vmem:[%s16300_s3 + $0x534] sm:$0xf0] }
 0x44f   : > { %6374 = vmatpush.bf16.msrb.mxu1 %v10231_v20  ;;  %v11228_v62 = vld [vmem:[#allocation2 + $0x34] sm:$0xf0]  ;;  %v9656_v20 = vld [vmem:[#allocation2 + $0x38] sm:$0xf0]  ;;  %v10183_v12 = vor.u32 %v11359_v5, %v10182_v30  ;;  %v11426_v47 = vld [vmem:[%s16300_s3 + $0x5ec] sm:$0xf] }
 0x450   : > { %4594 = vst [vmem:[#allocation2 + $0x58] sm:$0xff] %v4590_v24  ;;  %v15022_v63 = vor.u32 %v11228_v62, %v9654_v51  ;;  %v15024_v42 = vor.u32 %v11224_v7, %v9656_v20  ;;  %v10455_v32 = vor.u32 %v11426_v47, %v10452_v1  ;;  %v11399_v38 = vld [vmem:[%s16300_s3 + $0x514] sm:$0xf]  ;;  %v10344_v51 = vld [vmem:[%s16300_s3 + $0x51c] sm:$0xf0]  ;;  %vm6966_vm13 = vcmask 941056  }
 0x451   : > { %6356 = vmatpush.bf16.msrb.mxu0 %v10123_v34  ;;  %v10086_v34 = vld [vmem:[%s16300_s3 + $0x308] sm:$0xf]  ;;  %v11423_v7 = vld [vmem:[%s16300_s3 + $0x5d4] sm:$0xf]  ;;  %v10347_v3 = vor.u32 %v11399_v38, %v10344_v51  ;;  %v10440_v44 = vld [vmem:[%s16300_s3 + $0x5dc] sm:$0xf0] }
 0x452   : > { %v11641_v61 = vpop.eup %11640  ;;  %6094 = vmatmul.bf16.vlgmr.msrb.gmra.mxu2 %v15022_v63  ;;  %6113 = vmatmul.bf16.vlgmr.msrb.gmra.mxu3 %v15024_v42  ;;  %v10087_v27 = vor.u32 %v11335_v37, %v10086_v34  ;;  %v10443_v24 = vor.u32 %v11423_v7, %v10440_v44  ;;  %v11420_v31 = vld [vmem:[%s16300_s3 + $0x5bc] sm:$0xf]  ;;  %v10428_v62 = vld [vmem:[%s16300_s3 + $0x5c4] sm:$0xf0]  ;;  %v11393_v18 = vld [vmem:[%s16300_s3 + $0x4e4] sm:$0xf] }
 0x453   : > { %6375 = vmatpush.bf16.msrb.mxu1 %v10219_v41  ;;  %v9627_v28 = vadd.f32 -1.0, %v11641_v61  ;;  %v15047_v35 = vpop.f32.mrf.mxu2  ;;  %v4586_v41 = vsel %vm4546_vm14, %v14741_v48, %v14952_v53  ;;  %6168 = vmatpush.bf16.msra.mxu2 %v9903_v36  ;;  %v10431_v61 = vor.u32 %v11420_v31, %v10428_v62  ;;  %v10320_v33 = vld [vmem:[%s16300_s3 + $0x4ec] sm:$0xf0]  ;;  %v11417_v26 = vld [vmem:[%s16300_s3 + $0x5a4] sm:$0xf]  ;;  %vm6925_vm14 = vcmask 949248  }
 0x454   : > { %v15059_v39 = vpop.f32.mrf.mxu3  ;;  %6187 = vmatpush.bf16.msra.mxu3 %v9999_v29  ;;  %v10323_v0 = vor.u32 %v11393_v18, %v10320_v33  ;;  %v11387_v5 = vld [vmem:[%s16300_s3 + $0x4b4] sm:$0xf]  ;;  %v10284_v47 = vld [vmem:[%s16300_s3 + $0x4a4] sm:$0xf0]  ;;  %v11381_v7 = vld [vmem:[%s16300_s3 + $0x484] sm:$0xf] }
 0x455   : > { %6357 = vmatpush.bf16.msrb.mxu0 %v10111_v23  ;;  %v4587_v48 = vsel %vm4547_vm15, %v14937_v57, %v9627_v28  ;;  %v6005_v53 = vpop.f32.mrf.mxu1  ;;  %v10359_v57 = vor.u32 %v11402_v58, %v10356_v9  ;;  %v10416_v28 = vld [vmem:[%s16300_s3 + $0x5ac] sm:$0xf0]  ;;  %v11384_v9 = vld [vmem:[%s16300_s3 + $0x49c] sm:$0xf]  ;;  %v9954_v18 = vld [vmem:[%s16300_s3 + $0x200] sm:$0xf] }
 0x456   : > { %v4591_v14 = vpack.c.bf16 %v4587_v48, %v4586_v41  ;;  %v6006_v8 = vadd.f32 %v6005_v53, %v5986_v6  ;;  %v10419_v34 = vor.u32 %v11417_v26, %v10416_v28  ;;  %v11390_v41 = vld [vmem:[%s16300_s3 + $0x4cc] sm:$0xf]  ;;  %v10308_v6 = vld [vmem:[%s16300_s3 + $0x4d4] sm:$0xf0]  ;;  %v10296_v48 = vld [vmem:[%s16300_s3 + $0x4bc] sm:$0xf0]  ;;  %v10287_v38 = vor.u32 %v11384_v9, %v10284_v47 }
 0x457   : > { %6376 = vmatpush.bf16.msrb.mxu1 %v10207_v10  ;;  %6169 = vmatpush.bf16.msra.mxu2 %v9891_v2  ;;  %v11396_v10 = vld [vmem:[%s16300_s3 + $0x4fc] sm:$0xf]  ;;  %v9686_v36 = vld [vmem:[#allocation2 + $0x58] sm:$0xf]  ;;  %v15143_v2 = vpop.f32.mrf.mxu0  ;;  %v10311_v37 = vor.u32 %v11390_v41, %v10308_v6  ;;  %v11411_v53 = vld [vmem:[%s16300_s3 + $0x574] sm:$0xf] }
 0x458   : > { %4595 = vst [vmem:[#allocation2 + $0x78] sm:$0xff] %v4591_v14  ;;  %6188 = vmatpush.bf16.msra.mxu3 %v9987_v54  ;;  %v11232_v29 = vld [vmem:[#allocation2 + $0x5c] sm:$0xf]  ;;  %v11302_v26 = vld [vmem:[%s16300_s3 + $0x208] sm:$0xf0]  ;;  %vm6597_vm15 = vcmask 1014784  }
 0x459   : > { %6358 = vmatpush.bf16.msrb.mxu0 %v10099_v43  ;;  %v11408_v14 = vld [vmem:[%s16300_s3 + $0x55c] sm:$0xf]  ;;  %v10050_v28 = vld [vmem:[%s16300_s3 + $0x2c0] sm:$0xf]  ;;  %v10026_v9 = vld [vmem:[%s16300_s3 + $0x290] sm:$0xf] }
 0x45a   : > { %v11320_v47 = vld [vmem:[%s16300_s3 + $0x298] sm:$0xf0] }
 0x45b   : > { %6377 = vmatpush.bf16.msrb.mxu1 %v10195_v40  ;;  %6238 = vmatpush.bf16.msrb.mxu2 %v10359_v57  ;;  %v6024_v23 = vpop.f32.mrf.mxu2  ;;  %v10335_v40 = vor.u32 %v11396_v10, %v10332_v25  ;;  %v10074_v10 = vld [vmem:[%s16300_s3 + $0x2f0] sm:$0xf] }
 0x45c   : > { %6257 = vmatpush.bf16.msrb.mxu3 %v10455_v32  ;;  %v6025_v15 = vadd.f32 %v6024_v23, %v6006_v8  ;;  %v6043_v22 = vpop.f32.mrf.mxu3  ;;  %6289 = vmatmul.bf16.gmra.mxu0 %v14214_v56  ;;  %v11414_v56 = vld [vmem:[%s16300_s3 + $0x58c] sm:$0xf]  ;;  %v10380_v8 = vld [vmem:[%s16300_s3 + $0x564] sm:$0xf0]  ;;  %v10272_v23 = vld [vmem:[%s16300_s3 + $0x48c] sm:$0xf0] }
 0x45d   : > { %6359 = vmatpush.bf16.msrb.mxu0 %v10087_v27  ;;  %6308 = vmatmul.bf16.gmra.mxu1 %v14225_v50  ;;  %v10404_v50 = vld [vmem:[%s16300_s3 + $0x594] sm:$0xf0]  ;;  %v15145_v54 = vpop.f32.mrf.mxu1  ;;  %v10392_v27 = vld [vmem:[%s16300_s3 + $0x57c] sm:$0xf0]  ;;  %v10383_v51 = vor.u32 %v11408_v14, %v10380_v8  ;;  %v10275_v25 = vor.u32 %v11381_v7, %v10272_v23  ;;  %v10027_v8 = vor.u32 %v11320_v47, %v10026_v9 }
 0x45e   : > { %v15109_v20 = vadd.f32 %v6043_v22, %v6025_v15  ;;  %v10407_v30 = vor.u32 %v11414_v56, %v10404_v50  ;;  %v10395_v58 = vor.u32 %v11411_v53, %v10392_v27  ;;  %v9978_v15 = vld [vmem:[%s16300_s3 + $0x230] sm:$0xf]  ;;  %v11332_v22 = vld [vmem:[%s16300_s3 + $0x2f8] sm:$0xf0]  ;;  %v11323_v53 = vld [vmem:[%s16300_s3 + $0x2b0] sm:$0xf0] }
 0x45f   : > { %6378 = vmatpush.bf16.msrb.mxu1 %v10183_v12  ;;  %6239 = vmatpush.bf16.msrb.mxu2 %v10347_v3  ;;  %v11236_v45 = vld [vmem:[#allocation2 + $0x74] sm:$0xf0]  ;;  %v9688_v55 = vld [vmem:[#allocation2 + $0x78] sm:$0xf0]  ;;  %v10299_v12 = vor.u32 %v11387_v5, %v10296_v48  ;;  %v11405_v3 = vld [vmem:[%s16300_s3 + $0x544] sm:$0xf] }
 0x460   : > { %6258 = vmatpush.bf16.msrb.mxu3 %v10443_v24  ;;  %v15111_v59 = vor.u32 %v11236_v45, %v9686_v36  ;;  %v15113_v43 = vor.u32 %v11232_v29, %v9688_v55  ;;  %v11308_v24 = vld [vmem:[%s16300_s3 + $0x238] sm:$0xf0]  ;;  %v10075_v36 = vor.u32 %v11332_v22, %v10074_v10  ;;  %v10062_v55 = vld [vmem:[%s16300_s3 + $0x2d8] sm:$0xf]  ;;  %v10038_v5 = vld [vmem:[%s16300_s3 + $0x2a8] sm:$0xf] }
 0x461   : > { %v9979_v62 = vor.u32 %v11308_v24, %v9978_v15  ;;  %v10039_v27 = vor.u32 %v11323_v53, %v10038_v5  ;;  %v9906_v7 = vld [vmem:[%s16300_s3 + $0x1a0] sm:$0xf]  ;;  %v11314_v15 = vld [vmem:[%s16300_s3 + $0x268] sm:$0xf0] }
 0x462   : > { %6099 = vmatmul.bf16.gmra.mxu2 %v15111_v59  ;;  %6118 = vmatmul.bf16.gmra.mxu3 %v15113_v43  ;;  %v11398_v5 = vld [vmem:[%s16300_s3 + $0x508] sm:$0xf0]  ;;  %v10434_v53 = vld [vmem:[%s16300_s3 + $0x5c0] sm:$0xf] }
 0x463   : > { %6240 = vmatpush.bf16.msrb.mxu2 %v10335_v40 }
 0x464   : > { %6259 = vmatpush.bf16.msrb.mxu3 %v10431_v61  ;;  %v11329_v61 = vld [vmem:[%s16300_s3 + $0x2e0] sm:$0xf0] }
 0x465   : > { %v10063_v33 = vor.u32 %v11329_v61, %v10062_v55  ;;  %v11404_v61 = vld [vmem:[%s16300_s3 + $0x538] sm:$0xf0] }
 0x467   : > { %6241 = vmatpush.bf16.msrb.mxu2 %v10323_v0  ;;  %v6057_v57 = vpop.f32.mrf.mxu0  ;;  %v6076_v1 = vpop.f32.mrf.mxu1  ;;  %v11326_v0 = vld [vmem:[%s16300_s3 + $0x2c8] sm:$0xf0] }
 0x468   : > { %6260 = vmatpush.bf16.msrb.mxu3 %v10419_v34  ;;  %v6058_v32 = vadd.f32 %v6057_v57, %v15008_v60  ;;  %v10368_v60 = vld [vmem:[%s16300_s3 + $0x54c] sm:$0xf0]  ;;  %v9955_v34 = vor.u32 %v11302_v26, %v9954_v18  ;;  %v10051_v41 = vor.u32 %v11326_v0, %v10050_v28  ;;  %v11428_v26 = vld [vmem:[%s16300_s3 + $0x5f8] sm:$0xf0] }
 0x469   : > { %v10371_v31 = vor.u32 %v11405_v3, %v10368_v60  ;;  %v11290_v3 = vld [vmem:[%s16300_s3 + $0x1a8] sm:$0xf0]  ;;  %v10002_v60 = vld [vmem:[%s16300_s3 + $0x260] sm:$0xf]  ;;  %v10458_v18 = vld [vmem:[%s16300_s3 + $0x5f0] sm:$0xf] }
 0x46a   : > { %v15184_v44 = vadd.f32 %v6076_v1, %v6058_v32  ;;  %v9918_v32 = vld [vmem:[%s16300_s3 + $0x1b8] sm:$0xf]  ;;  %v9907_v24 = vor.u32 %v11290_v3, %v9906_v7  ;;  %v10003_v10 = vor.u32 %v11314_v15, %v10002_v60  ;;  %v10459_v28 = vor.u32 %v11428_v26, %v10458_v18  ;;  %v11392_v7 = vld [vmem:[%s16300_s3 + $0x4d8] sm:$0xf0]  ;;  %v10386_v18 = vld [vmem:[%s16300_s3 + $0x560] sm:$0xf] }
 0x46b   : > { %6242 = vmatpush.bf16.msrb.mxu2 %v10311_v37  ;;  %v9942_v37 = vld [vmem:[%s16300_s3 + $0x1e8] sm:$0xf]  ;;  %v11416_v60 = vld [vmem:[%s16300_s3 + $0x598] sm:$0xf0] }
 0x46c   : > { %6261 = vmatpush.bf16.msrb.mxu3 %v10407_v30  ;;  %6360 = vmatmul.bf16.vlgmr.msrb.gmra.mxu0 %v14367_v13  ;;  %v9966_v13 = vld [vmem:[%s16300_s3 + $0x218] sm:$0xf]  ;;  %v11299_v30 = vld [vmem:[%s16300_s3 + $0x1f0] sm:$0xf0] }
 0x46d   : > { %6379 = vmatmul.bf16.vlgmr.msrb.gmra.mxu1 %v14369_v16  ;;  %v11305_v16 = vld [vmem:[%s16300_s3 + $0x220] sm:$0xf0]  ;;  %v9943_v48 = vor.u32 %v11299_v30, %v9942_v37  ;;  %v10338_v30 = vld [vmem:[%s16300_s3 + $0x500] sm:$0xf] }
 0x46e   : > { %v9967_v40 = vor.u32 %v11305_v16, %v9966_v13  ;;  %v11311_v13 = vld [vmem:[%s16300_s3 + $0x250] sm:$0xf0]  ;;  %v11425_v37 = vld [vmem:[%s16300_s3 + $0x5e0] sm:$0xf0] }
 0x46f   : > { %6243 = vmatpush.bf16.msrb.mxu2 %v10299_v12  ;;  %v15202_v45 = vpop.f32.mrf.mxu0  ;;  %v15204_v29 = vpop.f32.mrf.mxu1  ;;  %v9930_v12 = vld [vmem:[%s16300_s3 + $0x1d0] sm:$0xf] }
 0x470   : > { %6262 = vmatpush.bf16.msrb.mxu3 %v10395_v58  ;;  %v11296_v58 = vld [vmem:[%s16300_s3 + $0x1d8] sm:$0xf0] }
 0x471   : > { %v9931_v14 = vor.u32 %v11296_v58, %v9930_v12  ;;  %v10339_v12 = vor.u32 %v11398_v5, %v10338_v30  ;;  %v11407_v5 = vld [vmem:[%s16300_s3 + $0x550] sm:$0xf0] }
 0x472   : > { %6170 = vmatmul.bf16.vlgmr.msra.gmra.mxu2 %v14138_v52  ;;  %6189 = vmatmul.bf16.vlgmr.msra.gmra.mxu3 %v14150_v11 }
 0x473   : > { %6244 = vmatpush.bf16.msrb.mxu2 %v10287_v38 }
 0x474   : > { %6263 = vmatpush.bf16.msrb.mxu3 %v10383_v51  ;;  %v11317_v51 = vld [vmem:[%s16300_s3 + $0x280] sm:$0xf0] }
 0x477   : > { %6245 = vmatpush.bf16.msrb.mxu2 %v10275_v25  ;;  %v6062_v6 = vpop.f32.mrf.mxu0  ;;  %v6081_v56 = vpop.f32.mrf.mxu1 }
 0x478   : > { %6264 = vmatpush.bf16.msrb.mxu3 %v10371_v31  ;;  %v6063_v50 = vadd.f32 %v6062_v6, %v15109_v20  ;;  %v9894_v31 = vld [vmem:[%s16300_s3 + $0x188] sm:$0xf]  ;;  %v11401_v6 = vld [vmem:[%s16300_s3 + $0x520] sm:$0xf0] }
 0x47a   : > { %v15243_v20 = vadd.f32 %v6081_v56, %v6063_v50  ;;  %v10446_v56 = vld [vmem:[%s16300_s3 + $0x5d8] sm:$0xf] }
 0x47b   : > { %6314 = vmatpush.bf16.msra.mxu2 %v9979_v62  ;;  %v11287_v62 = vld [vmem:[%s16300_s3 + $0x190] sm:$0xf0] }
 0x47c   : > { %6333 = vmatpush.bf16.msra.mxu3 %v10075_v36  ;;  %6365 = vmatmul.bf16.gmra.mxu0 %v14449_v17  ;;  %v11293_v17 = vld [vmem:[%s16300_s3 + $0x1c0] sm:$0xf0]  ;;  %v9990_v36 = vld [vmem:[%s16300_s3 + $0x248] sm:$0xf]  ;;  %v9895_v16 = vor.u32 %v11287_v62, %v9894_v31  ;;  %v10302_v31 = vld [vmem:[%s16300_s3 + $0x4b8] sm:$0xf] }
 0x47d   : > { %6384 = vmatmul.bf16.gmra.mxu1 %v14451_v21  ;;  %v10014_v21 = vld [vmem:[%s16300_s3 + $0x278] sm:$0xf]  ;;  %v9919_v38 = vor.u32 %v11293_v17, %v9918_v32  ;;  %v9991_v55 = vor.u32 %v11311_v13, %v9990_v36  ;;  %v10422_v32 = vld [vmem:[%s16300_s3 + $0x5a8] sm:$0xf]  ;;  %v11389_v62 = vld [vmem:[%s16300_s3 + $0x4c0] sm:$0xf0] }
 0x47e   : > { %v10015_v23 = vor.u32 %v11317_v51, %v10014_v21  ;;  %v11419_v21 = vld [vmem:[%s16300_s3 + $0x5b0] sm:$0xf0]  ;;  %v10314_v51 = vld [vmem:[%s16300_s3 + $0x4d0] sm:$0xf]  ;;  %v10398_v36 = vld [vmem:[%s16300_s3 + $0x578] sm:$0xf]  ;;  %v10303_v13 = vor.u32 %v11389_v62, %v10302_v31 }
 0x47f   : > { %6315 = vmatpush.bf16.msra.mxu2 %v9967_v40  ;;  %v15261_v57 = vpop.f32.mrf.mxu0  ;;  %v15263_v1 = vpop.f32.mrf.mxu1  ;;  %v10362_v40 = vld [vmem:[%s16300_s3 + $0x530] sm:$0xf]  ;;  %v10315_v3 = vor.u32 %v11392_v7, %v10314_v51 }
 0x480   : > { %6334 = vmatpush.bf16.msra.mxu3 %v10063_v33  ;;  %v10363_v33 = vor.u32 %v11404_v61, %v10362_v40  ;;  %v11386_v40 = vld [vmem:[%s16300_s3 + $0x4a8] sm:$0xf0] }
 0x482   : > { %6175 = vmatmul.bf16.gmra.mxu2 %v14229_v49  ;;  %6194 = vmatmul.bf16.gmra.mxu3 %v14238_v46 }
 0x483   : > { %6316 = vmatpush.bf16.msra.mxu2 %v9955_v34 }
 0x484   : > { %6335 = vmatpush.bf16.msra.mxu3 %v10051_v41  ;;  %v10350_v41 = vld [vmem:[%s16300_s3 + $0x518] sm:$0xf] }
 0x485   : > { %v10351_v50 = vor.u32 %v11401_v6, %v10350_v41 }
 0x487   : > { %6317 = vmatpush.bf16.msra.mxu2 %v9943_v48  ;;  %v15289_v22 = vpop.f32.mrf.mxu0  ;;  %v15291_v25 = vpop.f32.mrf.mxu1  ;;  %v10447_v48 = vor.u32 %v11425_v37, %v10446_v56  ;;  %v10278_v56 = vld [vmem:[%s16300_s3 + $0x488] sm:$0xf] }
 0x488   : > { %6336 = vmatpush.bf16.msra.mxu3 %v10039_v27  ;;  %v11422_v27 = vld [vmem:[%s16300_s3 + $0x5c8] sm:$0xf0]  ;;  %v10374_v37 = vld [vmem:[%s16300_s3 + $0x548] sm:$0xf] }
 0x489   : > { %v10435_v58 = vor.u32 %v11422_v27, %v10434_v53 }
 0x48b   : > { %6318 = vmatpush.bf16.msra.mxu2 %v9931_v14  ;;  %v10326_v14 = vld [vmem:[%s16300_s3 + $0x4e8] sm:$0xf] }
 0x48c   : > { %6337 = vmatpush.bf16.msra.mxu3 %v10027_v8  ;;  %v11395_v8 = vld [vmem:[%s16300_s3 + $0x4f0] sm:$0xf0] }
 0x48d   : > { %v10327_v17 = vor.u32 %v11395_v8, %v10326_v14  ;;  %v15435_v14 = vpop.f32.mrf.mxu2  ;;  %v15437_v8 = vpop.f32.mrf.mxu3 }
 0x48f   : > { %6319 = vmatpush.bf16.msra.mxu2 %v9919_v38  ;;  %v15319_v0 = vpop.f32.mrf.mxu0  ;;  %v15321_v34 = vpop.f32.mrf.mxu1  ;;  %v10423_v38 = vor.u32 %v11419_v21, %v10422_v32 }
 0x490   : > { %6338 = vmatpush.bf16.msra.mxu3 %v10015_v23  ;;  %v10410_v23 = vld [vmem:[%s16300_s3 + $0x590] sm:$0xf] }
 0x491   : > { %v10411_v15 = vor.u32 %v11416_v60, %v10410_v23 }
 0x492   : > { %6246 = vmatmul.bf16.vlgmr.msrb.gmra.mxu2 %v15022_v63  ;;  %6265 = vmatmul.bf16.vlgmr.msrb.gmra.mxu3 %v15024_v42 }
 0x493   : > { %6320 = vmatpush.bf16.msra.mxu2 %v9907_v24 }
 0x494   : > { %6339 = vmatpush.bf16.msra.mxu3 %v10003_v10 }
 0x497   : > { %6321 = vmatpush.bf16.msra.mxu2 %v9895_v16  ;;  %v15347_v9 = vpop.f32.mrf.mxu0  ;;  %v11413_v16 = vld [vmem:[%s16300_s3 + $0x580] sm:$0xf0] }
 0x498   : > { %6340 = vmatpush.bf16.msra.mxu3 %v9991_v55  ;;  %v10290_v55 = vld [vmem:[%s16300_s3 + $0x4a0] sm:$0xf]  ;;  %v10399_v61 = vor.u32 %v11413_v16, %v10398_v36 }
 0x499   : > { %v15349_v47 = vpop.f32.mrf.mxu1  ;;  %v10291_v26 = vor.u32 %v11386_v40, %v10290_v55 }
 0x49b   : > { %6390 = vmatpush.bf16.msrb.mxu2 %v10363_v33  ;;  %v11410_v33 = vld [vmem:[%s16300_s3 + $0x568] sm:$0xf0] }
 0x49c   : > { %6409 = vmatpush.bf16.msrb.mxu3 %v10459_v28  ;;  %v10387_v28 = vor.u32 %v11410_v33, %v10386_v18 }
 0x49f   : > { %6391 = vmatpush.bf16.msrb.mxu2 %v10351_v50  ;;  %v15377_v24 = vpop.f32.mrf.mxu0  ;;  %v11383_v50 = vld [vmem:[%s16300_s3 + $0x490] sm:$0xf0] }
 0x4a0   : > { %6410 = vmatpush.bf16.msrb.mxu3 %v10447_v48  ;;  %v10279_v30 = vor.u32 %v11383_v50, %v10278_v56  ;;  %v10375_v48 = vor.u32 %v11407_v5, %v10374_v37  ;;  %v6155_v5 = vadd.f32 %v15321_v34, %v15319_v0 }
 0x4a1   : > { %v15379_v10 = vpop.f32.mrf.mxu1 }
 0x4a2   : > { %6251 = vmatmul.bf16.gmra.mxu2 %v15111_v59  ;;  %6270 = vmatmul.bf16.gmra.mxu3 %v15113_v43 }
 0x4a3   : > { %6392 = vmatpush.bf16.msrb.mxu2 %v10339_v12 }
 0x4a4   : > { %6411 = vmatpush.bf16.msrb.mxu3 %v10435_v58 }
 0x4a7   : > { %6393 = vmatpush.bf16.msrb.mxu2 %v10327_v17  ;;  %v15405_v41 = vpop.f32.mrf.mxu0 }
 0x4a8   : > { %6412 = vmatpush.bf16.msrb.mxu3 %v10423_v38 }
 0x4a9   : > { %v15407_v6 = vpop.f32.mrf.mxu1 }
 0x4ab   : > { %6394 = vmatpush.bf16.msrb.mxu2 %v10315_v3 }
 0x4ac   : > { %6413 = vmatpush.bf16.msrb.mxu3 %v10411_v15 }
 0x4af   : > { %6395 = vmatpush.bf16.msrb.mxu2 %v10303_v13  ;;  %v6211_v53 = vpop.f32.mrf.mxu0 }
 0x4b0   : > { %6414 = vmatpush.bf16.msrb.mxu3 %v10399_v61 }
 0x4b1   : > { %v15423_v27 = vpop.f32.mrf.mxu1 }
 0x4b2   : > { %6322 = vmatmul.bf16.vlgmr.msra.gmra.mxu2 %v14138_v52  ;;  %6341 = vmatmul.bf16.vlgmr.msra.gmra.mxu3 %v14150_v11 }
 0x4b3   : > { %6396 = vmatpush.bf16.msrb.mxu2 %v10291_v26 }
 0x4b4   : > { %6415 = vmatpush.bf16.msrb.mxu3 %v10387_v28  ;;  %v6153_v28 = vadd.f32 %v15291_v25, %v15289_v22 }
 0x4b7   : > { %6397 = vmatpush.bf16.msrb.mxu2 %v10279_v30  ;;  %v6003_v30 = vadd.f32 %v14997_v4, %v14980_v19  ;;  %v6158_v19 = vadd.f32 %v15349_v47, %v15347_v9  ;;  %v6008_v9 = vadd.f32 %v15145_v54, %v15143_v2 }
 0x4b8   : > { %6416 = vmatpush.bf16.msrb.mxu3 %v10375_v48  ;;  %v15425_v12 = vpop.f32.mrf.mxu0 }
 0x4b9   : > { %v15427_v58 = vpop.f32.mrf.mxu1  ;;  %v6022_v48 = vadd.f32 %v15047_v35, %v6003_v30 }
 0x4c0   : > { %v15431_v52 = vpop.f32.mrf.mxu0 }
 0x4c1   : > { %v15433_v11 = vpop.f32.mrf.mxu1 }
 0x4c2   : > { %6327 = vmatmul.bf16.gmra.mxu2 %v14229_v49  ;;  %6346 = vmatmul.bf16.gmra.mxu3 %v14238_v46 }
 0x4c8   : > { %v15439_v32 = vpop.f32.mrf.mxu0 }
 0x4c9   : > { %v15441_v17 = vpop.f32.mrf.mxu1 }
 0x4d0   : > { %v15446_v51 = vpop.f32.mrf.mxu0 }
 0x4d1   : > { %v15448_v7 = vpop.f32.mrf.mxu1 }
 0x4d2   : > { %6398 = vmatmul.bf16.vlgmr.msrb.gmra.mxu2 %v15022_v63  ;;  %6417 = vmatmul.bf16.vlgmr.msrb.gmra.mxu3 %v15024_v42 }
 0x4d5   : > { %v6095_v21 = vpop.f32.mrf.mxu2  ;;  %v6114_v49 = vpop.f32.mrf.mxu3 }
 0x4d6   : > { %v6096_v46 = vadd.f32 %v6095_v21, %v15184_v44 }
 0x4d8   : > { %v6115_v38 = vadd.f32 %v6114_v49, %v6096_v46  ;;  %v6041_v46 = vadd.f32 %v15059_v39, %v6022_v48 }
 0x4d9   : > { %v6290_v60 = vpop.f32.mrf.mxu0 }
 0x4da   : > { %v6309_v15 = vpop.f32.mrf.mxu1 }
 0x4db   : > { %v15450_v31 = vadd.f32 %v6309_v15, %v6290_v60 }
 0x4dd   : > { %v6097_v23 = vpop.f32.mrf.mxu2  ;;  %v6116_v3 = vpop.f32.mrf.mxu3 }
 0x4e1   : > { %v6292_v36 = vpop.f32.mrf.mxu0 }
 0x4e2   : > { %6403 = vmatmul.bf16.gmra.mxu2 %v15111_v59  ;;  %6422 = vmatmul.bf16.gmra.mxu3 %v15113_v43  ;;  %v6311_v13 = vpop.f32.mrf.mxu1 }
 0x4e3   : > { %v15457_v16 = vadd.f32 %v6311_v13, %v6292_v36 }
 0x4e5   : > { %v6100_v63 = vpop.f32.mrf.mxu2  ;;  %v6119_v42 = vpop.f32.mrf.mxu3 }
 0x4e6   : > { %v6101_v62 = vadd.f32 %v6100_v63, %v15243_v20  ;;  %v6060_v63 = vadd.f32 %v15202_v45, %v6041_v46 }
 0x4e8   : > { %v15455_v44 = vadd.f32 %v6119_v42, %v6101_v62  ;;  %v6079_v35 = vadd.f32 %v15204_v29, %v6060_v63 }
 0x4ea   : > { %v6098_v62 = vadd.f32 %v6097_v23, %v6079_v35 }
 0x4ec   : > { %v6117_v23 = vadd.f32 %v6116_v3, %v6098_v62  ;;  %v6361_v62 = vpop.f32.mrf.mxu0 }
 0x4ed   : > { %v15459_v55 = vpop.f32.mrf.mxu2  ;;  %v15461_v40 = vpop.f32.mrf.mxu3 }
 0x4f5   : > { %v6171_v61 = vpop.f32.mrf.mxu2  ;;  %v6190_v18 = vpop.f32.mrf.mxu3 }
 0x4f6   : > { %v6172_v20 = vadd.f32 %v6171_v61, %v6153_v28 }
 0x4f8   : > { %v6191_v56 = vadd.f32 %v6190_v18, %v6172_v20 }
 0x4fa   : > { %v6210_v21 = vadd.f32 %v15405_v41, %v6191_v56 }
 0x4fc   : > { %v6229_v22 = vadd.f32 %v15407_v6, %v6210_v21  ;;  %v6160_v6 = vadd.f32 %v15379_v10, %v15377_v24 }
 0x4fd   : > { %v6173_v33 = vpop.f32.mrf.mxu2  ;;  %v6192_v59 = vpop.f32.mrf.mxu3 }
 0x4fe   : > { %v6174_v49 = vadd.f32 %v6173_v33, %v6155_v5 }
 0x500   : > { %v6193_v60 = vadd.f32 %v6192_v59, %v6174_v49 }
 0x502   : > { %v6212_v42 = vadd.f32 %v6211_v53, %v6193_v60 }
 0x504   : > { %v6231_v45 = vadd.f32 %v15423_v27, %v6212_v42 }
 0x505   : > { %v6176_v26 = vpop.f32.mrf.mxu2  ;;  %v6195_v43 = vpop.f32.mrf.mxu3 }
 0x506   : > { %v6177_v0 = vadd.f32 %v6176_v26, %v6158_v19 }
 0x508   : > { %v6196_v39 = vadd.f32 %v6195_v43, %v6177_v0 }
 0x50a   : > { %v6215_v36 = vadd.f32 %v15425_v12, %v6196_v39 }
 0x50c   : > { %v6234_v24 = vadd.f32 %v15427_v58, %v6215_v36 }
 0x50d   : > { %v6178_v50 = vpop.f32.mrf.mxu2  ;;  %v6197_v37 = vpop.f32.mrf.mxu3 }
 0x50e   : > { %v6179_v13 = vadd.f32 %v6178_v50, %v6160_v6 }
 0x510   : > { %v6198_v54 = vadd.f32 %v6197_v37, %v6179_v13 }
 0x512   : > { %v6217_v3 = vadd.f32 %v15431_v52, %v6198_v54 }
 0x515   : > { %v6247_v25 = vpop.f32.mrf.mxu2  ;;  %v6266_v15 = vpop.f32.mrf.mxu3 }
 0x516   : > { %v6248_v4 = vadd.f32 %v6247_v25, %v6229_v22 }
 0x518   : > { %v6267_v34 = vadd.f32 %v6266_v15, %v6248_v4  ;;  %v6305_v4 = vadd.f32 %v15441_v17, %v15439_v32  ;;  %v6380_v17 = vpop.f32.mrf.mxu1 }
 0x51a   : > { %v15477_v41 = vpack.c.bf16 %v6267_v34, %v6115_v38  ;;  %v6027_v38 = vadd.f32 %v15435_v14, %v6008_v9 }
 0x51c   : > { %6432 = vst [vmem:[#allocation3] sm:$0xff] %v15477_v41  ;;  %7023 = vrot.lane.b32.xlu1 %v15477_v41, %s11683_s23  ;;  %6531 = vrot.lane.b32.xlu0 %v15477_v41, %s11684_s29  ;;  %v6046_v2 = vadd.f32 %v15437_v8, %v6027_v38 }
 0x51d   : > { %6859 = vrot.lane.b32.xlu2 %v15477_v41, %s11685_s30  ;;  %v6249_v29 = vpop.f32.mrf.mxu2  ;;  %v6268_v47 = vpop.f32.mrf.mxu3 }
 0x51e   : > { %v6250_v53 = vadd.f32 %v6249_v29, %v6231_v45  ;;  %v6065_v14 = vadd.f32 %v15261_v57, %v6046_v2  ;;  %v6236_v57 = vadd.f32 %v15433_v11, %v6217_v3 }
 0x520   : > { %v6269_v27 = vadd.f32 %v6268_v47, %v6250_v53  ;;  %v6084_v33 = vadd.f32 %v15263_v1, %v6065_v14 }
 0x522   : > { %v15493_v61 = vpack.c.bf16 %v6269_v27, %v6117_v23  ;;  %v6103_v26 = vadd.f32 %v15459_v55, %v6084_v33  ;;  %v6382_v33 = vpop.f32.mrf.mxu1 }
 0x524   : > { %6433 = vst [vmem:[#allocation3 + $0x8] sm:$0xff] %v15493_v61  ;;  %6818 = vrot.lane.b32.xlu1 %v15477_v41, %s11686_s19  ;;  %6982 = vrot.lane.b32.xlu0 %v15477_v41, %s11687_s10 }
 0x525   : > { %6695 = vrot.lane.b32.xlu2 %v15477_v41, %s11688_s11  ;;  %v6252_v10 = vpop.f32.mrf.mxu2  ;;  %v6271_v12 = vpop.f32.mrf.mxu3 }
 0x526   : > { %v6253_v8 = vadd.f32 %v6252_v10, %v6234_v24  ;;  %v6307_v10 = vadd.f32 %v15448_v7, %v15446_v51  ;;  %v6363_v51 = vpop.f32.mrf.mxu0 }
 0x528   : > { %v6272_v18 = vadd.f32 %v6271_v12, %v6253_v8 }
 0x52a   : > { %v15508_v59 = vpack.c.bf16 %v6272_v18, %v15455_v44  ;;  %v6122_v44 = vadd.f32 %v15461_v40, %v6103_v26 }
 0x52c   : > { %6434 = vst [vmem:[#allocation3 + $0x10] sm:$0xff] %v15508_v59  ;;  %6654 = vrot.lane.b32.xlu1 %v15477_v41, %s11689_s12  ;;  %6777 = vrot.lane.b32.xlu0 %v15477_v41, %s11690_s13 }
 0x52d   : > { %6490 = vrot.lane.b32.xlu2 %v15477_v41, %s11691_s14  ;;  %v6254_v1 = vpop.f32.mrf.mxu2  ;;  %v6273_v58 = vpop.f32.mrf.mxu3 }
 0x52e   : > { %v6255_v52 = vadd.f32 %v6254_v1, %v6236_v57 }
 0x530   : > { %v6274_v55 = vadd.f32 %v6273_v58, %v6255_v52 }
 0x532   : > { %v15520_v43 = vpack.c.bf16 %v6274_v55, %v6122_v44 }
 0x534   : > { %6435 = vst [vmem:[#allocation3 + $0x18] sm:$0xff] %v15520_v43  ;;  %6448 = vrot.lane.b32.xlu1 %v15477_v41, %s11692_s15  ;;  %6613 = vrot.lane.b32.xlu0 %v15477_v41, %s11693_s16 }
 0x535   : > { %6941 = vrot.lane.b32.xlu2 %v15477_v41, %s11694_s18  ;;  %v6323_v11 = vpop.f32.mrf.mxu2  ;;  %v15529_v28 = vpop.f32.mrf.mxu3 }
 0x536   : > { %v6324_v42 = vadd.f32 %v6323_v11, %v6305_v4 }
 0x53c   : > { %6736 = vrot.lane.b32.xlu1 %v15477_v41, %s11695_s20  ;;  %6572 = vrot.lane.b32.xlu0 %v15477_v41, %s11696_s21 }
 0x53d   : > { %6900 = vrot.lane.b32.xlu2 %v15477_v41, %s11697_s22  ;;  %v15537_v40 = vpop.f32.mrf.mxu2  ;;  %v15539_v20 = vpop.f32.mrf.mxu3  ;;  %v6343_v41 = vadd.f32 %v15529_v28, %v6324_v42 }
 0x53e   : > { %v6326_v12 = vadd.f32 %v15537_v40, %v6307_v10 }
 0x53f   : > { %v6362_v32 = vadd.f32 %v6361_v62, %v6343_v41  ;;  %v6366_v41 = vpop.f32.mrf.mxu0 }
 0x540   : > { %v6345_v18 = vadd.f32 %v15539_v20, %v6326_v12 }
 0x541   : > { %v6381_v47 = vadd.f32 %v6380_v17, %v6362_v32  ;;  %v6385_v32 = vpop.f32.mrf.mxu1 }
 0x542   : > { %v6364_v7 = vadd.f32 %v6363_v51, %v6345_v18 }
 0x544   : > { %6863 = vrot.lane.b32.xlu1 %v15493_v61, %s11685_s30  ;;  %7027 = vrot.lane.b32.xlu0 %v15493_v61, %s11683_s23  ;;  %v6383_v58 = vadd.f32 %v6382_v33, %v6364_v7 }
 0x545   : > { %6535 = vrot.lane.b32.xlu2 %v15493_v61, %s11684_s29  ;;  %v6328_v56 = vpop.f32.mrf.mxu2  ;;  %v6347_v50 = vpop.f32.mrf.mxu3 }
 0x546   : > { %v6329_v37 = vadd.f32 %v6328_v56, %v15450_v31 }
 0x548   : > { %v15548_v30 = vadd.f32 %v6347_v50, %v6329_v37 }
 0x54a   : > { %v6367_v62 = vadd.f32 %v6366_v41, %v15548_v30 }
 0x54c   : > { %6699 = vrot.lane.b32.xlu1 %v15493_v61, %s11688_s11  ;;  %6822 = vrot.lane.b32.xlu0 %v15493_v61, %s11686_s19 }
 0x54d   : > { %6986 = vrot.lane.b32.xlu2 %v15493_v61, %s11687_s10  ;;  %v6330_v5 = vpop.f32.mrf.mxu2  ;;  %v6349_v21 = vpop.f32.mrf.mxu3 }
 0x54e   : > { %v6331_v48 = vadd.f32 %v6330_v5, %v15457_v16 }
 0x550   : > { %v15557_v49 = vadd.f32 %v6349_v21, %v6331_v48 }
 0x554   : > { %6494 = vrot.lane.b32.xlu1 %v15493_v61, %s11691_s14  ;;  %6658 = vrot.lane.b32.xlu0 %v15493_v61, %s11689_s12 }
 0x555   : > { %6781 = vrot.lane.b32.xlu2 %v15493_v61, %s11690_s13  ;;  %v6399_v9 = vpop.f32.mrf.mxu2  ;;  %v6418_v53 = vpop.f32.mrf.mxu3 }
 0x556   : > { %v6400_v6 = vadd.f32 %v6399_v9, %v6381_v47 }
 0x558   : > { %v6419_v38 = vadd.f32 %v6418_v53, %v6400_v6  ;;  %v6386_v53 = vadd.f32 %v6385_v32, %v6367_v62 }
 0x55a   : > { %v15670_v27 = vpack.c.bf16 %v6419_v38, %v6419_v38 }
 0x55c   : > { %6945 = vrot.lane.b32.xlu1 %v15493_v61, %s11694_s18  ;;  %6452 = vrot.lane.b32.xlu0 %v15493_v61, %s11692_s15 }
 0x55d   : > { %6617 = vrot.lane.b32.xlu2 %v15493_v61, %s11693_s16  ;;  %v6401_v57 = vpop.f32.mrf.mxu2  ;;  %v6420_v44 = vpop.f32.mrf.mxu3 }
 0x55e   : > { %v6402_v52 = vadd.f32 %v6401_v57, %v6383_v58 }
 0x560   : > { %v6421_v55 = vadd.f32 %v6420_v44, %v6402_v52 }
 0x562   : > { %v15724_v40 = vpack.c.bf16 %v6421_v55, %v6421_v55 }
 0x564   : > { %6904 = vrot.lane.b32.xlu1 %v15493_v61, %s11697_s22  ;;  %6740 = vrot.lane.b32.xlu0 %v15493_v61, %s11695_s20 }
 0x565   : > { %6867 = vrot.lane.b32.xlu2 %v15508_v59, %s11685_s30  ;;  %v6404_v47 = vpop.f32.mrf.mxu2  ;;  %v6423_v30 = vpop.f32.mrf.mxu3 }
 0x566   : > { %v6405_v38 = vadd.f32 %v6404_v47, %v6386_v53  ;;  %v6368_v47 = vpop.f32.mrf.mxu0 }
 0x567   : > { %v6369_v53 = vadd.f32 %v6368_v47, %v15557_v49 }
 0x568   : > { %v6424_v10 = vadd.f32 %v6423_v30, %v6405_v38  ;;  %v6387_v38 = vpop.f32.mrf.mxu1 }
 0x56a   : > { %v15787_v7 = vpack.c.bf16 %v6424_v10, %v6424_v10 }
 0x56c   : > { %6703 = vrot.lane.b32.xlu1 %v15508_v59, %s11688_s11  ;;  %7031 = vrot.lane.b32.xlu0 %v15508_v59, %s11683_s23 }
 0x56d   : > { %6539 = vrot.lane.b32.xlu2 %v15508_v59, %s11684_s29 }
 0x574   : > { %6498 = vrot.lane.b32.xlu1 %v15508_v59, %s11691_s14  ;;  %6826 = vrot.lane.b32.xlu0 %v15508_v59, %s11686_s19 }
 0x575   : > { %6990 = vrot.lane.b32.xlu2 %v15508_v59, %s11687_s10 }
 0x577   : > { %v15589_v31 = vpop.permute.xlu2 %6859 }
 0x57c   : > { %6949 = vrot.lane.b32.xlu1 %v15508_v59, %s11694_s18  ;;  %6662 = vrot.lane.b32.xlu0 %v15508_v59, %s11689_s12 }
 0x57d   : > { %6785 = vrot.lane.b32.xlu2 %v15508_v59, %s11690_s13 }
 0x57f   : > { %v15597_v16 = vpop.permute.xlu2 %6695 }
 0x584   : > { %6744 = vrot.lane.b32.xlu1 %v15508_v59, %s11695_s20  ;;  %6456 = vrot.lane.b32.xlu0 %v15508_v59, %s11692_s15 }
 0x585   : > { %6621 = vrot.lane.b32.xlu2 %v15508_v59, %s11693_s16 }
 0x587   : > { %v15605_v46 = vpop.permute.xlu2 %6490 }
 0x58c   : > { %6543 = vrot.lane.b32.xlu1 %v15520_v43, %s11684_s29  ;;  %6580 = vrot.lane.b32.xlu0 %v15508_v59, %s11696_s21 }
 0x58d   : > { %6908 = vrot.lane.b32.xlu2 %v15508_v59, %s11697_s22 }
 0x58e   : > { %v15613_v60 = vpop.permute.xlu1 %7023  ;;  %v15615_v22 = vpop.permute.xlu0 %6531 }
 0x58f   : > { %v15617_v25 = vpop.permute.xlu2 %6941  ;;  %v7039_v49 = vrot.slane %v15613_v60, 4 }
 0x594   : > { %6994 = vrot.lane.b32.xlu1 %v15520_v43, %s11687_s10  ;;  %6871 = vrot.lane.b32.xlu0 %v15520_v43, %s11685_s30 }
 0x595   : > { %7035 = vrot.lane.b32.xlu2 %v15520_v43, %s11683_s23 }
 0x596   : > { %v15625_v15 = vpop.permute.xlu1 %6818  ;;  %v15627_v63 = vpop.permute.xlu0 %6982 }
 0x597   : > { %v15629_v19 = vpop.permute.xlu2 %6900 }
 0x59c   : > { %6789 = vrot.lane.b32.xlu1 %v15520_v43, %s11690_s13  ;;  %6707 = vrot.lane.b32.xlu0 %v15520_v43, %s11688_s11 }
 0x59d   : > { %6830 = vrot.lane.b32.xlu2 %v15520_v43, %s11686_s19 }
 0x59e   : > { %v15639_v0 = vpop.permute.xlu1 %6654  ;;  %v15641_v34 = vpop.permute.xlu0 %6777 }
 0x59f   : > { %v15643_v35 = vpop.permute.xlu2 %6535 }
 0x5a4   : > { %6625 = vrot.lane.b32.xlu1 %v15520_v43, %s11693_s16  ;;  %6502 = vrot.lane.b32.xlu0 %v15520_v43, %s11691_s14 }
 0x5a5   : > { %6666 = vrot.lane.b32.xlu2 %v15520_v43, %s11689_s12 }
 0x5a6   : > { %v15652_v39 = vpop.permute.xlu1 %6448  ;;  %v15654_v45 = vpop.permute.xlu0 %6613 }
 0x5a7   : > { %v15656_v29 = vpop.permute.xlu2 %6986 }
 0x5ac   : > { %6912 = vrot.lane.b32.xlu1 %v15520_v43, %s11697_s22  ;;  %6953 = vrot.lane.b32.xlu0 %v15520_v43, %s11694_s18 }
 0x5ad   : > { %6460 = vrot.lane.b32.xlu2 %v15520_v43, %s11692_s15 }
 0x5ae   : > { %v15664_v23 = vpop.permute.xlu1 %6736  ;;  %v15666_v36 = vpop.permute.xlu0 %6572 }
 0x5af   : > { %16319 = vst [vmem:[#allocation6_spill] sm:$0xff] %v15666_v36  ;;  %v15668_v13 = vpop.permute.xlu2 %6781  ;;  %v6406_v36 = vpop.f32.mrf.mxu2 }
 0x5b4   : > { %6533 = vrot.lane.b32.xlu1 %v15670_v27, %s11684_s29  ;;  %6748 = vrot.lane.b32.xlu0 %v15520_v43, %s11695_s20 }
 0x5b5   : > { %6584 = vrot.lane.b32.xlu2 %v15520_v43, %s11696_s21 }
 0x5b6   : > { %v15678_v2 = vpop.permute.xlu1 %6863  ;;  %v15680_v54 = vpop.permute.xlu0 %7027 }
 0x5b7   : > { %v15682_v24 = vpop.permute.xlu2 %6617 }
 0x5bc   : > { %6984 = vrot.lane.b32.xlu1 %v15670_v27, %s11687_s10  ;;  %6861 = vrot.lane.b32.xlu0 %v15670_v27, %s11685_s30 }
 0x5bd   : > { %7025 = vrot.lane.b32.xlu2 %v15670_v27, %s11683_s23 }
 0x5be   : > { %v15693_v14 = vpop.permute.xlu1 %6699  ;;  %v15695_v8 = vpop.permute.xlu0 %6822 }
 0x5bf   : > { %v15697_v3 = vpop.permute.xlu2 %6867 }
 0x5c4   : > { %6779 = vrot.lane.b32.xlu1 %v15670_v27, %s11690_s13  ;;  %6697 = vrot.lane.b32.xlu0 %v15670_v27, %s11688_s11 }
 0x5c5   : > { %6820 = vrot.lane.b32.xlu2 %v15670_v27, %s11686_s19 }
 0x5c6   : > { %v15706_v59 = vpop.permute.xlu1 %6494  ;;  %v15708_v26 = vpop.permute.xlu0 %6658 }
 0x5c7   : > { %v15710_v1 = vpop.permute.xlu2 %6539 }
 0x5cc   : > { %6615 = vrot.lane.b32.xlu1 %v15670_v27, %s11693_s16  ;;  %6492 = vrot.lane.b32.xlu0 %v15670_v27, %s11691_s14 }
 0x5cd   : > { %6656 = vrot.lane.b32.xlu2 %v15670_v27, %s11689_s12 }
 0x5ce   : > { %v15718_v43 = vpop.permute.xlu1 %6945  ;;  %v15720_v11 = vpop.permute.xlu0 %6452 }
 0x5cf   : > { %v15722_v28 = vpop.permute.xlu2 %6990 }
 0x5d4   : > { %7029 = vrot.lane.b32.xlu1 %v15724_v40, %s11683_s23  ;;  %6943 = vrot.lane.b32.xlu0 %v15670_v27, %s11694_s18 }
 0x5d5   : > { %6450 = vrot.lane.b32.xlu2 %v15670_v27, %s11692_s15 }
 0x5d6   : > { %v15732_v20 = vpop.permute.xlu1 %6904  ;;  %v15734_v56 = vpop.permute.xlu0 %6740 }
 0x5d7   : > { %v15736_v50 = vpop.permute.xlu2 %6785 }
 0x5dc   : > { %6824 = vrot.lane.b32.xlu1 %v15724_v40, %s11686_s19  ;;  %6902 = vrot.lane.b32.xlu0 %v15670_v27, %s11697_s22 }
 0x5dd   : > { %6738 = vrot.lane.b32.xlu2 %v15670_v27, %s11695_s20 }
 0x5de   : > { %v15744_v37 = vpop.permute.xlu1 %6703  ;;  %v15746_v5 = vpop.permute.xlu0 %7031 }
 0x5df   : > { %v15748_v48 = vpop.permute.xlu2 %6621 }
 0x5e4   : > { %6660 = vrot.lane.b32.xlu1 %v15724_v40, %s11689_s12  ;;  %6537 = vrot.lane.b32.xlu0 %v15724_v40, %s11684_s29 }
 0x5e5   : > { %6865 = vrot.lane.b32.xlu2 %v15724_v40, %s11685_s30 }
 0x5e6   : > { %v15756_v21 = vpop.permute.xlu1 %6498  ;;  %v15758_v4 = vpop.permute.xlu0 %6826 }
 0x5e7   : > { %v15760_v42 = vpop.permute.xlu2 %6908 }
 0x5ec   : > { %6454 = vrot.lane.b32.xlu1 %v15724_v40, %s11692_s15  ;;  %6988 = vrot.lane.b32.xlu0 %v15724_v40, %s11687_s10 }
 0x5ed   : > { %6701 = vrot.lane.b32.xlu2 %v15724_v40, %s11688_s11 }
 0x5ee   : > { %v15769_v17 = vpop.permute.xlu1 %6949  ;;  %v15771_v9 = vpop.permute.xlu0 %6662 }
 0x5ef   : > { %v15773_v6 = vpop.permute.xlu2 %7035 }
 0x5f4   : > { %6742 = vrot.lane.b32.xlu1 %v15724_v40, %s11695_s20  ;;  %6783 = vrot.lane.b32.xlu0 %v15724_v40, %s11690_s13 }
 0x5f5   : > { %6496 = vrot.lane.b32.xlu2 %v15724_v40, %s11691_s14 }
 0x5f6   : > { %v15781_v12 = vpop.permute.xlu1 %6744  ;;  %v15783_v18 = vpop.permute.xlu0 %6456 }
 0x5f7   : > { %v15785_v51 = vpop.permute.xlu2 %6830 }
 0x5f8   : > { %16320 = vst [vmem:[#allocation7_spill] sm:$0xff] %v15785_v51 }
 0x5fc   : > { %7033 = vrot.lane.b32.xlu1 %v15787_v7, %s11683_s23  ;;  %6619 = vrot.lane.b32.xlu0 %v15724_v40, %s11693_s16 }
 0x5fd   : > { %6947 = vrot.lane.b32.xlu2 %v15724_v40, %s11694_s18 }
 0x5fe   : > { %v15795_v33 = vpop.permute.xlu1 %6543  ;;  %v15797_v57 = vpop.permute.xlu0 %6580 }
 0x5ff   : > { %v15799_v58 = vpop.permute.xlu2 %6666 }
 0x600   : > { %16321 = vst [vmem:[#allocation8_spill] sm:$0xff] %v15799_v58 }
 0x604   : > { %6828 = vrot.lane.b32.xlu1 %v15787_v7, %s11686_s19  ;;  %6541 = vrot.lane.b32.xlu0 %v15787_v7, %s11684_s29 }
 0x605   : > { %6906 = vrot.lane.b32.xlu2 %v15724_v40, %s11697_s22 }
 0x606   : > { %v15807_v52 = vpop.permute.xlu1 %6994  ;;  %v15809_v44 = vpop.permute.xlu0 %6871 }
 0x607   : > { %v15811_v55 = vpop.permute.xlu2 %6460 }
 0x608   : > { %16322 = vst [vmem:[#allocation9_spill] sm:$0xff] %v15811_v55  ;;  %v6388_v55 = vadd.f32 %v6387_v38, %v6369_v53 }
 0x60a   : > { %v6407_v58 = vadd.f32 %v6406_v36, %v6388_v55 }
 0x60c   : > { %6664 = vrot.lane.b32.xlu1 %v15787_v7, %s11689_s12  ;;  %6992 = vrot.lane.b32.xlu0 %v15787_v7, %s11687_s10 }
 0x60d   : > { %6869 = vrot.lane.b32.xlu2 %v15787_v7, %s11685_s30 }
 0x60e   : > { %v15819_v41 = vpop.permute.xlu1 %6789  ;;  %v15821_v62 = vpop.permute.xlu0 %6707 }
 0x60f   : > { %16323 = vst [vmem:[#allocation10_spill] sm:$0xff] %v15819_v41  ;;  %v15823_v32 = vpop.permute.xlu2 %6584 }
 0x610   : > { %16324 = vst [vmem:[#allocation11_spill] sm:$0xff] %v15823_v32 }
 0x614   : > { %6458 = vrot.lane.b32.xlu1 %v15787_v7, %s11692_s15  ;;  %6787 = vrot.lane.b32.xlu0 %v15787_v7, %s11690_s13 }
 0x615   : > { %6705 = vrot.lane.b32.xlu2 %v15787_v7, %s11688_s11 }
 0x616   : > { %v15832_v30 = vpop.permute.xlu1 %6625  ;;  %v15834_v10 = vpop.permute.xlu0 %6502 }
 0x617   : > { %16325 = vst [vmem:[#allocation12_spill] sm:$0xff] %v15832_v30  ;;  %v7026_v32 = vpop.permute.xlu2 %7025  ;;  %v6425_v30 = vpop.f32.mrf.mxu3 }
 0x618   : > { %v7040_v47 = vrot.slane %v7026_v32, 4  ;;  %v6426_v53 = vadd.f32 %v6425_v30, %v6407_v58  ;;  %v6834_v32 = vrot.slane %v15625_v15, 4 }
 0x61a   : > { %v7047_v51 = vsel %vm6472_vm0, %v7039_v49, %v7040_v47  ;;  %v6547_v47 = vrot.slane %v15615_v22, 4 }
 0x61b   : > { %v7049_v41 = vsel %vm7048_vm1, %v15613_v60, %v7047_v51  ;;  %v15851_v51 = vpack.c.bf16 %v6426_v53, %v6426_v53 }
 0x61c   : > { %7060 = vst [vmem:[#allocation3 + $0x1e0] sm:$0xff] %v7049_v41  ;;  %6582 = vrot.lane.b32.xlu1 %v15787_v7, %s11696_s21  ;;  %6623 = vrot.lane.b32.xlu0 %v15787_v7, %s11693_s16 }
 0x61d   : > { %6500 = vrot.lane.b32.xlu2 %v15787_v7, %s11691_s14 }
 0x61e   : > { %v15846_v38 = vpop.permute.xlu1 %6912  ;;  %v15848_v36 = vpop.permute.xlu0 %6953 }
 0x61f   : > { %16326 = vst [vmem:[#allocation13_spill] sm:$0xff] %v15846_v38  ;;  %v6821_v55 = vpop.permute.xlu2 %6820 }
 0x620   : > { %v6835_v60 = vrot.slane %v6821_v55, 4 }
 0x622   : > { %v6842_v41 = vsel %vm6472_vm0, %v6834_v32, %v6835_v60 }
 0x623   : > { %v6844_v49 = vsel %vm6843_vm2, %v15625_v15, %v6842_v41  ;;  %v6670_v15 = vrot.slane %v15639_v0, 4 }
 0x624   : > { %6855 = vst [vmem:[#allocation3 + $0x140] sm:$0xff] %v6844_v49  ;;  %6873 = vrot.lane.b32.xlu1 %v15851_v51, %s11685_s30  ;;  %6910 = vrot.lane.b32.xlu0 %v15787_v7, %s11697_s22 }
 0x625   : > { %6951 = vrot.lane.b32.xlu2 %v15787_v7, %s11694_s18 }
 0x626   : > { %v6534_v58 = vpop.permute.xlu1 %6533  ;;  %v15862_v30 = vpop.permute.xlu0 %6748 }
 0x627   : > { %16327 = vst [vmem:[#allocation14_spill] sm:$0xff] %v15862_v30  ;;  %v6548_v53 = vrot.slane %v6534_v58, 4  ;;  %v6657_v55 = vpop.permute.xlu2 %6656  ;;  %v6875_v58 = vrot.slane %v15589_v31, 4 }
 0x628   : > { %v6671_v32 = vrot.slane %v6657_v55, 4 }
 0x629   : > { %v6555_v60 = vsel %vm6472_vm0, %v6547_v47, %v6548_v53 }
 0x62a   : > { %v6557_v41 = vsel %vm6556_vm3, %v15615_v22, %v6555_v60  ;;  %v6678_v49 = vsel %vm6472_vm0, %v6670_v15, %v6671_v32  ;;  %v6998_v22 = vrot.slane %v15627_v63, 4  ;;  %v6464_v15 = vrot.slane %v15652_v39, 4 }
 0x62b   : > { %6568 = vst [vmem:[#allocation3 + $0x60] sm:$0xff] %v6557_v41  ;;  %v6680_v30 = vsel %vm6679_vm4, %v15639_v0, %v6678_v49 }
 0x62c   : > { %6691 = vst [vmem:[#allocation3 + $0xc0] sm:$0xff] %v6680_v30  ;;  %6709 = vrot.lane.b32.xlu1 %v15851_v51, %s11688_s11  ;;  %7037 = vrot.lane.b32.xlu0 %v15851_v51, %s11683_s23  ;;  %s7902_s23 = scalar_lea.vmem (%p11768_p5), %s16304_s7, %s10821_s24 }
 0x62d   : > { %6746 = vrot.lane.b32.xlu2 %v15787_v7, %s11695_s20 }
 0x62e   : > { %v6985_v47 = vpop.permute.xlu1 %6984  ;;  %v6862_v53 = vpop.permute.xlu0 %6861 }
 0x62f   : > { %v6999_v55 = vrot.slane %v6985_v47, 4  ;;  %v6876_v0 = vrot.slane %v6862_v53, 4  ;;  %v6451_v30 = vpop.permute.xlu2 %6450 }
 0x630   : > { %v6465_v32 = vrot.slane %v6451_v30, 4 }
 0x631   : > { %v7006_v60 = vsel %vm6472_vm0, %v6998_v22, %v6999_v55  ;;  %v6883_v41 = vsel %vm6472_vm0, %v6875_v58, %v6876_v0  ;;  %v6752_v55 = vrot.slane %v15664_v23, 4 }
 0x632   : > { %v7008_v7 = vsel %vm7007_vm5, %v15627_v63, %v7006_v60  ;;  %v6885_v49 = vsel %vm6884_vm6, %v15589_v31, %v6883_v41  ;;  %v6473_v38 = vsel %vm6472_vm0, %v6464_v15, %v6465_v32  ;;  %v6711_v63 = vrot.slane %v15597_v16, 4 }
 0x633   : > { %7019 = vst [vmem:[#allocation3 + $0x1c0] sm:$0xff] %v7008_v7  ;;  %v6475_v47 = vsel %vm6474_vm7, %v15652_v39, %v6473_v38  ;;  %v6793_v31 = vrot.slane %v15641_v34, 4 }
 0x634   : > { %6896 = vst [vmem:[#allocation3 + $0x160] sm:$0xff] %v6885_v49  ;;  %6504 = vrot.lane.b32.xlu1 %v15851_v51, %s11691_s14  ;;  %6832 = vrot.lane.b32.xlu0 %v15851_v51, %s11686_s19 }
 0x635   : > { %6486 = vst [vmem:[#allocation3 + $0x20] sm:$0xff] %v6475_v47  ;;  %6545 = vrot.lane.b32.xlu2 %v15851_v51, %s11684_s29 }
 0x636   : > { %v6780_v58 = vpop.permute.xlu1 %6779  ;;  %v6698_v22 = vpop.permute.xlu0 %6697 }
 0x637   : > { %v6794_v53 = vrot.slane %v6780_v58, 4  ;;  %v6712_v39 = vrot.slane %v6698_v22, 4  ;;  %v6739_v38 = vpop.permute.xlu2 %6738  ;;  %v6877_v58 = vrot.slane %v15678_v2, 4 }
 0x638   : > { %v6753_v0 = vrot.slane %v6739_v38, 4 }
 0x639   : > { %v6801_v30 = vsel %vm6472_vm0, %v6793_v31, %v6794_v53  ;;  %v6719_v15 = vsel %vm6472_vm0, %v6711_v63, %v6712_v39 }
 0x63a   : > { %v6803_v32 = vsel %vm6802_vm8, %v15641_v34, %v6801_v30  ;;  %v6721_v60 = vsel %vm6720_vm9, %v15597_v16, %v6719_v15  ;;  %v6760_v41 = vsel %vm6472_vm0, %v6752_v55, %v6753_v0  ;;  %v6506_v34 = vrot.slane %v15605_v46, 4 }
 0x63b   : > { %6814 = vst [vmem:[#allocation3 + $0x120] sm:$0xff] %v6803_v32  ;;  %v6762_v7 = vsel %vm6761_vm10, %v15664_v23, %v6760_v41  ;;  %v6629_v16 = vrot.slane %v15654_v45, 4  ;;  %v7041_v32 = vrot.slane %v15680_v54, 4 }
 0x63c   : > { %6732 = vst [vmem:[#allocation3 + $0xe0] sm:$0xff] %v6721_v60  ;;  %6955 = vrot.lane.b32.xlu1 %v15851_v51, %s11694_s18  ;;  %6668 = vrot.lane.b32.xlu0 %v15851_v51, %s11689_s12 }
 0x63d   : > { %6773 = vst [vmem:[#allocation3 + $0x100] sm:$0xff] %v6762_v7  ;;  %6996 = vrot.lane.b32.xlu2 %v15851_v51, %s11687_s10  ;;  %v6713_v7 = vrot.slane %v15693_v14, 4 }
 0x63e   : > { %v6616_v49 = vpop.permute.xlu1 %6615  ;;  %v6493_v47 = vpop.permute.xlu0 %6492 }
 0x63f   : > { %v6630_v63 = vrot.slane %v6616_v49, 4  ;;  %v6507_v23 = vrot.slane %v6493_v47, 4  ;;  %v6866_v31 = vpop.permute.xlu2 %6865 }
 0x640   : > { %v6878_v22 = vrot.slane %v6866_v31, 4 }
 0x641   : > { %v6637_v53 = vsel %vm6472_vm0, %v6629_v16, %v6630_v63  ;;  %v6514_v39 = vsel %vm6472_vm0, %v6506_v34, %v6507_v23 }
 0x642   : > { %v6639_v38 = vsel %vm6638_vm11, %v15654_v45, %v6637_v53  ;;  %v6516_v55 = vsel %vm6515_vm12, %v15605_v46, %v6514_v39  ;;  %v6886_v0 = vsel %vm6472_vm0, %v6877_v58, %v6878_v22  ;;  %v6957_v45 = vrot.slane %v15617_v25, 4 }
 0x643   : > { %6650 = vst [vmem:[#allocation3 + $0xa0] sm:$0xff] %v6639_v38  ;;  %v6887_v30 = vsel %vm6884_vm6, %v15678_v2, %v6886_v0  ;;  %v6836_v22 = vrot.slane %v15695_v8, 4  ;;  %v6508_v38 = vrot.slane %v15706_v59, 4 }
 0x644   : > { %6527 = vst [vmem:[#allocation3 + $0x40] sm:$0xff] %v6516_v55  ;;  %6750 = vrot.lane.b32.xlu1 %v15851_v51, %s11695_s20  ;;  %6462 = vrot.lane.b32.xlu0 %v15851_v51, %s11692_s15  ;;  %s8011_s20 = sshll.u32 %s1029_s17, 5 }
 0x645   : > { %6897 = vst [vmem:[#allocation3 + $0x168] sm:$0xff] %v6887_v30  ;;  %6791 = vrot.lane.b32.xlu2 %v15851_v51, %s11690_s13  ;;  %v7138_v30 = vld [vmem:[%s16302_s5 + $0x10] sm:$0xff] }
 0x646   : > { %v7030_v46 = vpop.permute.xlu1 %7029  ;;  %v6944_v15 = vpop.permute.xlu0 %6943 }
 0x647   : > { %v7042_v60 = vrot.slane %v7030_v46, 4  ;;  %v6958_v2 = vrot.slane %v6944_v15, 4  ;;  %v6702_v41 = vpop.permute.xlu2 %6701 }
 0x648   : > { %v6714_v34 = vrot.slane %v6702_v41, 4 }
 0x649   : > { %v7050_v16 = vsel %vm6472_vm0, %v7041_v32, %v7042_v60  ;;  %v6965_v49 = vsel %vm6472_vm0, %v6957_v45, %v6958_v2  ;;  %v6549_v2 = vrot.slane %v15643_v35, 4 }
 0x64a   : > { %v7051_v47 = vsel %vm7048_vm1, %v15680_v54, %v7050_v16  ;;  %v6967_v63 = vsel %vm6966_vm13, %v15617_v25, %v6965_v49  ;;  %v6722_v23 = vsel %vm6472_vm0, %v6713_v7, %v6714_v34  ;;  %v6916_v54 = vrot.slane %v15629_v19, 4 }
 0x64b   : > { %7061 = vst [vmem:[#allocation3 + $0x1e8] sm:$0xff] %v7051_v47  ;;  %v6723_v31 = vsel %vm6720_vm9, %v15693_v14, %v6722_v23  ;;  %v7136_v47 = vld [vmem:[%s16302_s5] sm:$0xff] }
 0x64c   : > { %6978 = vst [vmem:[#allocation3 + $0x1a0] sm:$0xff] %v6967_v63  ;;  %6574 = vrot.lane.b32.xlu1 %v15670_v27, %s11696_s21  ;;  %6586 = vrot.lane.b32.xlu0 %v15851_v51, %s11696_s21 }
 0x64d   : > { %6733 = vst [vmem:[#allocation3 + $0xe8] sm:$0xff] %v6723_v31  ;;  %6627 = vrot.lane.b32.xlu2 %v15851_v51, %s11693_s16 }
 0x64e   : > { %v6825_v25 = vpop.permute.xlu1 %6824  ;;  %v6903_v58 = vpop.permute.xlu0 %6902 }
 0x64f   : > { %v6837_v53 = vrot.slane %v6825_v25, 4  ;;  %v6917_v14 = vrot.slane %v6903_v58, 4  ;;  %v6497_v39 = vpop.permute.xlu2 %6496 }
 0x650   : > { %v6509_v27 = vrot.slane %v6497_v39, 4  ;;  %v6918_v39 = vrot.slane %v15732_v20, 4 }
 0x651   : > { %v6845_v55 = vsel %vm6472_vm0, %v6836_v22, %v6837_v53  ;;  %v6924_v0 = vsel %vm6472_vm0, %v6916_v54, %v6917_v14  ;;  %v6466_v22 = vrot.slane %v15720_v11, 4 }
 0x652   : > { %v6846_v45 = vsel %vm6843_vm2, %v15695_v8, %v6845_v55  ;;  %v6926_v46 = vsel %vm6925_vm14, %v15629_v19, %v6924_v0  ;;  %v6517_v15 = vsel %vm6472_vm0, %v6508_v38, %v6509_v27  ;;  %v6672_v19 = vrot.slane %v15708_v26, 4 }
 0x653   : > { %6856 = vst [vmem:[#allocation3 + $0x148] sm:$0xff] %v6846_v45  ;;  %v6518_v32 = vsel %vm6515_vm12, %v15706_v59, %v6517_v15  ;;  %v6959_v59 = vrot.slane %v15718_v43, 4  ;;  %v6795_v15 = vrot.slane %v15668_v13, 4 }
 0x654   : > { %6937 = vst [vmem:[#allocation3 + $0x180] sm:$0xff] %v6926_v46  ;;  %7152 = vperm.xlu1 %11576, %v7138_v30   ;;  %6578 = vrot.lane.b32.xlu0 %v15724_v40, %s11696_s21 }
 0x655   : > { %6528 = vst [vmem:[#allocation3 + $0x48] sm:$0xff] %v6518_v32  ;;  %6914 = vrot.lane.b32.xlu2 %v15851_v51, %s11697_s22  ;;  %v7137_v51 = vld [vmem:[%s16302_s5 + $0x8] sm:$0xff]  ;;  %v6754_v32 = vrot.slane %v15734_v56, 4 }
 0x656   : > { %v6661_v60 = vpop.permute.xlu1 %6660  ;;  %v6538_v8 = vpop.permute.xlu0 %6537 }
 0x657   : > { %v6673_v41 = vrot.slane %v6661_v60, 4  ;;  %v6550_v7 = vrot.slane %v6538_v8, 4  ;;  %v6948_v34 = vpop.permute.xlu2 %6947 }
 0x658   : > { %v6960_v16 = vrot.slane %v6948_v34, 4 }
 0x659   : > { %v6681_v49 = vsel %vm6472_vm0, %v6672_v19, %v6673_v41  ;;  %v6558_v40 = vsel %vm6472_vm0, %v6549_v2, %v6550_v7  ;;  %v6879_v2 = vrot.slane %v15697_v3, 4 }
 0x65a   : > { %v6682_v63 = vsel %vm6679_vm4, %v15708_v26, %v6681_v49  ;;  %v6559_v23 = vsel %vm6556_vm3, %v15643_v35, %v6558_v40  ;;  %v6968_v31 = vsel %vm6472_vm0, %v6959_v59, %v6960_v16  ;;  %v7000_v26 = vrot.slane %v15656_v29, 4 }
 0x65b   : > { %6692 = vst [vmem:[#allocation3 + $0xc8] sm:$0xff] %v6682_v63  ;;  %v6969_v54 = vsel %vm6966_vm13, %v15718_v43, %v6968_v31  ;;  %v6631_v40 = vrot.slane %v15682_v24, 4 }
 0x65c   : > { %6569 = vst [vmem:[#allocation3 + $0x68] sm:$0xff] %v6559_v23  ;;  %7147 = vperm.xlu1 %11576, %v7137_v51   ;;  %7142 = vperm.xlu0 %11575, %v7136_v47   ;;  %v7043_v51 = vrot.slane %v15746_v5, 4  ;;  %v6715_v23 = vrot.slane %v15744_v37, 4 }
 0x65d   : > { %6979 = vst [vmem:[#allocation3 + $0x1a8] sm:$0xff] %v6969_v54  ;;  %6576 = vrot.lane.b32.xlu2 %v15493_v61, %s11696_s21  ;;  %s1058_s21 = scalar_lea.vmem [#allocation5], %s8011_s20 }
 0x65e   : > { %v6455_v25 = vpop.permute.xlu1 %6454  ;;  %v6989_v58 = vpop.permute.xlu0 %6988 }
 0x65f   : > { %v6467_v35 = vrot.slane %v6455_v25, 4  ;;  %v7001_v53 = vrot.slane %v6989_v58, 4  ;;  %v6907_v14 = vpop.permute.xlu2 %6906 }
 0x660   : > { %v6919_v38 = vrot.slane %v6907_v14, 4  ;;  %v6838_v14 = vrot.slane %v15758_v4, 4 }
 0x661   : > { %v6476_v43 = vsel %vm6472_vm0, %v6466_v22, %v6467_v35  ;;  %v7009_v27 = vsel %vm6472_vm0, %v7000_v26, %v7001_v53  ;;  %v6551_v53 = vrot.slane %v15710_v1, 4 }
 0x662   : > { %v6477_v55 = vsel %vm6474_vm7, %v15720_v11, %v6476_v43  ;;  %v7010_v61 = vsel %vm7007_vm5, %v15656_v29, %v7009_v27  ;;  %v6927_v0 = vsel %vm6472_vm0, %v6918_v39, %v6919_v38  ;;  %v6510_v43 = vrot.slane %v15756_v21, 4 }
 0x663   : > { %6487 = vst [vmem:[#allocation3 + $0x28] sm:$0xff] %v6477_v55  ;;  %v6928_v30 = vsel %vm6925_vm14, %v15732_v20, %v6927_v0 }
 0x664   : > { %7020 = vst [vmem:[#allocation3 + $0x1c8] sm:$0xff] %v7010_v61 }
 0x665   : > { %6938 = vst [vmem:[#allocation3 + $0x188] sm:$0xff] %v6928_v30 }
 0x666   : > { %v6743_v45 = vpop.permute.xlu1 %6742  ;;  %v6784_v46 = vpop.permute.xlu0 %6783 }
 0x667   : > { %v6755_v60 = vrot.slane %v6743_v45, 4  ;;  %v6796_v8 = vrot.slane %v6784_v46, 4  ;;  %v6870_v11 = vpop.permute.xlu2 %6869 }
 0x668   : > { %v6880_v29 = vrot.slane %v6870_v11, 4  ;;  %v6961_v11 = vrot.slane %v15769_v17, 4 }
 0x669   : > { %v6763_v19 = vsel %vm6472_vm0, %v6754_v32, %v6755_v60  ;;  %v6804_v41 = vsel %vm6472_vm0, %v6795_v15, %v6796_v8  ;;  %v7002_v15 = vrot.slane %v15722_v28, 4  ;;  %v6674_v32 = vrot.slane %v15771_v9, 4 }
 0x66a   : > { %v6764_v20 = vsel %vm6761_vm10, %v15734_v56, %v6763_v19  ;;  %v6805_v7 = vsel %vm6802_vm8, %v15668_v13, %v6804_v41  ;;  %v6888_v34 = vsel %vm6472_vm0, %v6879_v2, %v6880_v29 }
 0x66b   : > { %6774 = vst [vmem:[#allocation3 + $0x108] sm:$0xff] %v6764_v20  ;;  %v6889_v59 = vsel %vm6884_vm6, %v15697_v3, %v6888_v34 }
 0x66c   : > { %6815 = vst [vmem:[#allocation3 + $0x128] sm:$0xff] %v6805_v7 }
 0x66d   : > { %6898 = vst [vmem:[#allocation3 + $0x170] sm:$0xff] %v6889_v59  ;;  %v6797_v59 = vrot.slane %v15736_v50, 4 }
 0x66e   : > { %v7034_v16 = vpop.permute.xlu1 %7033  ;;  %v6620_v49 = vpop.permute.xlu0 %6619 }
 0x66f   : > { %v7044_v47 = vrot.slane %v7034_v16, 4  ;;  %v6632_v63 = vrot.slane %v6620_v49, 4  ;;  %v6706_v56 = vpop.permute.xlu2 %6705  ;;  %v6468_v16 = vrot.slane %v15783_v18, 4 }
 0x670   : > { %v6716_v13 = vrot.slane %v6706_v56, 4 }
 0x671   : > { %v7052_v31 = vsel %vm6472_vm0, %v7043_v51, %v7044_v47  ;;  %v6640_v54 = vsel %vm6472_vm0, %v6631_v40, %v6632_v63  ;;  %v6756_v51 = vrot.slane %v15781_v12, 4 }
 0x672   : > { %v7053_v3 = vsel %vm7048_vm1, %v15746_v5, %v7052_v31  ;;  %v6641_v25 = vsel %vm6638_vm11, %v15682_v24, %v6640_v54  ;;  %v6724_v58 = vsel %vm6472_vm0, %v6715_v23, %v6716_v13  ;;  %v6633_v31 = vrot.slane %v15748_v48, 4 }
 0x673   : > { %7062 = vst [vmem:[#allocation3 + $0x1f0] sm:$0xff] %v7053_v3  ;;  %v6725_v26 = vsel %vm6720_vm9, %v15744_v37, %v6724_v58 }
 0x674   : > { %6651 = vst [vmem:[#allocation3 + $0xa8] sm:$0xff] %v6641_v25  ;;  %v6592_v25 = vrot.slane %v15797_v57, 4 }
 0x675   : > { %6734 = vst [vmem:[#allocation3 + $0xf0] sm:$0xff] %v6725_v26 }
 0x676   : > { %v6829_v22 = vpop.permute.xlu1 %6828  ;;  %v6542_v35 = vpop.permute.xlu0 %6541 }
 0x677   : > { %v6839_v39 = vrot.slane %v6829_v22, 4  ;;  %v6552_v38 = vrot.slane %v6542_v35, 4  ;;  %v6501_v5 = vpop.permute.xlu2 %6500 }
 0x678   : > { %v6511_v24 = vrot.slane %v6501_v5, 4 }
 0x679   : > { %v6847_v27 = vsel %vm6472_vm0, %v6838_v14, %v6839_v39  ;;  %v6560_v55 = vsel %vm6472_vm0, %v6551_v53, %v6552_v38 }
 0x67a   : > { %v6848_v37 = vsel %vm6843_vm2, %v15758_v4, %v6847_v27  ;;  %v6561_v61 = vsel %vm6556_vm3, %v15710_v1, %v6560_v55  ;;  %v6519_v0 = vsel %vm6472_vm0, %v6510_v43, %v6511_v24  ;;  %v6920_v24 = vrot.slane %v15760_v42, 4 }
 0x67b   : > { %6857 = vst [vmem:[#allocation3 + $0x150] sm:$0xff] %v6848_v37  ;;  %v6520_v30 = vsel %vm6515_vm12, %v15756_v21, %v6519_v0  ;;  %v6881_v27 = vrot.slane %v15809_v44, 4 }
 0x67c   : > { %6570 = vst [vmem:[#allocation3 + $0x70] sm:$0xff] %v6561_v61  ;;  %v7004_v61 = vrot.slane %v15807_v52, 4 }
 0x67d   : > { %6529 = vst [vmem:[#allocation3 + $0x50] sm:$0xff] %v6520_v30 }
 0x67e   : > { %v6665_v45 = vpop.permute.xlu1 %6664  ;;  %v6993_v46 = vpop.permute.xlu0 %6992 }
 0x67f   : > { %v6675_v60 = vrot.slane %v6665_v45, 4  ;;  %v7003_v8 = vrot.slane %v6993_v46, 4  ;;  %v6952_v4 = vpop.permute.xlu2 %6951 }
 0x680   : > { %v6962_v1 = vrot.slane %v6952_v4, 4 }
 0x681   : > { %v6683_v2 = vsel %vm6472_vm0, %v6674_v32, %v6675_v60  ;;  %v7011_v29 = vsel %vm6472_vm0, %v7002_v15, %v7003_v8 }
 0x682   : > { %v6684_v21 = vsel %vm6679_vm4, %v15771_v9, %v6683_v2  ;;  %v7012_v19 = vsel %vm7007_vm5, %v15722_v28, %v7011_v29  ;;  %v6970_v41 = vsel %vm6472_vm0, %v6961_v11, %v6962_v1  ;;  %v11450_v1 = vld [vmem:[#allocation3 + $0x64] sm:$0xf0]  ;;  %v7045_v2 = vrot.slane %v15773_v6, 4 }
 0x683   : > { %6693 = vst [vmem:[#allocation3 + $0xd0] sm:$0xff] %v6684_v21  ;;  %v6971_v20 = vsel %vm6966_vm13, %v15769_v17, %v6970_v41  ;;  %v10550_v32 = vld [vmem:[#allocation3 + $0x70] sm:$0xf] }
 0x684   : > { %7021 = vst [vmem:[#allocation3 + $0x1d0] sm:$0xff] %v7012_v19  ;;  %v16328_v19 = vld [vmem:[#allocation10_spill] sm:$0xff] }
 0x685   : > { %6980 = vst [vmem:[#allocation3 + $0x1b0] sm:$0xff] %v6971_v20  ;;  %v6799_v41 = vrot.slane %v16328_v19, 4 }
 0x686   : > { %v6459_v7 = vpop.permute.xlu1 %6458  ;;  %v6788_v34 = vpop.permute.xlu0 %6787 }
 0x687   : > { %v6469_v49 = vrot.slane %v6459_v7, 4  ;;  %v6798_v40 = vrot.slane %v6788_v34, 4  ;;  %v6747_v9 = vpop.permute.xlu2 %6746 }
 0x688   : > { %v6757_v28 = vrot.slane %v6747_v9, 4  ;;  %v10678_v9 = vld [vmem:[#allocation3 + $0x170] sm:$0xf] }
 0x689   : > { %v6478_v47 = vsel %vm6472_vm0, %v6468_v16, %v6469_v49  ;;  %v6806_v63 = vsel %vm6472_vm0, %v6797_v59, %v6798_v40 }
 0x68a   : > { %v6479_v17 = vsel %vm6474_vm7, %v15783_v18, %v6478_v47  ;;  %v6807_v56 = vsel %vm6802_vm8, %v15736_v50, %v6806_v63  ;;  %v6765_v23 = vsel %vm6472_vm0, %v6756_v51, %v6757_v28  ;;  %v6553_v50 = vrot.slane %v15795_v33, 4  ;;  %v11482_v63 = vld [vmem:[#allocation3 + $0x164] sm:$0xf0] }
 0x68b   : > { %6488 = vst [vmem:[#allocation3 + $0x30] sm:$0xff] %v6479_v17  ;;  %v6766_v13 = vsel %vm6761_vm10, %v15781_v12, %v6765_v23  ;;  %v16329_v17 = vld [vmem:[#allocation7_spill] sm:$0xff] }
 0x68c   : > { %6816 = vst [vmem:[#allocation3 + $0x130] sm:$0xff] %v6807_v56  ;;  %v6840_v56 = vrot.slane %v16329_v17, 4 }
 0x68d   : > { %6775 = vst [vmem:[#allocation3 + $0x110] sm:$0xff] %v6766_v13  ;;  %v10670_v13 = vld [vmem:[#allocation3 + $0x160] sm:$0xf] }
 0x68e   : > { %v6583_v54 = vpop.permute.xlu1 %6582  ;;  %v6624_v3 = vpop.permute.xlu0 %6623 }
 0x68f   : > { %v6593_v58 = vrot.slane %v6583_v54, 4  ;;  %v6634_v18 = vrot.slane %v6624_v3, 4  ;;  %v6546_v26 = vpop.permute.xlu2 %6545 }
 0x690   : > { %v6554_v22 = vrot.slane %v6546_v26, 4 }
 0x691   : > { %v6601_v35 = vsel %vm6472_vm0, %v6592_v25, %v6593_v58  ;;  %v6642_v53 = vsel %vm6472_vm0, %v6633_v31, %v6634_v18  ;;  %v10671_v25 = vor.u32 %v11482_v63, %v10670_v13  ;;  %v16330_v58 = vld [vmem:[#allocation12_spill] sm:$0xff] }
 0x692   : > { %v6602_v12 = vsel %vm6597_vm15, %v15797_v57, %v6601_v35  ;;  %v6643_v14 = vsel %vm6638_vm11, %v15748_v48, %v6642_v53  ;;  %v6562_v39 = vsel %vm6472_vm0, %v6553_v50, %v6554_v22  ;;  %v6635_v18 = vrot.slane %v16330_v58, 4 }
 0x693   : > { %6611 = vst [vmem:[#allocation3 + $0x90] sm:$0xff] %v6602_v12  ;;  %v6563_v38 = vsel %vm6556_vm3, %v15795_v33, %v6562_v39 }
 0x694   : > { %6652 = vst [vmem:[#allocation3 + $0xb0] sm:$0xff] %v6643_v14  ;;  %v10614_v14 = vld [vmem:[#allocation3 + $0xf0] sm:$0xf] }
 0x695   : > { %6571 = vst [vmem:[#allocation3 + $0x78] sm:$0xff] %v6563_v38 }
 0x696   : > { %v6874_v5 = vpop.permute.xlu1 %6873  ;;  %v6911_v43 = vpop.permute.xlu0 %6910 }
 0x697   : > { %v6882_v55 = vrot.slane %v6874_v5, 4  ;;  %v6921_v37 = vrot.slane %v6911_v43, 4  ;;  %v6997_v57 = vpop.permute.xlu2 %6996  ;;  %v10742_v43 = vld [vmem:[#allocation3 + $0x1f0] sm:$0xf] }
 0x698   : > { %v7005_v48 = vrot.slane %v6997_v57, 4 }
 0x699   : > { %v6890_v0 = vsel %vm6472_vm0, %v6881_v27, %v6882_v55  ;;  %v6929_v30 = vsel %vm6472_vm0, %v6920_v24, %v6921_v37  ;;  %v11466_v55 = vld [vmem:[#allocation3 + $0xe4] sm:$0xf0]  ;;  %v16331_v37 = vld [vmem:[#allocation8_spill] sm:$0xff] }
 0x69a   : > { %v6891_v33 = vsel %vm6884_vm6, %v15809_v44, %v6890_v0  ;;  %v6930_v45 = vsel %vm6925_vm14, %v15760_v42, %v6929_v30  ;;  %v7013_v46 = vsel %vm6472_vm0, %v7004_v61, %v7005_v48  ;;  %v6717_v44 = vrot.slane %v15821_v62, 4  ;;  %v10606_v0 = vld [vmem:[#allocation3 + $0xe0] sm:$0xf] }
 0x69b   : > { %6899 = vst [vmem:[#allocation3 + $0x178] sm:$0xff] %v6891_v33  ;;  %v7014_v15 = vsel %vm7007_vm5, %v15807_v52, %v7013_v46  ;;  %v10542_v52 = vld [vmem:[#allocation3 + $0x60] sm:$0xf]  ;;  %v6676_v57 = vrot.slane %v16331_v37, 4  ;;  %v6963_v30 = vrot.slane %v15848_v36, 4 }
 0x69c   : > { %6939 = vst [vmem:[#allocation3 + $0x190] sm:$0xff] %v6930_v45  ;;  %v11452_v60 = vld [vmem:[#allocation3 + $0x74] sm:$0xf0]  ;;  %v10543_v59 = vor.u32 %v11450_v1, %v10542_v52 }
 0x69d   : > { %7022 = vst [vmem:[#allocation3 + $0x1d8] sm:$0xff] %v7014_v15  ;;  %v10551_v8 = vor.u32 %v11452_v60, %v10550_v32  ;;  %v10607_v15 = vor.u32 %v11466_v55, %v10606_v0  ;;  %v10734_v32 = vld [vmem:[#allocation3 + $0x1e0] sm:$0xf]  ;;  %v16332_v60 = vld [vmem:[#allocation13_spill] sm:$0xff]  ;;  %v11490_v0 = vld [vmem:[#allocation3 + $0x1a4] sm:$0xf0] }
 0x69e   : > { %v6710_v4 = vpop.permute.xlu1 %6709  ;;  %v7038_v11 = vpop.permute.xlu0 %7037  ;;  %v16335_v55 = vld [vmem:[#allocation6_spill] sm:$0xff] }
 0x69f   : > { %7520 = vmatpush.bf16.msra.mxu0 %v10551_v8  ;;  %v6718_v42 = vrot.slane %v6710_v4, 4  ;;  %v7046_v29 = vrot.slane %v7038_v11, 4  ;;  %v6792_v21 = vpop.permute.xlu2 %6791  ;;  %v6922_v8 = vrot.slane %v16332_v60, 4 }
 0x6a0   : > { %v6800_v20 = vrot.slane %v6792_v21, 4 }
 0x6a1   : > { %v6726_v7 = vsel %vm6472_vm0, %v6717_v44, %v6718_v42  ;;  %v7054_v34 = vsel %vm6472_vm0, %v7045_v2, %v7046_v29 }
 0x6a2   : > { %v6727_v16 = vsel %vm6720_vm9, %v15821_v62, %v6726_v7  ;;  %v7055_v49 = vsel %vm7048_vm1, %v15773_v6, %v7054_v34  ;;  %v6808_v40 = vsel %vm6472_vm0, %v6799_v41, %v6800_v20  ;;  %v11484_v51 = vld [vmem:[#allocation3 + $0x174] sm:$0xf0]  ;;  %v6512_v6 = vrot.slane %v15834_v10, 4  ;;  %v10662_v20 = vld [vmem:[#allocation3 + $0x150] sm:$0xf] }
 0x6a3   : > { %6735 = vst [vmem:[#allocation3 + $0xf8] sm:$0xff] %v6727_v16  ;;  %v6809_v28 = vsel %vm6802_vm8, %v16328_v19, %v6808_v40  ;;  %7521 = vmatpush.bf16.msra.mxu0 %v10543_v59  ;;  %v10679_v47 = vor.u32 %v11484_v51, %v10678_v9  ;;  %v10534_v19 = vld [vmem:[#allocation3 + $0x50] sm:$0xf]  ;;  %v11478_v40 = vld [vmem:[#allocation3 + $0x144] sm:$0xf0]  ;;  %v16333_v51 = vld [vmem:[#allocation9_spill] sm:$0xff] }
 0x6a4   : > { %7063 = vst [vmem:[#allocation3 + $0x1f8] sm:$0xff] %v7055_v49  ;;  %v11496_v44 = vld [vmem:[#allocation3 + $0x1d4] sm:$0xf0]  ;;  %v10726_v59 = vld [vmem:[#allocation3 + $0x1d0] sm:$0xf] }
 0x6a5   : > { %6817 = vst [vmem:[#allocation3 + $0x138] sm:$0xff] %v6809_v28  ;;  %7558 = vmatpush.bf16.msra.mxu2 %v10679_v47  ;;  %v10727_v49 = vor.u32 %v11496_v44, %v10726_v59  ;;  %v11494_v9 = vld [vmem:[#allocation3 + $0x1c4] sm:$0xf0]  ;;  %v6470_v28 = vrot.slane %v16333_v51, 4  ;;  %v16334_v47 = vld [vmem:[#allocation14_spill] sm:$0xff] }
 0x6a6   : > { %v6505_v62 = vpop.permute.xlu1 %6504  ;;  %v6833_v23 = vpop.permute.xlu0 %6832  ;;  %v6758_v63 = vrot.slane %v16334_v47, 4 }
 0x6a7   : > { %v6513_v31 = vrot.slane %v6505_v62, 4  ;;  %v6841_v54 = vrot.slane %v6833_v23, 4  ;;  %v6628_v3 = vpop.permute.xlu2 %6627  ;;  %v10526_v62 = vld [vmem:[#allocation3 + $0x40] sm:$0xf] }
 0x6a8   : > { %v6636_v26 = vrot.slane %v6628_v3, 4 }
 0x6a9   : > { %v6521_v50 = vsel %vm6472_vm0, %v6512_v6, %v6513_v31  ;;  %v6849_v22 = vsel %vm6472_vm0, %v6840_v56, %v6841_v54  ;;  %7559 = vmatpush.bf16.msra.mxu2 %v10671_v25  ;;  %v10654_v31 = vld [vmem:[#allocation3 + $0x140] sm:$0xf] }
 0x6aa   : > { %v6522_v35 = vsel %vm6515_vm12, %v15834_v10, %v6521_v50  ;;  %v6850_v53 = vsel %vm6843_vm2, %v16329_v17, %v6849_v22  ;;  %v6644_v12 = vsel %vm6472_vm0, %v6635_v18, %v6636_v26  ;;  %v11468_v39 = vld [vmem:[#allocation3 + $0xf4] sm:$0xf0]  ;;  %v11498_v10 = vld [vmem:[#allocation3 + $0x1e4] sm:$0xf0]  ;;  %v10718_v54 = vld [vmem:[#allocation3 + $0x1c0] sm:$0xf]  ;;  %v10655_v3 = vor.u32 %v11478_v40, %v10654_v31 }
 0x6ab   : > { %6530 = vst [vmem:[#allocation3 + $0x58] sm:$0xff] %v6522_v35  ;;  %v6645_v38 = vsel %vm6638_vm11, %v16330_v58, %v6644_v12  ;;  %v10615_v5 = vor.u32 %v11468_v39, %v10614_v14  ;;  %v11500_v24 = vld [vmem:[#allocation3 + $0x1f4] sm:$0xf0]  ;;  %v10735_v11 = vor.u32 %v11498_v10, %v10734_v32  ;;  %v10719_v25 = vor.u32 %v11494_v9, %v10718_v54  ;;  %v10598_v35 = vld [vmem:[#allocation3 + $0xd0] sm:$0xf] }
 0x6ac   : > { %6858 = vst [vmem:[#allocation3 + $0x158] sm:$0xff] %v6850_v53  ;;  %v10743_v27 = vor.u32 %v11500_v24, %v10742_v43  ;;  %v11476_v26 = vld [vmem:[#allocation3 + $0x134] sm:$0xf0]  ;;  %v10710_v53 = vld [vmem:[#allocation3 + $0x1b0] sm:$0xf]  ;;  %v6588_v10 = vrot.slane %v16335_v55, 4 }
 0x6ad   : > { %6653 = vst [vmem:[#allocation3 + $0xb8] sm:$0xff] %v6645_v38  ;;  %7539 = vmatpush.bf16.msra.mxu1 %v10615_v5  ;;  %v10646_v39 = vld [vmem:[#allocation3 + $0x130] sm:$0xf]  ;;  %v11462_v24 = vld [vmem:[#allocation3 + $0xc4] sm:$0xf0] }
 0x6ae   : > { %7577 = vmatpush.bf16.msra.mxu3 %v10743_v27  ;;  %v6956_v61 = vpop.permute.xlu1 %6955  ;;  %v6669_v48 = vpop.permute.xlu0 %6668  ;;  %v10647_v43 = vor.u32 %v11476_v26, %v10646_v39  ;;  %v11474_v27 = vld [vmem:[#allocation3 + $0x124] sm:$0xf0]  ;;  %v10574_v9 = vld [vmem:[#allocation3 + $0xa0] sm:$0xf] }
 0x6af   : > { %v6964_v33 = vrot.slane %v6956_v61, 4  ;;  %v6677_v45 = vrot.slane %v6669_v48, 4  ;;  %v6915_v46 = vpop.permute.xlu2 %6914  ;;  %v11442_v40 = vld [vmem:[#allocation3 + $0x24] sm:$0xf0] }
 0x6b0   : > { %v6923_v4 = vrot.slane %v6915_v46, 4  ;;  %v10638_v46 = vld [vmem:[#allocation3 + $0x120] sm:$0xf]  ;;  %v10470_v31 = vld [vmem:[%s16301_s4 + $0x8] sm:$0xf] }
 0x6b1   : > { %v6972_v1 = vsel %vm6472_vm0, %v6963_v30, %v6964_v33  ;;  %v6685_v2 = vsel %vm6472_vm0, %v6676_v57, %v6677_v45  ;;  %7540 = vmatpush.bf16.msra.mxu1 %v10607_v15  ;;  %v10590_v45 = vld [vmem:[#allocation3 + $0xc0] sm:$0xf]  ;;  %v10639_v32 = vor.u32 %v11474_v27, %v10638_v46  ;;  %v10566_v27 = vld [vmem:[#allocation3 + $0x90] sm:$0xf]  ;;  %v10552_v46 = vld [vmem:[#allocation3 + $0x78] sm:$0xf0] }
 0x6b2   : > { %v6973_v42 = vsel %vm6966_vm13, %v15848_v36, %v6972_v1  ;;  %v6686_v29 = vsel %vm6679_vm4, %v16331_v37, %v6685_v2  ;;  %v6931_v21 = vsel %vm6472_vm0, %v6922_v8, %v6923_v4  ;;  %7578 = vmatpush.bf16.msra.mxu3 %v10735_v11  ;;  %v11448_v41 = vld [vmem:[#allocation3 + $0x54] sm:$0xf0]  ;;  %v11446_v36 = vld [vmem:[#allocation3 + $0x44] sm:$0xf0]  ;;  %v10591_v15 = vor.u32 %v11462_v24, %v10590_v45  ;;  %v10518_v1 = vld [vmem:[#allocation3 + $0x30] sm:$0xf] }
 0x6b3   : > { %6981 = vst [vmem:[#allocation3 + $0x1b8] sm:$0xff] %v6973_v42  ;;  %v6932_v52 = vsel %vm6925_vm14, %v16332_v60, %v6931_v21  ;;  %v10535_v7 = vor.u32 %v11448_v41, %v10534_v19  ;;  %v11480_v34 = vld [vmem:[#allocation3 + $0x154] sm:$0xf0]  ;;  %v10527_v6 = vor.u32 %v11446_v36, %v10526_v62  ;;  %v16336_v37 = vld [vmem:[#allocation11_spill] sm:$0xff]  ;;  %v10702_v60 = vld [vmem:[#allocation3 + $0x1a0] sm:$0xf] }
 0x6b4   : > { %6694 = vst [vmem:[#allocation3 + $0xd8] sm:$0xff] %v6686_v29  ;;  %v10663_v16 = vor.u32 %v11480_v34, %v10662_v20  ;;  %v6594_v57 = vrot.slane %v16336_v37, 4  ;;  %v10703_v11 = vor.u32 %v11490_v0, %v10702_v60  ;;  %v11460_v2 = vld [vmem:[#allocation3 + $0xb4] sm:$0xf0]  ;;  %v10630_v29 = vld [vmem:[#allocation3 + $0x110] sm:$0xf] }
 0x6b5   : > { %6940 = vst [vmem:[#allocation3 + $0x198] sm:$0xff] %v6932_v52  ;;  %7522 = vmatpush.bf16.msra.mxu0 %v10535_v7  ;;  %v10582_v20 = vld [vmem:[#allocation3 + $0xb0] sm:$0xf]  ;;  %v10510_v36 = vld [vmem:[#allocation3 + $0x20] sm:$0xf] }
 0x6b6   : > { %7560 = vmatpush.bf16.msra.mxu2 %v10663_v16  ;;  %7579 = vmatpush.bf16.msra.mxu3 %v10727_v49  ;;  %v6751_v17 = vpop.permute.xlu1 %6750  ;;  %v6463_v56 = vpop.permute.xlu0 %6462  ;;  %v10583_v59 = vor.u32 %v11460_v2, %v10582_v20  ;;  %v10694_v16 = vld [vmem:[#allocation3 + $0x190] sm:$0xf]  ;;  %v10680_v62 = vld [vmem:[#allocation3 + $0x178] sm:$0xf0]  ;;  %v10511_v54 = vor.u32 %v11442_v40, %v10510_v36  ;;  %v10736_v24 = vld [vmem:[#allocation3 + $0x1e8] sm:$0xf0] }
 0x6b7   : > { %v6759_v23 = vrot.slane %v6751_v17, 4  ;;  %v6471_v13 = vrot.slane %v6463_v56, 4  ;;  %v6577_v7 = vpop.permute.xlu2 %6576  ;;  %v10686_v17 = vld [vmem:[#allocation3 + $0x180] sm:$0xf]  ;;  %v11486_v56 = vld [vmem:[#allocation3 + $0x184] sm:$0xf0] }
 0x6b8   : > { %v11497_v0 = vld [vmem:[#allocation3 + $0x1e4] sm:$0xf]  ;;  %v10494_v60 = vld [vmem:[#allocation3] sm:$0xf]  ;;  %v11479_v2 = vld [vmem:[#allocation3 + $0x154] sm:$0xf] }
 0x6b9   : > { %v6767_v58 = vsel %vm6472_vm0, %v6758_v63, %v6759_v23  ;;  %v6480_v18 = vsel %vm6472_vm0, %v6470_v28, %v6471_v13  ;;  %7523 = vmatpush.bf16.msra.mxu0 %v10527_v6  ;;  %v11470_v63 = vld [vmem:[#allocation3 + $0x104] sm:$0xf0]  ;;  %v6590_v23 = vrot.slane %v6577_v7, 4  ;;  %v10744_v6 = vld [vmem:[#allocation3 + $0x1f8] sm:$0xf0]  ;;  %v10739_v45 = vor.u32 %v11497_v0, %v10736_v24 }
 0x6ba   : > { %v6768_v50 = vsel %vm6761_vm10, %v16334_v47, %v6767_v58  ;;  %v6481_v22 = vsel %vm6474_vm7, %v16333_v51, %v6480_v18  ;;  %7561 = vmatpush.bf16.msra.mxu2 %v10655_v3  ;;  %7580 = vmatpush.bf16.msra.mxu3 %v10719_v25  ;;  %v11492_v12 = vld [vmem:[#allocation3 + $0x1b4] sm:$0xf0]  ;;  %v11458_v51 = vld [vmem:[#allocation3 + $0xa4] sm:$0xf0]  ;;  %v10622_v47 = vld [vmem:[#allocation3 + $0x100] sm:$0xf] }
 0x6bb   : > { %6776 = vst [vmem:[#allocation3 + $0x118] sm:$0xff] %v6768_v50  ;;  %v11464_v14 = vld [vmem:[#allocation3 + $0xd4] sm:$0xf0]  ;;  %v10711_v38 = vor.u32 %v11492_v12, %v10710_v53  ;;  %v10575_v3 = vor.u32 %v11458_v51, %v10574_v9  ;;  %v11430_v58 = vld [vmem:[%s16301_s4 + $0xc] sm:$0xf]  ;;  %v10623_v50 = vor.u32 %v11470_v63, %v10622_v47 }
 0x6bc   : > { %6489 = vst [vmem:[#allocation3 + $0x38] sm:$0xff] %v6481_v22  ;;  %v10599_v5 = vor.u32 %v11464_v14, %v10598_v35  ;;  %v11488_v19 = vld [vmem:[#allocation3 + $0x194] sm:$0xf0]  ;;  %v10472_v18 = vld [vmem:[%s16301_s4 + $0x18] sm:$0xf0]  ;;  %v10687_v22 = vor.u32 %v11486_v56, %v10686_v17 }
 0x6bd   : > { %v10695_v49 = vor.u32 %v11488_v19, %v10694_v16  ;;  %v11432_v25 = vld [vmem:[%s16301_s4 + $0x14] sm:$0xf0]  ;;  %v11483_v35 = vld [vmem:[#allocation3 + $0x174] sm:$0xf]  ;;  %v10616_v19 = vld [vmem:[#allocation3 + $0xf8] sm:$0xf0] }
 0x6be   : > { %7541 = vmatpush.bf16.msra.mxu1 %v10599_v5  ;;  %7562 = vmatpush.bf16.msra.mxu2 %v10647_v43  ;;  %v6575_v61 = vpop.permute.xlu1 %6574  ;;  %v6587_v48 = vpop.permute.xlu0 %6586  ;;  %v11499_v53 = vld [vmem:[#allocation3 + $0x1f4] sm:$0xf]  ;;  %v11440_v12 = vld [vmem:[#allocation3 + $0x14] sm:$0xf0]  ;;  %v10683_v39 = vor.u32 %v11483_v35, %v10680_v62  ;;  %v10502_v5 = vld [vmem:[#allocation3 + $0x10] sm:$0xf] }
 0x6bf   : > { %7581 = vmatpush.bf16.msra.mxu3 %v10711_v38  ;;  %v6589_v30 = vrot.slane %v6575_v61, 4  ;;  %v6595_v33 = vrot.slane %v6587_v48, 4  ;;  %v10747_v38 = vor.u32 %v11499_v53, %v10744_v6  ;;  %v10672_v43 = vld [vmem:[#allocation3 + $0x168] sm:$0xf0]  ;;  %v11481_v48 = vld [vmem:[#allocation3 + $0x164] sm:$0xf] }
 0x6c0   : > { %v10656_v36 = vld [vmem:[#allocation3 + $0x148] sm:$0xf0]  ;;  %v11449_v9 = vld [vmem:[#allocation3 + $0x64] sm:$0xf]  ;;  %v10600_v35 = vld [vmem:[#allocation3 + $0xd8] sm:$0xf0] }
 0x6c1   : > { %v6596_v8 = vsel %vm6472_vm0, %v6588_v10, %v6589_v30  ;;  %v6603_v4 = vsel %vm6472_vm0, %v6594_v57, %v6595_v33  ;;  %v16151_v10 = vor.u32 %v11432_v25, %v10470_v31  ;;  %v10503_v57 = vor.u32 %v11440_v12, %v10502_v5  ;;  %v11438_v30 = vld [vmem:[#allocation3 + $0x4] sm:$0xf0]  ;;  %v10720_v40 = vld [vmem:[#allocation3 + $0x1c8] sm:$0xf0]  ;;  %v11477_v47 = vld [vmem:[#allocation3 + $0x144] sm:$0xf] }
 0x6c2   : > { %v6598_v44 = vsel %vm6597_vm15, %v16335_v55, %v6596_v8  ;;  %v6604_v42 = vsel %vm6597_vm15, %v16336_v37, %v6603_v4  ;;  %7542 = vmatpush.bf16.msra.mxu1 %v10591_v15  ;;  %7563 = vmatpush.bf16.msra.mxu2 %v10639_v32  ;;  %v11472_v21 = vld [vmem:[#allocation3 + $0x114] sm:$0xf0]  ;;  %v16153_v37 = vor.u32 %v11430_v58, %v10472_v18  ;;  %v10462_v15 = vld [vmem:[%s16301_s4] sm:$0xf]  ;;  %v11431_v32 = vld [vmem:[%s16301_s4 + $0xc] sm:$0xf0] }
 0x6c3   : > { %6609 = vst [vmem:[#allocation3 + $0x80] sm:$0xff] %v6598_v44  ;;  %7582 = vmatpush.bf16.msra.mxu3 %v10703_v11  ;;  %v11444_v41 = vld [vmem:[#allocation3 + $0x34] sm:$0xf0]  ;;  %v10631_v52 = vor.u32 %v11472_v21, %v10630_v29  ;;  %v10675_v33 = vor.u32 %v11481_v48, %v10672_v43  ;;  %v10664_v8 = vld [vmem:[#allocation3 + $0x158] sm:$0xf0]  ;;  %v10495_v11 = vor.u32 %v11438_v30, %v10494_v60 }
 0x6c4   : > { %6612 = vst [vmem:[#allocation3 + $0x98] sm:$0xff] %v6604_v42  ;;  %v10519_v34 = vor.u32 %v11444_v41, %v10518_v1  ;;  %v10728_v4 = vld [vmem:[#allocation3 + $0x1d8] sm:$0xf0]  ;;  %v11451_v1 = vld [vmem:[#allocation3 + $0x74] sm:$0xf]  ;;  %v16163_v21 = vor.u32 %v11431_v32, %v10462_v15  ;;  %v10667_v20 = vor.u32 %v11479_v2, %v10664_v8  ;;  %v10659_v62 = vor.u32 %v11477_v47, %v10656_v36 }
 0x6c5   : > { %v10544_v44 = vld [vmem:[#allocation3 + $0x68] sm:$0xf0]  ;;  %v10555_v42 = vor.u32 %v11451_v1, %v10552_v46  ;;  %v11495_v29 = vld [vmem:[#allocation3 + $0x1d4] sm:$0xf]  ;;  %v11429_v41 = vld [vmem:[%s16301_s4 + $0x4] sm:$0xf] }
 0x6c6   : > { %7524 = vmatpush.bf16.msra.mxu0 %v10519_v34  ;;  %7543 = vmatpush.bf16.msra.mxu1 %v10583_v59  ;;  %v6579_v28 = vpop.permute.xlu0 %6578  ;;  %v10464_v59 = vld [vmem:[%s16301_s4 + $0x10] sm:$0xf0]  ;;  %v11493_v63 = vld [vmem:[#allocation3 + $0x1c4] sm:$0xf]  ;;  %v10608_v56 = vld [vmem:[#allocation3 + $0xe8] sm:$0xf0] }
 0x6c7   : > { %7564 = vmatpush.bf16.msra.mxu2 %v10631_v52  ;;  %7583 = vmatpush.bf16.msra.mxu3 %v10695_v49  ;;  %v6591_v13 = vrot.slane %v6579_v28, 4  ;;  %v10731_v52 = vor.u32 %v11495_v29, %v10728_v4  ;;  %v11467_v49 = vld [vmem:[#allocation3 + $0xf4] sm:$0xf]  ;;  %v10547_v28 = vor.u32 %v11449_v9, %v10544_v44  ;;  %v16172_v17 = vor.u32 %v11429_v41, %v10464_v59  ;;  %v11465_v6 = vld [vmem:[#allocation3 + $0xe4] sm:$0xf] }
 0x6c8   : > { %v10619_v51 = vor.u32 %v11467_v49, %v10616_v19  ;;  %v10648_v31 = vld [vmem:[#allocation3 + $0x138] sm:$0xf0]  ;;  %v10611_v25 = vor.u32 %v11465_v6, %v10608_v56  ;;  %v10486_v58 = vld [vmem:[%s16301_s4 + $0x28] sm:$0xf]  ;;  %v11436_v18 = vld [vmem:[%s16301_s4 + $0x34] sm:$0xf0] }
 0x6c9   : > { %v6599_v26 = vsel %vm6472_vm0, %v6590_v23, %v6591_v13  ;;  %v10723_v23 = vor.u32 %v11493_v63, %v10720_v40  ;;  %v10536_v13 = vld [vmem:[#allocation3 + $0x58] sm:$0xf0]  ;;  %v16187_v5 = vor.u32 %v11436_v18, %v10486_v58  ;;  %v11463_v43 = vld [vmem:[#allocation3 + $0xd4] sm:$0xf]  ;;  %v10640_v24 = vld [vmem:[#allocation3 + $0x128] sm:$0xf0] }
 0x6ca   : > { %v6600_v14 = vsel %vm6597_vm15, %v6577_v7, %v6599_v26  ;;  %7525 = vmatpush.bf16.msra.mxu0 %v10511_v54  ;;  %7544 = vmatpush.bf16.msra.mxu1 %v10575_v3  ;;  %v10558_v7 = vld [vmem:[#allocation3 + $0x80] sm:$0xf]  ;;  %v10712_v54 = vld [vmem:[#allocation3 + $0x1b8] sm:$0xf0]  ;;  %v11447_v3 = vld [vmem:[#allocation3 + $0x54] sm:$0xf] }
 0x6cb   : > { %6610 = vst [vmem:[#allocation3 + $0x88] sm:$0xff] %v6600_v14  ;;  %7565 = vmatpush.bf16.msra.mxu2 %v10623_v50  ;;  %7584 = vmatpush.bf16.msra.mxu3 %v10687_v22  ;;  %v11456_v55 = vld [vmem:[#allocation3 + $0x94] sm:$0xf0]  ;;  %v10539_v26 = vor.u32 %v11447_v3, %v10536_v13  ;;  %v11475_v50 = vld [vmem:[#allocation3 + $0x134] sm:$0xf] }
 0x6cc   : > { %v10567_v61 = vor.u32 %v11456_v55, %v10566_v27  ;;  %v11491_v22 = vld [vmem:[#allocation3 + $0x1b4] sm:$0xf]  ;;  %v10651_v53 = vor.u32 %v11475_v50, %v10648_v31  ;;  %v10528_v14 = vld [vmem:[#allocation3 + $0x48] sm:$0xf0]  ;;  %v11445_v55 = vld [vmem:[#allocation3 + $0x44] sm:$0xf] }
 0x6cd   : > { %v10715_v12 = vor.u32 %v11491_v22, %v10712_v54  ;;  %v10704_v27 = vld [vmem:[#allocation3 + $0x1a8] sm:$0xf0]  ;;  %v11473_v48 = vld [vmem:[#allocation3 + $0x124] sm:$0xf]  ;;  %v10520_v15 = vld [vmem:[#allocation3 + $0x38] sm:$0xf0] }
 0x6ce   : > { %7526 = vmatpush.bf16.msra.mxu0 %v10503_v57  ;;  %7545 = vmatpush.bf16.msra.mxu1 %v10567_v61  ;;  %v10603_v57 = vor.u32 %v11463_v43, %v10600_v35  ;;  %v10531_v61 = vor.u32 %v11445_v55, %v10528_v14  ;;  %v11489_v0 = vld [vmem:[#allocation3 + $0x1a4] sm:$0xf]  ;;  %v10478_v32 = vld [vmem:[%s16301_s4 + $0x20] sm:$0xf]  ;;  %v11435_v60 = vld [vmem:[%s16301_s4 + $0x2c] sm:$0xf0] }
 0x6cf   : > { %7634 = vmatpush.bf16.msrb.mxu2 %v10683_v39  ;;  %7653 = vmatpush.bf16.msrb.mxu3 %v10747_v38  ;;  %v11434_v39 = vld [vmem:[%s16301_s4 + $0x2c] sm:$0xf]  ;;  %v10488_v38 = vld [vmem:[%s16301_s4 + $0x38] sm:$0xf0]  ;;  %v10707_v46 = vor.u32 %v11489_v0, %v10704_v27  ;;  %v11461_v8 = vld [vmem:[#allocation3 + $0xc4] sm:$0xf]  ;;  %v10479_v19 = vor.u32 %v11435_v60, %v10478_v32 }
 0x6d0   : > { %7566 = vmatmul.bf16.vlgmr.msra.gmra.mxu2 %v16151_v10  ;;  %7585 = vmatmul.bf16.vlgmr.msra.gmra.mxu3 %v16153_v37  ;;  %v16189_v30 = vor.u32 %v11434_v39, %v10488_v38  ;;  %v10632_v4 = vld [vmem:[#allocation3 + $0x118] sm:$0xf0]  ;;  %v11443_v1 = vld [vmem:[#allocation3 + $0x34] sm:$0xf]  ;;  %v10624_v49 = vld [vmem:[#allocation3 + $0x108] sm:$0xf0] }
 0x6d1   : > { %v10523_v44 = vor.u32 %v11443_v1, %v10520_v15  ;;  %v11487_v29 = vld [vmem:[#allocation3 + $0x194] sm:$0xf]  ;;  %v10584_v41 = vld [vmem:[#allocation3 + $0xb8] sm:$0xf0]  ;;  %v10688_v36 = vld [vmem:[#allocation3 + $0x188] sm:$0xf0] }
 0x6d2   : > { %7527 = vmatpush.bf16.msra.mxu0 %v10495_v11  ;;  %v11454_v34 = vld [vmem:[#allocation3 + $0x84] sm:$0xf0]  ;;  %v10696_v11 = vld [vmem:[#allocation3 + $0x198] sm:$0xf0]  ;;  %v10480_v59 = vld [vmem:[%s16301_s4 + $0x30] sm:$0xf0] }
 0x6d3   : > { %7635 = vmatpush.bf16.msrb.mxu2 %v10675_v33  ;;  %7654 = vmatpush.bf16.msrb.mxu3 %v10739_v45  ;;  %v10559_v16 = vor.u32 %v11454_v34, %v10558_v7  ;;  %v10592_v33 = vld [vmem:[#allocation3 + $0xc8] sm:$0xf0]  ;;  %v10643_v45 = vor.u32 %v11473_v48, %v10640_v24  ;;  %v11433_v34 = vld [vmem:[%s16301_s4 + $0x24] sm:$0xf]  ;;  %v10504_v13 = vld [vmem:[#allocation3 + $0x18] sm:$0xf0] }
 0x6d4   : > { %v10595_v2 = vor.u32 %v11461_v8, %v10592_v33  ;;  %v10512_v7 = vld [vmem:[#allocation3 + $0x28] sm:$0xf0]  ;;  %v11441_v40 = vld [vmem:[#allocation3 + $0x24] sm:$0xf]  ;;  %v10483_v63 = vor.u32 %v11433_v34, %v10480_v59  ;;  %v11439_v31 = vld [vmem:[#allocation3 + $0x14] sm:$0xf] }
 0x6d5   : > { %7528 = vmatmul.bf16.vlgmr.msra.gmra.mxu0 %v16163_v21  ;;  %7546 = vmatpush.bf16.msra.mxu1 %v10559_v16  ;;  %v11459_v16 = vld [vmem:[#allocation3 + $0xb4] sm:$0xf]  ;;  %v11485_v47 = vld [vmem:[#allocation3 + $0x184] sm:$0xf]  ;;  %v10576_v56 = vld [vmem:[#allocation3 + $0xa8] sm:$0xf0]  ;;  %v10507_v3 = vor.u32 %v11439_v31, %v10504_v13 }
 0x6d6   : > { %7596 = vmatpush.bf16.msrb.mxu0 %v10555_v42  ;;  %v11471_v42 = vld [vmem:[#allocation3 + $0x114] sm:$0xf]  ;;  %v10587_v9 = vor.u32 %v11459_v16, %v10584_v41  ;;  %v11457_v6 = vld [vmem:[#allocation3 + $0xa4] sm:$0xf]  ;;  %v7139_v58 = vld [vmem:[%s16302_s5 + $0x18] sm:$0xff] }
 0x6d7   : > { %7636 = vmatpush.bf16.msrb.mxu2 %v10667_v20  ;;  %7655 = vmatpush.bf16.msrb.mxu3 %v10731_v52  ;;  %v10635_v20 = vor.u32 %v11471_v42, %v10632_v4  ;;  %v10699_v52 = vor.u32 %v11487_v29, %v10696_v11  ;;  %v10579_v54 = vor.u32 %v11457_v6, %v10576_v56  ;;  %v10496_v18 = vld [vmem:[#allocation3 + $0x8] sm:$0xf0]  ;;  %v11437_v50 = vld [vmem:[#allocation3 + $0x4] sm:$0xf]  ;;  %v11504_v39 = vld [vmem:[%s16303_s6 + $0x18] sm:$0xff] }
 0x6d8   : > { %7547 = vmatmul.bf16.vlgmr.msra.gmra.mxu1 %v16172_v17  ;;  %7157 = vperm.xlu2 %11577, %v7139_v58   ;;  %v10499_v35 = vor.u32 %v11437_v50, %v10496_v18  ;;  %v11503_v38 = vld [vmem:[%s16303_s6 + $0x10] sm:$0xff]  ;;  %v11502_v27 = vld [vmem:[%s16303_s6 + $0x8] sm:$0xff]  ;;  %v11501_v0 = vld [vmem:[%s16303_s6] sm:$0xff] }
 0x6d9   : > { %7615 = vmatpush.bf16.msrb.mxu1 %v10619_v51  ;;  %v10515_v51 = vor.u32 %v11441_v40, %v10512_v7  ;;  %v11516_v15 = vld [vmem:[%s16303_s6 + $0x78] sm:$0xff] }
 0x6da   : > { %7597 = vmatpush.bf16.msrb.mxu0 %v10547_v28  ;;  %v11469_v28 = vld [vmem:[#allocation3 + $0x104] sm:$0xf] }
 0x6db   : > { %7637 = vmatpush.bf16.msrb.mxu2 %v10659_v62  ;;  %7656 = vmatpush.bf16.msrb.mxu3 %v10723_v23  ;;  %v10627_v62 = vor.u32 %v11469_v28, %v10624_v49  ;;  %v10691_v23 = vor.u32 %v11485_v47, %v10688_v36  ;;  %v11513_v49 = vld [vmem:[%s16303_s6 + $0x60] sm:$0xff] }
 0x6dd   : > { %7616 = vmatpush.bf16.msrb.mxu1 %v10611_v25  ;;  %v10568_v25 = vld [vmem:[#allocation3 + $0x98] sm:$0xf0] }
 0x6de   : > { %7598 = vmatpush.bf16.msrb.mxu0 %v10539_v26  ;;  %v11455_v26 = vld [vmem:[#allocation3 + $0x94] sm:$0xf] }
 0x6df   : > { %7638 = vmatpush.bf16.msrb.mxu2 %v10651_v53  ;;  %7657 = vmatpush.bf16.msrb.mxu3 %v10715_v12  ;;  %v10571_v22 = vor.u32 %v11455_v26, %v10568_v25  ;;  %v10560_v53 = vld [vmem:[#allocation3 + $0x88] sm:$0xf0]  ;;  %v11453_v12 = vld [vmem:[#allocation3 + $0x84] sm:$0xf] }
 0x6e0   : > { %7571 = vmatmul.bf16.gmra.mxu2 %v16187_v5  ;;  %7590 = vmatmul.bf16.gmra.mxu3 %v16189_v30  ;;  %v10563_v14 = vor.u32 %v11453_v12, %v10560_v53 }
 0x6e1   : > { %7617 = vmatpush.bf16.msrb.mxu1 %v10603_v57  ;;  %v16237_v57 = vpop.permute.xlu0 %7142 }
 0x6e2   : > { %7599 = vmatpush.bf16.msrb.mxu0 %v10531_v61 }
 0x6e3   : > { %7639 = vmatpush.bf16.msrb.mxu2 %v10643_v45  ;;  %7658 = vmatpush.bf16.msrb.mxu3 %v10707_v46 }
 0x6e5   : > { %7618 = vmatpush.bf16.msrb.mxu1 %v10595_v2  ;;  %7533 = vmatmul.bf16.gmra.mxu0 %v10479_v19  ;;  %v11515_v2 = vld [vmem:[%s16303_s6 + $0x70] sm:$0xff] }
 0x6e6   : > { %7600 = vmatpush.bf16.msrb.mxu0 %v10523_v44 }
 0x6e7   : > { %7640 = vmatpush.bf16.msrb.mxu2 %v10635_v20  ;;  %7659 = vmatpush.bf16.msrb.mxu3 %v10699_v52  ;;  %v11514_v20 = vld [vmem:[%s16303_s6 + $0x68] sm:$0xff] }
 0x6e8   : > { %7552 = vmatmul.bf16.gmra.mxu1 %v10483_v63 }
 0x6e9   : > { %7619 = vmatpush.bf16.msrb.mxu1 %v10587_v9 }
 0x6ea   : > { %7601 = vmatpush.bf16.msrb.mxu0 %v10515_v51 }
 0x6eb   : > { %7641 = vmatpush.bf16.msrb.mxu2 %v10627_v62  ;;  %7660 = vmatpush.bf16.msrb.mxu3 %v10691_v23 }
 0x6ed   : > { %7620 = vmatpush.bf16.msrb.mxu1 %v10579_v54 }
 0x6ee   : > { %7602 = vmatpush.bf16.msrb.mxu0 %v10507_v3  ;;  %v11511_v3 = vld [vmem:[%s16303_s6 + $0x50] sm:$0xff] }
 0x6ef   : > { %11525 = vmatpush.bf16.msra.mxu3 %v11516_v15 }
 0x6f0   : > { %7642 = vmatmul.bf16.vlgmr.msrb.gmra.mxu2 %v16151_v10  ;;  %7661 = vmatmul.bf16.vlgmr.msrb.gmra.mxu3 %v16153_v37  ;;  %v11508_v10 = vld [vmem:[%s16303_s6 + $0x38] sm:$0xff]  ;;  %v11507_v37 = vld [vmem:[%s16303_s6 + $0x30] sm:$0xff] }
 0x6f1   : > { %7621 = vmatpush.bf16.msrb.mxu1 %v10571_v22  ;;  %11517 = vmatpush.bf16.msra.mxu2 %v11508_v10 }
 0x6f2   : > { %7603 = vmatpush.bf16.msrb.mxu0 %v10499_v35 }
 0x6f3   : > { %11526 = vmatpush.bf16.msra.mxu3 %v11515_v2 }
 0x6f5   : > { %7622 = vmatpush.bf16.msrb.mxu1 %v10563_v14  ;;  %7604 = vmatmul.bf16.vlgmr.msrb.gmra.mxu0 %v16163_v21  ;;  %v11506_v21 = vld [vmem:[%s16303_s6 + $0x28] sm:$0xff] }
 0x6f6   : > { %7852 = vmatpush.bf16.msra.mxu0 %v11508_v10  ;;  %11518 = vmatpush.bf16.msra.mxu2 %v11507_v37  ;;  %v11510_v14 = vld [vmem:[%s16303_s6 + $0x48] sm:$0xff] }
 0x6f7   : > { %11527 = vmatpush.bf16.msra.mxu3 %v11514_v20 }
 0x6f8   : > { %7623 = vmatmul.bf16.vlgmr.msrb.gmra.mxu1 %v16172_v17  ;;  %v11505_v17 = vld [vmem:[%s16303_s6 + $0x20] sm:$0xff] }
 0x6f9   : > { %7871 = vmatpush.bf16.msra.mxu1 %v11516_v15 }
 0x6fa   : > { %7853 = vmatpush.bf16.msra.mxu0 %v11507_v37  ;;  %11519 = vmatpush.bf16.msra.mxu2 %v11506_v21 }
 0x6fb   : > { %11528 = vmatpush.bf16.msra.mxu3 %v11513_v49 }
 0x6fd   : > { %7872 = vmatpush.bf16.msra.mxu1 %v11515_v2 }
 0x6fe   : > { %7854 = vmatpush.bf16.msra.mxu0 %v11506_v21  ;;  %11520 = vmatpush.bf16.msra.mxu2 %v11505_v17 }
 0x700   : > { %7647 = vmatmul.bf16.gmra.mxu2 %v16187_v5  ;;  %7666 = vmatmul.bf16.gmra.mxu3 %v16189_v30  ;;  %v16232_v5 = vpop.permute.xlu1 %7152 }
 0x701   : > { %7873 = vmatpush.bf16.msra.mxu1 %v11514_v20 }
 0x702   : > { %7855 = vmatpush.bf16.msra.mxu0 %v11505_v17  ;;  %11521 = vmatpush.bf16.msra.mxu2 %v11504_v39 }
 0x705   : > { %7609 = vmatmul.bf16.gmra.mxu0 %v10479_v19  ;;  %7874 = vmatpush.bf16.msra.mxu1 %v11513_v49 }
 0x706   : > { %7856 = vmatpush.bf16.msra.mxu0 %v11504_v39  ;;  %11522 = vmatpush.bf16.msra.mxu2 %v11503_v38 }
 0x708   : > { %7628 = vmatmul.bf16.gmra.mxu1 %v10483_v63  ;;  %v16246_v8 = vpop.permute.xlu1 %7147  ;;  %v11512_v63 = vld [vmem:[%s16303_s6 + $0x58] sm:$0xff] }
 0x709   : > { %7875 = vmatpush.bf16.msra.mxu1 %v11512_v63  ;;  %11529 = vmatpush.bf16.msra.mxu3 %v11512_v63 }
 0x70a   : > { %7857 = vmatpush.bf16.msra.mxu0 %v11503_v38  ;;  %11523 = vmatpush.bf16.msra.mxu2 %v11502_v27 }
 0x70d   : > { %7876 = vmatpush.bf16.msra.mxu1 %v11511_v3  ;;  %11530 = vmatpush.bf16.msra.mxu3 %v11511_v3 }
 0x70e   : > { %7858 = vmatpush.bf16.msra.mxu0 %v11502_v27  ;;  %11524 = vmatpush.bf16.msra.mxu2 %v11501_v0 }
 0x711   : > { %7877 = vmatpush.bf16.msra.mxu1 %v11510_v14  ;;  %11531 = vmatpush.bf16.msra.mxu3 %v11510_v14 }
 0x712   : > { %7859 = vmatpush.bf16.msra.mxu0 %v11501_v0 }
 0x732   : > { %v16259_v51 = vpop.permute.xlu2 %7157 }
 0x752   : > { %v7529_v24 = vpop.f32.mrf.mxu0 }
 0x753   : > { %v7567_v43 = vpop.f32.mrf.mxu2  ;;  %v7586_v55 = vpop.f32.mrf.mxu3  ;;  %v7530_v61 = vadd.f32 %v7529_v24, %v16237_v57 }
 0x755   : > { %v7548_v48 = vpop.f32.mrf.mxu1 }
 0x756   : > { %v7549_v30 = vadd.f32 %v7548_v48, %v7530_v61 }
 0x758   : > { %v7568_v33 = vadd.f32 %v7567_v43, %v7549_v30  ;;  %v11509_v43 = vld [vmem:[%s16303_s6 + $0x40] sm:$0xff] }
 0x759   : > { %7878 = vmatpush.bf16.msra.mxu1 %v11509_v43  ;;  %11532 = vmatpush.bf16.msra.mxu3 %v11509_v43 }
 0x75a   : > { %v7531_v46 = vpop.f32.mrf.mxu0  ;;  %v7587_v32 = vadd.f32 %v7586_v55, %v7568_v33 }
 0x75b   : > { %v7569_v45 = vpop.f32.mrf.mxu2  ;;  %v7588_v60 = vpop.f32.mrf.mxu3  ;;  %v7532_v11 = vadd.f32 %v7531_v46, %v16246_v8 }
 0x75c   : > { %v7680_v4 = vmin.f32 %v7587_v32, 0.0  ;;  %vm7672_vm0 = vcmp.gt.f32.partialorder %v7587_v32, 0.0 }
 0x75d   : > { %v7550_v1 = vpop.f32.mrf.mxu1 }
 0x75e   : > { %v7551_v44 = vadd.f32 %v7550_v1, %v7532_v11  ;;  %v7688_v42 = vmul.f32 1.442695, %v7680_v4 }
 0x760   : > { %v7570_v29 = vadd.f32 %v7569_v45, %v7551_v44  ;;  %11642 = vpow2.f32 %v7688_v42 }
 0x762   : > { %v7534_v41 = vpop.f32.mrf.mxu0  ;;  %v7589_v52 = vadd.f32 %v7588_v60, %v7570_v29 }
 0x763   : > { %v7572_v19 = vpop.f32.mrf.mxu2  ;;  %v7591_v7 = vpop.f32.mrf.mxu3  ;;  %v7535_v59 = vadd.f32 %v7534_v41, %v16232_v5 }
 0x764   : > { %v7682_v34 = vmin.f32 %v7589_v52, 0.0  ;;  %vm7674_vm1 = vcmp.gt.f32.partialorder %v7589_v52, 0.0 }
 0x765   : > { %v7553_v16 = vpop.f32.mrf.mxu1 }
 0x766   : > { %v7692_v36 = vmul.f32 1.442695, %v7682_v34  ;;  %v7554_v40 = vadd.f32 %v7553_v16, %v7535_v59  ;;  %v11643_v56 = vpop.eup %11642 }
 0x767   : > { %v10748_v31 = vadd.f32 -1.0, %v11643_v56 }
 0x768   : > { %11644 = vpow2.f32 %v7692_v36  ;;  %v7573_v9 = vadd.f32 %v7572_v19, %v7554_v40 }
 0x769   : > { %v7712_v22 = vsel %vm7672_vm0, %v7587_v32, %v10748_v31 }
 0x76a   : > { %v7536_v47 = vpop.f32.mrf.mxu0  ;;  %v7592_v62 = vadd.f32 %v7591_v7, %v7573_v9 }
 0x76b   : > { %v7574_v28 = vpop.f32.mrf.mxu2  ;;  %v7593_v23 = vpop.f32.mrf.mxu3  ;;  %v7537_v6 = vadd.f32 %v7536_v47, %v16259_v51 }
 0x76c   : > { %v7684_v13 = vmin.f32 %v7592_v62, 0.0  ;;  %vm7676_vm2 = vcmp.gt.f32.partialorder %v7592_v62, 0.0 }
 0x76d   : > { %v7555_v54 = vpop.f32.mrf.mxu1 }
 0x76e   : > { %v11645_v25 = vpop.eup %11644  ;;  %v7556_v58 = vadd.f32 %v7555_v54, %v7537_v6  ;;  %v7696_v26 = vmul.f32 1.442695, %v7684_v13 }
 0x76f   : > { %v10750_v18 = vadd.f32 -1.0, %v11645_v25 }
 0x770   : > { %v7575_v50 = vadd.f32 %v7574_v28, %v7556_v58  ;;  %11646 = vpow2.f32 %v7696_v26 }
 0x771   : > { %v7714_v35 = vsel %vm7674_vm1, %v7589_v52, %v10750_v18 }
 0x772   : > { %v7605_v12 = vpop.f32.mrf.mxu0  ;;  %v7720_v10 = vpack.c.bf16 %v7714_v35, %v7712_v22  ;;  %v7594_v37 = vadd.f32 %v7593_v23, %v7575_v50 }
 0x773   : > { %v7643_v53 = vpop.f32.mrf.mxu2  ;;  %v7662_v21 = vpop.f32.mrf.mxu3  ;;  %v7606_v39 = vadd.f32 %v7605_v12, %v16237_v57 }
 0x774   : > { %v7686_v17 = vmin.f32 %v7594_v37, 0.0  ;;  %7860 = vmatmul.bf16.vlgmr.msra.gmra.mxu0 %v7720_v10  ;;  %vm7678_vm3 = vcmp.gt.f32.partialorder %v7594_v37, 0.0 }
 0x775   : > { %v7624_v38 = vpop.f32.mrf.mxu1 }
 0x776   : > { %v7700_v24 = vmul.f32 1.442695, %v7686_v17  ;;  %v7625_v27 = vadd.f32 %v7624_v38, %v7606_v39  ;;  %v11647_v48 = vpop.eup %11646 }
 0x777   : > { %v10752_v57 = vadd.f32 -1.0, %v11647_v48 }
 0x778   : > { %11648 = vpow2.f32 %v7700_v24  ;;  %v7644_v55 = vadd.f32 %v7643_v53, %v7625_v27 }
 0x779   : > { %v7716_v2 = vsel %vm7676_vm2, %v7592_v62, %v10752_v57 }
 0x77a   : > { %v7607_v61 = vpop.f32.mrf.mxu0  ;;  %v7663_v0 = vadd.f32 %v7662_v21, %v7644_v55 }
 0x77b   : > { %v7645_v30 = vpop.f32.mrf.mxu2  ;;  %v7608_v45 = vadd.f32 %v7607_v61, %v16246_v8  ;;  %v7664_v46 = vpop.f32.mrf.mxu3 }
 0x77c   : > { %v7681_v33 = vmin.f32 %v7663_v0, 0.0  ;;  %vm7673_vm4 = vcmp.gt.f32.partialorder %v7663_v0, 0.0 }
 0x77d   : > { %v7626_v15 = vpop.f32.mrf.mxu1 }
 0x77e   : > { %v11649_v32 = vpop.eup %11648  ;;  %v7627_v60 = vadd.f32 %v7626_v15, %v7608_v45  ;;  %v7690_v11 = vmul.f32 1.442695, %v7681_v33 }
 0x77f   : > { %v10754_v4 = vadd.f32 -1.0, %v11649_v32 }
 0x780   : > { %v7646_v1 = vadd.f32 %v7645_v30, %v7627_v60  ;;  %11650 = vpow2.f32 %v7690_v11 }
 0x781   : > { %v7718_v44 = vsel %vm7678_vm3, %v7594_v37, %v10754_v4 }
 0x782   : > { %v7610_v42 = vpop.f32.mrf.mxu0  ;;  %v7722_v29 = vpack.c.bf16 %v7718_v44, %v7716_v2  ;;  %v7665_v19 = vadd.f32 %v7664_v46, %v7646_v1 }
 0x783   : > { %v7611_v20 = vadd.f32 %v7610_v42, %v16232_v5  ;;  %v7648_v8 = vpop.f32.mrf.mxu2  ;;  %v7667_v59 = vpop.f32.mrf.mxu3 }
 0x784   : > { %v7683_v41 = vmin.f32 %v7665_v19, 0.0  ;;  %7865 = vmatmul.bf16.vlgmr.msra.gmra.mxu2 %v7722_v29  ;;  %vm7675_vm5 = vcmp.gt.f32.partialorder %v7665_v19, 0.0 }
 0x785   : > { %v7629_v52 = vpop.f32.mrf.mxu1 }
 0x786   : > { %v7694_v7 = vmul.f32 1.442695, %v7683_v41  ;;  %v7630_v34 = vadd.f32 %v7629_v52, %v7611_v20  ;;  %v11651_v36 = vpop.eup %11650 }
 0x787   : > { %v10749_v47 = vadd.f32 -1.0, %v11651_v36 }
 0x788   : > { %11652 = vpow2.f32 %v7694_v7  ;;  %v7649_v16 = vadd.f32 %v7648_v8, %v7630_v34 }
 0x789   : > { %v7713_v31 = vsel %vm7673_vm4, %v7663_v0, %v10749_v47 }
 0x78a   : > { %v7612_v49 = vpop.f32.mrf.mxu0  ;;  %v7668_v40 = vadd.f32 %v7667_v59, %v7649_v16 }
 0x78b   : > { %v7613_v28 = vadd.f32 %v7612_v49, %v16259_v51  ;;  %v7650_v5 = vpop.f32.mrf.mxu2  ;;  %v7669_v3 = vpop.f32.mrf.mxu3 }
 0x78c   : > { %v7685_v9 = vmin.f32 %v7668_v40, 0.0  ;;  %vm7677_vm6 = vcmp.gt.f32.partialorder %v7668_v40, 0.0 }
 0x78d   : > { %v7631_v63 = vpop.f32.mrf.mxu1 }
 0x78e   : > { %v11653_v56 = vpop.eup %11652  ;;  %v7632_v62 = vadd.f32 %v7631_v63, %v7613_v28  ;;  %v7698_v13 = vmul.f32 1.442695, %v7685_v9 }
 0x78f   : > { %v10751_v23 = vadd.f32 -1.0, %v11653_v56 }
 0x790   : > { %v7651_v6 = vadd.f32 %v7650_v5, %v7632_v62  ;;  %11654 = vpow2.f32 %v7698_v13 }
 0x791   : > { %v7715_v54 = vsel %vm7675_vm5, %v7665_v19, %v10751_v23 }
 0x792   : > { %v7721_v25 = vpack.c.bf16 %v7715_v54, %v7713_v31  ;;  %v7670_v58 = vadd.f32 %v7669_v3, %v7651_v6 }
 0x794   : > { %v7687_v18 = vmin.f32 %v7670_v58, 0.0  ;;  %7879 = vmatmul.bf16.vlgmr.msra.gmra.mxu1 %v7721_v25  ;;  %vm7679_vm7 = vcmp.gt.f32.partialorder %v7670_v58, 0.0 }
 0x796   : > { %v7702_v51 = vmul.f32 1.442695, %v7687_v18  ;;  %v11655_v26 = vpop.eup %11654 }
 0x797   : > { %v10753_v50 = vadd.f32 -1.0, %v11655_v26 }
 0x798   : > { %11656 = vpow2.f32 %v7702_v51 }
 0x799   : > { %v7717_v53 = vsel %vm7677_vm6, %v7668_v40, %v10753_v50 }
 0x79e   : > { %v11657_v22 = vpop.eup %11656 }
 0x79f   : > { %v10755_v35 = vadd.f32 -1.0, %v11657_v22 }
 0x7a1   : > { %v7719_v12 = vsel %vm7679_vm7, %v7670_v58, %v10755_v35 }
 0x7a2   : > { %v7723_v14 = vpack.c.bf16 %v7719_v12, %v7717_v53 }
 0x7a4   : > { %7884 = vmatmul.bf16.vlgmr.msra.gmra.mxu3 %v7723_v14 }
 0x7f1   : > { %v7861_v10 = vpop.f32.mrf.mxu0 }
 0x7f9   : > { %v7863_v17 = vpop.f32.mrf.mxu0 }
 0x807   : > { %v7866_v43 = vpop.f32.mrf.mxu2 }
 0x80f   : > { %v7868_v55 = vpop.f32.mrf.mxu2 }
 0x811   : > { %v7880_v37 = vpop.f32.mrf.mxu1 }
 0x812   : > { %v7881_v21 = vadd.f32 %v7880_v37, %v7861_v10 }
 0x814   : > { %7890 = vst [vmem:[%s1058_s21] sm:$0xff] %v7881_v21 }
 0x819   : > { %v7882_v39 = vpop.f32.mrf.mxu1 }
 0x81a   : > { %v7883_v38 = vadd.f32 %v7882_v39, %v7863_v17 }
 0x81b   : > { %v7937_v0 = vld [vmem:[%s1058_s21] sm:$0xff] (%p11768_p5) }
 0x81c   : > { %7891 = vst [vmem:[%s1058_s21 + $0x8] sm:$0xff] %v7883_v38 }
 0x81d   : > { %7938 = vst [vmem:[%s7902_s23] sm:$0xff] (%p11768_p5), %v7937_v0 }
 0x823   : > { %v7939_v30 = vld [vmem:[%s1058_s21 + $0x8] sm:$0xff] (%p11768_p5) }
 0x824   : > { %7940 = vst [vmem:[%s7902_s23 + $0x10] sm:$0xff] (%p11768_p5), %v7939_v30 }
 0x827   : > { %v7885_v24 = vpop.f32.mrf.mxu3 }
 0x828   : > { %v7886_v27 = vadd.f32 %v7885_v24, %v7866_v43 }
 0x82a   : > { %7892 = vst [vmem:[%s1058_s21 + $0x10] sm:$0xff] %v7886_v27 }
 0x82e   : > { %7900 = sbr.rel (!%p11768_p5) target bundleno = 2107 (0x83b), region = 75 }
 0x82f   : > { %v7887_v61 = vpop.f32.mrf.mxu3 }
 0x830   : > { %v7888_v48 = vadd.f32 %v7887_v61, %v7868_v55 }
 0x831   : > { %v7941_v33 = vld [vmem:[%s1058_s21 + $0x10] sm:$0xff] (%p11768_p5) }
 0x832   : > { %7893 = vst [vmem:[%s1058_s21 + $0x18] sm:$0xff] %v7888_v48 }
 0x833   : > { %7942 = vst [vmem:[%s7902_s23 + $0x20] sm:$0xff] %v7941_v33 }
 0x839   : > { %v7943_v45 = vld [vmem:[%s1058_s21 + $0x18] sm:$0xff] }
 0x83a   : > { %7944 = vst [vmem:[%s7902_s23 + $0x30] sm:$0xff] %v7943_v45 }
 0x83b PF: > { %p14_p10 = scmp.ge.s32.totalorder %s11755_s28, 4   ;;  %s16337_s24 = smov %s11676_s25 }
 0x83c   : > { %s16338_s25 = smov %s11766_s8  ;;  %s16339_s26 = smov %s11755_s28 }
 0x83d   :  { %16 = sbr.rel (!%p14_p10) target bundleno = 2 (0x2), region = 144 }

</bundles_post_ra>
